<compile_context>
chip_gen: v7x
topology: tpu7x:2x2x1
jax: 0.10.0
libtpu: 0.0.40
codegen_flags: <defaults>
</compile_context>

<pallas_src>
import functools

import jax
import jax.numpy as jnp
from jax import lax
from jax.experimental import pallas as pl
from jax.experimental.pallas import tpu as pltpu


_LN_EPS = 1e-5
_ROW_TILE = 512                      # rows per grid step for row-tiled kernels
_VMEM_LIMIT = 48 * 1024 * 1024       # safe on v5e/v6e (128 MiB) and v7x (64 MiB)


def _row_tile(M):
    return M if M <= _ROW_TILE else _ROW_TILE


def _cparams(sem):
    return pltpu.CompilerParams(dimension_semantics=sem,
                                vmem_limit_bytes=_VMEM_LIMIT)


# ----------------------------------------------------------------------------------
# Generic fused (LN?) -> linear -> activation -> gate -> mask -> residual kernel.
# Supports channel-major input (input_cm) and transposed output (transpose_out).
# ----------------------------------------------------------------------------------


def _fused_linear_kernel(*refs, activation, has_ln, has_gate, gate_on_input,
                         gate_sigmoid, has_mask, has_res, input_cm, transpose_out):
    it = iter(refs)
    x_ref = next(it)
    if has_ln:
        ln_g_ref = next(it)
        ln_b_ref = next(it)
    w_ref = next(it)
    b_ref = next(it)
    if has_gate:
        gate_ref = next(it)
    if has_mask:
        mask_ref = next(it)
    if has_res:
        res_ref = next(it)
    o_ref = next(it)

    x = x_ref[...].astype(jnp.float32)
    if input_cm:
        x = x.T                                        # [K, TM] -> [TM, K]
    if has_ln:
        mean = jnp.mean(x, axis=-1, keepdims=True)
        var = jnp.mean(jnp.square(x - mean), axis=-1, keepdims=True)
        x = (x - mean) * lax.rsqrt(var + _LN_EPS)
        x = x * ln_g_ref[...] + ln_b_ref[...]
    if has_gate and gate_on_input:
        g = gate_ref[...].astype(jnp.float32)
        if gate_sigmoid:
            g = jax.nn.sigmoid(g)
        x = x * g
    y = jnp.dot(x.astype(jnp.bfloat16), w_ref[...],
                preferred_element_type=jnp.float32)
    y = y + b_ref[...].astype(jnp.float32)
    if activation == "relu":
        y = jnp.maximum(y, 0.0)
    elif activation == "sigmoid":
        y = jax.nn.sigmoid(y)
    if has_gate and not gate_on_input:
        g = gate_ref[...].astype(jnp.float32)
        if gate_sigmoid:
            g = jax.nn.sigmoid(g)
        y = y * g
    if has_mask:
        y = y * mask_ref[...]
    if has_res:
        y = y + res_ref[...].astype(jnp.float32)
    if transpose_out:
        y = y.T
    o_ref[...] = y.astype(o_ref.dtype)


def fused_linear(x, w, b=None, *, ln=None, activation="none",
                 gate=None, gate_on_input=False, gate_sigmoid=False,
                 scale_mask=None, residual=None, input_cm=False,
                 transpose_out=False, out_dtype=jnp.float32):
    """act(LN?(x) [*gate_in] @ w + b) [*gate_out] [*mask] [+residual]."""
    if input_cm:
        K, M = x.shape
        x2 = x
        lead = None
    else:
        K = x.shape[-1]
        lead = x.shape[:-1]
        x2 = x.reshape(-1, K)
        M = x2.shape[0]
    n_out = w.shape[1]
    TM = _row_tile(M)
    grid = (pl.cdiv(M, TM),)

    w_b = w.astype(jnp.bfloat16)
    if b is None:
        b = jnp.zeros((n_out,), jnp.float32)

    args = [x2]
    if input_cm:
        in_specs = [pl.BlockSpec((K, TM), lambda i: (0, i))]
    else:
        in_specs = [pl.BlockSpec((TM, K), lambda i: (i, 0))]
    if ln is not None:
        g_ln, b_ln = ln
        ln_spec = pl.BlockSpec((1, K), lambda i: (0, 0))
        args += [g_ln.reshape(1, K), b_ln.reshape(1, K)]
        in_specs += [ln_spec, ln_spec]
    args += [w_b, b.reshape(1, n_out).astype(jnp.float32)]
    in_specs += [pl.BlockSpec((K, n_out), lambda i: (0, 0)),
                 pl.BlockSpec((1, n_out), lambda i: (0, 0))]
    if gate is not None:
        gdim = K if gate_on_input else n_out
        args.append(gate.reshape(-1, gdim))
        in_specs.append(pl.BlockSpec((TM, gdim), lambda i: (i, 0)))
    if scale_mask is not None:
        args.append(scale_mask.reshape(-1, 1).astype(jnp.float32))
        in_specs.append(pl.BlockSpec((TM, 1), lambda i: (i, 0)))
    if residual is not None:
        args.append(residual.reshape(-1, n_out))
        in_specs.append(pl.BlockSpec((TM, n_out), lambda i: (i, 0)))

    if transpose_out:
        out_shape = jax.ShapeDtypeStruct((n_out, M), out_dtype)
        out_spec = pl.BlockSpec((n_out, TM), lambda i: (0, i))
    else:
        out_shape = jax.ShapeDtypeStruct((M, n_out), out_dtype)
        out_spec = pl.BlockSpec((TM, n_out), lambda i: (i, 0))

    kernel = functools.partial(
        _fused_linear_kernel, activation=activation, has_ln=ln is not None,
        has_gate=gate is not None, gate_on_input=gate_on_input,
        gate_sigmoid=gate_sigmoid, has_mask=scale_mask is not None,
        has_res=residual is not None, input_cm=input_cm,
        transpose_out=transpose_out)

    out = pl.pallas_call(
        kernel, out_shape=out_shape, grid=grid,
        in_specs=in_specs, out_specs=out_spec,
        compiler_params=_cparams(("parallel",)),
    )(*args)
    if transpose_out or input_cm:
        return out
    return out.reshape(lead + (n_out,))


# ----------------------------------------------------------------------------------
# Fully fused transition: LN -> w1 -> relu -> w2 -> mask -> +residual, one HBM pass.
# ----------------------------------------------------------------------------------


def _transition_kernel(x_ref, ln_g_ref, ln_b_ref, w1_ref, b1_ref, w2_ref, b2_ref,
                       mask_ref, o_ref):
    x0 = x_ref[...].astype(jnp.float32)
    mean = jnp.mean(x0, axis=-1, keepdims=True)
    var = jnp.mean(jnp.square(x0 - mean), axis=-1, keepdims=True)
    xn = (x0 - mean) * lax.rsqrt(var + _LN_EPS) * ln_g_ref[...] + ln_b_ref[...]
    h = jnp.dot(xn.astype(jnp.bfloat16), w1_ref[...],
                preferred_element_type=jnp.float32) + b1_ref[...]
    h = jnp.maximum(h, 0.0)
    y = jnp.dot(h.astype(jnp.bfloat16), w2_ref[...],
                preferred_element_type=jnp.float32) + b2_ref[...]
    y = y * mask_ref[...] + x0
    o_ref[...] = y.astype(o_ref.dtype)


def transition(x, mask, p):
    lead = x.shape[:-1]
    C = x.shape[-1]
    x2 = x.reshape(-1, C)
    M = x2.shape[0]
    Hn = p["w1"]["w"].shape[1]
    TM = _row_tile(M)
    out = pl.pallas_call(
        _transition_kernel,
        out_shape=jax.ShapeDtypeStruct((M, C), jnp.float32),
        grid=(pl.cdiv(M, TM),),
        in_specs=[pl.BlockSpec((TM, C), lambda i: (i, 0)),
                  pl.BlockSpec((1, C), lambda i: (0, 0)),
                  pl.BlockSpec((1, C), lambda i: (0, 0)),
                  pl.BlockSpec((C, Hn), lambda i: (0, 0)),
                  pl.BlockSpec((1, Hn), lambda i: (0, 0)),
                  pl.BlockSpec((Hn, C), lambda i: (0, 0)),
                  pl.BlockSpec((1, C), lambda i: (0, 0)),
                  pl.BlockSpec((TM, 1), lambda i: (i, 0))],
        out_specs=pl.BlockSpec((TM, C), lambda i: (i, 0)),
        compiler_params=_cparams(("parallel",)),
    )(x2, p["ln"]["g"].reshape(1, C), p["ln"]["b"].reshape(1, C),
      p["w1"]["w"].astype(jnp.bfloat16), p["w1"]["b"].reshape(1, Hn),
      p["w2"]["w"].astype(jnp.bfloat16), p["w2"]["b"].reshape(1, C),
      mask.reshape(M, 1).astype(jnp.float32))
    return out.reshape(lead + (C,))


# ----------------------------------------------------------------------------------
# Fused attention projection: LN(x) @ [Wq|Wk|Wv|Wg|(Wbias)] -> q,k,v,g (bf16, channels
# last) and optionally the bias head projection already transposed to [H, M] (bf16).
# ----------------------------------------------------------------------------------


def _attn_proj_kernel(x_ref, ln_g_ref, ln_b_ref, w_ref, b_ref, *out_refs,
                      hd, n_bias):
    x = x_ref[...].astype(jnp.float32)
    mean = jnp.mean(x, axis=-1, keepdims=True)
    var = jnp.mean(jnp.square(x - mean), axis=-1, keepdims=True)
    x = (x - mean) * lax.rsqrt(var + _LN_EPS) * ln_g_ref[...] + ln_b_ref[...]
    y = jnp.dot(x.astype(jnp.bfloat16), w_ref[...],
                preferred_element_type=jnp.float32) + b_ref[...]
    q_ref, k_ref, v_ref, g_ref = out_refs[:4]
    q_ref[...] = y[:, 0:hd].astype(q_ref.dtype)
    k_ref[...] = y[:, hd:2 * hd].astype(k_ref.dtype)
    v_ref[...] = y[:, 2 * hd:3 * hd].astype(v_ref.dtype)
    g_ref[...] = y[:, 3 * hd:4 * hd].astype(g_ref.dtype)
    if n_bias > 0:
        out_refs[4][...] = y[:, 4 * hd:4 * hd + n_bias].T.astype(out_refs[4].dtype)


def attn_project(x2, ln, w_cat, b_cat, hd, n_bias):
    M, K = x2.shape
    n_out = w_cat.shape[1]
    TM = _row_tile(M)
    out_shapes = [jax.ShapeDtypeStruct((M, hd), jnp.bfloat16)] * 4
    out_specs = [pl.BlockSpec((TM, hd), lambda i: (i, 0))] * 4
    if n_bias > 0:
        out_shapes.append(jax.ShapeDtypeStruct((n_bias, M), jnp.bfloat16))
        out_specs.append(pl.BlockSpec((n_bias, TM), lambda i: (0, i)))
    return pl.pallas_call(
        functools.partial(_attn_proj_kernel, hd=hd, n_bias=n_bias),
        out_shape=tuple(out_shapes),
        grid=(pl.cdiv(M, TM),),
        in_specs=[pl.BlockSpec((TM, K), lambda i: (i, 0)),
                  pl.BlockSpec((1, K), lambda i: (0, 0)),
                  pl.BlockSpec((1, K), lambda i: (0, 0)),
                  pl.BlockSpec((K, n_out), lambda i: (0, 0)),
                  pl.BlockSpec((1, n_out), lambda i: (0, 0))],
        out_specs=tuple(out_specs),
        compiler_params=_cparams(("parallel",)),
    )(x2, ln[0].reshape(1, K), ln[1].reshape(1, K),
      w_cat.astype(jnp.bfloat16), b_cat.reshape(1, n_out))


# ----------------------------------------------------------------------------------
# Attention kernel: grid (batch rows, query tiles), in-kernel head split, bf16 bias.
# ----------------------------------------------------------------------------------


def _attention_kernel(q_ref, k_ref, v_ref, tb_ref, mb_ref, o_ref, *, scale, H, D):
    q = q_ref[0]                          # [TQ, H*D] bf16
    k = k_ref[0]                          # [N,  H*D] bf16
    v = v_ref[0]
    mb = mb_ref[0]                        # [1, N] f32
    outs = []
    for h in range(H):
        qh = q[:, h * D:(h + 1) * D]
        kh = k[:, h * D:(h + 1) * D]
        vh = v[:, h * D:(h + 1) * D]
        logits = lax.dot_general(qh, kh, (((1,), (1,)), ((), ())),
                                 preferred_element_type=jnp.float32)   # [TQ, N]
        logits = logits * scale + tb_ref[h].astype(jnp.float32) + mb
        mx = jnp.max(logits, axis=-1, keepdims=True)
        p = jnp.exp(logits - mx)
        p = p * pl.reciprocal(jnp.sum(p, axis=-1, keepdims=True), approx=True)
        outs.append(jnp.dot(p.astype(jnp.bfloat16), vh,
                            preferred_element_type=jnp.float32))
    o = jnp.concatenate(outs, axis=-1)    # [TQ, H*D]
    o_ref[0] = o.astype(o_ref.dtype)


def attention_pallas(q, k, v, tri_bias, mask_bias, scale, H, D):
    """q,k,v: [B, N, H*D] bf16; tri_bias: [H, N, N] bf16 (shared over B);
    mask_bias: [B, 1, N] f32.  Returns [B, N, H*D] bf16."""
    B, N, hd = q.shape
    TQ = N if N <= 256 else 256
    grid = (B, pl.cdiv(N, TQ))
    return pl.pallas_call(
        functools.partial(_attention_kernel, scale=scale, H=H, D=D),
        out_shape=jax.ShapeDtypeStruct((B, N, hd), jnp.bfloat16),
        grid=grid,
        in_specs=[pl.BlockSpec((1, TQ, hd), lambda b, qi: (b, qi, 0)),
                  pl.BlockSpec((1, N, hd), lambda b, qi: (b, 0, 0)),
                  pl.BlockSpec((1, N, hd), lambda b, qi: (b, 0, 0)),
                  pl.BlockSpec((H, TQ, N), lambda b, qi: (0, qi, 0)),
                  pl.BlockSpec((1, 1, N), lambda b, qi: (b, 0, 0))],
        out_specs=pl.BlockSpec((1, TQ, hd), lambda b, qi: (b, qi, 0)),
        compiler_params=_cparams(("parallel", "parallel")),
    )(q, k, v, tri_bias, mask_bias)


# ----------------------------------------------------------------------------------
# Triangle multiplication: fused 5-way projection (channel-major a/b outputs) +
# channel-batched triangle matmul (channel-major in/out, bf16).
# ----------------------------------------------------------------------------------


def _trimul_proj_kernel(z_ref, ln_g_ref, ln_b_ref, w_ref, b_ref, m_ref,
                        a_ref, b_out_ref, g_ref, *, ch):
    x = z_ref[...].astype(jnp.float32)
    mean = jnp.mean(x, axis=-1, keepdims=True)
    var = jnp.mean(jnp.square(x - mean), axis=-1, keepdims=True)
    x = (x - mean) * lax.rsqrt(var + _LN_EPS) * ln_g_ref[...] + ln_b_ref[...]
    y = jnp.dot(x.astype(jnp.bfloat16), w_ref[...],
                preferred_element_type=jnp.float32) + b_ref[...]
    mask = m_ref[...]
    a = mask * y[:, 0:ch] * jax.nn.sigmoid(y[:, ch:2 * ch])
    b = mask * y[:, 2 * ch:3 * ch] * jax.nn.sigmoid(y[:, 3 * ch:4 * ch])
    a_ref[...] = a.T.astype(a_ref.dtype)                 # channel-major [ch, TM]
    b_out_ref[...] = b.T.astype(b_out_ref.dtype)
    g_ref[...] = jax.nn.sigmoid(y[:, 4 * ch:]).astype(g_ref.dtype)


def trimul_project(z, pair_mask, p, ch):
    n1, n2, cz = z.shape
    M = n1 * n2
    z2 = z.reshape(M, cz)
    w_cat = jnp.concatenate([p["ap"]["w"], p["ag"]["w"], p["bp"]["w"],
                             p["bg"]["w"], p["g"]["w"]], axis=1).astype(jnp.bfloat16)
    b_cat = jnp.concatenate([p["ap"]["b"], p["ag"]["b"], p["bp"]["b"],
                             p["bg"]["b"], p["g"]["b"]])
    n_out = w_cat.shape[1]
    TM = _row_tile(M)
    mask2 = pair_mask.reshape(M, 1).astype(jnp.float32)

    a_cm, b_cm, g = pl.pallas_call(
        functools.partial(_trimul_proj_kernel, ch=ch),
        out_shape=(jax.ShapeDtypeStruct((ch, M), jnp.bfloat16),
                   jax.ShapeDtypeStruct((ch, M), jnp.bfloat16),
                   jax.ShapeDtypeStruct((M, cz), jnp.bfloat16)),
        grid=(pl.cdiv(M, TM),),
        in_specs=[pl.BlockSpec((TM, cz), lambda i: (i, 0)),
                  pl.BlockSpec((1, cz), lambda i: (0, 0)),
                  pl.BlockSpec((1, cz), lambda i: (0, 0)),
                  pl.BlockSpec((cz, n_out), lambda i: (0, 0)),
                  pl.BlockSpec((1, n_out), lambda i: (0, 0)),
                  pl.BlockSpec((TM, 1), lambda i: (i, 0))],
        out_specs=(pl.BlockSpec((ch, TM), lambda i: (0, i)),
                   pl.BlockSpec((ch, TM), lambda i: (0, i)),
                   pl.BlockSpec((TM, cz), lambda i: (i, 0))),
        compiler_params=_cparams(("parallel",)),
    )(z2, p["ln_in"]["g"].reshape(1, cz), p["ln_in"]["b"].reshape(1, cz),
      w_cat, b_cat.reshape(1, n_out), mask2)
    return a_cm, b_cm, g


def _trimul_mul_kernel(a_ref, b_ref, o_ref, *, outgoing):
    a = a_ref[...]                                        # [CB, N, N] bf16
    b = b_ref[...]
    if outgoing:
        # x[c,i,j] = sum_k a[c,i,k] * b[c,j,k]
        x = jnp.einsum("cik,cjk->cij", a, b, preferred_element_type=jnp.float32)
    else:
        # x[c,i,j] = sum_k a[c,k,i] * b[c,k,j]
        a = jnp.swapaxes(a, 1, 2)
        x = jnp.einsum("cik,ckj->cij", a, b, preferred_element_type=jnp.float32)
    o_ref[...] = x.astype(o_ref.dtype)


def triangle_multiply_pallas(a_cm, b_cm, n, outgoing):
    C, M = a_cm.shape
    a3 = a_cm.reshape(C, n, n)
    b3 = b_cm.reshape(C, n, n)
    cb = max(1, min(C, (4 * 1024 * 1024) // max(1, n * n * 2)))
    spec = pl.BlockSpec((cb, n, n), lambda c: (c, 0, 0))
    out = pl.pallas_call(
        functools.partial(_trimul_mul_kernel, outgoing=outgoing),
        out_shape=jax.ShapeDtypeStruct((C, n, n), jnp.bfloat16),
        grid=(pl.cdiv(C, cb),),
        in_specs=[spec, spec],
        out_specs=spec,
        compiler_params=_cparams(("parallel",)),
    )(a3, b3)
    return out.reshape(C, M)


# ----------------------------------------------------------------------------------
# Outer-product-mean combine: out[i,j,:] = (b[j,:] @ t[i,:,:] + bias) / (eps + mask)
# + residual z.  Batched over TB output rows; mask normalization computed in-kernel.
# ----------------------------------------------------------------------------------


def _opm_combine_kernel(t_ref, bmat_ref, bias_ref, mrow_ref, mcol_ref, res_ref,
                        o_ref, *, eps):
    t = t_ref[...].astype(jnp.bfloat16)                   # [TB, c, cz]
    bmat = bmat_ref[...].astype(jnp.bfloat16)             # [N, c]
    TB = t.shape[0]
    bmat_b = jnp.broadcast_to(bmat[None], (TB,) + bmat.shape)
    out = jnp.einsum("bnq,bqz->bnz", bmat_b, t,
                     preferred_element_type=jnp.float32)  # [TB, N, cz]
    out = out + bias_ref[...].astype(jnp.float32)
    inv = 1.0 / (eps + mrow_ref[...] * mcol_ref[...])     # [TB, N]
    out = out * inv[:, :, None]
    out = out + res_ref[...].astype(jnp.float32)
    o_ref[...] = out.astype(o_ref.dtype)


# ----------------------------- module forwards -----------------------------------


def seq_attention(m, z, seq_mask, p, cfg):
    H, d = cfg["no_heads_seq"], cfg["c_hidden_seq_att"]
    inf = cfg["inf"]
    N = m.shape[0]
    hd = H * d
    mha_p = p["mha"]

    # pair bias: LN(z) @ Wz, emitted already transposed / lane-dense: [H, N*N] bf16
    tri_bias = fused_linear(z, p["wz"]["w"], p["wz"]["b"],
                            ln=(p["ln_z"]["g"], p["ln_z"]["b"]),
                            transpose_out=True,
                            out_dtype=jnp.bfloat16).reshape(H, N, N)

    w_cat = jnp.concatenate([mha_p["wq"]["w"], mha_p["wk"]["w"],
                             mha_p["wv"]["w"], mha_p["g"]["w"]], axis=1)
    b_cat = jnp.concatenate([mha_p["wq"]["b"], mha_p["wk"]["b"],
                             mha_p["wv"]["b"], mha_p["g"]["b"]])
    q, k, v, g = attn_project(m, (p["ln_m"]["g"], p["ln_m"]["b"]),
                              w_cat, b_cat, hd, 0)

    mask_bias = (inf * (seq_mask - 1.0)).reshape(1, 1, N).astype(jnp.float32)
    o = attention_pallas(q[None], k[None], v[None], tri_bias, mask_bias,
                         d ** -0.5, H, d)[0]              # [N, hd] bf16

    # output projection with sigmoid(gate) on the input and residual add of m
    return fused_linear(o, mha_p["o"]["w"], mha_p["o"]["b"],
                        gate=g, gate_on_input=True, gate_sigmoid=True, residual=m)


def outer_product_mean(m, z, seq_mask, p, cfg, eps=1e-3):
    c = cfg["c_hidden_opm"]
    cz = z.shape[-1]
    N = m.shape[0]

    w_ab = jnp.concatenate([p["a"]["w"], p["b"]["w"]], axis=1)
    b_ab = jnp.concatenate([p["a"]["b"], p["b"]["b"]])
    ab = fused_linear(m, w_ab, b_ab, ln=(p["ln"]["g"], p["ln"]["b"]))
    ab = ab * seq_mask[:, None]
    a, b = ab[:, :c], ab[:, c:]

    # t[i, q, :] = sum_p a[i, p] * W_o[p*c + q, :]
    w3 = p["o"]["w"].reshape(c, c * cz)
    t = fused_linear(a, w3, out_dtype=jnp.bfloat16).reshape(N, c, cz)

    TB = N if N <= 8 else 8
    out = pl.pallas_call(
        functools.partial(_opm_combine_kernel, eps=eps),
        out_shape=jax.ShapeDtypeStruct((N, N, cz), jnp.float32),
        grid=(pl.cdiv(N, TB),),
        in_specs=[pl.BlockSpec((TB, c, cz), lambda i: (i, 0, 0)),
                  pl.BlockSpec((N, c), lambda i: (0, 0)),
                  pl.BlockSpec((1, cz), lambda i: (0, 0)),
                  pl.BlockSpec((TB, 1), lambda i: (i, 0)),
                  pl.BlockSpec((1, N), lambda i: (0, 0)),
                  pl.BlockSpec((TB, N, cz), lambda i: (i, 0, 0))],
        out_specs=pl.BlockSpec((TB, N, cz), lambda i: (i, 0, 0)),
        compiler_params=_cparams(("parallel",)),
    )(t, b.astype(jnp.float32), p["o"]["b"].reshape(1, cz),
      seq_mask.reshape(N, 1).astype(jnp.float32),
      seq_mask.reshape(1, N).astype(jnp.float32), z)
    return out   # residual z already included


def triangle_multiplication(z, pair_mask, p, cfg, outgoing):
    ch = cfg["c_hidden_mul"]
    n1, n2, cz = z.shape
    M = n1 * n2
    a_cm, b_cm, g = trimul_project(z, pair_mask, p, ch)       # [ch,M],[ch,M],[M,cz]
    x_cm = triangle_multiply_pallas(a_cm, b_cm, n1, outgoing)  # [ch, M] bf16
    # LN_out + linear_z + output gate + residual add of z, channel-major input
    out = fused_linear(x_cm, p["z"]["w"], p["z"]["b"],
                       ln=(p["ln_out"]["g"], p["ln_out"]["b"]),
                       gate=g, gate_on_input=False, gate_sigmoid=False,
                       residual=z.reshape(M, cz), input_cm=True)
    return out.reshape(n1, n2, cz)


def triangle_attention(z, pair_mask, p, cfg, starting):
    H, d = cfg["no_heads_pair"], cfg["c_hidden_pair_att"]
    inf = cfg["inf"]
    if not starting:
        z = jnp.swapaxes(z, 0, 1)
        pair_mask = jnp.swapaxes(pair_mask, 0, 1)
    I, J, cz = z.shape
    hd = H * d
    mha_p = p["mha"]

    # one fused projection off LN(z): q | k | v | gate | triangle-bias (transposed)
    w_cat = jnp.concatenate([mha_p["wq"]["w"], mha_p["wk"]["w"], mha_p["wv"]["w"],
                             mha_p["g"]["w"], p["wtri"]["w"]], axis=1)
    b_cat = jnp.concatenate([mha_p["wq"]["b"], mha_p["wk"]["b"], mha_p["wv"]["b"],
                             mha_p["g"]["b"], p["wtri"]["b"]])
    z2 = z.reshape(I * J, cz)
    q, k, v, g, bias_t = attn_project(z2, (p["ln"]["g"], p["ln"]["b"]),
                                      w_cat, b_cat, hd, H)
    tri_bias = bias_t.reshape(H, I, J)                      # shared across batch rows

    mask_bias = (inf * (pair_mask - 1.0)).reshape(I, 1, J).astype(jnp.float32)
    o = attention_pallas(q.reshape(I, J, hd), k.reshape(I, J, hd),
                         v.reshape(I, J, hd), tri_bias, mask_bias,
                         d ** -0.5, H, d)                   # [I, J, hd] bf16

    out = fused_linear(o.reshape(I * J, hd), mha_p["o"]["w"], mha_p["o"]["b"],
                       gate=g, gate_on_input=True, gate_sigmoid=True,
                       residual=z2).reshape(I, J, cz)
    if not starting:
        out = jnp.swapaxes(out, 0, 1)
    return out


def evoformer_block(m, z, seq_mask, pair_mask, p, cfg):
    # dropout layers are identity at inference; residual adds are fused in-kernel.
    m = seq_attention(m, z, seq_mask, p["seq_att"], cfg)
    m = transition(m, seq_mask, p["seq_trans"])
    z = outer_product_mean(m, z, seq_mask, p["opm"], cfg)
    z = triangle_multiplication(z, pair_mask, p["tri_mul_out"], cfg, outgoing=True)
    z = triangle_multiplication(z, pair_mask, p["tri_mul_in"], cfg, outgoing=False)
    z = triangle_attention(z, pair_mask, p["tri_att_start"], cfg, starting=True)
    z = triangle_attention(z, pair_mask, p["tri_att_end"], cfg, starting=False)
    z = transition(z, pair_mask, p["pair_trans"])
    return m, z


def evoformer_stack(params, m, z, seq_mask, pair_mask, cfg):
    for p in params["blocks"]:
        m, z = evoformer_block(m, z, seq_mask, pair_mask, p, cfg)
    return m, z


# ----------------------------- parameter init ------------------------------------


class KeyGen:
    def __init__(self, key):
        self.key = key

    def __call__(self):
        self.key, sub = jax.random.split(self.key)
        return sub


def _init_linear(kg, d_in, d_out, bias=True, scale=0.1):
    w = jax.random.normal(kg(), (d_in, d_out), jnp.float32) * scale
    if bias:
        b = jax.random.normal(kg(), (d_out,), jnp.float32) * scale
    else:
        b = jnp.zeros((d_out,), jnp.float32)
    return {"w": w, "b": b}


def _init_ln(c):
    return {"g": jnp.ones((c,), jnp.float32), "b": jnp.zeros((c,), jnp.float32)}


def _init_mha(kg, c_in, c_hidden, no_heads):
    hc = no_heads * c_hidden
    return {"wq": _init_linear(kg, c_in, hc, bias=False),
            "wk": _init_linear(kg, c_in, hc, bias=False),
            "wv": _init_linear(kg, c_in, hc, bias=False),
            "g": _init_linear(kg, c_in, hc),
            "o": _init_linear(kg, hc, c_in)}


def _init_trimul(kg, c_z, c_hidden):
    return {"ln_in": _init_ln(c_z),
            "ap": _init_linear(kg, c_z, c_hidden),
            "ag": _init_linear(kg, c_z, c_hidden),
            "bp": _init_linear(kg, c_z, c_hidden),
            "bg": _init_linear(kg, c_z, c_hidden),
            "ln_out": _init_ln(c_hidden),
            "z": _init_linear(kg, c_hidden, c_z),
            "g": _init_linear(kg, c_z, c_z)}


def _init_triatt(kg, c_z, c_hidden, no_heads):
    return {"ln": _init_ln(c_z),
            "wtri": _init_linear(kg, c_z, no_heads, bias=False),
            "mha": _init_mha(kg, c_z, c_hidden, no_heads)}


def _init_block(kg, cfg):
    c_m, c_z, n = cfg["c_m"], cfg["c_z"], cfg["transition_n"]
    return {
        "seq_att": {"ln_m": _init_ln(c_m), "ln_z": _init_ln(c_z),
                    "wz": _init_linear(kg, c_z, cfg["no_heads_seq"], bias=False),
                    "mha": _init_mha(kg, c_m, cfg["c_hidden_seq_att"],
                                     cfg["no_heads_seq"])},
        "seq_trans": {"ln": _init_ln(c_m),
                      "w1": _init_linear(kg, c_m, n * c_m),
                      "w2": _init_linear(kg, n * c_m, c_m)},
        "opm": {"ln": _init_ln(c_m),
                "a": _init_linear(kg, c_m, cfg["c_hidden_opm"]),
                "b": _init_linear(kg, c_m, cfg["c_hidden_opm"]),
                "o": _init_linear(kg, cfg["c_hidden_opm"] ** 2, c_z)},
        "tri_mul_out": _init_trimul(kg, c_z, cfg["c_hidden_mul"]),
        "tri_mul_in": _init_trimul(kg, c_z, cfg["c_hidden_mul"]),
        "tri_att_start": _init_triatt(kg, c_z, cfg["c_hidden_pair_att"],
                                      cfg["no_heads_pair"]),
        "tri_att_end": _init_triatt(kg, c_z, cfg["c_hidden_pair_att"],
                                    cfg["no_heads_pair"]),
        "pair_trans": {"ln": _init_ln(c_z),
                       "w1": _init_linear(kg, c_z, n * c_z),
                       "w2": _init_linear(kg, n * c_z, c_z)},
    }


# ----------------------------- main -----------------------------------------------


if __name__ == "__main__":
    cfg = dict(c_m=16, c_z=8, c_hidden_seq_att=8, c_hidden_opm=8, c_hidden_mul=8,
               c_hidden_pair_att=8, no_heads_seq=2, no_heads_pair=2, no_blocks=2,
               transition_n=2, inf=1e9)
    N = 8

    key = jax.random.PRNGKey(0)
    k_m, k_z, k_p = jax.random.split(key, 3)
    m = jax.random.normal(k_m, (N, cfg["c_m"]), jnp.float32)
    z = jax.random.normal(k_z, (N, N, cfg["c_z"]), jnp.float32)
    seq_mask = jnp.ones((N,), jnp.float32).at[-1].set(0.0)
    pair_mask = seq_mask[:, None] * seq_mask[None, :]

    kg = KeyGen(k_p)
    params = {"blocks": [_init_block(kg, cfg) for _ in range(cfg["no_blocks"])]}

    fwd = jax.jit(functools.partial(evoformer_stack, cfg=cfg))
    m_out, z_out = fwd(params, m, z, seq_mask, pair_mask)
    jax.block_until_ready((m_out, z_out))

    assert m_out.shape == (N, cfg["c_m"])
    assert z_out.shape == (N, N, cfg["c_z"])
    assert bool(jnp.all(jnp.isfinite(m_out))) and bool(jnp.all(jnp.isfinite(z_out)))
    print("KERNEL_OK")
</pallas_src>

<mosaic_0001>
module attributes {stable_mosaic.version = 11 : i64} {
  func.func @_attn_proj_kernel(%arg0: i32, %arg1: memref<8x16xf32, #tpu.memory_space<vmem>>, %arg2: memref<1x16xf32, #tpu.memory_space<vmem>>, %arg3: memref<1x16xf32, #tpu.memory_space<vmem>>, %arg4: memref<16x64xbf16, #tpu.memory_space<vmem>>, %arg5: memref<1x64xf32, #tpu.memory_space<vmem>>, %arg6: memref<8x16xbf16, #tpu.memory_space<vmem>>, %arg7: memref<8x16xbf16, #tpu.memory_space<vmem>>, %arg8: memref<8x16xbf16, #tpu.memory_space<vmem>>, %arg9: memref<8x16xbf16, #tpu.memory_space<vmem>>) attributes {dimension_semantics = [#tpu.dimension_semantics<parallel>], iteration_bounds = array<i64: 1>, scalar_prefetch = 0 : i64, scratch_operands = 0 : i64, tpu.core_type = #tpu.core_type<tc>, window_params = [{transform_indices = @transform_0, window_bounds = array<i64: 8, 16>}, {pipeline_mode = #tpu.pipeline_mode<synchronous>, transform_indices = @transform_1, window_bounds = array<i64: 1, 16>}, {pipeline_mode = #tpu.pipeline_mode<synchronous>, transform_indices = @transform_2, window_bounds = array<i64: 1, 16>}, {pipeline_mode = #tpu.pipeline_mode<synchronous>, transform_indices = @transform_3, window_bounds = array<i64: 16, 64>}, {pipeline_mode = #tpu.pipeline_mode<synchronous>, transform_indices = @transform_4, window_bounds = array<i64: 1, 64>}, {transform_indices = @transform_5, window_bounds = array<i64: 8, 16>}, {transform_indices = @transform_6, window_bounds = array<i64: 8, 16>}, {transform_indices = @transform_7, window_bounds = array<i64: 8, 16>}, {transform_indices = @transform_8, window_bounds = array<i64: 8, 16>}]} {
    %c0 = arith.constant 0 : index
    %c0_0 = arith.constant 0 : index
    %0 = vector.load %arg1[%c0, %c0_0] : memref<8x16xf32, #tpu.memory_space<vmem>>, vector<8x16xf32>
    %cst = arith.constant dense<0.000000e+00> : vector<8xf32>
    %1 = vector.multi_reduction <add>, %0, %cst [1] : vector<8x16xf32> to vector<8xf32>
    %2 = vector.shape_cast %1 : vector<8xf32> to vector<8x1xf32>
    %cst_1 = arith.constant 1.600000e+01 : f32
    %3 = vector.broadcast %cst_1 : f32 to vector<8x1xf32>
    %4 = arith.divf %2, %3 : vector<8x1xf32>
    %5 = vector.broadcast %4 : vector<8x1xf32> to vector<8x16xf32>
    %6 = arith.subf %0, %5 : vector<8x16xf32>
    %7 = arith.mulf %6, %6 : vector<8x16xf32>
    %cst_2 = arith.constant dense<0.000000e+00> : vector<8xf32>
    %8 = vector.multi_reduction <add>, %7, %cst_2 [1] : vector<8x16xf32> to vector<8xf32>
    %9 = vector.shape_cast %8 : vector<8xf32> to vector<8x1xf32>
    %cst_3 = arith.constant 1.600000e+01 : f32
    %10 = vector.broadcast %cst_3 : f32 to vector<8x1xf32>
    %11 = arith.divf %9, %10 : vector<8x1xf32>
    %12 = vector.broadcast %4 : vector<8x1xf32> to vector<8x16xf32>
    %13 = arith.subf %0, %12 : vector<8x16xf32>
    %cst_4 = arith.constant 9.99999974E-6 : f32
    %14 = vector.broadcast %cst_4 : f32 to vector<8x1xf32>
    %15 = arith.addf %11, %14 : vector<8x1xf32>
    %16 = math.rsqrt %15 : vector<8x1xf32>
    %17 = vector.broadcast %16 : vector<8x1xf32> to vector<8x16xf32>
    %18 = arith.mulf %13, %17 : vector<8x16xf32>
    %c0_5 = arith.constant 0 : index
    %c0_6 = arith.constant 0 : index
    %19 = vector.load %arg2[%c0_5, %c0_6] : memref<1x16xf32, #tpu.memory_space<vmem>>, vector<1x16xf32>
    %20 = vector.broadcast %19 : vector<1x16xf32> to vector<8x16xf32>
    %21 = arith.mulf %18, %20 : vector<8x16xf32>
    %c0_7 = arith.constant 0 : index
    %c0_8 = arith.constant 0 : index
    %22 = vector.load %arg3[%c0_7, %c0_8] : memref<1x16xf32, #tpu.memory_space<vmem>>, vector<1x16xf32>
    %23 = vector.broadcast %22 : vector<1x16xf32> to vector<8x16xf32>
    %24 = arith.addf %21, %23 : vector<8x16xf32>
    %25 = arith.truncf %24 : vector<8x16xf32> to vector<8x16xbf16>
    %c0_9 = arith.constant 0 : index
    %c0_10 = arith.constant 0 : index
    %26 = vector.load %arg4[%c0_9, %c0_10] : memref<16x64xbf16, #tpu.memory_space<vmem>>, vector<16x64xbf16>
    %cst_11 = arith.constant dense<0.000000e+00> : vector<8x64xf32>
    %27 = tpu.matmul %25, %26, %cst_11 {dimension_numbers = #tpu.dot_dimension_numbers<[1], [0], [0], [1], [0, 0, 1, 1], [], []>} : vector<8x16xbf16>, vector<16x64xbf16>, vector<8x64xf32> -> vector<8x64xf32>
    %c0_12 = arith.constant 0 : index
    %c0_13 = arith.constant 0 : index
    %28 = vector.load %arg5[%c0_12, %c0_13] : memref<1x64xf32, #tpu.memory_space<vmem>>, vector<1x64xf32>
    %29 = vector.broadcast %28 : vector<1x64xf32> to vector<8x64xf32>
    %30 = arith.addf %27, %29 : vector<8x64xf32>
    %31 = vector.extract_strided_slice %30 {offsets = [0, 0], sizes = [8, 16], strides = [1, 1]} : vector<8x64xf32> to vector<8x16xf32>
    %32 = arith.truncf %31 : vector<8x16xf32> to vector<8x16xbf16>
    %c0_14 = arith.constant 0 : index
    %c0_15 = arith.constant 0 : index
    %33 = vector.load %arg6[%c0_14, %c0_15] : memref<8x16xbf16, #tpu.memory_space<vmem>>, vector<8x16xbf16>
    tpu.vector_store %arg6[%c0_14, %c0_15], %32 {strides = array<i32>} : memref<8x16xbf16, #tpu.memory_space<vmem>>, vector<8x16xbf16>,
    %34 = vector.extract_strided_slice %30 {offsets = [0, 16], sizes = [8, 16], strides = [1, 1]} : vector<8x64xf32> to vector<8x16xf32>
    %35 = arith.truncf %34 : vector<8x16xf32> to vector<8x16xbf16>
    %c0_16 = arith.constant 0 : index
    %c0_17 = arith.constant 0 : index
    %36 = vector.load %arg7[%c0_16, %c0_17] : memref<8x16xbf16, #tpu.memory_space<vmem>>, vector<8x16xbf16>
    tpu.vector_store %arg7[%c0_16, %c0_17], %35 {strides = array<i32>} : memref<8x16xbf16, #tpu.memory_space<vmem>>, vector<8x16xbf16>,
    %37 = vector.extract_strided_slice %30 {offsets = [0, 32], sizes = [8, 16], strides = [1, 1]} : vector<8x64xf32> to vector<8x16xf32>
    %38 = arith.truncf %37 : vector<8x16xf32> to vector<8x16xbf16>
    %c0_18 = arith.constant 0 : index
    %c0_19 = arith.constant 0 : index
    %39 = vector.load %arg8[%c0_18, %c0_19] : memref<8x16xbf16, #tpu.memory_space<vmem>>, vector<8x16xbf16>
    tpu.vector_store %arg8[%c0_18, %c0_19], %38 {strides = array<i32>} : memref<8x16xbf16, #tpu.memory_space<vmem>>, vector<8x16xbf16>,
    %40 = vector.extract_strided_slice %30 {offsets = [0, 48], sizes = [8, 16], strides = [1, 1]} : vector<8x64xf32> to vector<8x16xf32>
    %41 = arith.truncf %40 : vector<8x16xf32> to vector<8x16xbf16>
    %c0_20 = arith.constant 0 : index
    %c0_21 = arith.constant 0 : index
    %42 = vector.load %arg9[%c0_20, %c0_21] : memref<8x16xbf16, #tpu.memory_space<vmem>>, vector<8x16xbf16>
    tpu.vector_store %arg9[%c0_20, %c0_21], %41 {strides = array<i32>} : memref<8x16xbf16, #tpu.memory_space<vmem>>, vector<8x16xbf16>,
    return
  }
  func.func @transform_0(%arg0: i32) -> (i32, i32) {
    %c0_i32 = arith.constant 0 : i32
    %c0_i32_0 = arith.constant 0 : i32
    return %arg0, %c0_i32 : i32, i32
  }
  func.func @transform_1(%arg0: i32) -> (i32, i32) {
    %c0_i32 = arith.constant 0 : i32
    %c0_i32_0 = arith.constant 0 : i32
    %c0_i32_1 = arith.constant 0 : i32
    return %c0_i32, %c0_i32_0 : i32, i32
  }
  func.func @transform_2(%arg0: i32) -> (i32, i32) {
    %c0_i32 = arith.constant 0 : i32
    %c0_i32_0 = arith.constant 0 : i32
    %c0_i32_1 = arith.constant 0 : i32
    return %c0_i32, %c0_i32_0 : i32, i32
  }
  func.func @transform_3(%arg0: i32) -> (i32, i32) {
    %c0_i32 = arith.constant 0 : i32
    %c0_i32_0 = arith.constant 0 : i32
    %c0_i32_1 = arith.constant 0 : i32
    return %c0_i32, %c0_i32_0 : i32, i32
  }
  func.func @transform_4(%arg0: i32) -> (i32, i32) {
    %c0_i32 = arith.constant 0 : i32
    %c0_i32_0 = arith.constant 0 : i32
    %c0_i32_1 = arith.constant 0 : i32
    return %c0_i32, %c0_i32_0 : i32, i32
  }
  func.func @transform_5(%arg0: i32) -> (i32, i32) {
    %c0_i32 = arith.constant 0 : i32
    %c0_i32_0 = arith.constant 0 : i32
    return %arg0, %c0_i32 : i32, i32
  }
  func.func @transform_6(%arg0: i32) -> (i32, i32) {
    %c0_i32 = arith.constant 0 : i32
    %c0_i32_0 = arith.constant 0 : i32
    return %arg0, %c0_i32 : i32, i32
  }
  func.func @transform_7(%arg0: i32) -> (i32, i32) {
    %c0_i32 = arith.constant 0 : i32
    %c0_i32_0 = arith.constant 0 : i32
    return %arg0, %c0_i32 : i32, i32
  }
  func.func @transform_8(%arg0: i32) -> (i32, i32) {
    %c0_i32 = arith.constant 0 : i32
    %c0_i32_0 = arith.constant 0 : i32
    return %arg0, %c0_i32 : i32, i32
  }
}

module attributes {stable_mosaic.version = 11 : i64} {
  func.func @_fused_linear_kernel(%arg0: i32, %arg1: memref<64x8xf32, #tpu.memory_space<vmem>>, %arg2: memref<1x8xf32, #tpu.memory_space<vmem>>, %arg3: memref<1x8xf32, #tpu.memory_space<vmem>>, %arg4: memref<8x2xbf16, #tpu.memory_space<vmem>>, %arg5: memref<1x2xf32, #tpu.memory_space<vmem>>, %arg6: memref<2x64xbf16, #tpu.memory_space<vmem>>) attributes {dimension_semantics = [#tpu.dimension_semantics<parallel>], iteration_bounds = array<i64: 1>, scalar_prefetch = 0 : i64, scratch_operands = 0 : i64, tpu.core_type = #tpu.core_type<tc>, window_params = [{transform_indices = @transform_0, window_bounds = array<i64: 64, 8>}, {pipeline_mode = #tpu.pipeline_mode<synchronous>, transform_indices = @transform_1, window_bounds = array<i64: 1, 8>}, {pipeline_mode = #tpu.pipeline_mode<synchronous>, transform_indices = @transform_2, window_bounds = array<i64: 1, 8>}, {pipeline_mode = #tpu.pipeline_mode<synchronous>, transform_indices = @transform_3, window_bounds = array<i64: 8, 2>}, {pipeline_mode = #tpu.pipeline_mode<synchronous>, transform_indices = @transform_4, window_bounds = array<i64: 1, 2>}, {transform_indices = @transform_5, window_bounds = array<i64: 2, 64>}]} {
    %c0 = arith.constant 0 : index
    %c0_0 = arith.constant 0 : index
    %0 = vector.load %arg1[%c0, %c0_0] : memref<64x8xf32, #tpu.memory_space<vmem>>, vector<64x8xf32>
    %cst = arith.constant dense<0.000000e+00> : vector<64xf32>
    %1 = vector.multi_reduction <add>, %0, %cst [1] : vector<64x8xf32> to vector<64xf32>
    %2 = vector.shape_cast %1 : vector<64xf32> to vector<64x1xf32>
    %cst_1 = arith.constant 8.000000e+00 : f32
    %3 = vector.broadcast %cst_1 : f32 to vector<64x1xf32>
    %4 = arith.divf %2, %3 : vector<64x1xf32>
    %5 = vector.broadcast %4 : vector<64x1xf32> to vector<64x8xf32>
    %6 = arith.subf %0, %5 : vector<64x8xf32>
    %7 = arith.mulf %6, %6 : vector<64x8xf32>
    %cst_2 = arith.constant dense<0.000000e+00> : vector<64xf32>
    %8 = vector.multi_reduction <add>, %7, %cst_2 [1] : vector<64x8xf32> to vector<64xf32>
    %9 = vector.shape_cast %8 : vector<64xf32> to vector<64x1xf32>
    %cst_3 = arith.constant 8.000000e+00 : f32
    %10 = vector.broadcast %cst_3 : f32 to vector<64x1xf32>
    %11 = arith.divf %9, %10 : vector<64x1xf32>
    %12 = vector.broadcast %4 : vector<64x1xf32> to vector<64x8xf32>
    %13 = arith.subf %0, %12 : vector<64x8xf32>
    %cst_4 = arith.constant 9.99999974E-6 : f32
    %14 = vector.broadcast %cst_4 : f32 to vector<64x1xf32>
    %15 = arith.addf %11, %14 : vector<64x1xf32>
    %16 = math.rsqrt %15 : vector<64x1xf32>
    %17 = vector.broadcast %16 : vector<64x1xf32> to vector<64x8xf32>
    %18 = arith.mulf %13, %17 : vector<64x8xf32>
    %c0_5 = arith.constant 0 : index
    %c0_6 = arith.constant 0 : index
    %19 = vector.load %arg2[%c0_5, %c0_6] : memref<1x8xf32, #tpu.memory_space<vmem>>, vector<1x8xf32>
    %20 = vector.broadcast %19 : vector<1x8xf32> to vector<64x8xf32>
    %21 = arith.mulf %18, %20 : vector<64x8xf32>
    %c0_7 = arith.constant 0 : index
    %c0_8 = arith.constant 0 : index
    %22 = vector.load %arg3[%c0_7, %c0_8] : memref<1x8xf32, #tpu.memory_space<vmem>>, vector<1x8xf32>
    %23 = vector.broadcast %22 : vector<1x8xf32> to vector<64x8xf32>
    %24 = arith.addf %21, %23 : vector<64x8xf32>
    %25 = arith.truncf %24 : vector<64x8xf32> to vector<64x8xbf16>
    %c0_9 = arith.constant 0 : index
    %c0_10 = arith.constant 0 : index
    %26 = vector.load %arg4[%c0_9, %c0_10] : memref<8x2xbf16, #tpu.memory_space<vmem>>, vector<8x2xbf16>
    %cst_11 = arith.constant dense<0.000000e+00> : vector<64x2xf32>
    %27 = tpu.matmul %25, %26, %cst_11 {dimension_numbers = #tpu.dot_dimension_numbers<[1], [0], [0], [1], [0, 0, 1, 1], [], []>} : vector<64x8xbf16>, vector<8x2xbf16>, vector<64x2xf32> -> vector<64x2xf32>
    %c0_12 = arith.constant 0 : index
    %c0_13 = arith.constant 0 : index
    %28 = vector.load %arg5[%c0_12, %c0_13] : memref<1x2xf32, #tpu.memory_space<vmem>>, vector<1x2xf32>
    %29 = vector.broadcast %28 : vector<1x2xf32> to vector<64x2xf32>
    %30 = arith.addf %27, %29 : vector<64x2xf32>
    %31 = tpu.transpose %30, [1, 0] : vector<64x2xf32> -> vector<2x64xf32>
    %32 = arith.truncf %31 : vector<2x64xf32> to vector<2x64xbf16>
    %c0_14 = arith.constant 0 : index
    %c0_15 = arith.constant 0 : index
    %33 = vector.load %arg6[%c0_14, %c0_15] : memref<2x64xbf16, #tpu.memory_space<vmem>>, vector<2x64xbf16>
    tpu.vector_store %arg6[%c0_14, %c0_15], %32 {strides = array<i32>} : memref<2x64xbf16, #tpu.memory_space<vmem>>, vector<2x64xbf16>,
    return
  }
  func.func @transform_0(%arg0: i32) -> (i32, i32) {
    %c0_i32 = arith.constant 0 : i32
    %c0_i32_0 = arith.constant 0 : i32
    return %arg0, %c0_i32 : i32, i32
  }
  func.func @transform_1(%arg0: i32) -> (i32, i32) {
    %c0_i32 = arith.constant 0 : i32
    %c0_i32_0 = arith.constant 0 : i32
    %c0_i32_1 = arith.constant 0 : i32
    return %c0_i32, %c0_i32_0 : i32, i32
  }
  func.func @transform_2(%arg0: i32) -> (i32, i32) {
    %c0_i32 = arith.constant 0 : i32
    %c0_i32_0 = arith.constant 0 : i32
    %c0_i32_1 = arith.constant 0 : i32
    return %c0_i32, %c0_i32_0 : i32, i32
  }
  func.func @transform_3(%arg0: i32) -> (i32, i32) {
    %c0_i32 = arith.constant 0 : i32
    %c0_i32_0 = arith.constant 0 : i32
    %c0_i32_1 = arith.constant 0 : i32
    return %c0_i32, %c0_i32_0 : i32, i32
  }
  func.func @transform_4(%arg0: i32) -> (i32, i32) {
    %c0_i32 = arith.constant 0 : i32
    %c0_i32_0 = arith.constant 0 : i32
    %c0_i32_1 = arith.constant 0 : i32
    return %c0_i32, %c0_i32_0 : i32, i32
  }
  func.func @transform_5(%arg0: i32) -> (i32, i32) {
    %c0_i32 = arith.constant 0 : i32
    %c0_i32_0 = arith.constant 0 : i32
    return %c0_i32, %arg0 : i32, i32
  }
}

module attributes {stable_mosaic.version = 11 : i64} {
  func.func @_attention_kernel(%arg0: i32, %arg1: i32, %arg2: memref<1x8x16xbf16, #tpu.memory_space<vmem>>, %arg3: memref<1x8x16xbf16, #tpu.memory_space<vmem>>, %arg4: memref<1x8x16xbf16, #tpu.memory_space<vmem>>, %arg5: memref<2x8x8xbf16, #tpu.memory_space<vmem>>, %arg6: memref<1x1x8xf32, #tpu.memory_space<vmem>>, %arg7: memref<1x8x16xbf16, #tpu.memory_space<vmem>>) attributes {dimension_semantics = [#tpu.dimension_semantics<parallel>, #tpu.dimension_semantics<parallel>], iteration_bounds = array<i64: 1, 1>, scalar_prefetch = 0 : i64, scratch_operands = 0 : i64, tpu.core_type = #tpu.core_type<tc>, window_params = [{transform_indices = @transform_0, window_bounds = array<i64: 1, 8, 16>}, {transform_indices = @transform_1, window_bounds = array<i64: 1, 8, 16>}, {transform_indices = @transform_2, window_bounds = array<i64: 1, 8, 16>}, {transform_indices = @transform_3, window_bounds = array<i64: 2, 8, 8>}, {transform_indices = @transform_4, window_bounds = array<i64: 1, 1, 8>}, {transform_indices = @transform_5, window_bounds = array<i64: 1, 8, 16>}]} {
    %c0 = arith.constant 0 : index
    %c0_0 = arith.constant 0 : index
    %c0_1 = arith.constant 0 : index
    %0 = vector.load %arg2[%c0, %c0_0, %c0_1] : memref<1x8x16xbf16, #tpu.memory_space<vmem>>, vector<1x8x16xbf16>
    %1 = vector.shape_cast %0 : vector<1x8x16xbf16> to vector<8x16xbf16>
    %c0_2 = arith.constant 0 : index
    %c0_3 = arith.constant 0 : index
    %c0_4 = arith.constant 0 : index
    %2 = vector.load %arg3[%c0_2, %c0_3, %c0_4] : memref<1x8x16xbf16, #tpu.memory_space<vmem>>, vector<1x8x16xbf16>
    %3 = vector.shape_cast %2 : vector<1x8x16xbf16> to vector<8x16xbf16>
    %c0_5 = arith.constant 0 : index
    %c0_6 = arith.constant 0 : index
    %c0_7 = arith.constant 0 : index
    %4 = vector.load %arg4[%c0_5, %c0_6, %c0_7] : memref<1x8x16xbf16, #tpu.memory_space<vmem>>, vector<1x8x16xbf16>
    %5 = vector.shape_cast %4 : vector<1x8x16xbf16> to vector<8x16xbf16>
    %c0_8 = arith.constant 0 : index
    %c0_9 = arith.constant 0 : index
    %c0_10 = arith.constant 0 : index
    %6 = vector.load %arg6[%c0_8, %c0_9, %c0_10] : memref<1x1x8xf32, #tpu.memory_space<vmem>>, vector<1x1x8xf32>
    %7 = vector.shape_cast %6 : vector<1x1x8xf32> to vector<1x8xf32>
    %8 = vector.extract_strided_slice %1 {offsets = [0, 0], sizes = [8, 8], strides = [1, 1]} : vector<8x16xbf16> to vector<8x8xbf16>
    %9 = vector.extract_strided_slice %3 {offsets = [0, 0], sizes = [8, 8], strides = [1, 1]} : vector<8x16xbf16> to vector<8x8xbf16>
    %10 = vector.extract_strided_slice %5 {offsets = [0, 0], sizes = [8, 8], strides = [1, 1]} : vector<8x16xbf16> to vector<8x8xbf16>
    %cst = arith.constant dense<0.000000e+00> : vector<8x8xf32>
    %11 = tpu.matmul %8, %9, %cst {dimension_numbers = #tpu.dot_dimension_numbers<[1], [1], [0], [0], [0, 0, 1, 0], [], []>} : vector<8x8xbf16>, vector<8x8xbf16>, vector<8x8xf32> -> vector<8x8xf32>
    %cst_11 = arith.constant 0.353553385 : f32
    %12 = vector.broadcast %cst_11 : f32 to vector<8x8xf32>
    %13 = arith.mulf %11, %12 : vector<8x8xf32>
    %c0_12 = arith.constant 0 : index
    %c0_13 = arith.constant 0 : index
    %c0_14 = arith.constant 0 : index
    %14 = vector.load %arg5[%c0_12, %c0_13, %c0_14] : memref<2x8x8xbf16, #tpu.memory_space<vmem>>, vector<1x8x8xbf16>
    %15 = vector.shape_cast %14 : vector<1x8x8xbf16> to vector<8x8xbf16>
    %16 = arith.extf %15 : vector<8x8xbf16> to vector<8x8xf32>
    %17 = arith.addf %13, %16 : vector<8x8xf32>
    %18 = vector.broadcast %7 : vector<1x8xf32> to vector<8x8xf32>
    %19 = arith.addf %17, %18 : vector<8x8xf32>
    %cst_15 = arith.constant dense<0xFF800000> : vector<8xf32>
    %20 = vector.multi_reduction <maximumf>, %19, %cst_15 [1] : vector<8x8xf32> to vector<8xf32>
    %21 = vector.shape_cast %20 : vector<8xf32> to vector<8x1xf32>
    %22 = vector.broadcast %21 : vector<8x1xf32> to vector<8x8xf32>
    %23 = arith.subf %19, %22 : vector<8x8xf32>
    %24 = math.exp %23 : vector<8x8xf32>
    %cst_16 = arith.constant dense<0.000000e+00> : vector<8xf32>
    %25 = vector.multi_reduction <add>, %24, %cst_16 [1] : vector<8x8xf32> to vector<8xf32>
    %26 = vector.shape_cast %25 : vector<8xf32> to vector<8x1xf32>
    %27 = tpu.reciprocal %26 {approx = true} : vector<8x1xf32> -> vector<8x1xf32>
    %28 = vector.broadcast %27 : vector<8x1xf32> to vector<8x8xf32>
    %29 = arith.mulf %24, %28 : vector<8x8xf32>
    %30 = arith.truncf %29 : vector<8x8xf32> to vector<8x8xbf16>
    %cst_17 = arith.constant dense<0.000000e+00> : vector<8x8xf32>
    %31 = tpu.matmul %30, %10, %cst_17 {dimension_numbers = #tpu.dot_dimension_numbers<[1], [0], [0], [1], [0, 0, 1, 1], [], []>} : vector<8x8xbf16>, vector<8x8xbf16>, vector<8x8xf32> -> vector<8x8xf32>
    %32 = vector.extract_strided_slice %1 {offsets = [0, 8], sizes = [8, 8], strides = [1, 1]} : vector<8x16xbf16> to vector<8x8xbf16>
    %33 = vector.extract_strided_slice %3 {offsets = [0, 8], sizes = [8, 8], strides = [1, 1]} : vector<8x16xbf16> to vector<8x8xbf16>
    %34 = vector.extract_strided_slice %5 {offsets = [0, 8], sizes = [8, 8], strides = [1, 1]} : vector<8x16xbf16> to vector<8x8xbf16>
    %cst_18 = arith.constant dense<0.000000e+00> : vector<8x8xf32>
    %35 = tpu.matmul %32, %33, %cst_18 {dimension_numbers = #tpu.dot_dimension_numbers<[1], [1], [0], [0], [0, 0, 1, 0], [], []>} : vector<8x8xbf16>, vector<8x8xbf16>, vector<8x8xf32> -> vector<8x8xf32>
    %cst_19 = arith.constant 0.353553385 : f32
    %36 = vector.broadcast %cst_19 : f32 to vector<8x8xf32>
    %37 = arith.mulf %35, %36 : vector<8x8xf32>
    %c1 = arith.constant 1 : index
    %c0_20 = arith.constant 0 : index
    %c0_21 = arith.constant 0 : index
    %38 = vector.load %arg5[%c1, %c0_20, %c0_21] : memref<2x8x8xbf16, #tpu.memory_space<vmem>>, vector<1x8x8xbf16>
    %39 = vector.shape_cast %38 : vector<1x8x8xbf16> to vector<8x8xbf16>
    %40 = arith.extf %39 : vector<8x8xbf16> to vector<8x8xf32>
    %41 = arith.addf %37, %40 : vector<8x8xf32>
    %42 = vector.broadcast %7 : vector<1x8xf32> to vector<8x8xf32>
    %43 = arith.addf %41, %42 : vector<8x8xf32>
    %cst_22 = arith.constant dense<0xFF800000> : vector<8xf32>
    %44 = vector.multi_reduction <maximumf>, %43, %cst_22 [1] : vector<8x8xf32> to vector<8xf32>
    %45 = vector.shape_cast %44 : vector<8xf32> to vector<8x1xf32>
    %46 = vector.broadcast %45 : vector<8x1xf32> to vector<8x8xf32>
    %47 = arith.subf %43, %46 : vector<8x8xf32>
    %48 = math.exp %47 : vector<8x8xf32>
    %cst_23 = arith.constant dense<0.000000e+00> : vector<8xf32>
    %49 = vector.multi_reduction <add>, %48, %cst_23 [1] : vector<8x8xf32> to vector<8xf32>
    %50 = vector.shape_cast %49 : vector<8xf32> to vector<8x1xf32>
    %51 = tpu.reciprocal %50 {approx = true} : vector<8x1xf32> -> vector<8x1xf32>
    %52 = vector.broadcast %51 : vector<8x1xf32> to vector<8x8xf32>
    %53 = arith.mulf %48, %52 : vector<8x8xf32>
    %54 = arith.truncf %53 : vector<8x8xf32> to vector<8x8xbf16>
    %cst_24 = arith.constant dense<0.000000e+00> : vector<8x8xf32>
    %55 = tpu.matmul %54, %34, %cst_24 {dimension_numbers = #tpu.dot_dimension_numbers<[1], [0], [0], [1], [0, 0, 1, 1], [], []>} : vector<8x8xbf16>, vector<8x8xbf16>, vector<8x8xf32> -> vector<8x8xf32>
    %56 = tpu.concatenate %31, %55 in 1 : vector<8x8xf32>, vector<8x8xf32> -> vector<8x16xf32>
    %57 = arith.truncf %56 : vector<8x16xf32> to vector<8x16xbf16>
    %c0_25 = arith.constant 0 : index
    %c0_26 = arith.constant 0 : index
    %c0_27 = arith.constant 0 : index
    %58 = vector.load %arg7[%c0_25, %c0_26, %c0_27] : memref<1x8x16xbf16, #tpu.memory_space<vmem>>, vector<1x8x16xbf16>
    %59 = vector.shape_cast %58 : vector<1x8x16xbf16> to vector<8x16xbf16>
    %60 = vector.shape_cast %57 : vector<8x16xbf16> to vector<1x8x16xbf16>
    tpu.vector_store %arg7[%c0_25, %c0_26, %c0_27], %60 {strides = array<i32>} : memref<1x8x16xbf16, #tpu.memory_space<vmem>>, vector<1x8x16xbf16>,
    return
  }
  func.func @transform_0(%arg0: i32, %arg1: i32) -> (i32, i32, i32) {
    %c0_i32 = arith.constant 0 : i32
    %c0_i32_0 = arith.constant 0 : i32
    return %arg0, %arg1, %c0_i32 : i32, i32, i32
  }
  func.func @transform_1(%arg0: i32, %arg1: i32) -> (i32, i32, i32) {
    %c0_i32 = arith.constant 0 : i32
    %c0_i32_0 = arith.constant 0 : i32
    %c0_i32_1 = arith.constant 0 : i32
    return %arg0, %c0_i32, %c0_i32_0 : i32, i32, i32
  }
  func.func @transform_2(%arg0: i32, %arg1: i32) -> (i32, i32, i32) {
    %c0_i32 = arith.constant 0 : i32
    %c0_i32_0 = arith.constant 0 : i32
    %c0_i32_1 = arith.constant 0 : i32
    return %arg0, %c0_i32, %c0_i32_0 : i32, i32, i32
  }
  func.func @transform_3(%arg0: i32, %arg1: i32) -> (i32, i32, i32) {
    %c0_i32 = arith.constant 0 : i32
    %c0_i32_0 = arith.constant 0 : i32
    %c0_i32_1 = arith.constant 0 : i32
    return %c0_i32, %arg1, %c0_i32_0 : i32, i32, i32
  }
  func.func @transform_4(%arg0: i32, %arg1: i32) -> (i32, i32, i32) {
    %c0_i32 = arith.constant 0 : i32
    %c0_i32_0 = arith.constant 0 : i32
    %c0_i32_1 = arith.constant 0 : i32
    return %arg0, %c0_i32, %c0_i32_0 : i32, i32, i32
  }
  func.func @transform_5(%arg0: i32, %arg1: i32) -> (i32, i32, i32) {
    %c0_i32 = arith.constant 0 : i32
    %c0_i32_0 = arith.constant 0 : i32
    return %arg0, %arg1, %c0_i32 : i32, i32, i32
  }
}

module attributes {stable_mosaic.version = 11 : i64} {
  func.func @_fused_linear_kernel(%arg0: i32, %arg1: memref<8x16xbf16, #tpu.memory_space<vmem>>, %arg2: memref<16x16xbf16, #tpu.memory_space<vmem>>, %arg3: memref<1x16xf32, #tpu.memory_space<vmem>>, %arg4: memref<8x16xbf16, #tpu.memory_space<vmem>>, %arg5: memref<8x16xf32, #tpu.memory_space<vmem>>, %arg6: memref<8x16xf32, #tpu.memory_space<vmem>>) attributes {dimension_semantics = [#tpu.dimension_semantics<parallel>], iteration_bounds = array<i64: 1>, scalar_prefetch = 0 : i64, scratch_operands = 0 : i64, tpu.core_type = #tpu.core_type<tc>, window_params = [{transform_indices = @transform_0, window_bounds = array<i64: 8, 16>}, {pipeline_mode = #tpu.pipeline_mode<synchronous>, transform_indices = @transform_1, window_bounds = array<i64: 16, 16>}, {pipeline_mode = #tpu.pipeline_mode<synchronous>, transform_indices = @transform_2, window_bounds = array<i64: 1, 16>}, {transform_indices = @transform_3, window_bounds = array<i64: 8, 16>}, {transform_indices = @transform_4, window_bounds = array<i64: 8, 16>}, {transform_indices = @transform_5, window_bounds = array<i64: 8, 16>}]} {
    %c0 = arith.constant 0 : index
    %c0_0 = arith.constant 0 : index
    %0 = vector.load %arg1[%c0, %c0_0] : memref<8x16xbf16, #tpu.memory_space<vmem>>, vector<8x16xbf16>
    %1 = arith.extf %0 : vector<8x16xbf16> to vector<8x16xf32>
    %c0_1 = arith.constant 0 : index
    %c0_2 = arith.constant 0 : index
    %2 = vector.load %arg4[%c0_1, %c0_2] : memref<8x16xbf16, #tpu.memory_space<vmem>>, vector<8x16xbf16>
    %3 = arith.extf %2 : vector<8x16xbf16> to vector<8x16xf32>
    %4 = arith.negf %3 : vector<8x16xf32>
    %5 = math.exp %4 : vector<8x16xf32>
    %cst = arith.constant 1.000000e+00 : f32
    %6 = vector.broadcast %cst : f32 to vector<8x16xf32>
    %7 = arith.addf %6, %5 : vector<8x16xf32>
    %8 = arith.divf %6, %7 : vector<8x16xf32>
    %9 = arith.mulf %1, %8 : vector<8x16xf32>
    %10 = arith.truncf %9 : vector<8x16xf32> to vector<8x16xbf16>
    %c0_3 = arith.constant 0 : index
    %c0_4 = arith.constant 0 : index
    %11 = vector.load %arg2[%c0_3, %c0_4] : memref<16x16xbf16, #tpu.memory_space<vmem>>, vector<16x16xbf16>
    %cst_5 = arith.constant dense<0.000000e+00> : vector<8x16xf32>
    %12 = tpu.matmul %10, %11, %cst_5 {dimension_numbers = #tpu.dot_dimension_numbers<[1], [0], [0], [1], [0, 0, 1, 1], [], []>} : vector<8x16xbf16>, vector<16x16xbf16>, vector<8x16xf32> -> vector<8x16xf32>
    %c0_6 = arith.constant 0 : index
    %c0_7 = arith.constant 0 : index
    %13 = vector.load %arg3[%c0_6, %c0_7] : memref<1x16xf32, #tpu.memory_space<vmem>>, vector<1x16xf32>
    %14 = vector.broadcast %13 : vector<1x16xf32> to vector<8x16xf32>
    %15 = arith.addf %12, %14 : vector<8x16xf32>
    %c0_8 = arith.constant 0 : index
    %c0_9 = arith.constant 0 : index
    %16 = vector.load %arg5[%c0_8, %c0_9] : memref<8x16xf32, #tpu.memory_space<vmem>>, vector<8x16xf32>
    %17 = arith.addf %15, %16 : vector<8x16xf32>
    %c0_10 = arith.constant 0 : index
    %c0_11 = arith.constant 0 : index
    %18 = vector.load %arg6[%c0_10, %c0_11] : memref<8x16xf32, #tpu.memory_space<vmem>>, vector<8x16xf32>
    tpu.vector_store %arg6[%c0_10, %c0_11], %17 {strides = array<i32>} : memref<8x16xf32, #tpu.memory_space<vmem>>, vector<8x16xf32>,
    return
  }
  func.func @transform_0(%arg0: i32) -> (i32, i32) {
    %c0_i32 = arith.constant 0 : i32
    %c0_i32_0 = arith.constant 0 : i32
    return %arg0, %c0_i32 : i32, i32
  }
  func.func @transform_1(%arg0: i32) -> (i32, i32) {
    %c0_i32 = arith.constant 0 : i32
    %c0_i32_0 = arith.constant 0 : i32
    %c0_i32_1 = arith.constant 0 : i32
    return %c0_i32, %c0_i32_0 : i32, i32
  }
  func.func @transform_2(%arg0: i32) -> (i32, i32) {
    %c0_i32 = arith.constant 0 : i32
    %c0_i32_0 = arith.constant 0 : i32
    %c0_i32_1 = arith.constant 0 : i32
    return %c0_i32, %c0_i32_0 : i32, i32
  }
  func.func @transform_3(%arg0: i32) -> (i32, i32) {
    %c0_i32 = arith.constant 0 : i32
    %c0_i32_0 = arith.constant 0 : i32
    return %arg0, %c0_i32 : i32, i32
  }
  func.func @transform_4(%arg0: i32) -> (i32, i32) {
    %c0_i32 = arith.constant 0 : i32
    %c0_i32_0 = arith.constant 0 : i32
    return %arg0, %c0_i32 : i32, i32
  }
  func.func @transform_5(%arg0: i32) -> (i32, i32) {
    %c0_i32 = arith.constant 0 : i32
    %c0_i32_0 = arith.constant 0 : i32
    return %arg0, %c0_i32 : i32, i32
  }
}

module attributes {stable_mosaic.version = 11 : i64} {
  func.func @_transition_kernel(%arg0: i32, %arg1: memref<8x16xf32, #tpu.memory_space<vmem>>, %arg2: memref<1x16xf32, #tpu.memory_space<vmem>>, %arg3: memref<1x16xf32, #tpu.memory_space<vmem>>, %arg4: memref<16x32xbf16, #tpu.memory_space<vmem>>, %arg5: memref<1x32xf32, #tpu.memory_space<vmem>>, %arg6: memref<32x16xbf16, #tpu.memory_space<vmem>>, %arg7: memref<1x16xf32, #tpu.memory_space<vmem>>, %arg8: memref<8x1xf32, #tpu.memory_space<vmem>>, %arg9: memref<8x16xf32, #tpu.memory_space<vmem>>) attributes {dimension_semantics = [#tpu.dimension_semantics<parallel>], iteration_bounds = array<i64: 1>, scalar_prefetch = 0 : i64, scratch_operands = 0 : i64, tpu.core_type = #tpu.core_type<tc>, window_params = [{transform_indices = @transform_0, window_bounds = array<i64: 8, 16>}, {pipeline_mode = #tpu.pipeline_mode<synchronous>, transform_indices = @transform_1, window_bounds = array<i64: 1, 16>}, {pipeline_mode = #tpu.pipeline_mode<synchronous>, transform_indices = @transform_2, window_bounds = array<i64: 1, 16>}, {pipeline_mode = #tpu.pipeline_mode<synchronous>, transform_indices = @transform_3, window_bounds = array<i64: 16, 32>}, {pipeline_mode = #tpu.pipeline_mode<synchronous>, transform_indices = @transform_4, window_bounds = array<i64: 1, 32>}, {pipeline_mode = #tpu.pipeline_mode<synchronous>, transform_indices = @transform_5, window_bounds = array<i64: 32, 16>}, {pipeline_mode = #tpu.pipeline_mode<synchronous>, transform_indices = @transform_6, window_bounds = array<i64: 1, 16>}, {transform_indices = @transform_7, window_bounds = array<i64: 8, 1>}, {transform_indices = @transform_8, window_bounds = array<i64: 8, 16>}]} {
    %c0 = arith.constant 0 : index
    %c0_0 = arith.constant 0 : index
    %0 = vector.load %arg1[%c0, %c0_0] : memref<8x16xf32, #tpu.memory_space<vmem>>, vector<8x16xf32>
    %cst = arith.constant dense<0.000000e+00> : vector<8xf32>
    %1 = vector.multi_reduction <add>, %0, %cst [1] : vector<8x16xf32> to vector<8xf32>
    %2 = vector.shape_cast %1 : vector<8xf32> to vector<8x1xf32>
    %cst_1 = arith.constant 1.600000e+01 : f32
    %3 = vector.broadcast %cst_1 : f32 to vector<8x1xf32>
    %4 = arith.divf %2, %3 : vector<8x1xf32>
    %5 = vector.broadcast %4 : vector<8x1xf32> to vector<8x16xf32>
    %6 = arith.subf %0, %5 : vector<8x16xf32>
    %7 = arith.mulf %6, %6 : vector<8x16xf32>
    %cst_2 = arith.constant dense<0.000000e+00> : vector<8xf32>
    %8 = vector.multi_reduction <add>, %7, %cst_2 [1] : vector<8x16xf32> to vector<8xf32>
    %9 = vector.shape_cast %8 : vector<8xf32> to vector<8x1xf32>
    %cst_3 = arith.constant 1.600000e+01 : f32
    %10 = vector.broadcast %cst_3 : f32 to vector<8x1xf32>
    %11 = arith.divf %9, %10 : vector<8x1xf32>
    %12 = vector.broadcast %4 : vector<8x1xf32> to vector<8x16xf32>
    %13 = arith.subf %0, %12 : vector<8x16xf32>
    %cst_4 = arith.constant 9.99999974E-6 : f32
    %14 = vector.broadcast %cst_4 : f32 to vector<8x1xf32>
    %15 = arith.addf %11, %14 : vector<8x1xf32>
    %16 = math.rsqrt %15 : vector<8x1xf32>
    %17 = vector.broadcast %16 : vector<8x1xf32> to vector<8x16xf32>
    %18 = arith.mulf %13, %17 : vector<8x16xf32>
    %c0_5 = arith.constant 0 : index
    %c0_6 = arith.constant 0 : index
    %19 = vector.load %arg2[%c0_5, %c0_6] : memref<1x16xf32, #tpu.memory_space<vmem>>, vector<1x16xf32>
    %20 = vector.broadcast %19 : vector<1x16xf32> to vector<8x16xf32>
    %21 = arith.mulf %18, %20 : vector<8x16xf32>
    %c0_7 = arith.constant 0 : index
    %c0_8 = arith.constant 0 : index
    %22 = vector.load %arg3[%c0_7, %c0_8] : memref<1x16xf32, #tpu.memory_space<vmem>>, vector<1x16xf32>
    %23 = vector.broadcast %22 : vector<1x16xf32> to vector<8x16xf32>
    %24 = arith.addf %21, %23 : vector<8x16xf32>
    %25 = arith.truncf %24 : vector<8x16xf32> to vector<8x16xbf16>
    %c0_9 = arith.constant 0 : index
    %c0_10 = arith.constant 0 : index
    %26 = vector.load %arg4[%c0_9, %c0_10] : memref<16x32xbf16, #tpu.memory_space<vmem>>, vector<16x32xbf16>
    %cst_11 = arith.constant dense<0.000000e+00> : vector<8x32xf32>
    %27 = tpu.matmul %25, %26, %cst_11 {dimension_numbers = #tpu.dot_dimension_numbers<[1], [0], [0], [1], [0, 0, 1, 1], [], []>} : vector<8x16xbf16>, vector<16x32xbf16>, vector<8x32xf32> -> vector<8x32xf32>
    %c0_12 = arith.constant 0 : index
    %c0_13 = arith.constant 0 : index
    %28 = vector.load %arg5[%c0_12, %c0_13] : memref<1x32xf32, #tpu.memory_space<vmem>>, vector<1x32xf32>
    %29 = vector.broadcast %28 : vector<1x32xf32> to vector<8x32xf32>
    %30 = arith.addf %27, %29 : vector<8x32xf32>
    %cst_14 = arith.constant 0.000000e+00 : f32
    %31 = vector.broadcast %cst_14 : f32 to vector<8x32xf32>
    %32 = arith.maximumf %30, %31 : vector<8x32xf32>
    %33 = arith.truncf %32 : vector<8x32xf32> to vector<8x32xbf16>
    %c0_15 = arith.constant 0 : index
    %c0_16 = arith.constant 0 : index
    %34 = vector.load %arg6[%c0_15, %c0_16] : memref<32x16xbf16, #tpu.memory_space<vmem>>, vector<32x16xbf16>
    %cst_17 = arith.constant dense<0.000000e+00> : vector<8x16xf32>
    %35 = tpu.matmul %33, %34, %cst_17 {dimension_numbers = #tpu.dot_dimension_numbers<[1], [0], [0], [1], [0, 0, 1, 1], [], []>} : vector<8x32xbf16>, vector<32x16xbf16>, vector<8x16xf32> -> vector<8x16xf32>
    %c0_18 = arith.constant 0 : index
    %c0_19 = arith.constant 0 : index
    %36 = vector.load %arg7[%c0_18, %c0_19] : memref<1x16xf32, #tpu.memory_space<vmem>>, vector<1x16xf32>
    %37 = vector.broadcast %36 : vector<1x16xf32> to vector<8x16xf32>
    %38 = arith.addf %35, %37 : vector<8x16xf32>
    %c0_20 = arith.constant 0 : index
    %c0_21 = arith.constant 0 : index
    %39 = vector.load %arg8[%c0_20, %c0_21] : memref<8x1xf32, #tpu.memory_space<vmem>>, vector<8x1xf32>
    %40 = vector.broadcast %39 : vector<8x1xf32> to vector<8x16xf32>
    %41 = arith.mulf %38, %40 : vector<8x16xf32>
    %42 = arith.addf %41, %0 : vector<8x16xf32>
    %c0_22 = arith.constant 0 : index
    %c0_23 = arith.constant 0 : index
    %43 = vector.load %arg9[%c0_22, %c0_23] : memref<8x16xf32, #tpu.memory_space<vmem>>, vector<8x16xf32>
    tpu.vector_store %arg9[%c0_22, %c0_23], %42 {strides = array<i32>} : memref<8x16xf32, #tpu.memory_space<vmem>>, vector<8x16xf32>,
    return
  }
  func.func @transform_0(%arg0: i32) -> (i32, i32) {
    %c0_i32 = arith.constant 0 : i32
    %c0_i32_0 = arith.constant 0 : i32
    return %arg0, %c0_i32 : i32, i32
  }
  func.func @transform_1(%arg0: i32) -> (i32, i32) {
    %c0_i32 = arith.constant 0 : i32
    %c0_i32_0 = arith.constant 0 : i32
    %c0_i32_1 = arith.constant 0 : i32
    return %c0_i32, %c0_i32_0 : i32, i32
  }
  func.func @transform_2(%arg0: i32) -> (i32, i32) {
    %c0_i32 = arith.constant 0 : i32
    %c0_i32_0 = arith.constant 0 : i32
    %c0_i32_1 = arith.constant 0 : i32
    return %c0_i32, %c0_i32_0 : i32, i32
  }
  func.func @transform_3(%arg0: i32) -> (i32, i32) {
    %c0_i32 = arith.constant 0 : i32
    %c0_i32_0 = arith.constant 0 : i32
    %c0_i32_1 = arith.constant 0 : i32
    return %c0_i32, %c0_i32_0 : i32, i32
  }
  func.func @transform_4(%arg0: i32) -> (i32, i32) {
    %c0_i32 = arith.constant 0 : i32
    %c0_i32_0 = arith.constant 0 : i32
    %c0_i32_1 = arith.constant 0 : i32
    return %c0_i32, %c0_i32_0 : i32, i32
  }
  func.func @transform_5(%arg0: i32) -> (i32, i32) {
    %c0_i32 = arith.constant 0 : i32
    %c0_i32_0 = arith.constant 0 : i32
    %c0_i32_1 = arith.constant 0 : i32
    return %c0_i32, %c0_i32_0 : i32, i32
  }
  func.func @transform_6(%arg0: i32) -> (i32, i32) {
    %c0_i32 = arith.constant 0 : i32
    %c0_i32_0 = arith.constant 0 : i32
    %c0_i32_1 = arith.constant 0 : i32
    return %c0_i32, %c0_i32_0 : i32, i32
  }
  func.func @transform_7(%arg0: i32) -> (i32, i32) {
    %c0_i32 = arith.constant 0 : i32
    %c0_i32_0 = arith.constant 0 : i32
    return %arg0, %c0_i32 : i32, i32
  }
  func.func @transform_8(%arg0: i32) -> (i32, i32) {
    %c0_i32 = arith.constant 0 : i32
    %c0_i32_0 = arith.constant 0 : i32
    return %arg0, %c0_i32 : i32, i32
  }
}

module attributes {stable_mosaic.version = 11 : i64} {
  func.func @_fused_linear_kernel(%arg0: i32, %arg1: memref<8x16xf32, #tpu.memory_space<vmem>>, %arg2: memref<1x16xf32, #tpu.memory_space<vmem>>, %arg3: memref<1x16xf32, #tpu.memory_space<vmem>>, %arg4: memref<16x16xbf16, #tpu.memory_space<vmem>>, %arg5: memref<1x16xf32, #tpu.memory_space<vmem>>, %arg6: memref<8x16xf32, #tpu.memory_space<vmem>>) attributes {dimension_semantics = [#tpu.dimension_semantics<parallel>], iteration_bounds = array<i64: 1>, scalar_prefetch = 0 : i64, scratch_operands = 0 : i64, tpu.core_type = #tpu.core_type<tc>, window_params = [{transform_indices = @transform_0, window_bounds = array<i64: 8, 16>}, {pipeline_mode = #tpu.pipeline_mode<synchronous>, transform_indices = @transform_1, window_bounds = array<i64: 1, 16>}, {pipeline_mode = #tpu.pipeline_mode<synchronous>, transform_indices = @transform_2, window_bounds = array<i64: 1, 16>}, {pipeline_mode = #tpu.pipeline_mode<synchronous>, transform_indices = @transform_3, window_bounds = array<i64: 16, 16>}, {pipeline_mode = #tpu.pipeline_mode<synchronous>, transform_indices = @transform_4, window_bounds = array<i64: 1, 16>}, {transform_indices = @transform_5, window_bounds = array<i64: 8, 16>}]} {
    %c0 = arith.constant 0 : index
    %c0_0 = arith.constant 0 : index
    %0 = vector.load %arg1[%c0, %c0_0] : memref<8x16xf32, #tpu.memory_space<vmem>>, vector<8x16xf32>
    %cst = arith.constant dense<0.000000e+00> : vector<8xf32>
    %1 = vector.multi_reduction <add>, %0, %cst [1] : vector<8x16xf32> to vector<8xf32>
    %2 = vector.shape_cast %1 : vector<8xf32> to vector<8x1xf32>
    %cst_1 = arith.constant 1.600000e+01 : f32
    %3 = vector.broadcast %cst_1 : f32 to vector<8x1xf32>
    %4 = arith.divf %2, %3 : vector<8x1xf32>
    %5 = vector.broadcast %4 : vector<8x1xf32> to vector<8x16xf32>
    %6 = arith.subf %0, %5 : vector<8x16xf32>
    %7 = arith.mulf %6, %6 : vector<8x16xf32>
    %cst_2 = arith.constant dense<0.000000e+00> : vector<8xf32>
    %8 = vector.multi_reduction <add>, %7, %cst_2 [1] : vector<8x16xf32> to vector<8xf32>
    %9 = vector.shape_cast %8 : vector<8xf32> to vector<8x1xf32>
    %cst_3 = arith.constant 1.600000e+01 : f32
    %10 = vector.broadcast %cst_3 : f32 to vector<8x1xf32>
    %11 = arith.divf %9, %10 : vector<8x1xf32>
    %12 = vector.broadcast %4 : vector<8x1xf32> to vector<8x16xf32>
    %13 = arith.subf %0, %12 : vector<8x16xf32>
    %cst_4 = arith.constant 9.99999974E-6 : f32
    %14 = vector.broadcast %cst_4 : f32 to vector<8x1xf32>
    %15 = arith.addf %11, %14 : vector<8x1xf32>
    %16 = math.rsqrt %15 : vector<8x1xf32>
    %17 = vector.broadcast %16 : vector<8x1xf32> to vector<8x16xf32>
    %18 = arith.mulf %13, %17 : vector<8x16xf32>
    %c0_5 = arith.constant 0 : index
    %c0_6 = arith.constant 0 : index
    %19 = vector.load %arg2[%c0_5, %c0_6] : memref<1x16xf32, #tpu.memory_space<vmem>>, vector<1x16xf32>
    %20 = vector.broadcast %19 : vector<1x16xf32> to vector<8x16xf32>
    %21 = arith.mulf %18, %20 : vector<8x16xf32>
    %c0_7 = arith.constant 0 : index
    %c0_8 = arith.constant 0 : index
    %22 = vector.load %arg3[%c0_7, %c0_8] : memref<1x16xf32, #tpu.memory_space<vmem>>, vector<1x16xf32>
    %23 = vector.broadcast %22 : vector<1x16xf32> to vector<8x16xf32>
    %24 = arith.addf %21, %23 : vector<8x16xf32>
    %25 = arith.truncf %24 : vector<8x16xf32> to vector<8x16xbf16>
    %c0_9 = arith.constant 0 : index
    %c0_10 = arith.constant 0 : index
    %26 = vector.load %arg4[%c0_9, %c0_10] : memref<16x16xbf16, #tpu.memory_space<vmem>>, vector<16x16xbf16>
    %cst_11 = arith.constant dense<0.000000e+00> : vector<8x16xf32>
    %27 = tpu.matmul %25, %26, %cst_11 {dimension_numbers = #tpu.dot_dimension_numbers<[1], [0], [0], [1], [0, 0, 1, 1], [], []>} : vector<8x16xbf16>, vector<16x16xbf16>, vector<8x16xf32> -> vector<8x16xf32>
    %c0_12 = arith.constant 0 : index
    %c0_13 = arith.constant 0 : index
    %28 = vector.load %arg5[%c0_12, %c0_13] : memref<1x16xf32, #tpu.memory_space<vmem>>, vector<1x16xf32>
    %29 = vector.broadcast %28 : vector<1x16xf32> to vector<8x16xf32>
    %30 = arith.addf %27, %29 : vector<8x16xf32>
    %c0_14 = arith.constant 0 : index
    %c0_15 = arith.constant 0 : index
    %31 = vector.load %arg6[%c0_14, %c0_15] : memref<8x16xf32, #tpu.memory_space<vmem>>, vector<8x16xf32>
    tpu.vector_store %arg6[%c0_14, %c0_15], %30 {strides = array<i32>} : memref<8x16xf32, #tpu.memory_space<vmem>>, vector<8x16xf32>,
    return
  }
  func.func @transform_0(%arg0: i32) -> (i32, i32) {
    %c0_i32 = arith.constant 0 : i32
    %c0_i32_0 = arith.constant 0 : i32
    return %arg0, %c0_i32 : i32, i32
  }
  func.func @transform_1(%arg0: i32) -> (i32, i32) {
    %c0_i32 = arith.constant 0 : i32
    %c0_i32_0 = arith.constant 0 : i32
    %c0_i32_1 = arith.constant 0 : i32
    return %c0_i32, %c0_i32_0 : i32, i32
  }
  func.func @transform_2(%arg0: i32) -> (i32, i32) {
    %c0_i32 = arith.constant 0 : i32
    %c0_i32_0 = arith.constant 0 : i32
    %c0_i32_1 = arith.constant 0 : i32
    return %c0_i32, %c0_i32_0 : i32, i32
  }
  func.func @transform_3(%arg0: i32) -> (i32, i32) {
    %c0_i32 = arith.constant 0 : i32
    %c0_i32_0 = arith.constant 0 : i32
    %c0_i32_1 = arith.constant 0 : i32
    return %c0_i32, %c0_i32_0 : i32, i32
  }
  func.func @transform_4(%arg0: i32) -> (i32, i32) {
    %c0_i32 = arith.constant 0 : i32
    %c0_i32_0 = arith.constant 0 : i32
    %c0_i32_1 = arith.constant 0 : i32
    return %c0_i32, %c0_i32_0 : i32, i32
  }
  func.func @transform_5(%arg0: i32) -> (i32, i32) {
    %c0_i32 = arith.constant 0 : i32
    %c0_i32_0 = arith.constant 0 : i32
    return %arg0, %c0_i32 : i32, i32
  }
}

module attributes {stable_mosaic.version = 11 : i64} {
  func.func @_opm_combine_kernel(%arg0: i32, %arg1: memref<8x8x8xbf16, #tpu.memory_space<vmem>>, %arg2: memref<8x8xf32, #tpu.memory_space<vmem>>, %arg3: memref<1x8xf32, #tpu.memory_space<vmem>>, %arg4: memref<8x1xf32, #tpu.memory_space<vmem>>, %arg5: memref<1x8xf32, #tpu.memory_space<vmem>>, %arg6: memref<8x8x8xf32, #tpu.memory_space<vmem>>, %arg7: memref<8x8x8xf32, #tpu.memory_space<vmem>>) attributes {dimension_semantics = [#tpu.dimension_semantics<parallel>], iteration_bounds = array<i64: 1>, scalar_prefetch = 0 : i64, scratch_operands = 0 : i64, tpu.core_type = #tpu.core_type<tc>, window_params = [{transform_indices = @transform_0, window_bounds = array<i64: 8, 8, 8>}, {pipeline_mode = #tpu.pipeline_mode<synchronous>, transform_indices = @transform_1, window_bounds = array<i64: 8, 8>}, {pipeline_mode = #tpu.pipeline_mode<synchronous>, transform_indices = @transform_2, window_bounds = array<i64: 1, 8>}, {transform_indices = @transform_3, window_bounds = array<i64: 8, 1>}, {pipeline_mode = #tpu.pipeline_mode<synchronous>, transform_indices = @transform_4, window_bounds = array<i64: 1, 8>}, {transform_indices = @transform_5, window_bounds = array<i64: 8, 8, 8>}, {transform_indices = @transform_6, window_bounds = array<i64: 8, 8, 8>}]} {
    %c0 = arith.constant 0 : index
    %c0_0 = arith.constant 0 : index
    %c0_1 = arith.constant 0 : index
    %0 = vector.load %arg1[%c0, %c0_0, %c0_1] : memref<8x8x8xbf16, #tpu.memory_space<vmem>>, vector<8x8x8xbf16>
    %c0_2 = arith.constant 0 : index
    %c0_3 = arith.constant 0 : index
    %1 = vector.load %arg2[%c0_2, %c0_3] : memref<8x8xf32, #tpu.memory_space<vmem>>, vector<8x8xf32>
    %2 = arith.truncf %1 : vector<8x8xf32> to vector<8x8xbf16>
    %3 = vector.shape_cast %2 : vector<8x8xbf16> to vector<1x8x8xbf16>
    %4 = vector.shape_cast %3 : vector<1x8x8xbf16> to vector<1x8x8xbf16>
    %5 = vector.broadcast %4 : vector<1x8x8xbf16> to vector<8x8x8xbf16>
    "tpu.trace_start"() <{level = 10 : i32, message = "bnq,bqz->bnz"}> : () -> ()
    %cst = arith.constant dense<0.000000e+00> : vector<8x8x8xf32>
    %6 = tpu.matmul %5, %0, %cst {dimension_numbers = #tpu.dot_dimension_numbers<[2], [1], [1], [2], [0, 0, 0, 1, 1, 2], [0], [0]>} : vector<8x8x8xbf16>, vector<8x8x8xbf16>, vector<8x8x8xf32> -> vector<8x8x8xf32>
    "tpu.trace_stop"() : () -> ()
    %c0_4 = arith.constant 0 : index
    %c0_5 = arith.constant 0 : index
    %7 = vector.load %arg3[%c0_4, %c0_5] : memref<1x8xf32, #tpu.memory_space<vmem>>, vector<1x8xf32>
    %8 = vector.shape_cast %7 : vector<1x8xf32> to vector<1x1x8xf32>
    %9 = vector.broadcast %8 : vector<1x1x8xf32> to vector<8x8x8xf32>
    %10 = arith.addf %6, %9 : vector<8x8x8xf32>
    %c0_6 = arith.constant 0 : index
    %c0_7 = arith.constant 0 : index
    %11 = vector.load %arg4[%c0_6, %c0_7] : memref<8x1xf32, #tpu.memory_space<vmem>>, vector<8x1xf32>
    %c0_8 = arith.constant 0 : index
    %c0_9 = arith.constant 0 : index
    %12 = vector.load %arg5[%c0_8, %c0_9] : memref<1x8xf32, #tpu.memory_space<vmem>>, vector<1x8xf32>
    %13 = vector.broadcast %11 : vector<8x1xf32> to vector<8x8xf32>
    %14 = vector.broadcast %12 : vector<1x8xf32> to vector<8x8xf32>
    %15 = arith.mulf %13, %14 : vector<8x8xf32>
    %cst_10 = arith.constant 1.000000e-03 : f32
    %16 = vector.broadcast %cst_10 : f32 to vector<8x8xf32>
    %17 = arith.addf %16, %15 : vector<8x8xf32>
    %cst_11 = arith.constant 1.000000e+00 : f32
    %18 = vector.broadcast %cst_11 : f32 to vector<8x8xf32>
    %19 = arith.divf %18, %17 : vector<8x8xf32>
    %20 = vector.shape_cast %19 : vector<8x8xf32> to vector<8x8x1xf32>
    %21 = vector.broadcast %20 : vector<8x8x1xf32> to vector<8x8x8xf32>
    %22 = arith.mulf %10, %21 : vector<8x8x8xf32>
    %c0_12 = arith.constant 0 : index
    %c0_13 = arith.constant 0 : index
    %c0_14 = arith.constant 0 : index
    %23 = vector.load %arg6[%c0_12, %c0_13, %c0_14] : memref<8x8x8xf32, #tpu.memory_space<vmem>>, vector<8x8x8xf32>
    %24 = arith.addf %22, %23 : vector<8x8x8xf32>
    %c0_15 = arith.constant 0 : index
    %c0_16 = arith.constant 0 : index
    %c0_17 = arith.constant 0 : index
    %25 = vector.load %arg7[%c0_15, %c0_16, %c0_17] : memref<8x8x8xf32, #tpu.memory_space<vmem>>, vector<8x8x8xf32>
    tpu.vector_store %arg7[%c0_15, %c0_16, %c0_17], %24 {strides = array<i32>} : memref<8x8x8xf32, #tpu.memory_space<vmem>>, vector<8x8x8xf32>,
    return
  }
  func.func @transform_0(%arg0: i32) -> (i32, i32, i32) {
    %c0_i32 = arith.constant 0 : i32
    %c0_i32_0 = arith.constant 0 : i32
    %c0_i32_1 = arith.constant 0 : i32
    return %arg0, %c0_i32, %c0_i32_0 : i32, i32, i32
  }
  func.func @transform_1(%arg0: i32) -> (i32, i32) {
    %c0_i32 = arith.constant 0 : i32
    %c0_i32_0 = arith.constant 0 : i32
    %c0_i32_1 = arith.constant 0 : i32
    return %c0_i32, %c0_i32_0 : i32, i32
  }
  func.func @transform_2(%arg0: i32) -> (i32, i32) {
    %c0_i32 = arith.constant 0 : i32
    %c0_i32_0 = arith.constant 0 : i32
    %c0_i32_1 = arith.constant 0 : i32
    return %c0_i32, %c0_i32_0 : i32, i32
  }
  func.func @transform_3(%arg0: i32) -> (i32, i32) {
    %c0_i32 = arith.constant 0 : i32
    %c0_i32_0 = arith.constant 0 : i32
    return %arg0, %c0_i32 : i32, i32
  }
  func.func @transform_4(%arg0: i32) -> (i32, i32) {
    %c0_i32 = arith.constant 0 : i32
    %c0_i32_0 = arith.constant 0 : i32
    %c0_i32_1 = arith.constant 0 : i32
    return %c0_i32, %c0_i32_0 : i32, i32
  }
  func.func @transform_5(%arg0: i32) -> (i32, i32, i32) {
    %c0_i32 = arith.constant 0 : i32
    %c0_i32_0 = arith.constant 0 : i32
    %c0_i32_1 = arith.constant 0 : i32
    return %arg0, %c0_i32, %c0_i32_0 : i32, i32, i32
  }
  func.func @transform_6(%arg0: i32) -> (i32, i32, i32) {
    %c0_i32 = arith.constant 0 : i32
    %c0_i32_0 = arith.constant 0 : i32
    %c0_i32_1 = arith.constant 0 : i32
    return %arg0, %c0_i32, %c0_i32_0 : i32, i32, i32
  }
}

module attributes {stable_mosaic.version = 11 : i64} {
  func.func @_fused_linear_kernel(%arg0: i32, %arg1: memref<8x8xf32, #tpu.memory_space<vmem>>, %arg2: memref<8x64xbf16, #tpu.memory_space<vmem>>, %arg3: memref<1x64xf32, #tpu.memory_space<vmem>>, %arg4: memref<8x64xbf16, #tpu.memory_space<vmem>>) attributes {dimension_semantics = [#tpu.dimension_semantics<parallel>], iteration_bounds = array<i64: 1>, scalar_prefetch = 0 : i64, scratch_operands = 0 : i64, tpu.core_type = #tpu.core_type<tc>, window_params = [{transform_indices = @transform_0, window_bounds = array<i64: 8, 8>}, {pipeline_mode = #tpu.pipeline_mode<synchronous>, transform_indices = @transform_1, window_bounds = array<i64: 8, 64>}, {pipeline_mode = #tpu.pipeline_mode<synchronous>, transform_indices = @transform_2, window_bounds = array<i64: 1, 64>}, {transform_indices = @transform_3, window_bounds = array<i64: 8, 64>}]} {
    %c0 = arith.constant 0 : index
    %c0_0 = arith.constant 0 : index
    %0 = vector.load %arg1[%c0, %c0_0] : memref<8x8xf32, #tpu.memory_space<vmem>>, vector<8x8xf32>
    %1 = arith.truncf %0 : vector<8x8xf32> to vector<8x8xbf16>
    %c0_1 = arith.constant 0 : index
    %c0_2 = arith.constant 0 : index
    %2 = vector.load %arg2[%c0_1, %c0_2] : memref<8x64xbf16, #tpu.memory_space<vmem>>, vector<8x64xbf16>
    %cst = arith.constant dense<0.000000e+00> : vector<8x64xf32>
    %3 = tpu.matmul %1, %2, %cst {dimension_numbers = #tpu.dot_dimension_numbers<[1], [0], [0], [1], [0, 0, 1, 1], [], []>} : vector<8x8xbf16>, vector<8x64xbf16>, vector<8x64xf32> -> vector<8x64xf32>
    %c0_3 = arith.constant 0 : index
    %c0_4 = arith.constant 0 : index
    %4 = vector.load %arg3[%c0_3, %c0_4] : memref<1x64xf32, #tpu.memory_space<vmem>>, vector<1x64xf32>
    %5 = vector.broadcast %4 : vector<1x64xf32> to vector<8x64xf32>
    %6 = arith.addf %3, %5 : vector<8x64xf32>
    %7 = arith.truncf %6 : vector<8x64xf32> to vector<8x64xbf16>
    %c0_5 = arith.constant 0 : index
    %c0_6 = arith.constant 0 : index
    %8 = vector.load %arg4[%c0_5, %c0_6] : memref<8x64xbf16, #tpu.memory_space<vmem>>, vector<8x64xbf16>
    tpu.vector_store %arg4[%c0_5, %c0_6], %7 {strides = array<i32>} : memref<8x64xbf16, #tpu.memory_space<vmem>>, vector<8x64xbf16>,
    return
  }
  func.func @transform_0(%arg0: i32) -> (i32, i32) {
    %c0_i32 = arith.constant 0 : i32
    %c0_i32_0 = arith.constant 0 : i32
    return %arg0, %c0_i32 : i32, i32
  }
  func.func @transform_1(%arg0: i32) -> (i32, i32) {
    %c0_i32 = arith.constant 0 : i32
    %c0_i32_0 = arith.constant 0 : i32
    %c0_i32_1 = arith.constant 0 : i32
    return %c0_i32, %c0_i32_0 : i32, i32
  }
  func.func @transform_2(%arg0: i32) -> (i32, i32) {
    %c0_i32 = arith.constant 0 : i32
    %c0_i32_0 = arith.constant 0 : i32
    %c0_i32_1 = arith.constant 0 : i32
    return %c0_i32, %c0_i32_0 : i32, i32
  }
  func.func @transform_3(%arg0: i32) -> (i32, i32) {
    %c0_i32 = arith.constant 0 : i32
    %c0_i32_0 = arith.constant 0 : i32
    return %arg0, %c0_i32 : i32, i32
  }
}

module attributes {stable_mosaic.version = 11 : i64} {
  func.func @_trimul_proj_kernel(%arg0: i32, %arg1: memref<64x8xf32, #tpu.memory_space<vmem>>, %arg2: memref<1x8xf32, #tpu.memory_space<vmem>>, %arg3: memref<1x8xf32, #tpu.memory_space<vmem>>, %arg4: memref<8x40xbf16, #tpu.memory_space<vmem>>, %arg5: memref<1x40xf32, #tpu.memory_space<vmem>>, %arg6: memref<64x1xf32, #tpu.memory_space<vmem>>, %arg7: memref<8x64xbf16, #tpu.memory_space<vmem>>, %arg8: memref<8x64xbf16, #tpu.memory_space<vmem>>, %arg9: memref<64x8xbf16, #tpu.memory_space<vmem>>) attributes {dimension_semantics = [#tpu.dimension_semantics<parallel>], iteration_bounds = array<i64: 1>, scalar_prefetch = 0 : i64, scratch_operands = 0 : i64, tpu.core_type = #tpu.core_type<tc>, window_params = [{transform_indices = @transform_0, window_bounds = array<i64: 64, 8>}, {pipeline_mode = #tpu.pipeline_mode<synchronous>, transform_indices = @transform_1, window_bounds = array<i64: 1, 8>}, {pipeline_mode = #tpu.pipeline_mode<synchronous>, transform_indices = @transform_2, window_bounds = array<i64: 1, 8>}, {pipeline_mode = #tpu.pipeline_mode<synchronous>, transform_indices = @transform_3, window_bounds = array<i64: 8, 40>}, {pipeline_mode = #tpu.pipeline_mode<synchronous>, transform_indices = @transform_4, window_bounds = array<i64: 1, 40>}, {transform_indices = @transform_5, window_bounds = array<i64: 64, 1>}, {transform_indices = @transform_6, window_bounds = array<i64: 8, 64>}, {transform_indices = @transform_7, window_bounds = array<i64: 8, 64>}, {transform_indices = @transform_8, window_bounds = array<i64: 64, 8>}]} {
    %c0 = arith.constant 0 : index
    %c0_0 = arith.constant 0 : index
    %0 = vector.load %arg1[%c0, %c0_0] : memref<64x8xf32, #tpu.memory_space<vmem>>, vector<64x8xf32>
    %cst = arith.constant dense<0.000000e+00> : vector<64xf32>
    %1 = vector.multi_reduction <add>, %0, %cst [1] : vector<64x8xf32> to vector<64xf32>
    %2 = vector.shape_cast %1 : vector<64xf32> to vector<64x1xf32>
    %cst_1 = arith.constant 8.000000e+00 : f32
    %3 = vector.broadcast %cst_1 : f32 to vector<64x1xf32>
    %4 = arith.divf %2, %3 : vector<64x1xf32>
    %5 = vector.broadcast %4 : vector<64x1xf32> to vector<64x8xf32>
    %6 = arith.subf %0, %5 : vector<64x8xf32>
    %7 = arith.mulf %6, %6 : vector<64x8xf32>
    %cst_2 = arith.constant dense<0.000000e+00> : vector<64xf32>
    %8 = vector.multi_reduction <add>, %7, %cst_2 [1] : vector<64x8xf32> to vector<64xf32>
    %9 = vector.shape_cast %8 : vector<64xf32> to vector<64x1xf32>
    %cst_3 = arith.constant 8.000000e+00 : f32
    %10 = vector.broadcast %cst_3 : f32 to vector<64x1xf32>
    %11 = arith.divf %9, %10 : vector<64x1xf32>
    %12 = vector.broadcast %4 : vector<64x1xf32> to vector<64x8xf32>
    %13 = arith.subf %0, %12 : vector<64x8xf32>
    %cst_4 = arith.constant 9.99999974E-6 : f32
    %14 = vector.broadcast %cst_4 : f32 to vector<64x1xf32>
    %15 = arith.addf %11, %14 : vector<64x1xf32>
    %16 = math.rsqrt %15 : vector<64x1xf32>
    %17 = vector.broadcast %16 : vector<64x1xf32> to vector<64x8xf32>
    %18 = arith.mulf %13, %17 : vector<64x8xf32>
    %c0_5 = arith.constant 0 : index
    %c0_6 = arith.constant 0 : index
    %19 = vector.load %arg2[%c0_5, %c0_6] : memref<1x8xf32, #tpu.memory_space<vmem>>, vector<1x8xf32>
    %20 = vector.broadcast %19 : vector<1x8xf32> to vector<64x8xf32>
    %21 = arith.mulf %18, %20 : vector<64x8xf32>
    %c0_7 = arith.constant 0 : index
    %c0_8 = arith.constant 0 : index
    %22 = vector.load %arg3[%c0_7, %c0_8] : memref<1x8xf32, #tpu.memory_space<vmem>>, vector<1x8xf32>
    %23 = vector.broadcast %22 : vector<1x8xf32> to vector<64x8xf32>
    %24 = arith.addf %21, %23 : vector<64x8xf32>
    %25 = arith.truncf %24 : vector<64x8xf32> to vector<64x8xbf16>
    %c0_9 = arith.constant 0 : index
    %c0_10 = arith.constant 0 : index
    %26 = vector.load %arg4[%c0_9, %c0_10] : memref<8x40xbf16, #tpu.memory_space<vmem>>, vector<8x40xbf16>
    %cst_11 = arith.constant dense<0.000000e+00> : vector<64x40xf32>
    %27 = tpu.matmul %25, %26, %cst_11 {dimension_numbers = #tpu.dot_dimension_numbers<[1], [0], [0], [1], [0, 0, 1, 1], [], []>} : vector<64x8xbf16>, vector<8x40xbf16>, vector<64x40xf32> -> vector<64x40xf32>
    %c0_12 = arith.constant 0 : index
    %c0_13 = arith.constant 0 : index
    %28 = vector.load %arg5[%c0_12, %c0_13] : memref<1x40xf32, #tpu.memory_space<vmem>>, vector<1x40xf32>
    %29 = vector.broadcast %28 : vector<1x40xf32> to vector<64x40xf32>
    %30 = arith.addf %27, %29 : vector<64x40xf32>
    %c0_14 = arith.constant 0 : index
    %c0_15 = arith.constant 0 : index
    %31 = vector.load %arg6[%c0_14, %c0_15] : memref<64x1xf32, #tpu.memory_space<vmem>>, vector<64x1xf32>
    %32 = vector.extract_strided_slice %30 {offsets = [0, 0], sizes = [64, 8], strides = [1, 1]} : vector<64x40xf32> to vector<64x8xf32>
    %33 = vector.broadcast %31 : vector<64x1xf32> to vector<64x8xf32>
    %34 = arith.mulf %33, %32 : vector<64x8xf32>
    %35 = vector.extract_strided_slice %30 {offsets = [0, 8], sizes = [64, 8], strides = [1, 1]} : vector<64x40xf32> to vector<64x8xf32>
    %36 = arith.negf %35 : vector<64x8xf32>
    %37 = math.exp %36 : vector<64x8xf32>
    %cst_16 = arith.constant 1.000000e+00 : f32
    %38 = vector.broadcast %cst_16 : f32 to vector<64x8xf32>
    %39 = arith.addf %38, %37 : vector<64x8xf32>
    %40 = arith.divf %38, %39 : vector<64x8xf32>
    %41 = arith.mulf %34, %40 : vector<64x8xf32>
    %42 = vector.extract_strided_slice %30 {offsets = [0, 16], sizes = [64, 8], strides = [1, 1]} : vector<64x40xf32> to vector<64x8xf32>
    %43 = vector.broadcast %31 : vector<64x1xf32> to vector<64x8xf32>
    %44 = arith.mulf %43, %42 : vector<64x8xf32>
    %45 = vector.extract_strided_slice %30 {offsets = [0, 24], sizes = [64, 8], strides = [1, 1]} : vector<64x40xf32> to vector<64x8xf32>
    %46 = arith.negf %45 : vector<64x8xf32>
    %47 = math.exp %46 : vector<64x8xf32>
    %cst_17 = arith.constant 1.000000e+00 : f32
    %48 = vector.broadcast %cst_17 : f32 to vector<64x8xf32>
    %49 = arith.addf %48, %47 : vector<64x8xf32>
    %50 = arith.divf %48, %49 : vector<64x8xf32>
    %51 = arith.mulf %44, %50 : vector<64x8xf32>
    %52 = tpu.transpose %41, [1, 0] : vector<64x8xf32> -> vector<8x64xf32>
    %53 = arith.truncf %52 : vector<8x64xf32> to vector<8x64xbf16>
    %c0_18 = arith.constant 0 : index
    %c0_19 = arith.constant 0 : index
    %54 = vector.load %arg7[%c0_18, %c0_19] : memref<8x64xbf16, #tpu.memory_space<vmem>>, vector<8x64xbf16>
    tpu.vector_store %arg7[%c0_18, %c0_19], %53 {strides = array<i32>} : memref<8x64xbf16, #tpu.memory_space<vmem>>, vector<8x64xbf16>,
    %55 = tpu.transpose %51, [1, 0] : vector<64x8xf32> -> vector<8x64xf32>
    %56 = arith.truncf %55 : vector<8x64xf32> to vector<8x64xbf16>
    %c0_20 = arith.constant 0 : index
    %c0_21 = arith.constant 0 : index
    %57 = vector.load %arg8[%c0_20, %c0_21] : memref<8x64xbf16, #tpu.memory_space<vmem>>, vector<8x64xbf16>
    tpu.vector_store %arg8[%c0_20, %c0_21], %56 {strides = array<i32>} : memref<8x64xbf16, #tpu.memory_space<vmem>>, vector<8x64xbf16>,
    %58 = vector.extract_strided_slice %30 {offsets = [0, 32], sizes = [64, 8], strides = [1, 1]} : vector<64x40xf32> to vector<64x8xf32>
    %59 = arith.negf %58 : vector<64x8xf32>
    %60 = math.exp %59 : vector<64x8xf32>
    %cst_22 = arith.constant 1.000000e+00 : f32
    %61 = vector.broadcast %cst_22 : f32 to vector<64x8xf32>
    %62 = arith.addf %61, %60 : vector<64x8xf32>
    %63 = arith.divf %61, %62 : vector<64x8xf32>
    %64 = arith.truncf %63 : vector<64x8xf32> to vector<64x8xbf16>
    %c0_23 = arith.constant 0 : index
    %c0_24 = arith.constant 0 : index
    %65 = vector.load %arg9[%c0_23, %c0_24] : memref<64x8xbf16, #tpu.memory_space<vmem>>, vector<64x8xbf16>
    tpu.vector_store %arg9[%c0_23, %c0_24], %64 {strides = array<i32>} : memref<64x8xbf16, #tpu.memory_space<vmem>>, vector<64x8xbf16>,
    return
  }
  func.func @transform_0(%arg0: i32) -> (i32, i32) {
    %c0_i32 = arith.constant 0 : i32
    %c0_i32_0 = arith.constant 0 : i32
    return %arg0, %c0_i32 : i32, i32
  }
  func.func @transform_1(%arg0: i32) -> (i32, i32) {
    %c0_i32 = arith.constant 0 : i32
    %c0_i32_0 = arith.constant 0 : i32
    %c0_i32_1 = arith.constant 0 : i32
    return %c0_i32, %c0_i32_0 : i32, i32
  }
  func.func @transform_2(%arg0: i32) -> (i32, i32) {
    %c0_i32 = arith.constant 0 : i32
    %c0_i32_0 = arith.constant 0 : i32
    %c0_i32_1 = arith.constant 0 : i32
    return %c0_i32, %c0_i32_0 : i32, i32
  }
  func.func @transform_3(%arg0: i32) -> (i32, i32) {
    %c0_i32 = arith.constant 0 : i32
    %c0_i32_0 = arith.constant 0 : i32
    %c0_i32_1 = arith.constant 0 : i32
    return %c0_i32, %c0_i32_0 : i32, i32
  }
  func.func @transform_4(%arg0: i32) -> (i32, i32) {
    %c0_i32 = arith.constant 0 : i32
    %c0_i32_0 = arith.constant 0 : i32
    %c0_i32_1 = arith.constant 0 : i32
    return %c0_i32, %c0_i32_0 : i32, i32
  }
  func.func @transform_5(%arg0: i32) -> (i32, i32) {
    %c0_i32 = arith.constant 0 : i32
    %c0_i32_0 = arith.constant 0 : i32
    return %arg0, %c0_i32 : i32, i32
  }
  func.func @transform_6(%arg0: i32) -> (i32, i32) {
    %c0_i32 = arith.constant 0 : i32
    %c0_i32_0 = arith.constant 0 : i32
    return %c0_i32, %arg0 : i32, i32
  }
  func.func @transform_7(%arg0: i32) -> (i32, i32) {
    %c0_i32 = arith.constant 0 : i32
    %c0_i32_0 = arith.constant 0 : i32
    return %c0_i32, %arg0 : i32, i32
  }
  func.func @transform_8(%arg0: i32) -> (i32, i32) {
    %c0_i32 = arith.constant 0 : i32
    %c0_i32_0 = arith.constant 0 : i32
    return %arg0, %c0_i32 : i32, i32
  }
}

module attributes {stable_mosaic.version = 11 : i64} {
  func.func @_trimul_mul_kernel(%arg0: i32, %arg1: memref<8x8x8xbf16, #tpu.memory_space<vmem>>, %arg2: memref<8x8x8xbf16, #tpu.memory_space<vmem>>, %arg3: memref<8x8x8xbf16, #tpu.memory_space<vmem>>) attributes {dimension_semantics = [#tpu.dimension_semantics<parallel>], iteration_bounds = array<i64: 1>, scalar_prefetch = 0 : i64, scratch_operands = 0 : i64, tpu.core_type = #tpu.core_type<tc>, window_params = [{transform_indices = @transform_0, window_bounds = array<i64: 8, 8, 8>}, {transform_indices = @transform_1, window_bounds = array<i64: 8, 8, 8>}, {transform_indices = @transform_2, window_bounds = array<i64: 8, 8, 8>}]} {
    %c0 = arith.constant 0 : index
    %c0_0 = arith.constant 0 : index
    %c0_1 = arith.constant 0 : index
    %0 = vector.load %arg1[%c0, %c0_0, %c0_1] : memref<8x8x8xbf16, #tpu.memory_space<vmem>>, vector<8x8x8xbf16>
    %c0_2 = arith.constant 0 : index
    %c0_3 = arith.constant 0 : index
    %c0_4 = arith.constant 0 : index
    %1 = vector.load %arg2[%c0_2, %c0_3, %c0_4] : memref<8x8x8xbf16, #tpu.memory_space<vmem>>, vector<8x8x8xbf16>
    "tpu.trace_start"() <{level = 10 : i32, message = "cik,cjk->cij"}> : () -> ()
    %cst = arith.constant dense<0.000000e+00> : vector<8x8x8xf32>
    %2 = tpu.matmul %0, %1, %cst {dimension_numbers = #tpu.dot_dimension_numbers<[2], [2], [1], [1], [0, 0, 0, 1, 1, 1], [0], [0]>} : vector<8x8x8xbf16>, vector<8x8x8xbf16>, vector<8x8x8xf32> -> vector<8x8x8xf32>
    "tpu.trace_stop"() : () -> ()
    %3 = arith.truncf %2 : vector<8x8x8xf32> to vector<8x8x8xbf16>
    %c0_5 = arith.constant 0 : index
    %c0_6 = arith.constant 0 : index
    %c0_7 = arith.constant 0 : index
    %4 = vector.load %arg3[%c0_5, %c0_6, %c0_7] : memref<8x8x8xbf16, #tpu.memory_space<vmem>>, vector<8x8x8xbf16>
    tpu.vector_store %arg3[%c0_5, %c0_6, %c0_7], %3 {strides = array<i32>} : memref<8x8x8xbf16, #tpu.memory_space<vmem>>, vector<8x8x8xbf16>,
    return
  }
  func.func @transform_0(%arg0: i32) -> (i32, i32, i32) {
    %c0_i32 = arith.constant 0 : i32
    %c0_i32_0 = arith.constant 0 : i32
    %c0_i32_1 = arith.constant 0 : i32
    return %arg0, %c0_i32, %c0_i32_0 : i32, i32, i32
  }
  func.func @transform_1(%arg0: i32) -> (i32, i32, i32) {
    %c0_i32 = arith.constant 0 : i32
    %c0_i32_0 = arith.constant 0 : i32
    %c0_i32_1 = arith.constant 0 : i32
    return %arg0, %c0_i32, %c0_i32_0 : i32, i32, i32
  }
  func.func @transform_2(%arg0: i32) -> (i32, i32, i32) {
    %c0_i32 = arith.constant 0 : i32
    %c0_i32_0 = arith.constant 0 : i32
    %c0_i32_1 = arith.constant 0 : i32
    return %arg0, %c0_i32, %c0_i32_0 : i32, i32, i32
  }
}

module attributes {stable_mosaic.version = 11 : i64} {
  func.func @_fused_linear_kernel(%arg0: i32, %arg1: memref<8x64xbf16, #tpu.memory_space<vmem>>, %arg2: memref<1x8xf32, #tpu.memory_space<vmem>>, %arg3: memref<1x8xf32, #tpu.memory_space<vmem>>, %arg4: memref<8x8xbf16, #tpu.memory_space<vmem>>, %arg5: memref<1x8xf32, #tpu.memory_space<vmem>>, %arg6: memref<64x8xbf16, #tpu.memory_space<vmem>>, %arg7: memref<64x8xf32, #tpu.memory_space<vmem>>, %arg8: memref<64x8xf32, #tpu.memory_space<vmem>>) attributes {dimension_semantics = [#tpu.dimension_semantics<parallel>], iteration_bounds = array<i64: 1>, scalar_prefetch = 0 : i64, scratch_operands = 0 : i64, tpu.core_type = #tpu.core_type<tc>, window_params = [{transform_indices = @transform_0, window_bounds = array<i64: 8, 64>}, {pipeline_mode = #tpu.pipeline_mode<synchronous>, transform_indices = @transform_1, window_bounds = array<i64: 1, 8>}, {pipeline_mode = #tpu.pipeline_mode<synchronous>, transform_indices = @transform_2, window_bounds = array<i64: 1, 8>}, {pipeline_mode = #tpu.pipeline_mode<synchronous>, transform_indices = @transform_3, window_bounds = array<i64: 8, 8>}, {pipeline_mode = #tpu.pipeline_mode<synchronous>, transform_indices = @transform_4, window_bounds = array<i64: 1, 8>}, {transform_indices = @transform_5, window_bounds = array<i64: 64, 8>}, {transform_indices = @transform_6, window_bounds = array<i64: 64, 8>}, {transform_indices = @transform_7, window_bounds = array<i64: 64, 8>}]} {
    %c0 = arith.constant 0 : index
    %c0_0 = arith.constant 0 : index
    %0 = vector.load %arg1[%c0, %c0_0] : memref<8x64xbf16, #tpu.memory_space<vmem>>, vector<8x64xbf16>
    %1 = arith.extf %0 : vector<8x64xbf16> to vector<8x64xf32>
    %2 = tpu.transpose %1, [1, 0] : vector<8x64xf32> -> vector<64x8xf32>
    %cst = arith.constant dense<0.000000e+00> : vector<64xf32>
    %3 = vector.multi_reduction <add>, %2, %cst [1] : vector<64x8xf32> to vector<64xf32>
    %4 = vector.shape_cast %3 : vector<64xf32> to vector<64x1xf32>
    %cst_1 = arith.constant 8.000000e+00 : f32
    %5 = vector.broadcast %cst_1 : f32 to vector<64x1xf32>
    %6 = arith.divf %4, %5 : vector<64x1xf32>
    %7 = vector.broadcast %6 : vector<64x1xf32> to vector<64x8xf32>
    %8 = arith.subf %2, %7 : vector<64x8xf32>
    %9 = arith.mulf %8, %8 : vector<64x8xf32>
    %cst_2 = arith.constant dense<0.000000e+00> : vector<64xf32>
    %10 = vector.multi_reduction <add>, %9, %cst_2 [1] : vector<64x8xf32> to vector<64xf32>
    %11 = vector.shape_cast %10 : vector<64xf32> to vector<64x1xf32>
    %cst_3 = arith.constant 8.000000e+00 : f32
    %12 = vector.broadcast %cst_3 : f32 to vector<64x1xf32>
    %13 = arith.divf %11, %12 : vector<64x1xf32>
    %14 = vector.broadcast %6 : vector<64x1xf32> to vector<64x8xf32>
    %15 = arith.subf %2, %14 : vector<64x8xf32>
    %cst_4 = arith.constant 9.99999974E-6 : f32
    %16 = vector.broadcast %cst_4 : f32 to vector<64x1xf32>
    %17 = arith.addf %13, %16 : vector<64x1xf32>
    %18 = math.rsqrt %17 : vector<64x1xf32>
    %19 = vector.broadcast %18 : vector<64x1xf32> to vector<64x8xf32>
    %20 = arith.mulf %15, %19 : vector<64x8xf32>
    %c0_5 = arith.constant 0 : index
    %c0_6 = arith.constant 0 : index
    %21 = vector.load %arg2[%c0_5, %c0_6] : memref<1x8xf32, #tpu.memory_space<vmem>>, vector<1x8xf32>
    %22 = vector.broadcast %21 : vector<1x8xf32> to vector<64x8xf32>
    %23 = arith.mulf %20, %22 : vector<64x8xf32>
    %c0_7 = arith.constant 0 : index
    %c0_8 = arith.constant 0 : index
    %24 = vector.load %arg3[%c0_7, %c0_8] : memref<1x8xf32, #tpu.memory_space<vmem>>, vector<1x8xf32>
    %25 = vector.broadcast %24 : vector<1x8xf32> to vector<64x8xf32>
    %26 = arith.addf %23, %25 : vector<64x8xf32>
    %27 = arith.truncf %26 : vector<64x8xf32> to vector<64x8xbf16>
    %c0_9 = arith.constant 0 : index
    %c0_10 = arith.constant 0 : index
    %28 = vector.load %arg4[%c0_9, %c0_10] : memref<8x8xbf16, #tpu.memory_space<vmem>>, vector<8x8xbf16>
    %cst_11 = arith.constant dense<0.000000e+00> : vector<64x8xf32>
    %29 = tpu.matmul %27, %28, %cst_11 {dimension_numbers = #tpu.dot_dimension_numbers<[1], [0], [0], [1], [0, 0, 1, 1], [], []>} : vector<64x8xbf16>, vector<8x8xbf16>, vector<64x8xf32> -> vector<64x8xf32>
    %c0_12 = arith.constant 0 : index
    %c0_13 = arith.constant 0 : index
    %30 = vector.load %arg5[%c0_12, %c0_13] : memref<1x8xf32, #tpu.memory_space<vmem>>, vector<1x8xf32>
    %31 = vector.broadcast %30 : vector<1x8xf32> to vector<64x8xf32>
    %32 = arith.addf %29, %31 : vector<64x8xf32>
    %c0_14 = arith.constant 0 : index
    %c0_15 = arith.constant 0 : index
    %33 = vector.load %arg6[%c0_14, %c0_15] : memref<64x8xbf16, #tpu.memory_space<vmem>>, vector<64x8xbf16>
    %34 = arith.extf %33 : vector<64x8xbf16> to vector<64x8xf32>
    %35 = arith.mulf %32, %34 : vector<64x8xf32>
    %c0_16 = arith.constant 0 : index
    %c0_17 = arith.constant 0 : index
    %36 = vector.load %arg7[%c0_16, %c0_17] : memref<64x8xf32, #tpu.memory_space<vmem>>, vector<64x8xf32>
    %37 = arith.addf %35, %36 : vector<64x8xf32>
    %c0_18 = arith.constant 0 : index
    %c0_19 = arith.constant 0 : index
    %38 = vector.load %arg8[%c0_18, %c0_19] : memref<64x8xf32, #tpu.memory_space<vmem>>, vector<64x8xf32>
    tpu.vector_store %arg8[%c0_18, %c0_19], %37 {strides = array<i32>} : memref<64x8xf32, #tpu.memory_space<vmem>>, vector<64x8xf32>,
    return
  }
  func.func @transform_0(%arg0: i32) -> (i32, i32) {
    %c0_i32 = arith.constant 0 : i32
    %c0_i32_0 = arith.constant 0 : i32
    return %c0_i32, %arg0 : i32, i32
  }
  func.func @transform_1(%arg0: i32) -> (i32, i32) {
    %c0_i32 = arith.constant 0 : i32
    %c0_i32_0 = arith.constant 0 : i32
    %c0_i32_1 = arith.constant 0 : i32
    return %c0_i32, %c0_i32_0 : i32, i32
  }
  func.func @transform_2(%arg0: i32) -> (i32, i32) {
    %c0_i32 = arith.constant 0 : i32
    %c0_i32_0 = arith.constant 0 : i32
    %c0_i32_1 = arith.constant 0 : i32
    return %c0_i32, %c0_i32_0 : i32, i32
  }
  func.func @transform_3(%arg0: i32) -> (i32, i32) {
    %c0_i32 = arith.constant 0 : i32
    %c0_i32_0 = arith.constant 0 : i32
    %c0_i32_1 = arith.constant 0 : i32
    return %c0_i32, %c0_i32_0 : i32, i32
  }
  func.func @transform_4(%arg0: i32) -> (i32, i32) {
    %c0_i32 = arith.constant 0 : i32
    %c0_i32_0 = arith.constant 0 : i32
    %c0_i32_1 = arith.constant 0 : i32
    return %c0_i32, %c0_i32_0 : i32, i32
  }
  func.func @transform_5(%arg0: i32) -> (i32, i32) {
    %c0_i32 = arith.constant 0 : i32
    %c0_i32_0 = arith.constant 0 : i32
    return %arg0, %c0_i32 : i32, i32
  }
  func.func @transform_6(%arg0: i32) -> (i32, i32) {
    %c0_i32 = arith.constant 0 : i32
    %c0_i32_0 = arith.constant 0 : i32
    return %arg0, %c0_i32 : i32, i32
  }
  func.func @transform_7(%arg0: i32) -> (i32, i32) {
    %c0_i32 = arith.constant 0 : i32
    %c0_i32_0 = arith.constant 0 : i32
    return %arg0, %c0_i32 : i32, i32
  }
}

module attributes {stable_mosaic.version = 11 : i64} {
  func.func @_trimul_mul_kernel(%arg0: i32, %arg1: memref<8x8x8xbf16, #tpu.memory_space<vmem>>, %arg2: memref<8x8x8xbf16, #tpu.memory_space<vmem>>, %arg3: memref<8x8x8xbf16, #tpu.memory_space<vmem>>) attributes {dimension_semantics = [#tpu.dimension_semantics<parallel>], iteration_bounds = array<i64: 1>, scalar_prefetch = 0 : i64, scratch_operands = 0 : i64, tpu.core_type = #tpu.core_type<tc>, window_params = [{transform_indices = @transform_0, window_bounds = array<i64: 8, 8, 8>}, {transform_indices = @transform_1, window_bounds = array<i64: 8, 8, 8>}, {transform_indices = @transform_2, window_bounds = array<i64: 8, 8, 8>}]} {
    %c0 = arith.constant 0 : index
    %c0_0 = arith.constant 0 : index
    %c0_1 = arith.constant 0 : index
    %0 = vector.load %arg1[%c0, %c0_0, %c0_1] : memref<8x8x8xbf16, #tpu.memory_space<vmem>>, vector<8x8x8xbf16>
    %c0_2 = arith.constant 0 : index
    %c0_3 = arith.constant 0 : index
    %c0_4 = arith.constant 0 : index
    %1 = vector.load %arg2[%c0_2, %c0_3, %c0_4] : memref<8x8x8xbf16, #tpu.memory_space<vmem>>, vector<8x8x8xbf16>
    %2 = tpu.transpose %0, [0, 2, 1] : vector<8x8x8xbf16> -> vector<8x8x8xbf16>
    "tpu.trace_start"() <{level = 10 : i32, message = "cik,ckj->cij"}> : () -> ()
    %cst = arith.constant dense<0.000000e+00> : vector<8x8x8xf32>
    %3 = tpu.matmul %2, %1, %cst {dimension_numbers = #tpu.dot_dimension_numbers<[2], [1], [1], [2], [0, 0, 0, 1, 1, 2], [0], [0]>} : vector<8x8x8xbf16>, vector<8x8x8xbf16>, vector<8x8x8xf32> -> vector<8x8x8xf32>
    "tpu.trace_stop"() : () -> ()
    %4 = arith.truncf %3 : vector<8x8x8xf32> to vector<8x8x8xbf16>
    %c0_5 = arith.constant 0 : index
    %c0_6 = arith.constant 0 : index
    %c0_7 = arith.constant 0 : index
    %5 = vector.load %arg3[%c0_5, %c0_6, %c0_7] : memref<8x8x8xbf16, #tpu.memory_space<vmem>>, vector<8x8x8xbf16>
    tpu.vector_store %arg3[%c0_5, %c0_6, %c0_7], %4 {strides = array<i32>} : memref<8x8x8xbf16, #tpu.memory_space<vmem>>, vector<8x8x8xbf16>,
    return
  }
  func.func @transform_0(%arg0: i32) -> (i32, i32, i32) {
    %c0_i32 = arith.constant 0 : i32
    %c0_i32_0 = arith.constant 0 : i32
    %c0_i32_1 = arith.constant 0 : i32
    return %arg0, %c0_i32, %c0_i32_0 : i32, i32, i32
  }
  func.func @transform_1(%arg0: i32) -> (i32, i32, i32) {
    %c0_i32 = arith.constant 0 : i32
    %c0_i32_0 = arith.constant 0 : i32
    %c0_i32_1 = arith.constant 0 : i32
    return %arg0, %c0_i32, %c0_i32_0 : i32, i32, i32
  }
  func.func @transform_2(%arg0: i32) -> (i32, i32, i32) {
    %c0_i32 = arith.constant 0 : i32
    %c0_i32_0 = arith.constant 0 : i32
    %c0_i32_1 = arith.constant 0 : i32
    return %arg0, %c0_i32, %c0_i32_0 : i32, i32, i32
  }
}

module attributes {stable_mosaic.version = 11 : i64} {
  func.func @_attention_kernel(%arg0: i32, %arg1: i32, %arg2: memref<1x8x16xbf16, #tpu.memory_space<vmem>>, %arg3: memref<1x8x16xbf16, #tpu.memory_space<vmem>>, %arg4: memref<1x8x16xbf16, #tpu.memory_space<vmem>>, %arg5: memref<2x8x8xbf16, #tpu.memory_space<vmem>>, %arg6: memref<1x1x8xf32, #tpu.memory_space<vmem>>, %arg7: memref<1x8x16xbf16, #tpu.memory_space<vmem>>) attributes {dimension_semantics = [#tpu.dimension_semantics<parallel>, #tpu.dimension_semantics<parallel>], iteration_bounds = array<i64: 8, 1>, scalar_prefetch = 0 : i64, scratch_operands = 0 : i64, tpu.core_type = #tpu.core_type<tc>, window_params = [{transform_indices = @transform_0, window_bounds = array<i64: 1, 8, 16>}, {transform_indices = @transform_1, window_bounds = array<i64: 1, 8, 16>}, {transform_indices = @transform_2, window_bounds = array<i64: 1, 8, 16>}, {transform_indices = @transform_3, window_bounds = array<i64: 2, 8, 8>}, {transform_indices = @transform_4, window_bounds = array<i64: 1, 1, 8>}, {transform_indices = @transform_5, window_bounds = array<i64: 1, 8, 16>}]} {
    %c0 = arith.constant 0 : index
    %c0_0 = arith.constant 0 : index
    %c0_1 = arith.constant 0 : index
    %0 = vector.load %arg2[%c0, %c0_0, %c0_1] : memref<1x8x16xbf16, #tpu.memory_space<vmem>>, vector<1x8x16xbf16>
    %1 = vector.shape_cast %0 : vector<1x8x16xbf16> to vector<8x16xbf16>
    %c0_2 = arith.constant 0 : index
    %c0_3 = arith.constant 0 : index
    %c0_4 = arith.constant 0 : index
    %2 = vector.load %arg3[%c0_2, %c0_3, %c0_4] : memref<1x8x16xbf16, #tpu.memory_space<vmem>>, vector<1x8x16xbf16>
    %3 = vector.shape_cast %2 : vector<1x8x16xbf16> to vector<8x16xbf16>
    %c0_5 = arith.constant 0 : index
    %c0_6 = arith.constant 0 : index
    %c0_7 = arith.constant 0 : index
    %4 = vector.load %arg4[%c0_5, %c0_6, %c0_7] : memref<1x8x16xbf16, #tpu.memory_space<vmem>>, vector<1x8x16xbf16>
    %5 = vector.shape_cast %4 : vector<1x8x16xbf16> to vector<8x16xbf16>
    %c0_8 = arith.constant 0 : index
    %c0_9 = arith.constant 0 : index
    %c0_10 = arith.constant 0 : index
    %6 = vector.load %arg6[%c0_8, %c0_9, %c0_10] : memref<1x1x8xf32, #tpu.memory_space<vmem>>, vector<1x1x8xf32>
    %7 = vector.shape_cast %6 : vector<1x1x8xf32> to vector<1x8xf32>
    %8 = vector.extract_strided_slice %1 {offsets = [0, 0], sizes = [8, 8], strides = [1, 1]} : vector<8x16xbf16> to vector<8x8xbf16>
    %9 = vector.extract_strided_slice %3 {offsets = [0, 0], sizes = [8, 8], strides = [1, 1]} : vector<8x16xbf16> to vector<8x8xbf16>
    %10 = vector.extract_strided_slice %5 {offsets = [0, 0], sizes = [8, 8], strides = [1, 1]} : vector<8x16xbf16> to vector<8x8xbf16>
    %cst = arith.constant dense<0.000000e+00> : vector<8x8xf32>
    %11 = tpu.matmul %8, %9, %cst {dimension_numbers = #tpu.dot_dimension_numbers<[1], [1], [0], [0], [0, 0, 1, 0], [], []>} : vector<8x8xbf16>, vector<8x8xbf16>, vector<8x8xf32> -> vector<8x8xf32>
    %cst_11 = arith.constant 0.353553385 : f32
    %12 = vector.broadcast %cst_11 : f32 to vector<8x8xf32>
    %13 = arith.mulf %11, %12 : vector<8x8xf32>
    %c0_12 = arith.constant 0 : index
    %c0_13 = arith.constant 0 : index
    %c0_14 = arith.constant 0 : index
    %14 = vector.load %arg5[%c0_12, %c0_13, %c0_14] : memref<2x8x8xbf16, #tpu.memory_space<vmem>>, vector<1x8x8xbf16>
    %15 = vector.shape_cast %14 : vector<1x8x8xbf16> to vector<8x8xbf16>
    %16 = arith.extf %15 : vector<8x8xbf16> to vector<8x8xf32>
    %17 = arith.addf %13, %16 : vector<8x8xf32>
    %18 = vector.broadcast %7 : vector<1x8xf32> to vector<8x8xf32>
    %19 = arith.addf %17, %18 : vector<8x8xf32>
    %cst_15 = arith.constant dense<0xFF800000> : vector<8xf32>
    %20 = vector.multi_reduction <maximumf>, %19, %cst_15 [1] : vector<8x8xf32> to vector<8xf32>
    %21 = vector.shape_cast %20 : vector<8xf32> to vector<8x1xf32>
    %22 = vector.broadcast %21 : vector<8x1xf32> to vector<8x8xf32>
    %23 = arith.subf %19, %22 : vector<8x8xf32>
    %24 = math.exp %23 : vector<8x8xf32>
    %cst_16 = arith.constant dense<0.000000e+00> : vector<8xf32>
    %25 = vector.multi_reduction <add>, %24, %cst_16 [1] : vector<8x8xf32> to vector<8xf32>
    %26 = vector.shape_cast %25 : vector<8xf32> to vector<8x1xf32>
    %27 = tpu.reciprocal %26 {approx = true} : vector<8x1xf32> -> vector<8x1xf32>
    %28 = vector.broadcast %27 : vector<8x1xf32> to vector<8x8xf32>
    %29 = arith.mulf %24, %28 : vector<8x8xf32>
    %30 = arith.truncf %29 : vector<8x8xf32> to vector<8x8xbf16>
    %cst_17 = arith.constant dense<0.000000e+00> : vector<8x8xf32>
    %31 = tpu.matmul %30, %10, %cst_17 {dimension_numbers = #tpu.dot_dimension_numbers<[1], [0], [0], [1], [0, 0, 1, 1], [], []>} : vector<8x8xbf16>, vector<8x8xbf16>, vector<8x8xf32> -> vector<8x8xf32>
    %32 = vector.extract_strided_slice %1 {offsets = [0, 8], sizes = [8, 8], strides = [1, 1]} : vector<8x16xbf16> to vector<8x8xbf16>
    %33 = vector.extract_strided_slice %3 {offsets = [0, 8], sizes = [8, 8], strides = [1, 1]} : vector<8x16xbf16> to vector<8x8xbf16>
    %34 = vector.extract_strided_slice %5 {offsets = [0, 8], sizes = [8, 8], strides = [1, 1]} : vector<8x16xbf16> to vector<8x8xbf16>
    %cst_18 = arith.constant dense<0.000000e+00> : vector<8x8xf32>
    %35 = tpu.matmul %32, %33, %cst_18 {dimension_numbers = #tpu.dot_dimension_numbers<[1], [1], [0], [0], [0, 0, 1, 0], [], []>} : vector<8x8xbf16>, vector<8x8xbf16>, vector<8x8xf32> -> vector<8x8xf32>
    %cst_19 = arith.constant 0.353553385 : f32
    %36 = vector.broadcast %cst_19 : f32 to vector<8x8xf32>
    %37 = arith.mulf %35, %36 : vector<8x8xf32>
    %c1 = arith.constant 1 : index
    %c0_20 = arith.constant 0 : index
    %c0_21 = arith.constant 0 : index
    %38 = vector.load %arg5[%c1, %c0_20, %c0_21] : memref<2x8x8xbf16, #tpu.memory_space<vmem>>, vector<1x8x8xbf16>
    %39 = vector.shape_cast %38 : vector<1x8x8xbf16> to vector<8x8xbf16>
    %40 = arith.extf %39 : vector<8x8xbf16> to vector<8x8xf32>
    %41 = arith.addf %37, %40 : vector<8x8xf32>
    %42 = vector.broadcast %7 : vector<1x8xf32> to vector<8x8xf32>
    %43 = arith.addf %41, %42 : vector<8x8xf32>
    %cst_22 = arith.constant dense<0xFF800000> : vector<8xf32>
    %44 = vector.multi_reduction <maximumf>, %43, %cst_22 [1] : vector<8x8xf32> to vector<8xf32>
    %45 = vector.shape_cast %44 : vector<8xf32> to vector<8x1xf32>
    %46 = vector.broadcast %45 : vector<8x1xf32> to vector<8x8xf32>
    %47 = arith.subf %43, %46 : vector<8x8xf32>
    %48 = math.exp %47 : vector<8x8xf32>
    %cst_23 = arith.constant dense<0.000000e+00> : vector<8xf32>
    %49 = vector.multi_reduction <add>, %48, %cst_23 [1] : vector<8x8xf32> to vector<8xf32>
    %50 = vector.shape_cast %49 : vector<8xf32> to vector<8x1xf32>
    %51 = tpu.reciprocal %50 {approx = true} : vector<8x1xf32> -> vector<8x1xf32>
    %52 = vector.broadcast %51 : vector<8x1xf32> to vector<8x8xf32>
    %53 = arith.mulf %48, %52 : vector<8x8xf32>
    %54 = arith.truncf %53 : vector<8x8xf32> to vector<8x8xbf16>
    %cst_24 = arith.constant dense<0.000000e+00> : vector<8x8xf32>
    %55 = tpu.matmul %54, %34, %cst_24 {dimension_numbers = #tpu.dot_dimension_numbers<[1], [0], [0], [1], [0, 0, 1, 1], [], []>} : vector<8x8xbf16>, vector<8x8xbf16>, vector<8x8xf32> -> vector<8x8xf32>
    %56 = tpu.concatenate %31, %55 in 1 : vector<8x8xf32>, vector<8x8xf32> -> vector<8x16xf32>
    %57 = arith.truncf %56 : vector<8x16xf32> to vector<8x16xbf16>
    %c0_25 = arith.constant 0 : index
    %c0_26 = arith.constant 0 : index
    %c0_27 = arith.constant 0 : index
    %58 = vector.load %arg7[%c0_25, %c0_26, %c0_27] : memref<1x8x16xbf16, #tpu.memory_space<vmem>>, vector<1x8x16xbf16>
    %59 = vector.shape_cast %58 : vector<1x8x16xbf16> to vector<8x16xbf16>
    %60 = vector.shape_cast %57 : vector<8x16xbf16> to vector<1x8x16xbf16>
    tpu.vector_store %arg7[%c0_25, %c0_26, %c0_27], %60 {strides = array<i32>} : memref<1x8x16xbf16, #tpu.memory_space<vmem>>, vector<1x8x16xbf16>,
    return
  }
  func.func @transform_0(%arg0: i32, %arg1: i32) -> (i32, i32, i32) {
    %c0_i32 = arith.constant 0 : i32
    %c0_i32_0 = arith.constant 0 : i32
    return %arg0, %arg1, %c0_i32 : i32, i32, i32
  }
  func.func @transform_1(%arg0: i32, %arg1: i32) -> (i32, i32, i32) {
    %c0_i32 = arith.constant 0 : i32
    %c0_i32_0 = arith.constant 0 : i32
    %c0_i32_1 = arith.constant 0 : i32
    return %arg0, %c0_i32, %c0_i32_0 : i32, i32, i32
  }
  func.func @transform_2(%arg0: i32, %arg1: i32) -> (i32, i32, i32) {
    %c0_i32 = arith.constant 0 : i32
    %c0_i32_0 = arith.constant 0 : i32
    %c0_i32_1 = arith.constant 0 : i32
    return %arg0, %c0_i32, %c0_i32_0 : i32, i32, i32
  }
  func.func @transform_3(%arg0: i32, %arg1: i32) -> (i32, i32, i32) {
    %c0_i32 = arith.constant 0 : i32
    %c0_i32_0 = arith.constant 0 : i32
    %c0_i32_1 = arith.constant 0 : i32
    return %c0_i32, %arg1, %c0_i32_0 : i32, i32, i32
  }
  func.func @transform_4(%arg0: i32, %arg1: i32) -> (i32, i32, i32) {
    %c0_i32 = arith.constant 0 : i32
    %c0_i32_0 = arith.constant 0 : i32
    %c0_i32_1 = arith.constant 0 : i32
    return %arg0, %c0_i32, %c0_i32_0 : i32, i32, i32
  }
  func.func @transform_5(%arg0: i32, %arg1: i32) -> (i32, i32, i32) {
    %c0_i32 = arith.constant 0 : i32
    %c0_i32_0 = arith.constant 0 : i32
    return %arg0, %arg1, %c0_i32 : i32, i32, i32
  }
}

module attributes {stable_mosaic.version = 11 : i64} {
  func.func @_attn_proj_kernel(%arg0: i32, %arg1: memref<64x8xf32, #tpu.memory_space<vmem>>, %arg2: memref<1x8xf32, #tpu.memory_space<vmem>>, %arg3: memref<1x8xf32, #tpu.memory_space<vmem>>, %arg4: memref<8x66xbf16, #tpu.memory_space<vmem>>, %arg5: memref<1x66xf32, #tpu.memory_space<vmem>>, %arg6: memref<64x16xbf16, #tpu.memory_space<vmem>>, %arg7: memref<64x16xbf16, #tpu.memory_space<vmem>>, %arg8: memref<64x16xbf16, #tpu.memory_space<vmem>>, %arg9: memref<64x16xbf16, #tpu.memory_space<vmem>>, %arg10: memref<2x64xbf16, #tpu.memory_space<vmem>>) attributes {dimension_semantics = [#tpu.dimension_semantics<parallel>], iteration_bounds = array<i64: 1>, scalar_prefetch = 0 : i64, scratch_operands = 0 : i64, tpu.core_type = #tpu.core_type<tc>, window_params = [{transform_indices = @transform_0, window_bounds = array<i64: 64, 8>}, {pipeline_mode = #tpu.pipeline_mode<synchronous>, transform_indices = @transform_1, window_bounds = array<i64: 1, 8>}, {pipeline_mode = #tpu.pipeline_mode<synchronous>, transform_indices = @transform_2, window_bounds = array<i64: 1, 8>}, {pipeline_mode = #tpu.pipeline_mode<synchronous>, transform_indices = @transform_3, window_bounds = array<i64: 8, 66>}, {pipeline_mode = #tpu.pipeline_mode<synchronous>, transform_indices = @transform_4, window_bounds = array<i64: 1, 66>}, {transform_indices = @transform_5, window_bounds = array<i64: 64, 16>}, {transform_indices = @transform_6, window_bounds = array<i64: 64, 16>}, {transform_indices = @transform_7, window_bounds = array<i64: 64, 16>}, {transform_indices = @transform_8, window_bounds = array<i64: 64, 16>}, {transform_indices = @transform_9, window_bounds = array<i64: 2, 64>}]} {
    %c0 = arith.constant 0 : index
    %c0_0 = arith.constant 0 : index
    %0 = vector.load %arg1[%c0, %c0_0] : memref<64x8xf32, #tpu.memory_space<vmem>>, vector<64x8xf32>
    %cst = arith.constant dense<0.000000e+00> : vector<64xf32>
    %1 = vector.multi_reduction <add>, %0, %cst [1] : vector<64x8xf32> to vector<64xf32>
    %2 = vector.shape_cast %1 : vector<64xf32> to vector<64x1xf32>
    %cst_1 = arith.constant 8.000000e+00 : f32
    %3 = vector.broadcast %cst_1 : f32 to vector<64x1xf32>
    %4 = arith.divf %2, %3 : vector<64x1xf32>
    %5 = vector.broadcast %4 : vector<64x1xf32> to vector<64x8xf32>
    %6 = arith.subf %0, %5 : vector<64x8xf32>
    %7 = arith.mulf %6, %6 : vector<64x8xf32>
    %cst_2 = arith.constant dense<0.000000e+00> : vector<64xf32>
    %8 = vector.multi_reduction <add>, %7, %cst_2 [1] : vector<64x8xf32> to vector<64xf32>
    %9 = vector.shape_cast %8 : vector<64xf32> to vector<64x1xf32>
    %cst_3 = arith.constant 8.000000e+00 : f32
    %10 = vector.broadcast %cst_3 : f32 to vector<64x1xf32>
    %11 = arith.divf %9, %10 : vector<64x1xf32>
    %12 = vector.broadcast %4 : vector<64x1xf32> to vector<64x8xf32>
    %13 = arith.subf %0, %12 : vector<64x8xf32>
    %cst_4 = arith.constant 9.99999974E-6 : f32
    %14 = vector.broadcast %cst_4 : f32 to vector<64x1xf32>
    %15 = arith.addf %11, %14 : vector<64x1xf32>
    %16 = math.rsqrt %15 : vector<64x1xf32>
    %17 = vector.broadcast %16 : vector<64x1xf32> to vector<64x8xf32>
    %18 = arith.mulf %13, %17 : vector<64x8xf32>
    %c0_5 = arith.constant 0 : index
    %c0_6 = arith.constant 0 : index
    %19 = vector.load %arg2[%c0_5, %c0_6] : memref<1x8xf32, #tpu.memory_space<vmem>>, vector<1x8xf32>
    %20 = vector.broadcast %19 : vector<1x8xf32> to vector<64x8xf32>
    %21 = arith.mulf %18, %20 : vector<64x8xf32>
    %c0_7 = arith.constant 0 : index
    %c0_8 = arith.constant 0 : index
    %22 = vector.load %arg3[%c0_7, %c0_8] : memref<1x8xf32, #tpu.memory_space<vmem>>, vector<1x8xf32>
    %23 = vector.broadcast %22 : vector<1x8xf32> to vector<64x8xf32>
    %24 = arith.addf %21, %23 : vector<64x8xf32>
    %25 = arith.truncf %24 : vector<64x8xf32> to vector<64x8xbf16>
    %c0_9 = arith.constant 0 : index
    %c0_10 = arith.constant 0 : index
    %26 = vector.load %arg4[%c0_9, %c0_10] : memref<8x66xbf16, #tpu.memory_space<vmem>>, vector<8x66xbf16>
    %cst_11 = arith.constant dense<0.000000e+00> : vector<64x66xf32>
    %27 = tpu.matmul %25, %26, %cst_11 {dimension_numbers = #tpu.dot_dimension_numbers<[1], [0], [0], [1], [0, 0, 1, 1], [], []>} : vector<64x8xbf16>, vector<8x66xbf16>, vector<64x66xf32> -> vector<64x66xf32>
    %c0_12 = arith.constant 0 : index
    %c0_13 = arith.constant 0 : index
    %28 = vector.load %arg5[%c0_12, %c0_13] : memref<1x66xf32, #tpu.memory_space<vmem>>, vector<1x66xf32>
    %29 = vector.broadcast %28 : vector<1x66xf32> to vector<64x66xf32>
    %30 = arith.addf %27, %29 : vector<64x66xf32>
    %31 = vector.extract_strided_slice %30 {offsets = [0, 0], sizes = [64, 16], strides = [1, 1]} : vector<64x66xf32> to vector<64x16xf32>
    %32 = arith.truncf %31 : vector<64x16xf32> to vector<64x16xbf16>
    %c0_14 = arith.constant 0 : index
    %c0_15 = arith.constant 0 : index
    %33 = vector.load %arg6[%c0_14, %c0_15] : memref<64x16xbf16, #tpu.memory_space<vmem>>, vector<64x16xbf16>
    tpu.vector_store %arg6[%c0_14, %c0_15], %32 {strides = array<i32>} : memref<64x16xbf16, #tpu.memory_space<vmem>>, vector<64x16xbf16>,
    %34 = vector.extract_strided_slice %30 {offsets = [0, 16], sizes = [64, 16], strides = [1, 1]} : vector<64x66xf32> to vector<64x16xf32>
    %35 = arith.truncf %34 : vector<64x16xf32> to vector<64x16xbf16>
    %c0_16 = arith.constant 0 : index
    %c0_17 = arith.constant 0 : index
    %36 = vector.load %arg7[%c0_16, %c0_17] : memref<64x16xbf16, #tpu.memory_space<vmem>>, vector<64x16xbf16>
    tpu.vector_store %arg7[%c0_16, %c0_17], %35 {strides = array<i32>} : memref<64x16xbf16, #tpu.memory_space<vmem>>, vector<64x16xbf16>,
    %37 = vector.extract_strided_slice %30 {offsets = [0, 32], sizes = [64, 16], strides = [1, 1]} : vector<64x66xf32> to vector<64x16xf32>
    %38 = arith.truncf %37 : vector<64x16xf32> to vector<64x16xbf16>
    %c0_18 = arith.constant 0 : index
    %c0_19 = arith.constant 0 : index
    %39 = vector.load %arg8[%c0_18, %c0_19] : memref<64x16xbf16, #tpu.memory_space<vmem>>, vector<64x16xbf16>
    tpu.vector_store %arg8[%c0_18, %c0_19], %38 {strides = array<i32>} : memref<64x16xbf16, #tpu.memory_space<vmem>>, vector<64x16xbf16>,
    %40 = vector.extract_strided_slice %30 {offsets = [0, 48], sizes = [64, 16], strides = [1, 1]} : vector<64x66xf32> to vector<64x16xf32>
    %41 = arith.truncf %40 : vector<64x16xf32> to vector<64x16xbf16>
    %c0_20 = arith.constant 0 : index
    %c0_21 = arith.constant 0 : index
    %42 = vector.load %arg9[%c0_20, %c0_21] : memref<64x16xbf16, #tpu.memory_space<vmem>>, vector<64x16xbf16>
    tpu.vector_store %arg9[%c0_20, %c0_21], %41 {strides = array<i32>} : memref<64x16xbf16, #tpu.memory_space<vmem>>, vector<64x16xbf16>,
    %43 = vector.extract_strided_slice %30 {offsets = [0, 64], sizes = [64, 2], strides = [1, 1]} : vector<64x66xf32> to vector<64x2xf32>
    %44 = tpu.transpose %43, [1, 0] : vector<64x2xf32> -> vector<2x64xf32>
    %45 = arith.truncf %44 : vector<2x64xf32> to vector<2x64xbf16>
    %c0_22 = arith.constant 0 : index
    %c0_23 = arith.constant 0 : index
    %46 = vector.load %arg10[%c0_22, %c0_23] : memref<2x64xbf16, #tpu.memory_space<vmem>>, vector<2x64xbf16>
    tpu.vector_store %arg10[%c0_22, %c0_23], %45 {strides = array<i32>} : memref<2x64xbf16, #tpu.memory_space<vmem>>, vector<2x64xbf16>,
    return
  }
  func.func @transform_0(%arg0: i32) -> (i32, i32) {
    %c0_i32 = arith.constant 0 : i32
    %c0_i32_0 = arith.constant 0 : i32
    return %arg0, %c0_i32 : i32, i32
  }
  func.func @transform_1(%arg0: i32) -> (i32, i32) {
    %c0_i32 = arith.constant 0 : i32
    %c0_i32_0 = arith.constant 0 : i32
    %c0_i32_1 = arith.constant 0 : i32
    return %c0_i32, %c0_i32_0 : i32, i32
  }
  func.func @transform_2(%arg0: i32) -> (i32, i32) {
    %c0_i32 = arith.constant 0 : i32
    %c0_i32_0 = arith.constant 0 : i32
    %c0_i32_1 = arith.constant 0 : i32
    return %c0_i32, %c0_i32_0 : i32, i32
  }
  func.func @transform_3(%arg0: i32) -> (i32, i32) {
    %c0_i32 = arith.constant 0 : i32
    %c0_i32_0 = arith.constant 0 : i32
    %c0_i32_1 = arith.constant 0 : i32
    return %c0_i32, %c0_i32_0 : i32, i32
  }
  func.func @transform_4(%arg0: i32) -> (i32, i32) {
    %c0_i32 = arith.constant 0 : i32
    %c0_i32_0 = arith.constant 0 : i32
    %c0_i32_1 = arith.constant 0 : i32
    return %c0_i32, %c0_i32_0 : i32, i32
  }
  func.func @transform_5(%arg0: i32) -> (i32, i32) {
    %c0_i32 = arith.constant 0 : i32
    %c0_i32_0 = arith.constant 0 : i32
    return %arg0, %c0_i32 : i32, i32
  }
  func.func @transform_6(%arg0: i32) -> (i32, i32) {
    %c0_i32 = arith.constant 0 : i32
    %c0_i32_0 = arith.constant 0 : i32
    return %arg0, %c0_i32 : i32, i32
  }
  func.func @transform_7(%arg0: i32) -> (i32, i32) {
    %c0_i32 = arith.constant 0 : i32
    %c0_i32_0 = arith.constant 0 : i32
    return %arg0, %c0_i32 : i32, i32
  }
  func.func @transform_8(%arg0: i32) -> (i32, i32) {
    %c0_i32 = arith.constant 0 : i32
    %c0_i32_0 = arith.constant 0 : i32
    return %arg0, %c0_i32 : i32, i32
  }
  func.func @transform_9(%arg0: i32) -> (i32, i32) {
    %c0_i32 = arith.constant 0 : i32
    %c0_i32_0 = arith.constant 0 : i32
    return %c0_i32, %arg0 : i32, i32
  }
}

module attributes {stable_mosaic.version = 11 : i64} {
  func.func @_fused_linear_kernel(%arg0: i32, %arg1: memref<64x16xbf16, #tpu.memory_space<vmem>>, %arg2: memref<16x8xbf16, #tpu.memory_space<vmem>>, %arg3: memref<1x8xf32, #tpu.memory_space<vmem>>, %arg4: memref<64x16xbf16, #tpu.memory_space<vmem>>, %arg5: memref<64x8xf32, #tpu.memory_space<vmem>>, %arg6: memref<64x8xf32, #tpu.memory_space<vmem>>) attributes {dimension_semantics = [#tpu.dimension_semantics<parallel>], iteration_bounds = array<i64: 1>, scalar_prefetch = 0 : i64, scratch_operands = 0 : i64, tpu.core_type = #tpu.core_type<tc>, window_params = [{transform_indices = @transform_0, window_bounds = array<i64: 64, 16>}, {pipeline_mode = #tpu.pipeline_mode<synchronous>, transform_indices = @transform_1, window_bounds = array<i64: 16, 8>}, {pipeline_mode = #tpu.pipeline_mode<synchronous>, transform_indices = @transform_2, window_bounds = array<i64: 1, 8>}, {transform_indices = @transform_3, window_bounds = array<i64: 64, 16>}, {transform_indices = @transform_4, window_bounds = array<i64: 64, 8>}, {transform_indices = @transform_5, window_bounds = array<i64: 64, 8>}]} {
    %c0 = arith.constant 0 : index
    %c0_0 = arith.constant 0 : index
    %0 = vector.load %arg1[%c0, %c0_0] : memref<64x16xbf16, #tpu.memory_space<vmem>>, vector<64x16xbf16>
    %1 = arith.extf %0 : vector<64x16xbf16> to vector<64x16xf32>
    %c0_1 = arith.constant 0 : index
    %c0_2 = arith.constant 0 : index
    %2 = vector.load %arg4[%c0_1, %c0_2] : memref<64x16xbf16, #tpu.memory_space<vmem>>, vector<64x16xbf16>
    %3 = arith.extf %2 : vector<64x16xbf16> to vector<64x16xf32>
    %4 = arith.negf %3 : vector<64x16xf32>
    %5 = math.exp %4 : vector<64x16xf32>
    %cst = arith.constant 1.000000e+00 : f32
    %6 = vector.broadcast %cst : f32 to vector<64x16xf32>
    %7 = arith.addf %6, %5 : vector<64x16xf32>
    %8 = arith.divf %6, %7 : vector<64x16xf32>
    %9 = arith.mulf %1, %8 : vector<64x16xf32>
    %10 = arith.truncf %9 : vector<64x16xf32> to vector<64x16xbf16>
    %c0_3 = arith.constant 0 : index
    %c0_4 = arith.constant 0 : index
    %11 = vector.load %arg2[%c0_3, %c0_4] : memref<16x8xbf16, #tpu.memory_space<vmem>>, vector<16x8xbf16>
    %cst_5 = arith.constant dense<0.000000e+00> : vector<64x8xf32>
    %12 = tpu.matmul %10, %11, %cst_5 {dimension_numbers = #tpu.dot_dimension_numbers<[1], [0], [0], [1], [0, 0, 1, 1], [], []>} : vector<64x16xbf16>, vector<16x8xbf16>, vector<64x8xf32> -> vector<64x8xf32>
    %c0_6 = arith.constant 0 : index
    %c0_7 = arith.constant 0 : index
    %13 = vector.load %arg3[%c0_6, %c0_7] : memref<1x8xf32, #tpu.memory_space<vmem>>, vector<1x8xf32>
    %14 = vector.broadcast %13 : vector<1x8xf32> to vector<64x8xf32>
    %15 = arith.addf %12, %14 : vector<64x8xf32>
    %c0_8 = arith.constant 0 : index
    %c0_9 = arith.constant 0 : index
    %16 = vector.load %arg5[%c0_8, %c0_9] : memref<64x8xf32, #tpu.memory_space<vmem>>, vector<64x8xf32>
    %17 = arith.addf %15, %16 : vector<64x8xf32>
    %c0_10 = arith.constant 0 : index
    %c0_11 = arith.constant 0 : index
    %18 = vector.load %arg6[%c0_10, %c0_11] : memref<64x8xf32, #tpu.memory_space<vmem>>, vector<64x8xf32>
    tpu.vector_store %arg6[%c0_10, %c0_11], %17 {strides = array<i32>} : memref<64x8xf32, #tpu.memory_space<vmem>>, vector<64x8xf32>,
    return
  }
  func.func @transform_0(%arg0: i32) -> (i32, i32) {
    %c0_i32 = arith.constant 0 : i32
    %c0_i32_0 = arith.constant 0 : i32
    return %arg0, %c0_i32 : i32, i32
  }
  func.func @transform_1(%arg0: i32) -> (i32, i32) {
    %c0_i32 = arith.constant 0 : i32
    %c0_i32_0 = arith.constant 0 : i32
    %c0_i32_1 = arith.constant 0 : i32
    return %c0_i32, %c0_i32_0 : i32, i32
  }
  func.func @transform_2(%arg0: i32) -> (i32, i32) {
    %c0_i32 = arith.constant 0 : i32
    %c0_i32_0 = arith.constant 0 : i32
    %c0_i32_1 = arith.constant 0 : i32
    return %c0_i32, %c0_i32_0 : i32, i32
  }
  func.func @transform_3(%arg0: i32) -> (i32, i32) {
    %c0_i32 = arith.constant 0 : i32
    %c0_i32_0 = arith.constant 0 : i32
    return %arg0, %c0_i32 : i32, i32
  }
  func.func @transform_4(%arg0: i32) -> (i32, i32) {
    %c0_i32 = arith.constant 0 : i32
    %c0_i32_0 = arith.constant 0 : i32
    return %arg0, %c0_i32 : i32, i32
  }
  func.func @transform_5(%arg0: i32) -> (i32, i32) {
    %c0_i32 = arith.constant 0 : i32
    %c0_i32_0 = arith.constant 0 : i32
    return %arg0, %c0_i32 : i32, i32
  }
}

module attributes {stable_mosaic.version = 11 : i64} {
  func.func @_transition_kernel(%arg0: i32, %arg1: memref<64x8xf32, #tpu.memory_space<vmem>>, %arg2: memref<1x8xf32, #tpu.memory_space<vmem>>, %arg3: memref<1x8xf32, #tpu.memory_space<vmem>>, %arg4: memref<8x16xbf16, #tpu.memory_space<vmem>>, %arg5: memref<1x16xf32, #tpu.memory_space<vmem>>, %arg6: memref<16x8xbf16, #tpu.memory_space<vmem>>, %arg7: memref<1x8xf32, #tpu.memory_space<vmem>>, %arg8: memref<64x1xf32, #tpu.memory_space<vmem>>, %arg9: memref<64x8xf32, #tpu.memory_space<vmem>>) attributes {dimension_semantics = [#tpu.dimension_semantics<parallel>], iteration_bounds = array<i64: 1>, scalar_prefetch = 0 : i64, scratch_operands = 0 : i64, tpu.core_type = #tpu.core_type<tc>, window_params = [{transform_indices = @transform_0, window_bounds = array<i64: 64, 8>}, {pipeline_mode = #tpu.pipeline_mode<synchronous>, transform_indices = @transform_1, window_bounds = array<i64: 1, 8>}, {pipeline_mode = #tpu.pipeline_mode<synchronous>, transform_indices = @transform_2, window_bounds = array<i64: 1, 8>}, {pipeline_mode = #tpu.pipeline_mode<synchronous>, transform_indices = @transform_3, window_bounds = array<i64: 8, 16>}, {pipeline_mode = #tpu.pipeline_mode<synchronous>, transform_indices = @transform_4, window_bounds = array<i64: 1, 16>}, {pipeline_mode = #tpu.pipeline_mode<synchronous>, transform_indices = @transform_5, window_bounds = array<i64: 16, 8>}, {pipeline_mode = #tpu.pipeline_mode<synchronous>, transform_indices = @transform_6, window_bounds = array<i64: 1, 8>}, {transform_indices = @transform_7, window_bounds = array<i64: 64, 1>}, {transform_indices = @transform_8, window_bounds = array<i64: 64, 8>}]} {
    %c0 = arith.constant 0 : index
    %c0_0 = arith.constant 0 : index
    %0 = vector.load %arg1[%c0, %c0_0] : memref<64x8xf32, #tpu.memory_space<vmem>>, vector<64x8xf32>
    %cst = arith.constant dense<0.000000e+00> : vector<64xf32>
    %1 = vector.multi_reduction <add>, %0, %cst [1] : vector<64x8xf32> to vector<64xf32>
    %2 = vector.shape_cast %1 : vector<64xf32> to vector<64x1xf32>
    %cst_1 = arith.constant 8.000000e+00 : f32
    %3 = vector.broadcast %cst_1 : f32 to vector<64x1xf32>
    %4 = arith.divf %2, %3 : vector<64x1xf32>
    %5 = vector.broadcast %4 : vector<64x1xf32> to vector<64x8xf32>
    %6 = arith.subf %0, %5 : vector<64x8xf32>
    %7 = arith.mulf %6, %6 : vector<64x8xf32>
    %cst_2 = arith.constant dense<0.000000e+00> : vector<64xf32>
    %8 = vector.multi_reduction <add>, %7, %cst_2 [1] : vector<64x8xf32> to vector<64xf32>
    %9 = vector.shape_cast %8 : vector<64xf32> to vector<64x1xf32>
    %cst_3 = arith.constant 8.000000e+00 : f32
    %10 = vector.broadcast %cst_3 : f32 to vector<64x1xf32>
    %11 = arith.divf %9, %10 : vector<64x1xf32>
    %12 = vector.broadcast %4 : vector<64x1xf32> to vector<64x8xf32>
    %13 = arith.subf %0, %12 : vector<64x8xf32>
    %cst_4 = arith.constant 9.99999974E-6 : f32
    %14 = vector.broadcast %cst_4 : f32 to vector<64x1xf32>
    %15 = arith.addf %11, %14 : vector<64x1xf32>
    %16 = math.rsqrt %15 : vector<64x1xf32>
    %17 = vector.broadcast %16 : vector<64x1xf32> to vector<64x8xf32>
    %18 = arith.mulf %13, %17 : vector<64x8xf32>
    %c0_5 = arith.constant 0 : index
    %c0_6 = arith.constant 0 : index
    %19 = vector.load %arg2[%c0_5, %c0_6] : memref<1x8xf32, #tpu.memory_space<vmem>>, vector<1x8xf32>
    %20 = vector.broadcast %19 : vector<1x8xf32> to vector<64x8xf32>
    %21 = arith.mulf %18, %20 : vector<64x8xf32>
    %c0_7 = arith.constant 0 : index
    %c0_8 = arith.constant 0 : index
    %22 = vector.load %arg3[%c0_7, %c0_8] : memref<1x8xf32, #tpu.memory_space<vmem>>, vector<1x8xf32>
    %23 = vector.broadcast %22 : vector<1x8xf32> to vector<64x8xf32>
    %24 = arith.addf %21, %23 : vector<64x8xf32>
    %25 = arith.truncf %24 : vector<64x8xf32> to vector<64x8xbf16>
    %c0_9 = arith.constant 0 : index
    %c0_10 = arith.constant 0 : index
    %26 = vector.load %arg4[%c0_9, %c0_10] : memref<8x16xbf16, #tpu.memory_space<vmem>>, vector<8x16xbf16>
    %cst_11 = arith.constant dense<0.000000e+00> : vector<64x16xf32>
    %27 = tpu.matmul %25, %26, %cst_11 {dimension_numbers = #tpu.dot_dimension_numbers<[1], [0], [0], [1], [0, 0, 1, 1], [], []>} : vector<64x8xbf16>, vector<8x16xbf16>, vector<64x16xf32> -> vector<64x16xf32>
    %c0_12 = arith.constant 0 : index
    %c0_13 = arith.constant 0 : index
    %28 = vector.load %arg5[%c0_12, %c0_13] : memref<1x16xf32, #tpu.memory_space<vmem>>, vector<1x16xf32>
    %29 = vector.broadcast %28 : vector<1x16xf32> to vector<64x16xf32>
    %30 = arith.addf %27, %29 : vector<64x16xf32>
    %cst_14 = arith.constant 0.000000e+00 : f32
    %31 = vector.broadcast %cst_14 : f32 to vector<64x16xf32>
    %32 = arith.maximumf %30, %31 : vector<64x16xf32>
    %33 = arith.truncf %32 : vector<64x16xf32> to vector<64x16xbf16>
    %c0_15 = arith.constant 0 : index
    %c0_16 = arith.constant 0 : index
    %34 = vector.load %arg6[%c0_15, %c0_16] : memref<16x8xbf16, #tpu.memory_space<vmem>>, vector<16x8xbf16>
    %cst_17 = arith.constant dense<0.000000e+00> : vector<64x8xf32>
    %35 = tpu.matmul %33, %34, %cst_17 {dimension_numbers = #tpu.dot_dimension_numbers<[1], [0], [0], [1], [0, 0, 1, 1], [], []>} : vector<64x16xbf16>, vector<16x8xbf16>, vector<64x8xf32> -> vector<64x8xf32>
    %c0_18 = arith.constant 0 : index
    %c0_19 = arith.constant 0 : index
    %36 = vector.load %arg7[%c0_18, %c0_19] : memref<1x8xf32, #tpu.memory_space<vmem>>, vector<1x8xf32>
    %37 = vector.broadcast %36 : vector<1x8xf32> to vector<64x8xf32>
    %38 = arith.addf %35, %37 : vector<64x8xf32>
    %c0_20 = arith.constant 0 : index
    %c0_21 = arith.constant 0 : index
    %39 = vector.load %arg8[%c0_20, %c0_21] : memref<64x1xf32, #tpu.memory_space<vmem>>, vector<64x1xf32>
    %40 = vector.broadcast %39 : vector<64x1xf32> to vector<64x8xf32>
    %41 = arith.mulf %38, %40 : vector<64x8xf32>
    %42 = arith.addf %41, %0 : vector<64x8xf32>
    %c0_22 = arith.constant 0 : index
    %c0_23 = arith.constant 0 : index
    %43 = vector.load %arg9[%c0_22, %c0_23] : memref<64x8xf32, #tpu.memory_space<vmem>>, vector<64x8xf32>
    tpu.vector_store %arg9[%c0_22, %c0_23], %42 {strides = array<i32>} : memref<64x8xf32, #tpu.memory_space<vmem>>, vector<64x8xf32>,
    return
  }
  func.func @transform_0(%arg0: i32) -> (i32, i32) {
    %c0_i32 = arith.constant 0 : i32
    %c0_i32_0 = arith.constant 0 : i32
    return %arg0, %c0_i32 : i32, i32
  }
  func.func @transform_1(%arg0: i32) -> (i32, i32) {
    %c0_i32 = arith.constant 0 : i32
    %c0_i32_0 = arith.constant 0 : i32
    %c0_i32_1 = arith.constant 0 : i32
    return %c0_i32, %c0_i32_0 : i32, i32
  }
  func.func @transform_2(%arg0: i32) -> (i32, i32) {
    %c0_i32 = arith.constant 0 : i32
    %c0_i32_0 = arith.constant 0 : i32
    %c0_i32_1 = arith.constant 0 : i32
    return %c0_i32, %c0_i32_0 : i32, i32
  }
  func.func @transform_3(%arg0: i32) -> (i32, i32) {
    %c0_i32 = arith.constant 0 : i32
    %c0_i32_0 = arith.constant 0 : i32
    %c0_i32_1 = arith.constant 0 : i32
    return %c0_i32, %c0_i32_0 : i32, i32
  }
  func.func @transform_4(%arg0: i32) -> (i32, i32) {
    %c0_i32 = arith.constant 0 : i32
    %c0_i32_0 = arith.constant 0 : i32
    %c0_i32_1 = arith.constant 0 : i32
    return %c0_i32, %c0_i32_0 : i32, i32
  }
  func.func @transform_5(%arg0: i32) -> (i32, i32) {
    %c0_i32 = arith.constant 0 : i32
    %c0_i32_0 = arith.constant 0 : i32
    %c0_i32_1 = arith.constant 0 : i32
    return %c0_i32, %c0_i32_0 : i32, i32
  }
  func.func @transform_6(%arg0: i32) -> (i32, i32) {
    %c0_i32 = arith.constant 0 : i32
    %c0_i32_0 = arith.constant 0 : i32
    %c0_i32_1 = arith.constant 0 : i32
    return %c0_i32, %c0_i32_0 : i32, i32
  }
  func.func @transform_7(%arg0: i32) -> (i32, i32) {
    %c0_i32 = arith.constant 0 : i32
    %c0_i32_0 = arith.constant 0 : i32
    return %arg0, %c0_i32 : i32, i32
  }
  func.func @transform_8(%arg0: i32) -> (i32, i32) {
    %c0_i32 = arith.constant 0 : i32
    %c0_i32_0 = arith.constant 0 : i32
    return %arg0, %c0_i32 : i32, i32
  }
}

module attributes {stable_mosaic.version = 11 : i64} {
  func.func @_transition_kernel(%arg0: i32, %arg1: memref<64x8xf32, #tpu.memory_space<vmem>>, %arg2: memref<1x8xf32, #tpu.memory_space<vmem>>, %arg3: memref<1x8xf32, #tpu.memory_space<vmem>>, %arg4: memref<8x16xbf16, #tpu.memory_space<vmem>>, %arg5: memref<1x16xf32, #tpu.memory_space<vmem>>, %arg6: memref<16x8xbf16, #tpu.memory_space<vmem>>, %arg7: memref<1x8xf32, #tpu.memory_space<vmem>>, %arg8: memref<64x1xf32, #tpu.memory_space<vmem>>, %arg9: memref<64x8xf32, #tpu.memory_space<vmem>>) attributes {dimension_semantics = [#tpu.dimension_semantics<parallel>], iteration_bounds = array<i64: 1>, scalar_prefetch = 0 : i64, scratch_operands = 0 : i64, tpu.core_type = #tpu.core_type<tc>, window_params = [{transform_indices = @transform_0, window_bounds = array<i64: 64, 8>}, {pipeline_mode = #tpu.pipeline_mode<synchronous>, transform_indices = @transform_1, window_bounds = array<i64: 1, 8>}, {pipeline_mode = #tpu.pipeline_mode<synchronous>, transform_indices = @transform_2, window_bounds = array<i64: 1, 8>}, {pipeline_mode = #tpu.pipeline_mode<synchronous>, transform_indices = @transform_3, window_bounds = array<i64: 8, 16>}, {pipeline_mode = #tpu.pipeline_mode<synchronous>, transform_indices = @transform_4, window_bounds = array<i64: 1, 16>}, {pipeline_mode = #tpu.pipeline_mode<synchronous>, transform_indices = @transform_5, window_bounds = array<i64: 16, 8>}, {pipeline_mode = #tpu.pipeline_mode<synchronous>, transform_indices = @transform_6, window_bounds = array<i64: 1, 8>}, {transform_indices = @transform_7, window_bounds = array<i64: 64, 1>}, {transform_indices = @transform_8, window_bounds = array<i64: 64, 8>}]} {
    %c0 = arith.constant 0 : index
    %c0_0 = arith.constant 0 : index
    %0 = vector.load %arg1[%c0, %c0_0] : memref<64x8xf32, #tpu.memory_space<vmem>>, vector<64x8xf32>
    %cst = arith.constant dense<0.000000e+00> : vector<64xf32>
    %1 = vector.multi_reduction <add>, %0, %cst [1] : vector<64x8xf32> to vector<64xf32>
    %2 = vector.shape_cast %1 : vector<64xf32> to vector<64x1xf32>
    %cst_1 = arith.constant 8.000000e+00 : f32
    %3 = vector.broadcast %cst_1 : f32 to vector<64x1xf32>
    %4 = arith.divf %2, %3 : vector<64x1xf32>
    %5 = vector.broadcast %4 : vector<64x1xf32> to vector<64x8xf32>
    %6 = arith.subf %0, %5 : vector<64x8xf32>
    %7 = arith.mulf %6, %6 : vector<64x8xf32>
    %cst_2 = arith.constant dense<0.000000e+00> : vector<64xf32>
    %8 = vector.multi_reduction <add>, %7, %cst_2 [1] : vector<64x8xf32> to vector<64xf32>
    %9 = vector.shape_cast %8 : vector<64xf32> to vector<64x1xf32>
    %cst_3 = arith.constant 8.000000e+00 : f32
    %10 = vector.broadcast %cst_3 : f32 to vector<64x1xf32>
    %11 = arith.divf %9, %10 : vector<64x1xf32>
    %12 = vector.broadcast %4 : vector<64x1xf32> to vector<64x8xf32>
    %13 = arith.subf %0, %12 : vector<64x8xf32>
    %cst_4 = arith.constant 9.99999974E-6 : f32
    %14 = vector.broadcast %cst_4 : f32 to vector<64x1xf32>
    %15 = arith.addf %11, %14 : vector<64x1xf32>
    %16 = math.rsqrt %15 : vector<64x1xf32>
    %17 = vector.broadcast %16 : vector<64x1xf32> to vector<64x8xf32>
    %18 = arith.mulf %13, %17 : vector<64x8xf32>
    %c0_5 = arith.constant 0 : index
    %c0_6 = arith.constant 0 : index
    %19 = vector.load %arg2[%c0_5, %c0_6] : memref<1x8xf32, #tpu.memory_space<vmem>>, vector<1x8xf32>
    %20 = vector.broadcast %19 : vector<1x8xf32> to vector<64x8xf32>
    %21 = arith.mulf %18, %20 : vector<64x8xf32>
    %c0_7 = arith.constant 0 : index
    %c0_8 = arith.constant 0 : index
    %22 = vector.load %arg3[%c0_7, %c0_8] : memref<1x8xf32, #tpu.memory_space<vmem>>, vector<1x8xf32>
    %23 = vector.broadcast %22 : vector<1x8xf32> to vector<64x8xf32>
    %24 = arith.addf %21, %23 : vector<64x8xf32>
    %25 = arith.truncf %24 : vector<64x8xf32> to vector<64x8xbf16>
    %c0_9 = arith.constant 0 : index
    %c0_10 = arith.constant 0 : index
    %26 = vector.load %arg4[%c0_9, %c0_10] : memref<8x16xbf16, #tpu.memory_space<vmem>>, vector<8x16xbf16>
    %cst_11 = arith.constant dense<0.000000e+00> : vector<64x16xf32>
    %27 = tpu.matmul %25, %26, %cst_11 {dimension_numbers = #tpu.dot_dimension_numbers<[1], [0], [0], [1], [0, 0, 1, 1], [], []>} : vector<64x8xbf16>, vector<8x16xbf16>, vector<64x16xf32> -> vector<64x16xf32>
    %c0_12 = arith.constant 0 : index
    %c0_13 = arith.constant 0 : index
    %28 = vector.load %arg5[%c0_12, %c0_13] : memref<1x16xf32, #tpu.memory_space<vmem>>, vector<1x16xf32>
    %29 = vector.broadcast %28 : vector<1x16xf32> to vector<64x16xf32>
    %30 = arith.addf %27, %29 : vector<64x16xf32>
    %cst_14 = arith.constant 0.000000e+00 : f32
    %31 = vector.broadcast %cst_14 : f32 to vector<64x16xf32>
    %32 = arith.maximumf %30, %31 : vector<64x16xf32>
    %33 = arith.truncf %32 : vector<64x16xf32> to vector<64x16xbf16>
    %c0_15 = arith.constant 0 : index
    %c0_16 = arith.constant 0 : index
    %34 = vector.load %arg6[%c0_15, %c0_16] : memref<16x8xbf16, #tpu.memory_space<vmem>>, vector<16x8xbf16>
    %cst_17 = arith.constant dense<0.000000e+00> : vector<64x8xf32>
    %35 = tpu.matmul %33, %34, %cst_17 {dimension_numbers = #tpu.dot_dimension_numbers<[1], [0], [0], [1], [0, 0, 1, 1], [], []>} : vector<64x16xbf16>, vector<16x8xbf16>, vector<64x8xf32> -> vector<64x8xf32>
    %c0_18 = arith.constant 0 : index
    %c0_19 = arith.constant 0 : index
    %36 = vector.load %arg7[%c0_18, %c0_19] : memref<1x8xf32, #tpu.memory_space<vmem>>, vector<1x8xf32>
    %37 = vector.broadcast %36 : vector<1x8xf32> to vector<64x8xf32>
    %38 = arith.addf %35, %37 : vector<64x8xf32>
    %c0_20 = arith.constant 0 : index
    %c0_21 = arith.constant 0 : index
    %39 = vector.load %arg8[%c0_20, %c0_21] : memref<64x1xf32, #tpu.memory_space<vmem>>, vector<64x1xf32>
    %40 = vector.broadcast %39 : vector<64x1xf32> to vector<64x8xf32>
    %41 = arith.mulf %38, %40 : vector<64x8xf32>
    %42 = arith.addf %41, %0 : vector<64x8xf32>
    %c0_22 = arith.constant 0 : index
    %c0_23 = arith.constant 0 : index
    %43 = vector.load %arg9[%c0_22, %c0_23] : memref<64x8xf32, #tpu.memory_space<vmem>>, vector<64x8xf32>
    tpu.vector_store %arg9[%c0_22, %c0_23], %42 {strides = array<i32>} : memref<64x8xf32, #tpu.memory_space<vmem>>, vector<64x8xf32>,
    return
  }
  func.func @transform_0(%arg0: i32) -> (i32, i32) {
    %c0_i32 = arith.constant 0 : i32
    %c0_i32_0 = arith.constant 0 : i32
    return %arg0, %c0_i32 : i32, i32
  }
  func.func @transform_1(%arg0: i32) -> (i32, i32) {
    %c0_i32 = arith.constant 0 : i32
    %c0_i32_0 = arith.constant 0 : i32
    %c0_i32_1 = arith.constant 0 : i32
    return %c0_i32, %c0_i32_0 : i32, i32
  }
  func.func @transform_2(%arg0: i32) -> (i32, i32) {
    %c0_i32 = arith.constant 0 : i32
    %c0_i32_0 = arith.constant 0 : i32
    %c0_i32_1 = arith.constant 0 : i32
    return %c0_i32, %c0_i32_0 : i32, i32
  }
  func.func @transform_3(%arg0: i32) -> (i32, i32) {
    %c0_i32 = arith.constant 0 : i32
    %c0_i32_0 = arith.constant 0 : i32
    %c0_i32_1 = arith.constant 0 : i32
    return %c0_i32, %c0_i32_0 : i32, i32
  }
  func.func @transform_4(%arg0: i32) -> (i32, i32) {
    %c0_i32 = arith.constant 0 : i32
    %c0_i32_0 = arith.constant 0 : i32
    %c0_i32_1 = arith.constant 0 : i32
    return %c0_i32, %c0_i32_0 : i32, i32
  }
  func.func @transform_5(%arg0: i32) -> (i32, i32) {
    %c0_i32 = arith.constant 0 : i32
    %c0_i32_0 = arith.constant 0 : i32
    %c0_i32_1 = arith.constant 0 : i32
    return %c0_i32, %c0_i32_0 : i32, i32
  }
  func.func @transform_6(%arg0: i32) -> (i32, i32) {
    %c0_i32 = arith.constant 0 : i32
    %c0_i32_0 = arith.constant 0 : i32
    %c0_i32_1 = arith.constant 0 : i32
    return %c0_i32, %c0_i32_0 : i32, i32
  }
  func.func @transform_7(%arg0: i32) -> (i32, i32) {
    %c0_i32 = arith.constant 0 : i32
    %c0_i32_0 = arith.constant 0 : i32
    return %arg0, %c0_i32 : i32, i32
  }
  func.func @transform_8(%arg0: i32) -> (i32, i32) {
    %c0_i32 = arith.constant 0 : i32
    %c0_i32_0 = arith.constant 0 : i32
    return %arg0, %c0_i32 : i32, i32
  }
}

</mosaic_0001>

<bundles_post_ra>
// kernel: evoformer_stack.42
= control target key start
LH: loop header
LB: loop body
LE: loop exit
PB: predicated region body
PF: predicated region fallthrough
CT: control target
= control target key end

     0   :  { %vm29_vm0 = vcmask 64512   ;;  %vm189_vm1 = vcmask 1043456   ;;  %vm291_vm2 = vcmask 516096   ;;  %s469_s0 = inlined_call_operand.vmem [shape: f32[64,8], index: 0, kind: input, shape index: {}]   ;;  %s470_s3 = inlined_call_operand.vmem [shape: bf16[8,2], index: 3, kind: input, shape index: {}]   ;;  %s471_s1 = inlined_call_operand.vmem [shape: f32[1,8], index: 1, kind: input, shape index: {}]   ;;  %s472_s2 = inlined_call_operand.vmem [shape: f32[1,8], index: 2, kind: input, shape index: {}]   ;;  %s473_s4 = inlined_call_operand.vmem [shape: f32[1,2], index: 4, kind: input, shape index: {}]   ;;  %s474_s5 = inlined_call_operand.vmem [shape: bf16[2,64], index: 5, kind: output, shape index: {}]  }
   0x1   :  { %v21_v0 = vld [vmem:[%s469_s0] sm:$0xff]  ;;  %v23_v1 = vld [vmem:[%s469_s0 + $0x10] sm:$0xff]  ;;  %v22_v2 = vld [vmem:[%s469_s0 + $0x8] sm:$0xff] }
   0x2   :  { %v30_v3 = vsel %vm29_vm0, %v21_v0, 0.0  ;;  %v36_v4 = vsel %vm29_vm0, %v23_v1, 0.0  ;;  %v24_v5 = vld [vmem:[%s469_s0 + $0x18] sm:$0xff]  ;;  %v33_v6 = vsel %vm29_vm0, %v22_v2, 0.0  ;;  %v25_v8 = vld [vmem:[%s469_s0 + $0x20] sm:$0xff]  ;;  %v26_v9 = vld [vmem:[%s469_s0 + $0x28] sm:$0xff] }
   0x3   :  { %31 = vadd.xlane.f32.xlu0 %v30_v3  ;;  %37 = vadd.xlane.f32.xlu1 %v36_v4  ;;  %v39_v7 = vsel %vm29_vm0, %v24_v5, 0.0  ;;  %v42_v10 = vsel %vm29_vm0, %v25_v8, 0.0  ;;  %v45_v11 = vsel %vm29_vm0, %v26_v9, 0.0  ;;  %v27_v12 = vld [vmem:[%s469_s0 + $0x30] sm:$0xff]  ;;  %v28_v13 = vld [vmem:[%s469_s0 + $0x38] sm:$0xff] }
   0x4   :  { %v48_v14 = vsel %vm29_vm0, %v27_v12, 0.0  ;;  %v51_v15 = vsel %vm29_vm0, %v28_v13, 0.0  ;;  %v169_v56 = vld [vmem:[%s470_s3] sm:$0xf] }
   0x5   :  { %321 = vmatprep.subr.msk.bf16.mxu0 %vm189_vm1, %v169_v56  ;;  %v191_v57 = vsel %vm189_vm1, %v169_v56, 0  ;;  %322 = vmatprep.subr.msk.bf16.mxu1 %vm189_vm1, %v169_v56 }
   0x6   :  { %310 = vmatpush3.bf16.msra.mxu0 %v191_v57  ;;  %320 = vmatpush3.bf16.msra.mxu1 %v191_v57 }
   0x7   :  { %34 = vadd.xlane.f32.xlu0 %v33_v6  ;;  %40 = vadd.xlane.f32.xlu1 %v39_v7 }
   0xb   :  { %43 = vadd.xlane.f32.xlu0 %v42_v10  ;;  %46 = vadd.xlane.f32.xlu1 %v45_v11 }
   0xf   :  { %49 = vadd.xlane.f32.xlu0 %v48_v14  ;;  %52 = vadd.xlane.f32.xlu1 %v51_v15 }
  0x90   :  { %v32_v16 = vpop.xlane.xlu0 %31  ;;  %v38_v17 = vpop.xlane.xlu1 %37 }
  0x91   :  { %v55_v18 = vmul.f32 0.125, %v32_v16  ;;  %v57_v19 = vmul.f32 0.125, %v38_v17 }
  0x93   :  { %v402_v20 = vsub.f32 %v21_v0, %v55_v18  ;;  %v404_v21 = vsub.f32 %v23_v1, %v57_v19  ;;  %v297_v19 = vld [vmem:[%s471_s1] ss:$0 sm:$0xff] }
  0x94   :  { %v35_v22 = vpop.xlane.xlu0 %34  ;;  %v41_v23 = vpop.xlane.xlu1 %40 }
  0x95   :  { %v56_v24 = vmul.f32 0.125, %v35_v22  ;;  %v58_v25 = vmul.f32 0.125, %v41_v23  ;;  %v71_v26 = vmul.f32 %v402_v20, %v402_v20  ;;  %v73_v27 = vmul.f32 %v404_v21, %v404_v21 }
  0x97   :  { %v410_v28 = vsub.f32 %v22_v2, %v56_v24  ;;  %v412_v29 = vsub.f32 %v24_v5, %v58_v25  ;;  %v79_v30 = vsel %vm29_vm0, %v71_v26, 0.0  ;;  %v85_v33 = vsel %vm29_vm0, %v73_v27, 0.0 }
  0x98   :  { %80 = vadd.xlane.f32.xlu0 %v79_v30  ;;  %v44_v31 = vpop.xlane.xlu0 %43  ;;  %v47_v32 = vpop.xlane.xlu1 %46 }
  0x99   :  { %v59_v34 = vmul.f32 0.125, %v44_v31  ;;  %v60_v35 = vmul.f32 0.125, %v47_v32  ;;  %v72_v36 = vmul.f32 %v410_v28, %v410_v28  ;;  %v74_v37 = vmul.f32 %v412_v29, %v412_v29 }
  0x9b   :  { %v420_v38 = vsub.f32 %v25_v8, %v59_v34  ;;  %v422_v39 = vsub.f32 %v26_v9, %v60_v35  ;;  %v82_v40 = vsel %vm29_vm0, %v72_v36, 0.0  ;;  %v88_v43 = vsel %vm29_vm0, %v74_v37, 0.0 }
  0x9c   :  { %86 = vadd.xlane.f32.xlu0 %v85_v33  ;;  %83 = vadd.xlane.f32.xlu1 %v82_v40  ;;  %v50_v41 = vpop.xlane.xlu0 %49  ;;  %v53_v42 = vpop.xlane.xlu1 %52 }
  0x9d   :  { %v61_v44 = vmul.f32 0.125, %v50_v41  ;;  %v62_v45 = vmul.f32 0.125, %v53_v42  ;;  %v75_v46 = vmul.f32 %v420_v38, %v420_v38  ;;  %v76_v47 = vmul.f32 %v422_v39, %v422_v39 }
  0x9f   :  { %v430_v48 = vsub.f32 %v27_v12, %v61_v44  ;;  %v432_v49 = vsub.f32 %v28_v13, %v62_v45  ;;  %v91_v50 = vsel %vm29_vm0, %v75_v46, 0.0  ;;  %v94_v51 = vsel %vm29_vm0, %v76_v47, 0.0 }
  0xa0   :  { %89 = vadd.xlane.f32.xlu1 %v88_v43  ;;  %92 = vadd.xlane.f32.xlu0 %v91_v50 }
  0xa1   :  { %v77_v52 = vmul.f32 %v430_v48, %v430_v48  ;;  %v78_v53 = vmul.f32 %v432_v49, %v432_v49 }
  0xa3   :  { %v97_v54 = vsel %vm29_vm0, %v77_v52, 0.0  ;;  %v100_v55 = vsel %vm29_vm0, %v78_v53, 0.0 }
  0xa4   :  { %95 = vadd.xlane.f32.xlu1 %v94_v51  ;;  %98 = vadd.xlane.f32.xlu0 %v97_v54 }
  0xa8   :  { %101 = vadd.xlane.f32.xlu1 %v100_v55 }
 0x125   :  { %v81_v58 = vpop.xlane.xlu0 %80 }
 0x126   :  { %v103_v59 = vmul.f32 0.125, %v81_v58 }
 0x128   :  { %v111_v60 = vadd.f32 1e-05, %v103_v59 }
 0x129   :  { %v84_v61 = vpop.xlane.xlu1 %83  ;;  %v87_v62 = vpop.xlane.xlu0 %86 }
 0x12a   :  { %324 = vrsqrt.f32 %v111_v60  ;;  %v104_v63 = vmul.f32 0.125, %v84_v61  ;;  %v105_v0 = vmul.f32 0.125, %v87_v62 }
 0x12c   :  { %v112_v1 = vadd.f32 1e-05, %v104_v63  ;;  %v113_v2 = vadd.f32 1e-05, %v105_v0 }
 0x12d   :  { %v90_v3 = vpop.xlane.xlu1 %89  ;;  %v93_v4 = vpop.xlane.xlu0 %92 }
 0x12e   :  { %326 = vrsqrt.f32 %v112_v1  ;;  %v106_v5 = vmul.f32 0.125, %v90_v3  ;;  %v107_v6 = vmul.f32 0.125, %v93_v4 }
 0x12f   :  { %328 = vrsqrt.f32 %v113_v2 }
 0x130   :  { %v114_v7 = vadd.f32 1e-05, %v106_v5  ;;  %v115_v8 = vadd.f32 1e-05, %v107_v6 }
 0x131   :  { %v96_v9 = vpop.xlane.xlu1 %95  ;;  %v99_v10 = vpop.xlane.xlu0 %98 }
 0x132   :  { %330 = vrsqrt.f32 %v114_v7  ;;  %v108_v11 = vmul.f32 0.125, %v96_v9  ;;  %v109_v12 = vmul.f32 0.125, %v99_v10 }
 0x133   :  { %332 = vrsqrt.f32 %v115_v8 }
 0x134   :  { %v325_v13 = vpop.eup %324  ;;  %v116_v14 = vadd.f32 1e-05, %v108_v11  ;;  %v117_v15 = vadd.f32 1e-05, %v109_v12 }
 0x135   :  { %v102_v16 = vpop.xlane.xlu1 %101  ;;  %v127_v17 = vmul.f32 %v325_v13, %v402_v20  ;;  %v298_v20 = vld [vmem:[%s472_s2] ss:$0 sm:$0xff] }
 0x136   :  { %334 = vrsqrt.f32 %v116_v14  ;;  %v110_v18 = vmul.f32 0.125, %v102_v16 }
 0x137   :  { %336 = vrsqrt.f32 %v117_v15  ;;  %v142_v26 = vmul.f32 %v297_v19, %v127_v17 }
 0x138   :  { %v327_v22 = vpop.eup %326  ;;  %v118_v23 = vadd.f32 1e-05, %v110_v18 }
 0x139   :  { %v329_v24 = vpop.eup %328  ;;  %v128_v25 = vmul.f32 %v327_v22, %v410_v28  ;;  %v157_v34 = vadd.f32 %v298_v20, %v142_v26 }
 0x13a   :  { %v129_v27 = vmul.f32 %v329_v24, %v404_v21  ;;  %338 = vrsqrt.f32 %v118_v23 }
 0x13b   :  { %v143_v30 = vmul.f32 %v297_v19, %v128_v25 }
 0x13c   :  { %v331_v31 = vpop.eup %330  ;;  %v144_v36 = vmul.f32 %v297_v19, %v129_v27 }
 0x13d   :  { %v333_v32 = vpop.eup %332  ;;  %v130_v33 = vmul.f32 %v331_v31, %v412_v29  ;;  %v158_v35 = vadd.f32 %v298_v20, %v143_v30 }
 0x13e   :  { %v131_v37 = vmul.f32 %v333_v32, %v420_v38  ;;  %v159_v21 = vadd.f32 %v298_v20, %v144_v36 }
 0x13f   :  { %v165_v40 = vpack.c.bf16 %v158_v35, %v157_v34  ;;  %v145_v28 = vmul.f32 %v297_v19, %v130_v33 }
 0x140   :  { %v335_v41 = vpop.eup %334  ;;  %v146_v45 = vmul.f32 %v297_v19, %v131_v37 }
 0x141   :  { %v337_v42 = vpop.eup %336  ;;  %311 = vmatprep.mubr.msk.bf16.mxu0 %vm29_vm0, %v165_v40  ;;  %v160_v43 = vadd.f32 %v298_v20, %v145_v28  ;;  %v132_v44 = vmul.f32 %v335_v41, %v422_v39 }
 0x142   :  { %v133_v46 = vmul.f32 %v337_v42, %v430_v48  ;;  %v161_v38 = vadd.f32 %v298_v20, %v146_v45  ;;  %v299_v48 = vld [vmem:[%s473_s4] ss:$0 sm:$0xff] }
 0x143   :  { %v166_v47 = vpack.c.bf16 %v160_v43, %v159_v21  ;;  %v147_v29 = vmul.f32 %v297_v19, %v132_v44 }
 0x144   :  { %v339_v50 = vpop.eup %338  ;;  %v148_v53 = vmul.f32 %v297_v19, %v133_v46 }
 0x145   :  { %v134_v51 = vmul.f32 %v339_v50, %v432_v49  ;;  %312 = vmatmul.mubr.msk.bf16.vlgmr.msra.gmra.mrb[0].mxu0 %vm29_vm0, %v166_v47  ;;  %v162_v52 = vadd.f32 %v298_v20, %v147_v29 }
 0x146   :  { %v163_v56 = vadd.f32 %v298_v20, %v148_v53 }
 0x147   :  { %v167_v54 = vpack.c.bf16 %v162_v52, %v161_v38  ;;  %v149_v55 = vmul.f32 %v297_v19, %v134_v51 }
 0x149   :  { %315 = vmatprep.mubr.msk.bf16.mxu1 %vm29_vm0, %v167_v54  ;;  %v164_v57 = vadd.f32 %v298_v20, %v149_v55 }
 0x14b   :  { %v168_v39 = vpack.c.bf16 %v164_v57, %v163_v56 }
 0x14d   :  { %316 = vmatmul.mubr.msk.bf16.vlgmr.msra.gmra.mrb[0].mxu1 %vm29_vm0, %v168_v39 }
 0x218   :  { %v313_v58 = vpop.f32.mrb[0].mxu0 }
 0x219   :  { %v227_v49 = vpop.f32.mrb[1].mxu0  ;;  %v236_v1 = vadd.f32 %v313_v58, %v299_v48 }
 0x21a   :  { %v228_v59 = vadd.f32 %v299_v48, %v227_v49  ;;  %v314_v60 = vpop.f32.mrb[2].mxu0 }
 0x21b   :  { %v230_v61 = vpop.f32.mrb[3].mxu0  ;;  %v239_v4 = vadd.f32 %v314_v60, %v299_v48 }
 0x21c   :  { %258 = vxpose.xlu0.b32.start [1/8] (short) (narrow) %v228_v59, 8  ;;  %v231_v62 = vadd.f32 %v299_v48, %v230_v61 }
 0x220   :  { %259 = vxpose.xlu0.b32.cont [2/8] (short) (narrow) %v231_v62, 8  ;;  %v317_v63 = vpop.f32.mrb[0].mxu1 }
 0x221   :  { %v243_v0 = vpop.f32.mrb[1].mxu1  ;;  %v252_v7 = vadd.f32 %v317_v63, %v299_v48 }
 0x222   :  { %v318_v2 = vpop.f32.mrb[2].mxu1  ;;  %v244_v5 = vadd.f32 %v299_v48, %v243_v0 }
 0x223   :  { %v246_v3 = vpop.f32.mrb[3].mxu1  ;;  %v255_v8 = vadd.f32 %v318_v2, %v299_v48 }
 0x224   :  { %260 = vxpose.xlu0.b32.cont [3/8] (short) (narrow) %v236_v1, 8  ;;  %v247_v6 = vadd.f32 %v299_v48, %v246_v3 }
 0x228   :  { %261 = vxpose.xlu0.b32.cont [4/8] (short) (narrow) %v239_v4, 8 }
 0x22c   :  { %262 = vxpose.xlu0.b32.cont [5/8] (short) (narrow) %v244_v5, 8 }
 0x230   :  { %263 = vxpose.xlu0.b32.cont [6/8] (short) (narrow) %v247_v6, 8 }
 0x234   :  { %264 = vxpose.xlu0.b32.cont [7/8] (short) (narrow) %v252_v7, 8 }
 0x238   :  { %265 = vxpose.xlu0.b32.end [8/8] (short) (narrow) %v255_v8, 8 }
 0x29c   :  { %v274_v9 = vpop.trf.xlu0 }
 0x29d   :  { %v290_v10 = vpack.c.bf16 %v274_v9, %v274_v9 }
 0x29f   :  { %292 = vst.msk [vmem:[%s474_s5] sm:$0x1] %vm291_vm2, %v290_v10 }

// kernel: evoformer_stack.44
= control target key start
LH: loop header
LB: loop body
LE: loop exit
PB: predicated region body
PF: predicated region fallthrough
CT: control target
= control target key end

     0   :  { %vm25_vm0 = vcmask 64512   ;;  %v335_v0 = vmov 0.0   ;;  %vm336_vm1 = vmmov 0   ;;  %vm98_vm2 = vcmask 1043456   ;;  %s410_s1 = inlined_call_operand.vmem [shape: bf16[1,8,16], index: 1, kind: input, shape index: {}]   ;;  %s411_s0 = inlined_call_operand.vmem [shape: bf16[1,8,16], index: 0, kind: input, shape index: {}]   ;;  %s412_s3 = inlined_call_operand.vmem [shape: bf16[2,8,8], index: 3, kind: input, shape index: {}]   ;;  %s413_s4 = inlined_call_operand.vmem [shape: f32[1,1,8], index: 4, kind: input, shape index: {}]   ;;  %s414_s2 = inlined_call_operand.vmem [shape: bf16[1,8,16], index: 2, kind: input, shape index: {}]   ;;  %s415_s5 = inlined_call_operand.vmem [shape: bf16[1,8,16], index: 5, kind: output, shape index: {}]  }
   0x1   :  { %296 = vmatprep.subr.bf16.mxu0 %v335_v0  ;;  %v22_v1 = vld [vmem:[%s410_s1] sm:$0xf]  ;;  %298 = vmatprep.mubr.msk.bf16.mxu0 %vm336_vm1, %v335_v0  ;;  %v285_v35 = vld [vmem:[%s412_s3 + $0x4] sm:$0xf]  ;;  %vm273_vm3 = vcmask 125952  }
   0x2   :  { %v30_v2 = vsel %vm25_vm0, %v22_v1, 0  ;;  %302 = vmatprep.subr.bf16.mxu1 %v335_v0  ;;  %304 = vmatprep.mubr.msk.bf16.mxu1 %vm336_vm1, %v335_v0  ;;  %v21_v3 = vld [vmem:[%s411_s0] sm:$0xf]  ;;  %v283_v15 = vcombine.low %v22_v1, %v22_v1  ;;  %s337_s0 = smov 120   ;;  %v201_v36 = vunpack.c.l.bf16 %v285_v35 }
   0x3   :  { %297 = vmatpush3.bf16.xpose.msra.mxu0 %v30_v2  ;;  %v73_v4 = vld [vmem:[%s412_s3] sm:$0xf]  ;;  %v282_v16 = vcombine.low %v21_v3, %v21_v3  ;;  %s338_s3 = smov 8  }
   0x4   :  { %314 = vmatprep.subr.bf16.mxu0 %v335_v0  ;;  %v74_v5 = vunpack.c.l.bf16 %v73_v4  ;;  %v280_v10 = vld [vmem:[%s413_s4] ss:$0 sm:$0xff]  ;;  %150 = vrot.lane.b32.xlu1 %v283_v15, %s337_s0 }
   0x5   :  { %v23_v22 = vld [vmem:[%s414_s2] sm:$0xf] }
   0x6   :  { %v100_v23 = vsel %vm98_vm2, %v23_v22, 0  ;;  %v286_v45 = vcombine.low %v23_v22, %v23_v22 }
   0x7   :  { %303 = vmatpush3.bf16.msra.mxu1 %v100_v23 }
   0x8   :  { %145 = vrot.lane.b32.xlu1 %v282_v16, %s337_s0  ;;  %308 = vmatprep.subr.bf16.mxu1 %v335_v0 }
   0xa   :  { %299 = vmatmul.mubr.msk.bf16.vlgmr.msra.gmra.mrb[0].mxu0 %vm25_vm0, %v21_v3 }
   0xb   :  { %316 = vmatprep.mubr.msk.bf16.mxu0 %vm336_vm1, %v335_v0 }
  0x76   :  { %v151_v26 = vpop.permute.xlu1 %150 }
  0x77   :  { %v156_v28 = vsel %vm25_vm0, %v151_v26, 0 }
  0x7a   :  { %v146_v30 = vpop.permute.xlu1 %145 }
  0xdd   :  { %v66_v6 = vpop.f32.mrb[0].mxu0 }
  0xde   :  { %v72_v7 = vmul.f32 0.35355338, %v66_v6  ;;  %v300_v8 = vpop.f32.mrb[1].mxu0 }
  0xdf   :  { %v69_v9 = vpop.f32.mrb[2].mxu0 }
  0xe0   :  { %v75_v11 = vadd.f32 %v74_v5, %v72_v7  ;;  %v301_v12 = vpop.f32.mrb[3].mxu0 }
  0xe2   :  { %v82_v13 = vadd.f32 %v280_v10, %v75_v11 }
  0xe4   :  { %v83_v14 = vsel %vm25_vm0, %v82_v13, -inf }
  0xe5   :  { %84 = vmax.xlane.f32.xlu0 %v83_v14 }
 0x172   :  { %v85_v17 = vpop.xlane.xlu0 %84 }
 0x173   :  { %v86_v18 = vsub.f32 %v82_v13, %v85_v17 }
 0x175   :  { %v87_v19 = vmul.f32 1.442695, %v86_v18 }
 0x177   :  { %327 = vpow2.f32 %v87_v19 }
 0x181   :  { %v328_v20 = vpop.eup %327 }
 0x182   :  { %v89_v21 = vsel %vm25_vm0, %v328_v20, 0.0 }
 0x183   :  { %90 = vadd.xlane.f32.xlu0 %v89_v21 }
 0x210   :  { %v91_v24 = vpop.xlane.xlu0 %90 }
 0x211   :  { %329 = vrcp.f32 %v91_v24 }
 0x21b   :  { %v330_v25 = vpop.eup %329 }
 0x21c   :  { %v93_v27 = vmul.f32 %v330_v25, %v328_v20 }
 0x21e   :  { %v94_v29 = vpack.c.bf16 %v93_v27, %v93_v27 }
 0x220   :  { %305 = vmatmul.mubr.msk.bf16.vlgmr.msra.gmra.mrb[0].mxu1 %vm25_vm0, %v94_v29 }
 0x221   :  { %309 = vmatpush3.bf16.xpose.msra.mxu1 %v156_v28  ;;  %310 = vmatprep.mubr.msk.bf16.mxu1 %vm336_vm1, %v335_v0 }
 0x228   :  { %311 = vmatmul.mubr.msk.bf16.vlgmr.msra.gmra.mrb[4].mxu1 %vm25_vm0, %v146_v30 }
 0x2f3   :  { %v136_v31 = vpop.f32.mrb[0].mxu1 }
 0x2f4   :  { %v306_v32 = vpop.f32.mrb[1].mxu1 }
 0x2f5   :  { %v139_v33 = vpop.f32.mrb[2].mxu1 }
 0x2f6   :  { %v307_v34 = vpop.f32.mrb[3].mxu1 }
 0x2fb   :  { %v192_v37 = vpop.f32.mrb[4].mxu1 }
 0x2fc   :  { %v198_v38 = vmul.f32 0.35355338, %v192_v37  ;;  %v312_v39 = vpop.f32.mrb[5].mxu1 }
 0x2fd   :  { %v195_v40 = vpop.f32.mrb[6].mxu1 }
 0x2fe   :  { %v202_v41 = vadd.f32 %v201_v36, %v198_v38  ;;  %v313_v42 = vpop.f32.mrb[7].mxu1 }
 0x300   :  { %v203_v43 = vadd.f32 %v280_v10, %v202_v41 }
 0x302   :  { %v204_v44 = vsel %vm25_vm0, %v203_v43, -inf }
 0x303   :  { %205 = vmax.xlane.f32.xlu0 %v204_v44 }
 0x319   :  { %219 = vrot.lane.b32.xlu0 %v286_v45, %s337_s0 }
 0x390   :  { %v206_v46 = vpop.xlane.xlu0 %205 }
 0x391   :  { %v207_v47 = vsub.f32 %v203_v43, %v206_v46 }
 0x393   :  { %v208_v48 = vmul.f32 1.442695, %v207_v47 }
 0x394   :  { %v220_v51 = vpop.permute.xlu0 %219 }
 0x395   :  { %331 = vpow2.f32 %v208_v48  ;;  %v225_v52 = vsel %vm98_vm2, %v220_v51, 0 }
 0x396   :  { %315 = vmatpush3.bf16.msra.mxu0 %v225_v52 }
 0x39f   :  { %v332_v49 = vpop.eup %331 }
 0x3a0   :  { %v210_v50 = vsel %vm25_vm0, %v332_v49, 0.0 }
 0x3a1   :  { %211 = vadd.xlane.f32.xlu1 %v210_v50 }
 0x42e   :  { %v212_v53 = vpop.xlane.xlu1 %211 }
 0x42f   :  { %333 = vrcp.f32 %v212_v53 }
 0x439   :  { %v334_v54 = vpop.eup %333 }
 0x43a   :  { %v214_v55 = vmul.f32 %v334_v54, %v332_v49 }
 0x43c   :  { %v215_v56 = vpack.c.bf16 %v214_v55, %v214_v55 }
 0x43e   :  { %317 = vmatmul.mubr.msk.bf16.vlgmr.msra.gmra.mrb[4].mxu0 %vm25_vm0, %v215_v56 }
 0x511   :  { %v261_v57 = vpop.f32.mrb[4].mxu0 }
 0x512   :  { %268 = vrot.lane.b32.xlu0 %v261_v57, %s338_s3  ;;  %v318_v58 = vpop.f32.mrb[5].mxu0 }
 0x513   :  { %v264_v59 = vpop.f32.mrb[6].mxu0 }
 0x514   :  { %v319_v60 = vpop.f32.mrb[7].mxu0 }
 0x584   :  { %v269_v61 = vpop.permute.xlu0 %268 }
 0x585   :  { %v271_v62 = vsel %vm25_vm0, %v136_v31, %v269_v61 }
 0x586   :  { %v272_v63 = vpack.c.bf16 %v271_v62, %v271_v62 }
 0x588   :  { %274 = vst.msk [vmem:[%s415_s5] sm:$0xf] %vm273_vm3, %v272_v63 }

// kernel: evoformer_stack.43
= control target key start
LH: loop header
LB: loop body
LE: loop exit
PB: predicated region body
PF: predicated region fallthrough
CT: control target
= control target key end

     0   :  { %vm26_vm0 = vcmask 130048   ;;  %v173_v7 = vmov 0.0   ;;  %vm174_vm1 = vmmov 0   ;;  %vm117_vm2 = vcmask 125952   ;;  %s176_s13 = smov 112   ;;  %s177_s15 = smov 96   ;;  %s257_s0 = inlined_call_operand.vmem [shape: f32[8,16], index: 0, kind: input, shape index: {}]   ;;  %s258_s3 = inlined_call_operand.vmem [shape: bf16[16,64], index: 3, kind: input, shape index: {}]   ;;  %s259_s1 = inlined_call_operand.vmem [shape: f32[1,16], index: 1, kind: input, shape index: {}]   ;;  %s260_s2 = inlined_call_operand.vmem [shape: f32[1,16], index: 2, kind: input, shape index: {}]   ;;  %s261_s4 = inlined_call_operand.vmem [shape: f32[1,64], index: 4, kind: input, shape index: {}]   ;;  %s262_s5 = inlined_call_operand.vmem [shape: bf16[8,16], index: 5, kind: output, shape index: {0}]   ;;  %s263_s8 = inlined_call_operand.vmem [shape: bf16[8,16], index: 8, kind: output, shape index: {3}]   ;;  %s264_s6 = inlined_call_operand.vmem [shape: bf16[8,16], index: 6, kind: output, shape index: {1}]   ;;  %s265_s7 = inlined_call_operand.vmem [shape: bf16[8,16], index: 7, kind: output, shape index: {2}]  }
   0x1   :  { %v25_v0 = vld [vmem:[%s257_s0] sm:$0xff]  ;;  %159 = vmatprep.subr.bf16.mxu0 %v173_v7  ;;  %161 = vmatprep.mubr.msk.bf16.mxu0 %vm174_vm1, %v173_v7 }
   0x2   :  { %v27_v1 = vsel %vm26_vm0, %v25_v0, 0.0  ;;  %v170_v8 = vld [vmem:[%s258_s3] sm:$0xff]  }
   0x3   :  { %28 = vadd.xlane.f32.xlu0 %v27_v1  ;;  %160 = vmatpush3.bf16.msra.mxu0 %v170_v8  ;;  %v150_v13 = vld [vmem:[%s259_s1] ss:$0 sm:$0xff]  ;;  %s175_s1 = smov 80  }
   0x4   :  { %v151_v15 = vld [vmem:[%s260_s2] ss:$0 sm:$0xff] }
   0x5   :  { %v152_v19 = vld [vmem:[%s261_s4] ss:$0 sm:$0xff] }
  0x90   :  { %v29_v2 = vpop.xlane.xlu0 %28 }
  0x91   :  { %v31_v3 = vmul.f32 0.0625, %v29_v2 }
  0x93   :  { %v32_v4 = vsub.f32 %v25_v0, %v31_v3 }
  0x95   :  { %v33_v5 = vmul.f32 %v32_v4, %v32_v4 }
  0x97   :  { %v34_v6 = vsel %vm26_vm0, %v33_v5, 0.0 }
  0x98   :  { %35 = vadd.xlane.f32.xlu0 %v34_v6 }
 0x125   :  { %v36_v9 = vpop.xlane.xlu0 %35 }
 0x126   :  { %v37_v10 = vmul.f32 0.0625, %v36_v9 }
 0x128   :  { %v38_v11 = vadd.f32 1e-05, %v37_v10 }
 0x12a   :  { %171 = vrsqrt.f32 %v38_v11 }
 0x134   :  { %v172_v12 = vpop.eup %171 }
 0x135   :  { %v40_v14 = vmul.f32 %v172_v12, %v32_v4 }
 0x137   :  { %v48_v16 = vmul.f32 %v150_v13, %v40_v14 }
 0x139   :  { %v56_v17 = vadd.f32 %v151_v15, %v48_v16 }
 0x13b   :  { %v57_v18 = vpack.c.bf16 %v56_v17, %v56_v17 }
 0x13d   :  { %162 = vmatmul.mubr.msk.bf16.vlgmr.msra.gmra.mrb[0].mxu0 %vm26_vm0, %v57_v18 }
 0x210   :  { %v110_v20 = vpop.f32.mrb[0].mxu0 }
 0x211   :  { %v111_v21 = vadd.f32 %v152_v19, %v110_v20  ;;  %v163_v22 = vpop.f32.mrb[1].mxu0 }
 0x212   :  { %v113_v23 = vpop.f32.mrb[2].mxu0 }
 0x213   :  { %v116_v24 = vpack.c.bf16 %v111_v21, %v111_v21  ;;  %v164_v25 = vpop.f32.mrb[3].mxu0 }
 0x215   :  { %130 = vrot.lane.b32.xlu0 %v116_v24, %s175_s1  ;;  %122 = vrot.lane.b32.xlu1 %v116_v24, %s176_s13  ;;  %118 = vst.msk [vmem:[%s262_s5] sm:$0xf] %vm117_vm2, %v116_v24 }
 0x219   :  { %126 = vrot.lane.b32.xlu1 %v116_v24, %s177_s15 }
 0x287   :  { %v131_v26 = vpop.permute.xlu0 %130  ;;  %v123_v27 = vpop.permute.xlu1 %122 }
 0x288   :  { %133 = vst.msk [vmem:[%s263_s8] sm:$0xf] %vm117_vm2, %v131_v26  ;;  %125 = vst.msk [vmem:[%s264_s6] sm:$0xf] %vm117_vm2, %v123_v27 }
 0x28b   :  { %v127_v28 = vpop.permute.xlu1 %126 }
 0x28c   :  { %129 = vst.msk [vmem:[%s265_s7] sm:$0xf] %vm117_vm2, %v127_v28 }

// kernel: evoformer_stack.45
= control target key start
LH: loop header
LB: loop body
LE: loop exit
PB: predicated region body
PF: predicated region fallthrough
CT: control target
= control target key end

     0   :  { %v118_v0 = vmov 0.0   ;;  %vm119_vm0 = vmmov 0   ;;  %vm48_vm1 = vcmask 130048   ;;  %s168_s1 = inlined_call_operand.vmem [shape: bf16[16,16], index: 1, kind: input, shape index: {}]   ;;  %s169_s3 = inlined_call_operand.vmem [shape: bf16[8,16], index: 3, kind: input, shape index: {}]   ;;  %s170_s0 = inlined_call_operand.vmem [shape: bf16[8,16], index: 0, kind: input, shape index: {}]   ;;  %s171_s2 = inlined_call_operand.vmem [shape: f32[1,16], index: 2, kind: input, shape index: {}]   ;;  %s172_s4 = inlined_call_operand.vmem [shape: f32[8,16], index: 4, kind: input, shape index: {}]   ;;  %s173_s5 = inlined_call_operand.vmem [shape: f32[8,16], index: 5, kind: output, shape index: {}]  }
   0x1   :  { %105 = vmatprep.subr.bf16.mxu0 %v118_v0  ;;  %v113_v1 = vld [vmem:[%s168_s1] sm:$0xff]   ;;  %107 = vmatprep.mubr.msk.bf16.mxu0 %vm119_vm0, %v118_v0 }
   0x2   :  { %v23_v2 = vld [vmem:[%s169_s3] sm:$0xf]  ;;  %106 = vmatpush3.bf16.msra.mxu0 %v113_v1 }
   0x3   :  { %v24_v3 = vunpack.c.l.bf16 %v23_v2  ;;  %v21_v7 = vld [vmem:[%s170_s0] sm:$0xf] }
   0x4   :  { %v22_v8 = vunpack.c.l.bf16 %v21_v7  ;;  %v100_v12 = vld [vmem:[%s171_s2] ss:$0 sm:$0xff] }
   0x5   :  { %v99_v4 = vmul.f32 -1.442695, %v24_v3  ;;  %v92_v14 = vld [vmem:[%s172_s4] sm:$0xff] }
   0x7   :  { %114 = vpow2.f32 %v99_v4 }
  0x11   :  { %v115_v5 = vpop.eup %114 }
  0x12   :  { %v28_v6 = vadd.f32 1.0, %v115_v5 }
  0x14   :  { %116 = vrcp.f32 %v28_v6 }
  0x1e   :  { %v117_v9 = vpop.eup %116 }
  0x1f   :  { %v31_v10 = vmul.f32 %v117_v9, %v22_v8 }
  0x21   :  { %v32_v11 = vpack.c.bf16 %v31_v10, %v31_v10 }
  0x23   :  { %108 = vmatmul.mubr.msk.bf16.vlgmr.msra.gmra.mrb[0].mxu0 %vm48_vm1, %v32_v11 }
  0xf6   :  { %v86_v13 = vpop.f32.mrb[0].mxu0 }
  0xf7   :  { %v87_v15 = vadd.f32 %v100_v12, %v86_v13  ;;  %v109_v16 = vpop.f32.mrb[1].mxu0 }
  0xf8   :  { %v89_v17 = vpop.f32.mrb[2].mxu0 }
  0xf9   :  { %v93_v18 = vadd.f32 %v92_v14, %v87_v15  ;;  %v110_v19 = vpop.f32.mrb[3].mxu0 }
  0xfb   :  { %94 = vst.msk [vmem:[%s173_s5] sm:$0xff] %vm48_vm1, %v93_v18 }

// kernel: evoformer_stack.47
= control target key start
LH: loop header
LB: loop body
LE: loop exit
PB: predicated region body
PF: predicated region fallthrough
CT: control target
= control target key end

     0   :  { %vm22_vm0 = vcmask 130048   ;;  %v135_v7 = vmov 0.0   ;;  %vm136_vm1 = vmmov 0   ;;  %s189_s0 = inlined_call_operand.vmem [shape: f32[8,16], index: 0, kind: input, shape index: {}]   ;;  %s190_s3 = inlined_call_operand.vmem [shape: bf16[16,16], index: 3, kind: input, shape index: {}]   ;;  %s191_s1 = inlined_call_operand.vmem [shape: f32[1,16], index: 1, kind: input, shape index: {}]   ;;  %s192_s2 = inlined_call_operand.vmem [shape: f32[1,16], index: 2, kind: input, shape index: {}]   ;;  %s193_s4 = inlined_call_operand.vmem [shape: f32[1,16], index: 4, kind: input, shape index: {}]   ;;  %s194_s5 = inlined_call_operand.vmem [shape: f32[8,16], index: 5, kind: output, shape index: {}]  }
   0x1   :  { %v21_v0 = vld [vmem:[%s189_s0] sm:$0xff]  ;;  %124 = vmatprep.subr.bf16.mxu0 %v135_v7  ;;  %126 = vmatprep.mubr.msk.bf16.mxu0 %vm136_vm1, %v135_v7 }
   0x2   :  { %v23_v1 = vsel %vm22_vm0, %v21_v0, 0.0  ;;  %v132_v8 = vld [vmem:[%s190_s3] sm:$0xff]  }
   0x3   :  { %24 = vadd.xlane.f32.xlu0 %v23_v1  ;;  %125 = vmatpush3.bf16.msra.mxu0 %v132_v8  ;;  %v117_v13 = vld [vmem:[%s191_s1] ss:$0 sm:$0xff] }
   0x4   :  { %v118_v15 = vld [vmem:[%s192_s2] ss:$0 sm:$0xff] }
   0x5   :  { %v119_v19 = vld [vmem:[%s193_s4] ss:$0 sm:$0xff] }
  0x90   :  { %v25_v2 = vpop.xlane.xlu0 %24 }
  0x91   :  { %v27_v3 = vmul.f32 0.0625, %v25_v2 }
  0x93   :  { %v28_v4 = vsub.f32 %v21_v0, %v27_v3 }
  0x95   :  { %v29_v5 = vmul.f32 %v28_v4, %v28_v4 }
  0x97   :  { %v30_v6 = vsel %vm22_vm0, %v29_v5, 0.0 }
  0x98   :  { %31 = vadd.xlane.f32.xlu0 %v30_v6 }
 0x125   :  { %v32_v9 = vpop.xlane.xlu0 %31 }
 0x126   :  { %v33_v10 = vmul.f32 0.0625, %v32_v9 }
 0x128   :  { %v34_v11 = vadd.f32 1e-05, %v33_v10 }
 0x12a   :  { %133 = vrsqrt.f32 %v34_v11 }
 0x134   :  { %v134_v12 = vpop.eup %133 }
 0x135   :  { %v36_v14 = vmul.f32 %v134_v12, %v28_v4 }
 0x137   :  { %v44_v16 = vmul.f32 %v117_v13, %v36_v14 }
 0x139   :  { %v52_v17 = vadd.f32 %v118_v15, %v44_v16 }
 0x13b   :  { %v53_v18 = vpack.c.bf16 %v52_v17, %v52_v17 }
 0x13d   :  { %127 = vmatmul.mubr.msk.bf16.vlgmr.msra.gmra.mrb[0].mxu0 %vm22_vm0, %v53_v18 }
 0x210   :  { %v106_v20 = vpop.f32.mrb[0].mxu0 }
 0x211   :  { %v107_v21 = vadd.f32 %v119_v19, %v106_v20  ;;  %v128_v22 = vpop.f32.mrb[1].mxu0 }
 0x212   :  { %v109_v23 = vpop.f32.mrb[2].mxu0 }
 0x213   :  { %112 = vst.msk [vmem:[%s194_s5] sm:$0xff] %vm22_vm0, %v107_v21  ;;  %v129_v24 = vpop.f32.mrb[3].mxu0 }

// kernel: evoformer_stack.46
= control target key start
LH: loop header
LB: loop body
LE: loop exit
PB: predicated region body
PF: predicated region fallthrough
CT: control target
= control target key end

     0   :  { %vm31_vm0 = vcmask 130048   ;;  %v241_v7 = vmov 0.0   ;;  %vm242_vm1 = vmmov 0   ;;  %v243_v21 = vmov 0   ;;  %s328_s0 = inlined_call_operand.vmem [shape: f32[8,16], index: 0, kind: input, shape index: {}]   ;;  %s329_s3 = inlined_call_operand.vmem [shape: bf16[16,32], index: 3, kind: input, shape index: {}]   ;;  %s330_s1 = inlined_call_operand.vmem [shape: f32[1,16], index: 1, kind: input, shape index: {}]   ;;  %s331_s2 = inlined_call_operand.vmem [shape: f32[1,16], index: 2, kind: input, shape index: {}]   ;;  %s332_s5 = inlined_call_operand.vmem [shape: bf16[32,16], index: 5, kind: input, shape index: {}]   ;;  %s333_s7 = inlined_call_operand.vmem [shape: f32[8,1], index: 7, kind: input, shape index: {}]   ;;  %s334_s4 = inlined_call_operand.vmem [shape: f32[1,32], index: 4, kind: input, shape index: {}]   ;;  %s335_s6 = inlined_call_operand.vmem [shape: f32[1,16], index: 6, kind: input, shape index: {}]   ;;  %s336_s8 = inlined_call_operand.vmem [shape: f32[8,16], index: 8, kind: output, shape index: {}]  }
   0x1   :  { %v292_v0 = vld [vmem:[%s328_s0] sm:$0xff]  ;;  %217 = vmatprep.subr.bf16.mxu0 %v241_v7  ;;  %219 = vmatprep.mubr.msk.bf16.mxu0 %vm242_vm1, %v241_v7  ;;  %v238_v20 = vld [vmem:[%s332_s5 + $0x8] sm:$0xff]   ;;  %vm146_vm2 = vcmask 261120  }
   0x2   :  { %v32_v1 = vsel %vm31_vm0, %v292_v0, 0.0  ;;  %v236_v8 = vld [vmem:[%s329_s3] sm:$0xff]   ;;  %223 = vmatprep.subr.bf16.mxu1 %v241_v7  ;;  %227 = vmatprep.mubr.msk.bf16.mxu1 %vm242_vm1, %v241_v7 }
   0x3   :  { %33 = vadd.xlane.f32.xlu0 %v32_v1  ;;  %218 = vmatpush3.bf16.msra.mxu0 %v236_v8  ;;  %v203_v13 = vld [vmem:[%s330_s1] ss:$0 sm:$0xff] }
   0x4   :  { %v204_v15 = vld [vmem:[%s331_s2] ss:$0 sm:$0xff]  ;;  %234 = vset.pattern.permute.xlu1 %v243_v21  ;;  %235 = vset.pattern.permute.xlu0 %v243_v21 }
   0x5   :  { %v237_v19 = vld [vmem:[%s332_s5] sm:$0xff]  }
   0x6   :  { %224 = vmatpush3.bf16.msra.mxu1 %v237_v19  ;;  %v190_v22 = vld [vmem:[%s333_s7] sm:$0xff] }
   0x7   :  { %225 = vmatprep.subr.bf16.mxu1 %v241_v7  ;;  %193 = vperm.xlu1 %234, %v190_v22   ;;  %v205_v23 = vld [vmem:[%s334_s4] ss:$0 sm:$0xff] }
   0x8   :  { %v208_v31 = vld [vmem:[%s335_s6] ss:$0 sm:$0xff] }
   0xa   :  { %226 = vmatpush3.bf16.msra.mxu1 %v238_v20 }
  0x86   :  { %v194_v33 = vpop.permute.xlu1 %193 }
  0x90   :  { %v34_v2 = vpop.xlane.xlu0 %33 }
  0x91   :  { %v36_v3 = vmul.f32 0.0625, %v34_v2 }
  0x93   :  { %v37_v4 = vsub.f32 %v292_v0, %v36_v3 }
  0x95   :  { %v38_v5 = vmul.f32 %v37_v4, %v37_v4 }
  0x97   :  { %v39_v6 = vsel %vm31_vm0, %v38_v5, 0.0 }
  0x98   :  { %40 = vadd.xlane.f32.xlu0 %v39_v6 }
 0x125   :  { %v41_v9 = vpop.xlane.xlu0 %40 }
 0x126   :  { %v42_v10 = vmul.f32 0.0625, %v41_v9 }
 0x128   :  { %v43_v11 = vadd.f32 1e-05, %v42_v10 }
 0x12a   :  { %239 = vrsqrt.f32 %v43_v11 }
 0x134   :  { %v240_v12 = vpop.eup %239 }
 0x135   :  { %v45_v14 = vmul.f32 %v240_v12, %v37_v4 }
 0x137   :  { %v53_v16 = vmul.f32 %v203_v13, %v45_v14 }
 0x139   :  { %v61_v17 = vadd.f32 %v204_v15, %v53_v16 }
 0x13b   :  { %v62_v18 = vpack.c.bf16 %v61_v17, %v61_v17 }
 0x13d   :  { %220 = vmatmul.mubr.msk.bf16.vlgmr.msra.gmra.mrb[0].mxu0 %vm31_vm0, %v62_v18 }
 0x210   :  { %v115_v24 = vpop.f32.mrb[0].mxu0 }
 0x211   :  { %v116_v25 = vadd.f32 %v205_v23, %v115_v24  ;;  %v221_v26 = vpop.f32.mrb[1].mxu0 }
 0x212   :  { %v118_v27 = vpop.f32.mrb[2].mxu0 }
 0x213   :  { %v121_v28 = vmax.f32 %v116_v25, 0.0  ;;  %v222_v29 = vpop.f32.mrb[3].mxu0 }
 0x215   :  { %v122_v30 = vpack.c.bf16 %v121_v28, %v121_v28 }
 0x217   :  { %228 = vmatmul.mubr.msk.bf16.vlgmr.msra.gmra.mrb[0].mxu1 %vm146_vm2, %v122_v30 }
 0x2ea   :  { %v184_v32 = vpop.f32.mrb[0].mxu1 }
 0x2eb   :  { %v185_v34 = vadd.f32 %v208_v31, %v184_v32  ;;  %v229_v35 = vpop.f32.mrb[1].mxu1 }
 0x2ec   :  { %v187_v36 = vpop.f32.mrb[2].mxu1 }
 0x2ed   :  { %v196_v37 = vmul.f32 %v194_v33, %v185_v34  ;;  %v230_v38 = vpop.f32.mrb[3].mxu1 }
 0x2ef   :  { %v197_v39 = vadd.f32 %v196_v37, %v292_v0 }
 0x2f1   :  { %198 = vst.msk [vmem:[%s336_s8] sm:$0xff] %vm31_vm0, %v197_v39 }

// kernel: evoformer_stack.48
= control target key start
LH: loop header
LB: loop body
LE: loop exit
PB: predicated region body
PF: predicated region fallthrough
CT: control target
= control target key end

     0   :  { %vm29_vm0 = vcmask 1043456   ;;  %v92_v0 = vmov 0.0   ;;  %vm93_vm1 = vmmov 0   ;;  %vm25_vm2 = vcmask 64512   ;;  %s126_s1 = inlined_call_operand.vmem [shape: bf16[8,64], index: 1, kind: input, shape index: {}]   ;;  %s127_s0 = inlined_call_operand.vmem [shape: f32[8,8], index: 0, kind: input, shape index: {}]   ;;  %s128_s2 = inlined_call_operand.vmem [shape: f32[1,64], index: 2, kind: input, shape index: {}]   ;;  %s129_s3 = inlined_call_operand.vmem [shape: bf16[8,64], index: 3, kind: output, shape index: {}]  }
   0x1   :  { %84 = vmatprep.subr.bf16.mxu0 %v92_v0  ;;  %v17_v1 = vld [vmem:[%s126_s1] sm:$0xf]  ;;  %86 = vmatprep.mubr.msk.bf16.mxu0 %vm93_vm1, %v92_v0  ;;  %vm74_vm3 = vcmask 519168  }
   0x2   :  { %v15_v2 = vld [vmem:[%s127_s0] sm:$0xff]  ;;  %v31_v3 = vsel %vm29_vm0, %v17_v1, 0 }
   0x3   :  { %v16_v4 = vpack.c.bf16 %v15_v2, %v15_v2  ;;  %85 = vmatpush3.bf16.msra.mxu0 %v31_v3  ;;  %v80_v5 = vld [vmem:[%s128_s2] ss:$0 sm:$0xff] }
   0x6   :  { %87 = vmatmul.mubr.msk.bf16.vlgmr.msra.gmra.mrb[0].mxu0 %vm25_vm2, %v16_v4 }
  0xd9   :  { %v67_v6 = vpop.f32.mrb[0].mxu0 }
  0xda   :  { %v68_v7 = vadd.f32 %v80_v5, %v67_v6  ;;  %v88_v8 = vpop.f32.mrb[1].mxu0 }
  0xdb   :  { %v70_v9 = vpop.f32.mrb[2].mxu0 }
  0xdc   :  { %v73_v10 = vpack.c.bf16 %v68_v7, %v68_v7  ;;  %v89_v11 = vpop.f32.mrb[3].mxu0 }
  0xde   :  { %75 = vst.msk [vmem:[%s129_s3] sm:$0xf] %vm74_vm3, %v73_v10 }

// kernel: evoformer_stack.49
= control target key start
LH: loop header
LB: loop body
LE: loop exit
PB: predicated region body
PF: predicated region fallthrough
CT: control target
= control target key end

     0   :  { %vm45_vm0 = vcmask 1043456   ;;  %v579_v0 = vmov 0   ;;  %v580_v2 = vmov 0.0   ;;  %vm41_vm1 = vcmask 64512   ;;  %s733_s3 = inlined_call_operand.vmem [shape: f32[8,1], index: 3, kind: input, shape index: {}]   ;;  %s734_s0 = inlined_call_operand.vmem [shape: bf16[8,8,8], index: 0, kind: input, shape index: {}]   ;;  %s735_s1 = inlined_call_operand.vmem [shape: f32[8,8], index: 1, kind: input, shape index: {}]   ;;  %s736_s4 = inlined_call_operand.vmem [shape: f32[1,8], index: 4, kind: input, shape index: {}]   ;;  %s737_s2 = inlined_call_operand.vmem [shape: f32[1,8], index: 2, kind: input, shape index: {}]   ;;  %s738_s5 = inlined_call_operand.vmem [shape: f32[8,8,8], index: 5, kind: input, shape index: {}]   ;;  %s739_s6 = inlined_call_operand.vmem [shape: f32[8,8,8], index: 6, kind: output, shape index: {}]  }
   0x1   :  { %576 = vset.pattern.permute.xlu0 %v579_v0  ;;  %v390_v1 = vld [vmem:[%s733_s3] sm:$0xff]  ;;  %525 = vmatprep.subr.bf16.mxu0 %v580_v2  ;;  %v26_v8 = vld [vmem:[%s734_s0 + $0x8] sm:$0xf]  ;;  %v27_v10 = vld [vmem:[%s734_s0 + $0xc] sm:$0xf]  ;;  %vm581_vm2 = vmmov 0   ;;  %v407_v25 = vlaneseq }
   0x2   :  { %v24_v3 = vld [vmem:[%s734_s0] sm:$0xf]  ;;  %v25_v4 = vld [vmem:[%s734_s0 + $0x4] sm:$0xf]  ;;  %394 = vperm.xlu0 %576, %v390_v1   ;;  %531 = vmatprep.subr.bf16.mxu1 %v580_v2  ;;  %v133_v11 = vsel %vm45_vm0, %v26_v8, 0  ;;  %v176_v12 = vsel %vm45_vm0, %v27_v10, 0 }
   0x3   :  { %v47_v5 = vsel %vm45_vm0, %v24_v3, 0  ;;  %v90_v6 = vsel %vm45_vm0, %v25_v4, 0  ;;  %v32_v7 = vld [vmem:[%s735_s1] sm:$0xff]  ;;  %527 = vmatprep.mubr.msk.bf16.mxu0 %vm581_vm2, %v580_v2  ;;  %533 = vmatprep.mubr.msk.bf16.mxu1 %vm581_vm2, %v580_v2  ;;  %v28_v13 = vld [vmem:[%s734_s0 + $0x10] sm:$0xf]  ;;  %v408_v26 = vshrl.u32 %v407_v25, 7 }
   0x4   :  { %526 = vmatpush3.bf16.msra.mxu0 %v47_v5  ;;  %532 = vmatpush3.bf16.msra.mxu1 %v90_v6  ;;  %v33_v9 = vpack.c.bf16 %v32_v7, %v32_v7  ;;  %v29_v14 = vld [vmem:[%s734_s0 + $0x14] sm:$0xf]  ;;  %v219_v15 = vsel %vm45_vm0, %v28_v13, 0  ;;  %v30_v17 = vld [vmem:[%s734_s0 + $0x18] sm:$0xf] }
   0x5   :  { %537 = vmatprep.subr.bf16.mxu0 %v580_v2  ;;  %543 = vmatprep.subr.bf16.mxu1 %v580_v2  ;;  %v262_v16 = vsel %vm45_vm0, %v29_v14, 0  ;;  %v31_v18 = vld [vmem:[%s734_s0 + $0x1c] sm:$0xf]  ;;  %v305_v19 = vsel %vm45_vm0, %v30_v17, 0  ;;  %v508_v21 = vld [vmem:[%s736_s4] ss:$0 sm:$0xff] }
   0x6   :  { %v348_v20 = vsel %vm45_vm0, %v31_v18, 0  ;;  %v416_v27 = vsub.s32 1, %v408_v26  ;;  %v409_v28 = vsub.s32 0, %v408_v26  ;;  %v423_v32 = vsub.s32 2, %v408_v26  ;;  %v471_v17 = vld [vmem:[%s738_s5] sm:$0xff]  ;;  %v473_v25 = vld [vmem:[%s738_s5 + $0x10] sm:$0xff] }
   0x7   :  { %528 = vmatmul.mubr.msk.bf16.vlgmr.msra.gmra.mrb[0].mxu0 %vm41_vm1, %v33_v9  ;;  %534 = vmatmul.mubr.msk.bf16.vlgmr.msra.gmra.mrb[0].mxu1 %vm41_vm1, %v33_v9  ;;  %v430_v33 = vsub.s32 3, %v408_v26  ;;  %v437_v36 = vsub.s32 4, %v408_v26  ;;  %v444_v37 = vsub.s32 5, %v408_v26  ;;  %v451_v40 = vsub.s32 6, %v408_v26 }
   0x8   :  { %538 = vmatpush3.bf16.msra.mxu0 %v133_v11  ;;  %544 = vmatpush3.bf16.msra.mxu1 %v176_v12  ;;  %v458_v41 = vsub.s32 7, %v408_v26  ;;  %v499_v12 = vld [vmem:[%s737_s2] ss:$0 sm:$0xff] }
   0x9   :  { %539 = vmatprep.mubr.msk.bf16.mxu0 %vm581_vm2, %v580_v2  ;;  %545 = vmatprep.mubr.msk.bf16.mxu1 %vm581_vm2, %v580_v2 }
   0xa   :  { %549 = vmatprep.subr.bf16.mxu0 %v580_v2  ;;  %555 = vmatprep.subr.bf16.mxu1 %v580_v2 }
   0xf   :  { %540 = vmatmul.mubr.msk.bf16.vlgmr.msra.gmra.mrb[4].mxu0 %vm41_vm1, %v33_v9  ;;  %546 = vmatmul.mubr.msk.bf16.vlgmr.msra.gmra.mrb[4].mxu1 %vm41_vm1, %v33_v9 }
  0x10   :  { %550 = vmatpush3.bf16.msra.mxu0 %v219_v15  ;;  %556 = vmatpush3.bf16.msra.mxu1 %v262_v16  ;;  %v472_v15 = vld [vmem:[%s738_s5 + $0x8] sm:$0xff] }
  0x11   :  { %551 = vmatprep.mubr.msk.bf16.mxu0 %vm581_vm2, %v580_v2  ;;  %557 = vmatprep.mubr.msk.bf16.mxu1 %vm581_vm2, %v580_v2 }
  0x12   :  { %561 = vmatprep.subr.bf16.mxu0 %v580_v2  ;;  %567 = vmatprep.subr.bf16.mxu1 %v580_v2 }
  0x17   :  { %552 = vmatmul.mubr.msk.bf16.vlgmr.msra.gmra.mrb[8].mxu0 %vm41_vm1, %v33_v9  ;;  %558 = vmatmul.mubr.msk.bf16.vlgmr.msra.gmra.mrb[8].mxu1 %vm41_vm1, %v33_v9 }
  0x18   :  { %562 = vmatpush3.bf16.msra.mxu0 %v305_v19  ;;  %568 = vmatpush3.bf16.msra.mxu1 %v348_v20 }
  0x19   :  { %563 = vmatprep.mubr.msk.bf16.mxu0 %vm581_vm2, %v580_v2  ;;  %569 = vmatprep.mubr.msk.bf16.mxu1 %vm581_vm2, %v580_v2 }
  0x1f   :  { %564 = vmatmul.mubr.msk.bf16.vlgmr.msra.gmra.mrb[12].mxu0 %vm41_vm1, %v33_v9  ;;  %570 = vmatmul.mubr.msk.bf16.vlgmr.msra.gmra.mrb[12].mxu1 %vm41_vm1, %v33_v9 }
  0x81   :  { %v395_v22 = vpop.permute.xlu0 %394 }
  0x82   :  { %v403_v23 = vmul.f32 %v508_v21, %v395_v22 }
  0x84   :  { %v404_v24 = vadd.f32 0.001, %v403_v23 }
  0x86   :  { %577 = vrcp.f32 %v404_v24 }
  0x90   :  { %v578_v29 = vpop.eup %577 }
  0x91   :  { %v417_v30 = vrot.slane %v578_v29, %v416_v27  ;;  %v410_v31 = vrot.slane %v578_v29, %v409_v28  ;;  %v424_v34 = vrot.slane %v578_v29, %v423_v32  ;;  %v431_v35 = vrot.slane %v578_v29, %v430_v33  ;;  %v474_v27 = vld [vmem:[%s738_s5 + $0x18] sm:$0xff] }
  0x92   :  { %v438_v38 = vrot.slane %v578_v29, %v437_v36  ;;  %v445_v39 = vrot.slane %v578_v29, %v444_v37  ;;  %v452_v42 = vrot.slane %v578_v29, %v451_v40  ;;  %v459_v43 = vrot.slane %v578_v29, %v458_v41  ;;  %v476_v37 = vld [vmem:[%s738_s5 + $0x28] sm:$0xff] }
  0x93   :  { %419 = vbcast.lane.b32.xlu1 %v417_v30, 256  ;;  %412 = vbcast.lane.b32.xlu0 %v410_v31, 256 }
  0x97   :  { %426 = vbcast.lane.b32.xlu1 %v424_v34, 256  ;;  %433 = vbcast.lane.b32.xlu0 %v431_v35, 256  ;;  %v475_v35 = vld [vmem:[%s738_s5 + $0x20] sm:$0xff] }
  0x9b   :  { %440 = vbcast.lane.b32.xlu1 %v438_v38, 256  ;;  %447 = vbcast.lane.b32.xlu0 %v445_v39, 256 }
  0x9f   :  { %454 = vbcast.lane.b32.xlu1 %v452_v42, 256  ;;  %461 = vbcast.lane.b32.xlu0 %v459_v43, 256 }
  0xda   :  { %v83_v44 = vpop.f32.mrb[0].mxu0  ;;  %v126_v45 = vpop.f32.mrb[0].mxu1 }
  0xdb   :  { %v529_v46 = vpop.f32.mrb[1].mxu0  ;;  %v535_v47 = vpop.f32.mrb[1].mxu1  ;;  %v84_v13 = vadd.f32 %v499_v12, %v83_v44  ;;  %v127_v14 = vadd.f32 %v499_v12, %v126_v45  ;;  %v477_v45 = vld [vmem:[%s738_s5 + $0x30] sm:$0xff] }
  0xdc   :  { %v86_v48 = vpop.f32.mrb[2].mxu0  ;;  %v129_v49 = vpop.f32.mrb[2].mxu1  ;;  %v478_v47 = vld [vmem:[%s738_s5 + $0x38] sm:$0xff] }
  0xdd   :  { %v530_v50 = vpop.f32.mrb[3].mxu0  ;;  %v536_v51 = vpop.f32.mrb[3].mxu1 }
  0xe2   :  { %v169_v52 = vpop.f32.mrb[4].mxu0  ;;  %v212_v53 = vpop.f32.mrb[4].mxu1 }
  0xe3   :  { %v541_v54 = vpop.f32.mrb[5].mxu0  ;;  %v547_v55 = vpop.f32.mrb[5].mxu1  ;;  %v170_v21 = vadd.f32 %v499_v12, %v169_v52  ;;  %v213_v22 = vadd.f32 %v499_v12, %v212_v53 }
  0xe4   :  { %v172_v56 = vpop.f32.mrb[6].mxu0  ;;  %v215_v57 = vpop.f32.mrb[6].mxu1 }
  0xe5   :  { %v542_v58 = vpop.f32.mrb[7].mxu0  ;;  %v548_v59 = vpop.f32.mrb[7].mxu1 }
  0xea   :  { %v255_v60 = vpop.f32.mrb[8].mxu0  ;;  %v298_v61 = vpop.f32.mrb[8].mxu1 }
  0xeb   :  { %v553_v62 = vpop.f32.mrb[9].mxu0  ;;  %v559_v63 = vpop.f32.mrb[9].mxu1  ;;  %v256_v31 = vadd.f32 %v499_v12, %v255_v60  ;;  %v299_v32 = vadd.f32 %v499_v12, %v298_v61 }
  0xec   :  { %v258_v0 = vpop.f32.mrb[10].mxu0  ;;  %v301_v1 = vpop.f32.mrb[10].mxu1 }
  0xed   :  { %v554_v2 = vpop.f32.mrb[11].mxu0  ;;  %v560_v3 = vpop.f32.mrb[11].mxu1 }
  0xf2   :  { %v341_v4 = vpop.f32.mrb[12].mxu0  ;;  %v384_v5 = vpop.f32.mrb[12].mxu1 }
  0xf3   :  { %v565_v6 = vpop.f32.mrb[13].mxu0  ;;  %v571_v7 = vpop.f32.mrb[13].mxu1  ;;  %v342_v39 = vadd.f32 %v499_v12, %v341_v4  ;;  %v385_v40 = vadd.f32 %v499_v12, %v384_v5 }
  0xf4   :  { %v344_v8 = vpop.f32.mrb[14].mxu0  ;;  %v387_v9 = vpop.f32.mrb[14].mxu1 }
  0xf5   :  { %v566_v10 = vpop.f32.mrb[15].mxu0  ;;  %v572_v11 = vpop.f32.mrb[15].mxu1 }
 0x105   :  { %v420_v16 = vpop.permute.xlu1 %419  ;;  %v413_v18 = vpop.permute.xlu0 %412 }
 0x106   :  { %v464_v19 = vmul.f32 %v420_v16, %v127_v14  ;;  %v463_v20 = vmul.f32 %v413_v18, %v84_v13 }
 0x108   :  { %v480_v23 = vadd.f32 %v472_v15, %v464_v19  ;;  %v479_v24 = vadd.f32 %v471_v17, %v463_v20 }
 0x109   :  { %v427_v26 = vpop.permute.xlu1 %426  ;;  %v434_v28 = vpop.permute.xlu0 %433 }
 0x10a   :  { %488 = vst.msk [vmem:[%s739_s6 + $0x8] sm:$0xff] %vm41_vm1, %v480_v23  ;;  %487 = vst.msk [vmem:[%s739_s6] sm:$0xff] %vm41_vm1, %v479_v24  ;;  %v465_v29 = vmul.f32 %v427_v26, %v170_v21  ;;  %v466_v30 = vmul.f32 %v434_v28, %v213_v22 }
 0x10c   :  { %v481_v33 = vadd.f32 %v473_v25, %v465_v29  ;;  %v482_v34 = vadd.f32 %v474_v27, %v466_v30 }
 0x10d   :  { %v441_v36 = vpop.permute.xlu1 %440  ;;  %v448_v38 = vpop.permute.xlu0 %447 }
 0x10e   :  { %489 = vst.msk [vmem:[%s739_s6 + $0x10] sm:$0xff] %vm41_vm1, %v481_v33  ;;  %490 = vst.msk [vmem:[%s739_s6 + $0x18] sm:$0xff] %vm41_vm1, %v482_v34  ;;  %v467_v41 = vmul.f32 %v441_v36, %v256_v31  ;;  %v468_v42 = vmul.f32 %v448_v38, %v299_v32 }
 0x110   :  { %v483_v43 = vadd.f32 %v475_v35, %v467_v41  ;;  %v484_v44 = vadd.f32 %v476_v37, %v468_v42 }
 0x111   :  { %v455_v46 = vpop.permute.xlu1 %454  ;;  %v462_v48 = vpop.permute.xlu0 %461 }
 0x112   :  { %491 = vst.msk [vmem:[%s739_s6 + $0x20] sm:$0xff] %vm41_vm1, %v483_v43  ;;  %492 = vst.msk [vmem:[%s739_s6 + $0x28] sm:$0xff] %vm41_vm1, %v484_v44  ;;  %v469_v49 = vmul.f32 %v455_v46, %v342_v39  ;;  %v470_v50 = vmul.f32 %v462_v48, %v385_v40 }
 0x114   :  { %v485_v51 = vadd.f32 %v477_v45, %v469_v49  ;;  %v486_v52 = vadd.f32 %v478_v47, %v470_v50 }
 0x116   :  { %493 = vst.msk [vmem:[%s739_s6 + $0x30] sm:$0xff] %vm41_vm1, %v485_v51  ;;  %494 = vst.msk [vmem:[%s739_s6 + $0x38] sm:$0xff] %vm41_vm1, %v486_v52 }

// kernel: evoformer_stack.51
= control target key start
LH: loop header
LB: loop body
LE: loop exit
PB: predicated region body
PF: predicated region fallthrough
CT: control target
= control target key end

     0   :  { %vm28_vm0 = vcmask 64512   ;;  %v492_v0 = vmov 0.0   ;;  %vm493_vm1 = vmmov 0   ;;  %vm405_vm2 = vcmask 60416   ;;  %s613_s1 = inlined_call_operand.vmem [shape: bf16[8,8,8], index: 1, kind: input, shape index: {}]   ;;  %s614_s0 = inlined_call_operand.vmem [shape: bf16[8,8,8], index: 0, kind: input, shape index: {}]   ;;  %s615_s2 = inlined_call_operand.vmem [shape: bf16[8,8,8], index: 2, kind: output, shape index: {}]  }
   0x1   :  { %442 = vmatprep.subr.bf16.mxu0 %v492_v0  ;;  %448 = vmatprep.subr.bf16.mxu1 %v492_v0  ;;  %v20_v1 = vld [vmem:[%s613_s1] sm:$0xf]  ;;  %v21_v2 = vld [vmem:[%s613_s1 + $0x4] sm:$0xf]  ;;  %v22_v5 = vld [vmem:[%s613_s1 + $0x8] sm:$0xf] }
   0x2   :  { %v33_v3 = vsel %vm28_vm0, %v20_v1, 0  ;;  %v79_v4 = vsel %vm28_vm0, %v21_v2, 0  ;;  %444 = vmatprep.mubr.msk.bf16.mxu0 %vm493_vm1, %v492_v0  ;;  %450 = vmatprep.mubr.msk.bf16.mxu1 %vm493_vm1, %v492_v0  ;;  %v23_v6 = vld [vmem:[%s613_s1 + $0xc] sm:$0xf]  ;;  %v12_v7 = vld [vmem:[%s614_s0] sm:$0xf] }
   0x3   :  { %443 = vmatpush3.bf16.xpose.msra.mxu0 %v33_v3  ;;  %449 = vmatpush3.bf16.xpose.msra.mxu1 %v79_v4  ;;  %v13_v8 = vld [vmem:[%s614_s0 + $0x4] sm:$0xf]  ;;  %v125_v9 = vsel %vm28_vm0, %v22_v5, 0  ;;  %v171_v10 = vsel %vm28_vm0, %v23_v6, 0  ;;  %v24_v11 = vld [vmem:[%s613_s1 + $0x10] sm:$0xf] }
   0x4   :  { %454 = vmatprep.subr.bf16.mxu0 %v492_v0  ;;  %460 = vmatprep.subr.bf16.mxu1 %v492_v0  ;;  %v25_v12 = vld [vmem:[%s613_s1 + $0x14] sm:$0xf]  ;;  %v14_v13 = vld [vmem:[%s614_s0 + $0x8] sm:$0xf]  ;;  %v15_v14 = vld [vmem:[%s614_s0 + $0xc] sm:$0xf] }
   0x5   :  { %v217_v15 = vsel %vm28_vm0, %v24_v11, 0  ;;  %v263_v16 = vsel %vm28_vm0, %v25_v12, 0  ;;  %v26_v17 = vld [vmem:[%s613_s1 + $0x18] sm:$0xf]  ;;  %v27_v18 = vld [vmem:[%s613_s1 + $0x1c] sm:$0xf] }
   0x6   :  { %v16_v19 = vld [vmem:[%s614_s0 + $0x10] sm:$0xf]  ;;  %v17_v20 = vld [vmem:[%s614_s0 + $0x14] sm:$0xf]  ;;  %v309_v21 = vsel %vm28_vm0, %v26_v17, 0  ;;  %v355_v22 = vsel %vm28_vm0, %v27_v18, 0 }
   0x7   :  { %v18_v23 = vld [vmem:[%s614_s0 + $0x18] sm:$0xf]  ;;  %v19_v24 = vld [vmem:[%s614_s0 + $0x1c] sm:$0xf] }
   0xa   :  { %445 = vmatmul.mubr.msk.bf16.vlgmr.msra.gmra.mrb[0].mxu0 %vm28_vm0, %v12_v7  ;;  %451 = vmatmul.mubr.msk.bf16.vlgmr.msra.gmra.mrb[0].mxu1 %vm28_vm0, %v13_v8 }
   0xb   :  { %455 = vmatpush3.bf16.xpose.msra.mxu0 %v125_v9  ;;  %461 = vmatpush3.bf16.xpose.msra.mxu1 %v171_v10 }
   0xc   :  { %456 = vmatprep.mubr.msk.bf16.mxu0 %vm493_vm1, %v492_v0  ;;  %462 = vmatprep.mubr.msk.bf16.mxu1 %vm493_vm1, %v492_v0 }
   0xd   :  { %466 = vmatprep.subr.bf16.mxu0 %v492_v0  ;;  %472 = vmatprep.subr.bf16.mxu1 %v492_v0 }
  0x12   :  { %457 = vmatmul.mubr.msk.bf16.vlgmr.msra.gmra.mrb[4].mxu0 %vm28_vm0, %v14_v13  ;;  %463 = vmatmul.mubr.msk.bf16.vlgmr.msra.gmra.mrb[4].mxu1 %vm28_vm0, %v15_v14 }
  0x13   :  { %467 = vmatpush3.bf16.xpose.msra.mxu0 %v217_v15  ;;  %473 = vmatpush3.bf16.xpose.msra.mxu1 %v263_v16 }
  0x14   :  { %468 = vmatprep.mubr.msk.bf16.mxu0 %vm493_vm1, %v492_v0  ;;  %474 = vmatprep.mubr.msk.bf16.mxu1 %vm493_vm1, %v492_v0 }
  0x15   :  { %478 = vmatprep.subr.bf16.mxu0 %v492_v0  ;;  %484 = vmatprep.subr.bf16.mxu1 %v492_v0 }
  0x1a   :  { %469 = vmatmul.mubr.msk.bf16.vlgmr.msra.gmra.mrb[8].mxu0 %vm28_vm0, %v16_v19  ;;  %475 = vmatmul.mubr.msk.bf16.vlgmr.msra.gmra.mrb[8].mxu1 %vm28_vm0, %v17_v20 }
  0x1b   :  { %479 = vmatpush3.bf16.xpose.msra.mxu0 %v309_v21  ;;  %485 = vmatpush3.bf16.xpose.msra.mxu1 %v355_v22 }
  0x1c   :  { %480 = vmatprep.mubr.msk.bf16.mxu0 %vm493_vm1, %v492_v0  ;;  %486 = vmatprep.mubr.msk.bf16.mxu1 %vm493_vm1, %v492_v0 }
  0x22   :  { %481 = vmatmul.mubr.msk.bf16.vlgmr.msra.gmra.mrb[12].mxu0 %vm28_vm0, %v18_v23  ;;  %487 = vmatmul.mubr.msk.bf16.vlgmr.msra.gmra.mrb[12].mxu1 %vm28_vm0, %v19_v24 }
  0xdd   :  { %v69_v25 = vpop.f32.mrb[0].mxu0  ;;  %v115_v26 = vpop.f32.mrb[0].mxu1 }
  0xde   :  { %v397_v27 = vpack.c.bf16 %v69_v25, %v69_v25  ;;  %v398_v28 = vpack.c.bf16 %v115_v26, %v115_v26  ;;  %v446_v29 = vpop.f32.mrb[1].mxu0  ;;  %v452_v30 = vpop.f32.mrb[1].mxu1 }
  0xdf   :  { %v72_v31 = vpop.f32.mrb[2].mxu0  ;;  %v118_v32 = vpop.f32.mrb[2].mxu1 }
  0xe0   :  { %406 = vst.msk [vmem:[%s615_s2] sm:$0xf] %vm405_vm2, %v397_v27  ;;  %407 = vst.msk [vmem:[%s615_s2 + $0x4] sm:$0xf] %vm405_vm2, %v398_v28  ;;  %v447_v33 = vpop.f32.mrb[3].mxu0  ;;  %v453_v34 = vpop.f32.mrb[3].mxu1 }
  0xe5   :  { %v161_v35 = vpop.f32.mrb[4].mxu0  ;;  %v207_v36 = vpop.f32.mrb[4].mxu1 }
  0xe6   :  { %v399_v37 = vpack.c.bf16 %v161_v35, %v161_v35  ;;  %v400_v38 = vpack.c.bf16 %v207_v36, %v207_v36  ;;  %v458_v39 = vpop.f32.mrb[5].mxu0  ;;  %v464_v40 = vpop.f32.mrb[5].mxu1 }
  0xe7   :  { %v164_v41 = vpop.f32.mrb[6].mxu0  ;;  %v210_v42 = vpop.f32.mrb[6].mxu1 }
  0xe8   :  { %408 = vst.msk [vmem:[%s615_s2 + $0x8] sm:$0xf] %vm405_vm2, %v399_v37  ;;  %409 = vst.msk [vmem:[%s615_s2 + $0xc] sm:$0xf] %vm405_vm2, %v400_v38  ;;  %v459_v43 = vpop.f32.mrb[7].mxu0  ;;  %v465_v44 = vpop.f32.mrb[7].mxu1 }
  0xed   :  { %v253_v45 = vpop.f32.mrb[8].mxu0  ;;  %v299_v46 = vpop.f32.mrb[8].mxu1 }
  0xee   :  { %v401_v47 = vpack.c.bf16 %v253_v45, %v253_v45  ;;  %v402_v48 = vpack.c.bf16 %v299_v46, %v299_v46  ;;  %v470_v49 = vpop.f32.mrb[9].mxu0  ;;  %v476_v50 = vpop.f32.mrb[9].mxu1 }
  0xef   :  { %v256_v51 = vpop.f32.mrb[10].mxu0  ;;  %v302_v52 = vpop.f32.mrb[10].mxu1 }
  0xf0   :  { %410 = vst.msk [vmem:[%s615_s2 + $0x10] sm:$0xf] %vm405_vm2, %v401_v47  ;;  %411 = vst.msk [vmem:[%s615_s2 + $0x14] sm:$0xf] %vm405_vm2, %v402_v48  ;;  %v471_v53 = vpop.f32.mrb[11].mxu0  ;;  %v477_v54 = vpop.f32.mrb[11].mxu1 }
  0xf5   :  { %v345_v55 = vpop.f32.mrb[12].mxu0  ;;  %v391_v56 = vpop.f32.mrb[12].mxu1 }
  0xf6   :  { %v403_v57 = vpack.c.bf16 %v345_v55, %v345_v55  ;;  %v404_v58 = vpack.c.bf16 %v391_v56, %v391_v56  ;;  %v482_v59 = vpop.f32.mrb[13].mxu0  ;;  %v488_v60 = vpop.f32.mrb[13].mxu1 }
  0xf7   :  { %v348_v61 = vpop.f32.mrb[14].mxu0  ;;  %v394_v62 = vpop.f32.mrb[14].mxu1 }
  0xf8   :  { %412 = vst.msk [vmem:[%s615_s2 + $0x18] sm:$0xf] %vm405_vm2, %v403_v57  ;;  %413 = vst.msk [vmem:[%s615_s2 + $0x1c] sm:$0xf] %vm405_vm2, %v404_v58  ;;  %v483_v63 = vpop.f32.mrb[15].mxu0  ;;  %v489_v0 = vpop.f32.mrb[15].mxu1 }

// kernel: evoformer_stack.50
= control target key start
LH: loop header
LB: loop body
LE: loop exit
PB: predicated region body
PF: predicated region fallthrough
CT: control target
= control target key end

     0   :  { %vm35_vm0 = vcmask 64512   ;;  %vm195_vm1 = vcmask 1043456   ;;  %v703_v58 = vmov 0   ;;  %s705_s18 = smov 96   ;;  %s706_s19 = smov 112   ;;  %vm557_vm2 = vcmask 60416   ;;  %s966_s0 = inlined_call_operand.vmem [shape: f32[64,8], index: 0, kind: input, shape index: {}]   ;;  %s967_s3 = inlined_call_operand.vmem [shape: bf16[8,40], index: 3, kind: input, shape index: {}]   ;;  %s968_s5 = inlined_call_operand.vmem [shape: f32[64,1], index: 5, kind: input, shape index: {}]   ;;  %s969_s1 = inlined_call_operand.vmem [shape: f32[1,8], index: 1, kind: input, shape index: {}]   ;;  %s970_s2 = inlined_call_operand.vmem [shape: f32[1,8], index: 2, kind: input, shape index: {}]   ;;  %s971_s4 = inlined_call_operand.vmem [shape: f32[1,40], index: 4, kind: input, shape index: {}]   ;;  %s972_s8 = inlined_call_operand.vmem [shape: bf16[64,8], index: 8, kind: output, shape index: {2}]   ;;  %s973_s6 = inlined_call_operand.vmem [shape: bf16[8,64], index: 6, kind: output, shape index: {0}]   ;;  %s974_s7 = inlined_call_operand.vmem [shape: bf16[8,64], index: 7, kind: output, shape index: {1}]  }
   0x1   :  { %v27_v0 = vld [vmem:[%s966_s0] sm:$0xff]  ;;  %v29_v1 = vld [vmem:[%s966_s0 + $0x10] sm:$0xff]  ;;  %v28_v2 = vld [vmem:[%s966_s0 + $0x8] sm:$0xff]  ;;  %634 = vset.pattern.permute.xlu1 %v703_v58  ;;  %633 = vset.pattern.permute.xlu0 %v703_v58  ;;  %vm441_vm3 = vcmask 519168  }
   0x2   :  { %v36_v3 = vsel %vm35_vm0, %v27_v0, 0.0  ;;  %v42_v4 = vsel %vm35_vm0, %v29_v1, 0.0  ;;  %v30_v5 = vld [vmem:[%s966_s0 + $0x18] sm:$0xff]  ;;  %v39_v6 = vsel %vm35_vm0, %v28_v2, 0.0  ;;  %v31_v8 = vld [vmem:[%s966_s0 + $0x20] sm:$0xff]  ;;  %v32_v9 = vld [vmem:[%s966_s0 + $0x28] sm:$0xff] }
   0x3   :  { %37 = vadd.xlane.f32.xlu0 %v36_v3  ;;  %43 = vadd.xlane.f32.xlu1 %v42_v4  ;;  %v45_v7 = vsel %vm35_vm0, %v30_v5, 0.0  ;;  %v48_v10 = vsel %vm35_vm0, %v31_v8, 0.0  ;;  %v51_v11 = vsel %vm35_vm0, %v32_v9, 0.0  ;;  %v33_v12 = vld [vmem:[%s966_s0 + $0x30] sm:$0xff]  ;;  %v34_v13 = vld [vmem:[%s966_s0 + $0x38] sm:$0xff]  ;;  %v265_v59 = vld [vmem:[%s968_s5 + $0x8] sm:$0xff] }
   0x4   :  { %v54_v14 = vsel %vm35_vm0, %v33_v12, 0.0  ;;  %v57_v15 = vsel %vm35_vm0, %v34_v13, 0.0  ;;  %v175_v56 = vld [vmem:[%s967_s3] sm:$0xf]  ;;  %v266_v61 = vld [vmem:[%s968_s5 + $0x10] sm:$0xff]  ;;  %v267_v62 = vld [vmem:[%s968_s5 + $0x18] sm:$0xff] }
   0x5   :  { %626 = vmatprep.subr.msk.bf16.mxu0 %vm195_vm1, %v175_v56  ;;  %v197_v57 = vsel %vm195_vm1, %v175_v56, 0  ;;  %627 = vmatprep.subr.msk.bf16.mxu1 %vm195_vm1, %v175_v56  ;;  %v264_v60 = vld [vmem:[%s968_s5] sm:$0xff] }
   0x6   :  { %615 = vmatpush3.bf16.msra.mxu0 %v197_v57  ;;  %625 = vmatpush3.bf16.msra.mxu1 %v197_v57  ;;  %v268_v63 = vld [vmem:[%s968_s5 + $0x20] sm:$0xff] }
   0x7   :  { %40 = vadd.xlane.f32.xlu0 %v39_v6  ;;  %46 = vadd.xlane.f32.xlu1 %v45_v7 }
   0xb   :  { %49 = vadd.xlane.f32.xlu0 %v48_v10  ;;  %52 = vadd.xlane.f32.xlu1 %v51_v11 }
   0xf   :  { %55 = vadd.xlane.f32.xlu0 %v54_v14  ;;  %58 = vadd.xlane.f32.xlu1 %v57_v15 }
  0x90   :  { %v38_v16 = vpop.xlane.xlu0 %37  ;;  %v44_v17 = vpop.xlane.xlu1 %43 }
  0x91   :  { %v61_v18 = vmul.f32 0.125, %v38_v16  ;;  %v63_v19 = vmul.f32 0.125, %v44_v17 }
  0x93   :  { %v784_v20 = vsub.f32 %v27_v0, %v61_v18  ;;  %v786_v21 = vsub.f32 %v29_v1, %v63_v19  ;;  %v269_v0 = vld [vmem:[%s968_s5 + $0x28] sm:$0xff]  ;;  %v270_v1 = vld [vmem:[%s968_s5 + $0x30] sm:$0xff] }
  0x94   :  { %v41_v22 = vpop.xlane.xlu0 %40  ;;  %v47_v23 = vpop.xlane.xlu1 %46 }
  0x95   :  { %v62_v24 = vmul.f32 0.125, %v41_v22  ;;  %v64_v25 = vmul.f32 0.125, %v47_v23  ;;  %v77_v26 = vmul.f32 %v784_v20, %v784_v20  ;;  %v79_v27 = vmul.f32 %v786_v21, %v786_v21 }
  0x97   :  { %v792_v28 = vsub.f32 %v28_v2, %v62_v24  ;;  %v794_v29 = vsub.f32 %v30_v5, %v64_v25  ;;  %v85_v30 = vsel %vm35_vm0, %v77_v26, 0.0  ;;  %v91_v33 = vsel %vm35_vm0, %v79_v27, 0.0  ;;  %v271_v2 = vld [vmem:[%s968_s5 + $0x38] sm:$0xff] }
  0x98   :  { %86 = vadd.xlane.f32.xlu0 %v85_v30  ;;  %v50_v31 = vpop.xlane.xlu0 %49  ;;  %v53_v32 = vpop.xlane.xlu1 %52 }
  0x99   :  { %v65_v34 = vmul.f32 0.125, %v50_v31  ;;  %v66_v35 = vmul.f32 0.125, %v53_v32  ;;  %v78_v36 = vmul.f32 %v792_v28, %v792_v28  ;;  %v80_v37 = vmul.f32 %v794_v29, %v794_v29  ;;  %v578_v32 = vld [vmem:[%s969_s1] ss:$0 sm:$0xff] }
  0x9b   :  { %v802_v38 = vsub.f32 %v31_v8, %v65_v34  ;;  %v804_v39 = vsub.f32 %v32_v9, %v66_v35  ;;  %v88_v40 = vsel %vm35_vm0, %v78_v36, 0.0  ;;  %v94_v43 = vsel %vm35_vm0, %v80_v37, 0.0 }
  0x9c   :  { %92 = vadd.xlane.f32.xlu0 %v91_v33  ;;  %89 = vadd.xlane.f32.xlu1 %v88_v40  ;;  %v56_v41 = vpop.xlane.xlu0 %55  ;;  %v59_v42 = vpop.xlane.xlu1 %58 }
  0x9d   :  { %v67_v44 = vmul.f32 0.125, %v56_v41  ;;  %v68_v45 = vmul.f32 0.125, %v59_v42  ;;  %v81_v46 = vmul.f32 %v802_v38, %v802_v38  ;;  %v82_v47 = vmul.f32 %v804_v39, %v804_v39 }
  0x9f   :  { %v812_v48 = vsub.f32 %v33_v12, %v67_v44  ;;  %v814_v49 = vsub.f32 %v34_v13, %v68_v45  ;;  %v97_v50 = vsel %vm35_vm0, %v81_v46, 0.0  ;;  %v100_v51 = vsel %vm35_vm0, %v82_v47, 0.0 }
  0xa0   :  { %95 = vadd.xlane.f32.xlu1 %v94_v43  ;;  %98 = vadd.xlane.f32.xlu0 %v97_v50 }
  0xa1   :  { %v83_v52 = vmul.f32 %v812_v48, %v812_v48  ;;  %v84_v53 = vmul.f32 %v814_v49, %v814_v49 }
  0xa3   :  { %v103_v54 = vsel %vm35_vm0, %v83_v52, 0.0  ;;  %v106_v55 = vsel %vm35_vm0, %v84_v53, 0.0 }
  0xa4   :  { %101 = vadd.xlane.f32.xlu1 %v100_v51  ;;  %104 = vadd.xlane.f32.xlu0 %v103_v54 }
  0xa8   :  { %107 = vadd.xlane.f32.xlu1 %v106_v55 }
  0xb9   :  { %279 = vperm.xlu1 %634, %v265_v59  }
  0xba   :  { %274 = vperm.xlu0 %633, %v264_v60  }
  0xbd   :  { %284 = vperm.xlu1 %634, %v266_v61  }
  0xc1   :  { %289 = vperm.xlu1 %634, %v267_v62  }
  0xc5   :  { %294 = vperm.xlu1 %634, %v268_v63  }
  0xc9   :  { %299 = vperm.xlu1 %634, %v269_v0  }
  0xcd   :  { %304 = vperm.xlu1 %634, %v270_v1  }
  0xd1   :  { %309 = vperm.xlu1 %634, %v271_v2  }
 0x125   :  { %v87_v3 = vpop.xlane.xlu0 %86 }
 0x126   :  { %v109_v4 = vmul.f32 0.125, %v87_v3 }
 0x128   :  { %v117_v5 = vadd.f32 1e-05, %v109_v4 }
 0x129   :  { %v90_v6 = vpop.xlane.xlu1 %89  ;;  %v93_v7 = vpop.xlane.xlu0 %92 }
 0x12a   :  { %655 = vrsqrt.f32 %v117_v5  ;;  %v110_v8 = vmul.f32 0.125, %v90_v6  ;;  %v111_v9 = vmul.f32 0.125, %v93_v7 }
 0x12c   :  { %v118_v10 = vadd.f32 1e-05, %v110_v8  ;;  %v119_v11 = vadd.f32 1e-05, %v111_v9 }
 0x12d   :  { %v96_v12 = vpop.xlane.xlu1 %95  ;;  %v99_v13 = vpop.xlane.xlu0 %98 }
 0x12e   :  { %657 = vrsqrt.f32 %v118_v10  ;;  %v112_v14 = vmul.f32 0.125, %v96_v12  ;;  %v113_v15 = vmul.f32 0.125, %v99_v13 }
 0x12f   :  { %659 = vrsqrt.f32 %v119_v11 }
 0x130   :  { %v120_v16 = vadd.f32 1e-05, %v112_v14  ;;  %v121_v17 = vadd.f32 1e-05, %v113_v15 }
 0x131   :  { %v102_v18 = vpop.xlane.xlu1 %101  ;;  %v105_v19 = vpop.xlane.xlu0 %104 }
 0x132   :  { %661 = vrsqrt.f32 %v120_v16  ;;  %v114_v22 = vmul.f32 0.125, %v102_v18  ;;  %v115_v23 = vmul.f32 0.125, %v105_v19 }
 0x133   :  { %663 = vrsqrt.f32 %v121_v17 }
 0x134   :  { %v656_v24 = vpop.eup %655  ;;  %v122_v25 = vadd.f32 1e-05, %v114_v22  ;;  %v123_v26 = vadd.f32 1e-05, %v115_v23 }
 0x135   :  { %v108_v27 = vpop.xlane.xlu1 %107  ;;  %v133_v30 = vmul.f32 %v656_v24, %v784_v20  ;;  %v579_v20 = vld [vmem:[%s970_s2] ss:$0 sm:$0xff] }
 0x136   :  { %665 = vrsqrt.f32 %v122_v25  ;;  %v116_v31 = vmul.f32 0.125, %v108_v27 }
 0x137   :  { %667 = vrsqrt.f32 %v123_v26  ;;  %v148_v37 = vmul.f32 %v578_v32, %v133_v30 }
 0x138   :  { %v658_v33 = vpop.eup %657  ;;  %v124_v34 = vadd.f32 1e-05, %v116_v31 }
 0x139   :  { %v660_v35 = vpop.eup %659  ;;  %v134_v36 = vmul.f32 %v658_v33, %v792_v28  ;;  %v163_v45 = vadd.f32 %v579_v20, %v148_v37 }
 0x13a   :  { %v135_v40 = vmul.f32 %v660_v35, %v786_v21  ;;  %669 = vrsqrt.f32 %v124_v34 }
 0x13b   :  { %v149_v41 = vmul.f32 %v578_v32, %v134_v36 }
 0x13c   :  { %v662_v42 = vpop.eup %661  ;;  %v150_v47 = vmul.f32 %v578_v32, %v135_v40 }
 0x13d   :  { %v664_v43 = vpop.eup %663  ;;  %v136_v44 = vmul.f32 %v662_v42, %v794_v29  ;;  %v164_v46 = vadd.f32 %v579_v20, %v149_v41 }
 0x13e   :  { %v137_v50 = vmul.f32 %v664_v43, %v802_v38  ;;  %v165_v21 = vadd.f32 %v579_v20, %v150_v47 }
 0x13f   :  { %v171_v51 = vpack.c.bf16 %v164_v46, %v163_v45  ;;  %v151_v28 = vmul.f32 %v578_v32, %v136_v44 }
 0x140   :  { %v666_v52 = vpop.eup %665  ;;  %v152_v56 = vmul.f32 %v578_v32, %v137_v50 }
 0x141   :  { %v668_v53 = vpop.eup %667  ;;  %616 = vmatprep.mubr.msk.bf16.mxu0 %vm35_vm0, %v171_v51  ;;  %v166_v54 = vadd.f32 %v579_v20, %v151_v28  ;;  %v138_v55 = vmul.f32 %v666_v52, %v804_v39 }
 0x142   :  { %v139_v57 = vmul.f32 %v668_v53, %v812_v48  ;;  %v167_v38 = vadd.f32 %v579_v20, %v152_v56  ;;  %v580_v48 = vld [vmem:[%s971_s4] ss:$0 sm:$0xff]  ;;  %s704_s4 = smov 120  }
 0x143   :  { %v172_v58 = vpack.c.bf16 %v166_v54, %v165_v21  ;;  %v153_v29 = vmul.f32 %v578_v32, %v138_v55 }
 0x144   :  { %v670_v59 = vpop.eup %669  ;;  %v154_v62 = vmul.f32 %v578_v32, %v139_v57 }
 0x145   :  { %v140_v60 = vmul.f32 %v670_v59, %v814_v49  ;;  %617 = vmatmul.mubr.msk.bf16.vlgmr.msra.gmra.mrb[0].mxu0 %vm35_vm0, %v172_v58  ;;  %v168_v61 = vadd.f32 %v579_v20, %v153_v29 }
 0x146   :  { %v169_v1 = vadd.f32 %v579_v20, %v154_v62 }
 0x147   :  { %v173_v63 = vpack.c.bf16 %v168_v61, %v167_v38  ;;  %v155_v0 = vmul.f32 %v578_v32, %v140_v60  ;;  %v280_v60 = vpop.permute.xlu1 %279 }
 0x149   :  { %620 = vmatprep.mubr.msk.bf16.mxu1 %vm35_vm0, %v173_v63  ;;  %v170_v2 = vadd.f32 %v579_v20, %v155_v0  ;;  %v275_v0 = vpop.permute.xlu0 %274 }
 0x14b   :  { %v174_v39 = vpack.c.bf16 %v170_v2, %v169_v1  ;;  %v285_v38 = vpop.permute.xlu1 %284 }
 0x14d   :  { %621 = vmatmul.mubr.msk.bf16.vlgmr.msra.gmra.mrb[0].mxu1 %vm35_vm0, %v174_v39 }
 0x14f   :  { %v290_v61 = vpop.permute.xlu1 %289 }
 0x153   :  { %v295_v62 = vpop.permute.xlu1 %294 }
 0x157   :  { %v300_v63 = vpop.permute.xlu1 %299 }
 0x15b   :  { %v305_v1 = vpop.permute.xlu1 %304 }
 0x218   :  { %v618_v3 = vpop.f32.mrb[0].mxu0 }
 0x219   :  { %v872_v49 = vadd.f32 %v618_v3, %v580_v48  ;;  %v233_v4 = vpop.f32.mrb[1].mxu0  ;;  %v310_v3 = vpop.permute.xlu1 %309 }
 0x21a   :  { %v619_v5 = vpop.f32.mrb[2].mxu0  ;;  %v877_v9 = vadd.f32 %v580_v48, %v233_v4 }
 0x21b   :  { %v587_v6 = vmul.f32 -1.442695, %v872_v49  ;;  %v875_v7 = vadd.f32 %v619_v5, %v580_v48  ;;  %v236_v8 = vpop.f32.mrb[3].mxu0  ;;  %v314_v39 = vmul.f32 %v285_v38, %v872_v49 }
 0x21c   :  { %v880_v11 = vadd.f32 %v580_v48, %v236_v8  ;;  %v585_v12 = vmul.f32 -1.442695, %v877_v9 }
 0x21d   :  { %671 = vpow2.f32 %v587_v6  ;;  %v588_v10 = vmul.f32 -1.442695, %v875_v7 }
 0x21e   :  { %v586_v16 = vmul.f32 -1.442695, %v880_v11 }
 0x21f   :  { %673 = vpow2.f32 %v588_v10 }
 0x220   :  { %v622_v13 = vpop.f32.mrb[0].mxu1  ;;  %675 = vpow2.f32 %v585_v12 }
 0x221   :  { %v883_v14 = vadd.f32 %v622_v13, %v580_v48  ;;  %v249_v15 = vpop.f32.mrb[1].mxu1 }
 0x222   :  { %v886_v17 = vadd.f32 %v580_v48, %v249_v15  ;;  %v623_v18 = vpop.f32.mrb[2].mxu1 }
 0x223   :  { %v591_v19 = vmul.f32 -1.442695, %v883_v14  ;;  %v889_v22 = vadd.f32 %v623_v18, %v580_v48  ;;  %v252_v23 = vpop.f32.mrb[3].mxu1  ;;  %v318_v13 = vmul.f32 %v305_v1, %v883_v14 }
 0x224   :  { %v891_v24 = vadd.f32 %v580_v48, %v252_v23  ;;  %v589_v25 = vmul.f32 -1.442695, %v886_v17  ;;  %v315_v48 = vmul.f32 %v290_v61, %v875_v7 }
 0x225   :  { %677 = vpow2.f32 %v591_v19  ;;  %v592_v26 = vmul.f32 -1.442695, %v889_v22  ;;  %v319_v12 = vmul.f32 %v310_v3, %v889_v22  ;;  %v316_v22 = vmul.f32 %v295_v62, %v886_v17 }
 0x226   :  { %679 = vpow2.f32 %v586_v16  ;;  %v590_v27 = vmul.f32 -1.442695, %v891_v24  ;;  %v312_v16 = vmul.f32 %v275_v0, %v877_v9 }
 0x227   :  { %v672_v30 = vpop.eup %671  ;;  %681 = vpow2.f32 %v592_v26  ;;  %v317_v26 = vmul.f32 %v300_v63, %v891_v24  ;;  %v313_v24 = vmul.f32 %v280_v60, %v880_v11 }
 0x228   :  { %v346_v31 = vadd.f32 1.0, %v672_v30  ;;  %683 = vpow2.f32 %v590_v27 }
 0x229   :  { %v674_v32 = vpop.eup %673  ;;  %685 = vpow2.f32 %v589_v25 }
 0x22a   :  { %687 = vrcp.f32 %v346_v31  ;;  %v347_v33 = vadd.f32 1.0, %v674_v32  ;;  %v676_v34 = vpop.eup %675 }
 0x22b   :  { %v344_v41 = vadd.f32 1.0, %v676_v34 }
 0x22c   :  { %689 = vrcp.f32 %v347_v33 }
 0x22f   :  { %v678_v35 = vpop.eup %677 }
 0x230   :  { %v680_v36 = vpop.eup %679  ;;  %v350_v37 = vadd.f32 1.0, %v678_v35 }
 0x231   :  { %v682_v40 = vpop.eup %681  ;;  %v345_v44 = vadd.f32 1.0, %v680_v36 }
 0x232   :  { %v684_v20 = vpop.eup %683  ;;  %691 = vrcp.f32 %v350_v37  ;;  %v351_v42 = vadd.f32 1.0, %v682_v40 }
 0x233   :  { %v686_v43 = vpop.eup %685  ;;  %v349_v46 = vadd.f32 1.0, %v684_v20 }
 0x234   :  { %v688_v45 = vpop.eup %687  ;;  %693 = vrcp.f32 %v351_v42  ;;  %v348_v47 = vadd.f32 1.0, %v686_v43 }
 0x235   :  { %380 = vrot.lane.b32.xlu0 %v688_v45, %s704_s4  ;;  %695 = vrcp.f32 %v344_v41  ;;  %v603_v56 = vpack.c.bf16 %v688_v45, %v688_v45 }
 0x236   :  { %697 = vrcp.f32 %v345_v44  ;;  %v690_v50 = vpop.eup %689 }
 0x237   :  { %699 = vrcp.f32 %v349_v46  ;;  %v604_v29 = vpack.c.bf16 %v690_v50, %v690_v50 }
 0x238   :  { %701 = vrcp.f32 %v348_v47 }
 0x239   :  { %382 = vrot.lane.b32.xlu0 %v690_v50, %s704_s4 }
 0x23c   :  { %v896_v51 = vpop.eup %691 }
 0x23d   :  { %388 = vrot.lane.b32.xlu1 %v896_v51, %s704_s4  ;;  %v607_v40 = vpack.c.bf16 %v896_v51, %v896_v51 }
 0x23e   :  { %v899_v28 = vpop.eup %693 }
 0x23f   :  { %390 = vrot.lane.b32.xlu0 %v899_v28, %s704_s4  ;;  %v696_v52 = vpop.eup %695 }
 0x240   :  { %v698_v53 = vpop.eup %697  ;;  %v601_v57 = vpack.c.bf16 %v696_v52, %v696_v52 }
 0x241   :  { %376 = vrot.lane.b32.xlu1 %v696_v52, %s704_s4  ;;  %v700_v21 = vpop.eup %699  ;;  %v602_v55 = vpack.c.bf16 %v698_v53, %v698_v53 }
 0x242   :  { %v702_v54 = vpop.eup %701  ;;  %v606_v59 = vpack.c.bf16 %v700_v21, %v700_v21 }
 0x243   :  { %386 = vrot.lane.b32.xlu0 %v700_v21, %s704_s4  ;;  %v605_v58 = vpack.c.bf16 %v702_v54, %v702_v54 }
 0x245   :  { %384 = vrot.lane.b32.xlu1 %v702_v54, %s704_s4 }
 0x247   :  { %535 = vrot.lane.b32.xlu0 %v602_v55, %s705_s18 }
 0x249   :  { %537 = vrot.lane.b32.xlu1 %v603_v56, %s705_s18  ;;  %v608_v56 = vpack.c.bf16 %v899_v28, %v899_v28 }
 0x24d   :  { %378 = vrot.lane.b32.xlu1 %v698_v53, %s704_s4 }
 0x251   :  { %533 = vrot.lane.b32.xlu1 %v601_v57, %s705_s18 }
 0x255   :  { %541 = vrot.lane.b32.xlu1 %v605_v58, %s705_s18 }
 0x259   :  { %539 = vrot.lane.b32.xlu1 %v604_v29, %s705_s18 }
 0x25d   :  { %543 = vrot.lane.b32.xlu1 %v606_v59, %s705_s18 }
 0x2a7   :  { %v381_v2 = vpop.permute.xlu0 %380 }
 0x2a8   :  { %v402_v5 = vmul.f32 %v381_v2, %v314_v39 }
 0x2ab   :  { %v383_v4 = vpop.permute.xlu0 %382 }
 0x2ac   :  { %v403_v6 = vmul.f32 %v383_v4, %v315_v48 }
 0x2ae   :  { %v635_v8 = vpack.i.bf16 %v403_v6, %v402_v5 }
 0x2af   :  { %v389_v10 = vpop.permute.xlu1 %388 }
 0x2b0   :  { %636 = vrot.lane.b32.xlu0 %v635_v8, %s706_s19  ;;  %v406_v18 = vmul.f32 %v389_v10, %v318_v13 }
 0x2b1   :  { %v391_v15 = vpop.permute.xlu0 %390 }
 0x2b2   :  { %v407_v49 = vmul.f32 %v391_v15, %v319_v12 }
 0x2b3   :  { %v377_v19 = vpop.permute.xlu1 %376 }
 0x2b4   :  { %v640_v7 = vpack.i.bf16 %v407_v49, %v406_v18  ;;  %v400_v23 = vmul.f32 %v377_v19, %v312_v16 }
 0x2b5   :  { %v387_v25 = vpop.permute.xlu0 %386 }
 0x2b6   :  { %408 = vxpose.xlu1.b32.start [1/8] (short) (narrow) %v400_v23, 8  ;;  %641 = vrot.lane.b32.xlu0 %v640_v7, %s706_s19  ;;  %v405_v27 = vmul.f32 %v387_v25, %v317_v26 }
 0x2b7   :  { %v385_v14 = vpop.permute.xlu1 %384 }
 0x2b8   :  { %v404_v30 = vmul.f32 %v385_v14, %v316_v22 }
 0x2b9   :  { %v536_v31 = vpop.permute.xlu0 %535 }
 0x2ba   :  { %v650_v32 = vpack.i.bf16 %v405_v27, %v404_v30  ;;  %559 = vst.msk [vmem:[%s972_s8 + $0x4] sm:$0xf] %vm557_vm2, %v536_v31 }
 0x2bb   :  { %v538_v9 = vpop.permute.xlu1 %537 }
 0x2bc   :  { %560 = vst.msk [vmem:[%s972_s8 + $0x8] sm:$0xf] %vm557_vm2, %v538_v9 }
 0x2bf   :  { %v379_v17 = vpop.permute.xlu1 %378 }
 0x2c0   :  { %v401_v33 = vmul.f32 %v379_v17, %v313_v24 }
 0x2c2   :  { %v645_v34 = vpack.i.bf16 %v401_v33, %v400_v23  ;;  %409 = vxpose.xlu1.b32.cont [2/8] (short) (narrow) %v401_v33, 8 }
 0x2c3   :  { %v534_v35 = vpop.permute.xlu1 %533 }
 0x2c4   :  { %558 = vst.msk [vmem:[%s972_s8] sm:$0xf] %vm557_vm2, %v534_v35  ;;  %646 = vrot.lane.b32.xlu0 %v645_v34, %s706_s19 }
 0x2c6   :  { %410 = vxpose.xlu1.b32.cont [3/8] (short) (narrow) %v402_v5, 8 }
 0x2c7   :  { %v542_v36 = vpop.permute.xlu1 %541 }
 0x2c8   :  { %562 = vst.msk [vmem:[%s972_s8 + $0x10] sm:$0xf] %vm557_vm2, %v542_v36  ;;  %651 = vrot.lane.b32.xlu0 %v650_v32, %s706_s19 }
 0x2ca   :  { %411 = vxpose.xlu1.b32.cont [4/8] (short) (narrow) %v403_v6, 8 }
 0x2cb   :  { %v540_v11 = vpop.permute.xlu1 %539 }
 0x2cc   :  { %561 = vst.msk [vmem:[%s972_s8 + $0xc] sm:$0xf] %vm557_vm2, %v540_v11 }
 0x2ce   :  { %412 = vxpose.xlu1.b32.cont [5/8] (short) (narrow) %v404_v30, 8 }
 0x2cf   :  { %v544_v37 = vpop.permute.xlu1 %543 }
 0x2d0   :  { %563 = vst.msk [vmem:[%s972_s8 + $0x14] sm:$0xf] %vm557_vm2, %v544_v37 }
 0x2d2   :  { %413 = vxpose.xlu1.b32.cont [6/8] (short) (narrow) %v405_v27, 8 }
 0x2d6   :  { %414 = vxpose.xlu1.b32.cont [7/8] (short) (narrow) %v406_v18, 8 }
 0x2da   :  { %415 = vxpose.xlu1.b32.end [8/8] (short) (narrow) %v407_v49, 8 }
 0x2f8   :  { %545 = vrot.lane.b32.xlu1 %v607_v40, %s705_s18 }
 0x322   :  { %v637_v20 = vpop.permute.xlu0 %636 }
 0x323   :  { %v638_v46 = vunpack.i.l.bf16 %v637_v20  ;;  %v639_v50 = vunpack.i.h.bf16 %v637_v20 }
 0x328   :  { %v642_v41 = vpop.permute.xlu0 %641 }
 0x329   :  { %v643_v21 = vunpack.i.l.bf16 %v642_v41  ;;  %v644_v54 = vunpack.i.h.bf16 %v642_v41 }
 0x336   :  { %v647_v42 = vpop.permute.xlu0 %646 }
 0x337   :  { %v648_v43 = vunpack.i.l.bf16 %v647_v42  ;;  %v649_v44 = vunpack.i.h.bf16 %v647_v42 }
 0x339   :  { %475 = vxpose.xlu0.b32.start [1/8] (short) (narrow) %v648_v43, 8 }
 0x33a   :  { %v652_v51 = vpop.permute.xlu0 %651 }
 0x33b   :  { %v653_v52 = vunpack.i.l.bf16 %v652_v51  ;;  %v654_v53 = vunpack.i.h.bf16 %v652_v51 }
 0x33d   :  { %476 = vxpose.xlu0.b32.cont [2/8] (short) (narrow) %v649_v44, 8 }
 0x33e   :  { %v424_v45 = vpop.trf.xlu1 }
 0x33f   :  { %v440_v47 = vpack.c.bf16 %v424_v45, %v424_v45 }
 0x341   :  { %477 = vxpose.xlu0.b32.cont [3/8] (short) (narrow) %v638_v46, 8  ;;  %442 = vst.msk [vmem:[%s973_s6] sm:$0xf] %vm441_vm3, %v440_v47 }
 0x345   :  { %478 = vxpose.xlu0.b32.cont [4/8] (short) (narrow) %v639_v50, 8 }
 0x349   :  { %479 = vxpose.xlu0.b32.cont [5/8] (short) (narrow) %v653_v52, 8 }
 0x34d   :  { %480 = vxpose.xlu0.b32.cont [6/8] (short) (narrow) %v654_v53, 8 }
 0x351   :  { %481 = vxpose.xlu0.b32.cont [7/8] (short) (narrow) %v643_v21, 8 }
 0x355   :  { %482 = vxpose.xlu0.b32.end [8/8] (short) (narrow) %v644_v54, 8 }
 0x36a   :  { %v546_v55 = vpop.permute.xlu1 %545 }
 0x36b   :  { %564 = vst.msk [vmem:[%s972_s8 + $0x18] sm:$0xf] %vm557_vm2, %v546_v55 }
 0x37e   :  { %547 = vrot.lane.b32.xlu0 %v608_v56, %s705_s18 }
 0x3b9   :  { %v491_v57 = vpop.trf.xlu0 }
 0x3ba   :  { %v507_v58 = vpack.c.bf16 %v491_v57, %v491_v57 }
 0x3bc   :  { %508 = vst.msk [vmem:[%s974_s7] sm:$0xf] %vm441_vm3, %v507_v58 }
 0x3f0   :  { %v548_v29 = vpop.permute.xlu0 %547 }
 0x3f1   :  { %565 = vst.msk [vmem:[%s972_s8 + $0x1c] sm:$0xf] %vm557_vm2, %v548_v29 }

// kernel: evoformer_stack.52
= control target key start
LH: loop header
LB: loop body
LE: loop exit
PB: predicated region body
PF: predicated region fallthrough
CT: control target
= control target key end

     0   :  { %vm61_vm0 = vcmask 64512   ;;  %vm221_vm1 = vcmask 1043456   ;;  %s587_s0 = inlined_call_operand.vmem [shape: bf16[8,64], index: 0, kind: input, shape index: {}]   ;;  %s588_s3 = inlined_call_operand.vmem [shape: bf16[8,8], index: 3, kind: input, shape index: {}]   ;;  %s589_s1 = inlined_call_operand.vmem [shape: f32[1,8], index: 1, kind: input, shape index: {}]   ;;  %s590_s2 = inlined_call_operand.vmem [shape: f32[1,8], index: 2, kind: input, shape index: {}]   ;;  %s591_s5 = inlined_call_operand.vmem [shape: bf16[64,8], index: 5, kind: input, shape index: {}]   ;;  %s592_s4 = inlined_call_operand.vmem [shape: f32[1,8], index: 4, kind: input, shape index: {}]   ;;  %s593_s6 = inlined_call_operand.vmem [shape: f32[64,8], index: 6, kind: input, shape index: {}]   ;;  %s594_s7 = inlined_call_operand.vmem [shape: f32[64,8], index: 7, kind: output, shape index: {}]  }
   0x1   :  { %v27_v0 = vld [vmem:[%s587_s0] sm:$0xf] }
   0x2   :  { %v28_v1 = vunpack.c.l.bf16 %v27_v0  ;;  %v201_v58 = vld [vmem:[%s588_s3] sm:$0xf] }
   0x3   :  { %385 = vmatprep.subr.msk.bf16.mxu0 %vm221_vm1, %v201_v58  ;;  %v223_v59 = vsel %vm221_vm1, %v201_v58, 0  ;;  %386 = vmatprep.subr.msk.bf16.mxu1 %vm221_vm1, %v201_v58 }
   0x4   :  { %29 = vxpose.xlu0.b32.start.end [1/1] (short) (narrow) %v28_v1, 64  ;;  %374 = vmatpush3.bf16.msra.mxu0 %v223_v59 }
   0x5   :  { %384 = vmatpush3.bf16.msra.mxu1 %v223_v59 }
  0x84   :  { %v45_v2 = vpop.trf.xlu0 }
  0x85   :  { %v62_v3 = vsel %vm61_vm0, %v45_v2, 0.0 }
  0x86   :  { %63 = vadd.xlane.f32.xlu0 %v62_v3 }
  0x88   :  { %v46_v4 = vpop.trf.xlu0 }
  0x89   :  { %v65_v5 = vsel %vm61_vm0, %v46_v4, 0.0 }
  0x8a   :  { %66 = vadd.xlane.f32.xlu1 %v65_v5 }
  0x8c   :  { %v47_v6 = vpop.trf.xlu0 }
  0x8d   :  { %v68_v7 = vsel %vm61_vm0, %v47_v6, 0.0 }
  0x8e   :  { %69 = vadd.xlane.f32.xlu1 %v68_v7 }
  0x90   :  { %v48_v8 = vpop.trf.xlu0 }
  0x91   :  { %v71_v9 = vsel %vm61_vm0, %v48_v8, 0.0 }
  0x92   :  { %72 = vadd.xlane.f32.xlu1 %v71_v9 }
  0x94   :  { %v49_v10 = vpop.trf.xlu0 }
  0x95   :  { %v74_v11 = vsel %vm61_vm0, %v49_v10, 0.0 }
  0x96   :  { %75 = vadd.xlane.f32.xlu1 %v74_v11 }
  0x98   :  { %v50_v12 = vpop.trf.xlu0 }
  0x99   :  { %v77_v13 = vsel %vm61_vm0, %v50_v12, 0.0 }
  0x9a   :  { %78 = vadd.xlane.f32.xlu1 %v77_v13 }
  0x9c   :  { %v51_v14 = vpop.trf.xlu0 }
  0x9d   :  { %v80_v15 = vsel %vm61_vm0, %v51_v14, 0.0 }
  0x9e   :  { %81 = vadd.xlane.f32.xlu1 %v80_v15 }
  0xa0   :  { %v52_v16 = vpop.trf.xlu0 }
  0xa1   :  { %v83_v17 = vsel %vm61_vm0, %v52_v16, 0.0 }
  0xa2   :  { %84 = vadd.xlane.f32.xlu1 %v83_v17 }
 0x113   :  { %v64_v18 = vpop.xlane.xlu0 %63 }
 0x114   :  { %v87_v19 = vmul.f32 0.125, %v64_v18 }
 0x116   :  { %v455_v20 = vsub.f32 %v45_v2, %v87_v19  ;;  %v343_v19 = vld [vmem:[%s590_s2] ss:$0 sm:$0xff] }
 0x117   :  { %v67_v21 = vpop.xlane.xlu1 %66 }
 0x118   :  { %v88_v22 = vmul.f32 0.125, %v67_v21  ;;  %v103_v23 = vmul.f32 %v455_v20, %v455_v20 }
 0x11a   :  { %v459_v24 = vsub.f32 %v46_v4, %v88_v22  ;;  %v111_v25 = vsel %vm61_vm0, %v103_v23, 0.0 }
 0x11b   :  { %v70_v26 = vpop.xlane.xlu1 %69  ;;  %112 = vadd.xlane.f32.xlu1 %v111_v25 }
 0x11c   :  { %v89_v27 = vmul.f32 0.125, %v70_v26  ;;  %v104_v28 = vmul.f32 %v459_v24, %v459_v24 }
 0x11e   :  { %v464_v29 = vsub.f32 %v47_v6, %v89_v27  ;;  %v114_v30 = vsel %vm61_vm0, %v104_v28, 0.0 }
 0x11f   :  { %v73_v31 = vpop.xlane.xlu1 %72  ;;  %115 = vadd.xlane.f32.xlu1 %v114_v30 }
 0x120   :  { %v90_v32 = vmul.f32 0.125, %v73_v31  ;;  %v105_v33 = vmul.f32 %v464_v29, %v464_v29 }
 0x122   :  { %v469_v34 = vsub.f32 %v48_v8, %v90_v32  ;;  %v117_v35 = vsel %vm61_vm0, %v105_v33, 0.0 }
 0x123   :  { %v76_v36 = vpop.xlane.xlu1 %75  ;;  %118 = vadd.xlane.f32.xlu1 %v117_v35 }
 0x124   :  { %v91_v37 = vmul.f32 0.125, %v76_v36  ;;  %v106_v38 = vmul.f32 %v469_v34, %v469_v34 }
 0x126   :  { %v474_v39 = vsub.f32 %v49_v10, %v91_v37  ;;  %v120_v40 = vsel %vm61_vm0, %v106_v38, 0.0 }
 0x127   :  { %v79_v41 = vpop.xlane.xlu1 %78  ;;  %121 = vadd.xlane.f32.xlu1 %v120_v40 }
 0x128   :  { %v92_v42 = vmul.f32 0.125, %v79_v41  ;;  %v107_v43 = vmul.f32 %v474_v39, %v474_v39 }
 0x12a   :  { %v479_v44 = vsub.f32 %v50_v12, %v92_v42  ;;  %v123_v45 = vsel %vm61_vm0, %v107_v43, 0.0  ;;  %v342_v12 = vld [vmem:[%s589_s1] ss:$0 sm:$0xff] }
 0x12b   :  { %v82_v46 = vpop.xlane.xlu1 %81  ;;  %124 = vadd.xlane.f32.xlu1 %v123_v45 }
 0x12c   :  { %v93_v47 = vmul.f32 0.125, %v82_v46  ;;  %v108_v48 = vmul.f32 %v479_v44, %v479_v44 }
 0x12e   :  { %v484_v49 = vsub.f32 %v51_v14, %v93_v47  ;;  %v126_v50 = vsel %vm61_vm0, %v108_v48, 0.0 }
 0x12f   :  { %v85_v51 = vpop.xlane.xlu1 %84  ;;  %127 = vadd.xlane.f32.xlu1 %v126_v50 }
 0x130   :  { %v94_v52 = vmul.f32 0.125, %v85_v51  ;;  %v109_v53 = vmul.f32 %v484_v49, %v484_v49 }
 0x132   :  { %v489_v54 = vsub.f32 %v52_v16, %v94_v52  ;;  %v129_v55 = vsel %vm61_vm0, %v109_v53, 0.0 }
 0x133   :  { %130 = vadd.xlane.f32.xlu1 %v129_v55 }
 0x134   :  { %v110_v56 = vmul.f32 %v489_v54, %v489_v54 }
 0x136   :  { %v132_v57 = vsel %vm61_vm0, %v110_v56, 0.0 }
 0x137   :  { %133 = vadd.xlane.f32.xlu1 %v132_v57 }
 0x1a8   :  { %v113_v60 = vpop.xlane.xlu1 %112 }
 0x1a9   :  { %v135_v61 = vmul.f32 0.125, %v113_v60 }
 0x1ab   :  { %v143_v62 = vadd.f32 1e-05, %v135_v61 }
 0x1ac   :  { %v116_v63 = vpop.xlane.xlu1 %115 }
 0x1ad   :  { %388 = vrsqrt.f32 %v143_v62  ;;  %v136_v0 = vmul.f32 0.125, %v116_v63 }
 0x1af   :  { %v144_v1 = vadd.f32 1e-05, %v136_v0 }
 0x1b0   :  { %v119_v2 = vpop.xlane.xlu1 %118 }
 0x1b1   :  { %390 = vrsqrt.f32 %v144_v1  ;;  %v137_v3 = vmul.f32 0.125, %v119_v2 }
 0x1b3   :  { %v145_v4 = vadd.f32 1e-05, %v137_v3  ;;  %v316_v3 = vld [vmem:[%s593_s6 + $0x10] sm:$0xff] }
 0x1b4   :  { %v122_v5 = vpop.xlane.xlu1 %121 }
 0x1b5   :  { %392 = vrsqrt.f32 %v145_v4  ;;  %v138_v6 = vmul.f32 0.125, %v122_v5 }
 0x1b7   :  { %v389_v7 = vpop.eup %388  ;;  %v146_v8 = vadd.f32 1e-05, %v138_v6 }
 0x1b8   :  { %v125_v9 = vpop.xlane.xlu1 %124  ;;  %v159_v10 = vmul.f32 %v389_v7, %v455_v20 }
 0x1b9   :  { %394 = vrsqrt.f32 %v146_v8  ;;  %v139_v11 = vmul.f32 0.125, %v125_v9  ;;  %v314_v8 = vld [vmem:[%s593_s6] sm:$0xff] }
 0x1ba   :  { %v174_v17 = vmul.f32 %v342_v12, %v159_v10 }
 0x1bb   :  { %v391_v13 = vpop.eup %390  ;;  %v147_v14 = vadd.f32 1e-05, %v139_v11 }
 0x1bc   :  { %v128_v15 = vpop.xlane.xlu1 %127  ;;  %v160_v16 = vmul.f32 %v391_v13, %v459_v24  ;;  %v189_v26 = vadd.f32 %v343_v19, %v174_v17 }
 0x1bd   :  { %396 = vrsqrt.f32 %v147_v14  ;;  %v140_v18 = vmul.f32 0.125, %v128_v15 }
 0x1be   :  { %v175_v21 = vmul.f32 %v342_v12, %v160_v16  ;;  %v315_v16 = vld [vmem:[%s593_s6 + $0x8] sm:$0xff] }
 0x1bf   :  { %v393_v20 = vpop.eup %392  ;;  %v148_v22 = vadd.f32 1e-05, %v140_v18 }
 0x1c0   :  { %v161_v23 = vmul.f32 %v393_v20, %v464_v29  ;;  %v131_v25 = vpop.xlane.xlu1 %130  ;;  %v190_v27 = vadd.f32 %v343_v19, %v175_v21  ;;  %v367_v20 = vld [vmem:[%s591_s5 + $0x18] sm:$0xff]  }
 0x1c1   :  { %398 = vrsqrt.f32 %v148_v22  ;;  %v141_v28 = vmul.f32 0.125, %v131_v25  ;;  %v366_v22 = vld [vmem:[%s591_s5 + $0x10] sm:$0xff]  }
 0x1c2   :  { %v197_v30 = vpack.c.bf16 %v190_v27, %v189_v26  ;;  %v176_v35 = vmul.f32 %v342_v12, %v161_v23  ;;  %v363_v23 = vunpack.c.l.bf16 %v367_v20  ;;  %v359_v26 = vunpack.c.l.bf16 %v366_v22 }
 0x1c3   :  { %v395_v31 = vpop.eup %394  ;;  %v149_v24 = vadd.f32 1e-05, %v141_v28 }
 0x1c4   :  { %v162_v32 = vmul.f32 %v395_v31, %v469_v34  ;;  %375 = vmatprep.mubr.msk.bf16.mxu0 %vm61_vm0, %v197_v30  ;;  %v134_v33 = vpop.xlane.xlu1 %133  ;;  %v191_v29 = vadd.f32 %v343_v19, %v176_v35  ;;  %v364_v30 = vunpack.c.h.bf16 %v367_v20  ;;  %v320_v31 = vld [vmem:[%s593_s6 + $0x30] sm:$0xff] }
 0x1c5   :  { %400 = vrsqrt.f32 %v149_v24  ;;  %v142_v36 = vmul.f32 0.125, %v134_v33  ;;  %v360_v33 = vunpack.c.h.bf16 %v366_v22 }
 0x1c6   :  { %v177_v37 = vmul.f32 %v342_v12, %v162_v32 }
 0x1c7   :  { %v397_v38 = vpop.eup %396  ;;  %v150_v40 = vadd.f32 1e-05, %v142_v36  ;;  %v318_v36 = vld [vmem:[%s593_s6 + $0x20] sm:$0xff] }
 0x1c8   :  { %v192_v41 = vadd.f32 %v343_v19, %v177_v37  ;;  %v163_v42 = vmul.f32 %v397_v38, %v474_v39 }
 0x1c9   :  { %402 = vrsqrt.f32 %v150_v40 }
 0x1ca   :  { %v198_v43 = vpack.c.bf16 %v192_v41, %v191_v29  ;;  %v178_v46 = vmul.f32 %v342_v12, %v163_v42  ;;  %v321_v29 = vld [vmem:[%s593_s6 + $0x38] sm:$0xff] }
 0x1cb   :  { %v399_v45 = vpop.eup %398 }
 0x1cc   :  { %376 = vmatmul.mubr.msk.bf16.vlgmr.msra.gmra.mrb[0].mxu0 %vm61_vm0, %v198_v43  ;;  %v164_v34 = vmul.f32 %v399_v45, %v479_v44  ;;  %v193_v51 = vadd.f32 %v343_v19, %v178_v46  ;;  %v365_v44 = vld [vmem:[%s591_s5 + $0x8] sm:$0xff]  }
 0x1cd   :  { %v355_v61 = vunpack.c.l.bf16 %v365_v44  ;;  %v356_v2 = vunpack.c.h.bf16 %v365_v44  ;;  %v319_v45 = vld [vmem:[%s593_s6 + $0x28] sm:$0xff] }
 0x1ce   :  { %v179_v47 = vmul.f32 %v342_v12, %v164_v34 }
 0x1cf   :  { %v401_v48 = vpop.eup %400 }
 0x1d0   :  { %v165_v50 = vmul.f32 %v401_v48, %v484_v49  ;;  %v194_v52 = vadd.f32 %v343_v19, %v179_v47  ;;  %v350_v49 = vld [vmem:[%s591_s5] sm:$0xff]  }
 0x1d1   :  { %v351_v63 = vunpack.c.l.bf16 %v350_v49  ;;  %v352_v6 = vunpack.c.h.bf16 %v350_v49 }
 0x1d2   :  { %v199_v53 = vpack.c.bf16 %v194_v52, %v193_v51  ;;  %v180_v39 = vmul.f32 %v342_v12, %v165_v50 }
 0x1d3   :  { %v403_v55 = vpop.eup %402 }
 0x1d4   :  { %v166_v56 = vmul.f32 %v403_v55, %v489_v54  ;;  %379 = vmatprep.mubr.msk.bf16.mxu1 %vm61_vm0, %v199_v53  ;;  %v195_v58 = vadd.f32 %v343_v19, %v180_v39  ;;  %v344_v54 = vld [vmem:[%s592_s4] ss:$0 sm:$0xff] }
 0x1d6   :  { %v181_v57 = vmul.f32 %v342_v12, %v166_v56  ;;  %v317_v12 = vld [vmem:[%s593_s6 + $0x18] sm:$0xff] }
 0x1d8   :  { %v196_v59 = vadd.f32 %v343_v19, %v181_v57 }
 0x1da   :  { %v200_v60 = vpack.c.bf16 %v196_v59, %v195_v58 }
 0x1dc   :  { %380 = vmatmul.mubr.msk.bf16.vlgmr.msra.gmra.mrb[0].mxu1 %vm61_vm0, %v200_v60 }
 0x29f   :  { %v377_v62 = vpop.f32.mrb[0].mxu0 }
 0x2a0   :  { %v268_v0 = vadd.f32 %v377_v62, %v344_v54  ;;  %v259_v1 = vpop.f32.mrb[1].mxu0 }
 0x2a1   :  { %v260_v4 = vadd.f32 %v344_v54, %v259_v1  ;;  %v378_v5 = vpop.f32.mrb[2].mxu0 }
 0x2a2   :  { %v308_v7 = vmul.f32 %v355_v61, %v268_v0  ;;  %v271_v9 = vadd.f32 %v378_v5, %v344_v54  ;;  %v262_v10 = vpop.f32.mrb[3].mxu0 }
 0x2a3   :  { %v306_v11 = vmul.f32 %v351_v63, %v260_v4  ;;  %v263_v13 = vadd.f32 %v344_v54, %v262_v10 }
 0x2a4   :  { %v324_v14 = vadd.f32 %v316_v3, %v308_v7  ;;  %v309_v15 = vmul.f32 %v356_v2, %v271_v9 }
 0x2a5   :  { %v322_v17 = vadd.f32 %v314_v8, %v306_v11  ;;  %v307_v18 = vmul.f32 %v352_v6, %v263_v13 }
 0x2a6   :  { %332 = vst.msk [vmem:[%s594_s7 + $0x10] sm:$0xff] %vm61_vm0, %v324_v14  ;;  %v325_v19 = vadd.f32 %v317_v12, %v309_v15 }
 0x2a7   :  { %330 = vst.msk [vmem:[%s594_s7] sm:$0xff] %vm61_vm0, %v322_v17  ;;  %v323_v21 = vadd.f32 %v315_v16, %v307_v18 }
 0x2a8   :  { %333 = vst.msk [vmem:[%s594_s7 + $0x18] sm:$0xff] %vm61_vm0, %v325_v19 }
 0x2a9   :  { %331 = vst.msk [vmem:[%s594_s7 + $0x8] sm:$0xff] %vm61_vm0, %v323_v21 }
 0x2af   :  { %v381_v25 = vpop.f32.mrb[0].mxu1 }
 0x2b0   :  { %v284_v27 = vadd.f32 %v381_v25, %v344_v54  ;;  %v275_v28 = vpop.f32.mrb[1].mxu1 }
 0x2b1   :  { %v276_v24 = vadd.f32 %v344_v54, %v275_v28  ;;  %v382_v32 = vpop.f32.mrb[2].mxu1 }
 0x2b2   :  { %v312_v35 = vmul.f32 %v363_v23, %v284_v27  ;;  %v287_v37 = vadd.f32 %v382_v32, %v344_v54  ;;  %v278_v38 = vpop.f32.mrb[3].mxu1 }
 0x2b3   :  { %v310_v40 = vmul.f32 %v359_v26, %v276_v24  ;;  %v279_v41 = vadd.f32 %v344_v54, %v278_v38 }
 0x2b4   :  { %v328_v42 = vadd.f32 %v320_v31, %v312_v35  ;;  %v313_v43 = vmul.f32 %v364_v30, %v287_v37 }
 0x2b5   :  { %v326_v34 = vadd.f32 %v318_v36, %v310_v40  ;;  %v311_v46 = vmul.f32 %v360_v33, %v279_v41 }
 0x2b6   :  { %336 = vst.msk [vmem:[%s594_s7 + $0x30] sm:$0xff] %vm61_vm0, %v328_v42  ;;  %v329_v47 = vadd.f32 %v321_v29, %v313_v43 }
 0x2b7   :  { %334 = vst.msk [vmem:[%s594_s7 + $0x20] sm:$0xff] %vm61_vm0, %v326_v34  ;;  %v327_v48 = vadd.f32 %v319_v45, %v311_v46 }
 0x2b8   :  { %337 = vst.msk [vmem:[%s594_s7 + $0x38] sm:$0xff] %vm61_vm0, %v329_v47 }
 0x2b9   :  { %335 = vst.msk [vmem:[%s594_s7 + $0x28] sm:$0xff] %vm61_vm0, %v327_v48 }

// kernel: evoformer_stack.54
= control target key start
LH: loop header
LB: loop body
LE: loop exit
PB: predicated region body
PF: predicated region fallthrough
CT: control target
= control target key end

     0   :  { %v622_v2 = vmov 0.0   ;;  %vm623_vm0 = vmmov 0   ;;  %vm160_vm1 = vcmask 1043456   ;;  %vm156_vm2 = vcmask 64512   ;;  %s759_s0 = inlined_call_operand.vmem [shape: bf16[8,8,8], index: 0, kind: input, shape index: {}]   ;;  %s760_s1 = inlined_call_operand.vmem [shape: bf16[8,8,8], index: 1, kind: input, shape index: {}]   ;;  %s761_s2 = inlined_call_operand.vmem [shape: bf16[8,8,8], index: 2, kind: output, shape index: {}]  }
   0x1   :  { %v12_v0 = vld [vmem:[%s759_s0] sm:$0xf]  ;;  %v14_v1 = vld [vmem:[%s759_s0 + $0x8] sm:$0xf]  ;;  %571 = vmatprep.subr.bf16.mxu0 %v622_v2  ;;  %573 = vmatprep.mubr.msk.bf16.mxu0 %vm623_vm0, %v622_v2  ;;  %v13_v3 = vld [vmem:[%s759_s0 + $0x4] sm:$0xf] }
   0x2   :  { %28 = vxpose.xlu0.c.b16.start.end [1/1] (short) (narrow) %v12_v0, 16  ;;  %60 = vxpose.xlu1.c.b16.start.end [1/1] (short) (narrow) %v14_v1, 16  ;;  %v15_v4 = vld [vmem:[%s759_s0 + $0xc] sm:$0xf]  ;;  %v20_v5 = vld [vmem:[%s760_s1] sm:$0xf] }
   0x3   :  { %577 = vmatprep.subr.bf16.mxu1 %v622_v2  ;;  %579 = vmatprep.mubr.msk.bf16.mxu1 %vm623_vm0, %v622_v2  ;;  %v21_v6 = vld [vmem:[%s760_s1 + $0x4] sm:$0xf]  ;;  %v16_v7 = vld [vmem:[%s759_s0 + $0x10] sm:$0xf]  ;;  %v17_v8 = vld [vmem:[%s759_s0 + $0x14] sm:$0xf] }
   0x4   :  { %v162_v9 = vsel %vm160_vm1, %v20_v5, 0  ;;  %v208_v10 = vsel %vm160_vm1, %v21_v6, 0  ;;  %v22_v11 = vld [vmem:[%s760_s1 + $0x8] sm:$0xf]  ;;  %v23_v12 = vld [vmem:[%s760_s1 + $0xc] sm:$0xf] }
   0x5   :  { %v254_v13 = vsel %vm160_vm1, %v22_v11, 0  ;;  %v300_v14 = vsel %vm160_vm1, %v23_v12, 0  ;;  %v24_v15 = vld [vmem:[%s760_s1 + $0x10] sm:$0xf]  ;;  %572 = vmatpush3.bf16.msra.mxu0 %v162_v9  ;;  %578 = vmatpush3.bf16.msra.mxu1 %v208_v10  ;;  %v25_v17 = vld [vmem:[%s760_s1 + $0x14] sm:$0xf] }
   0x6   :  { %44 = vxpose.xlu0.c.b16.start.end [1/1] (short) (narrow) %v13_v3, 16  ;;  %76 = vxpose.xlu1.c.b16.start.end [1/1] (short) (narrow) %v15_v4, 16  ;;  %v346_v16 = vsel %vm160_vm1, %v24_v15, 0  ;;  %v26_v18 = vld [vmem:[%s760_s1 + $0x18] sm:$0xf]  ;;  %v392_v19 = vsel %vm160_vm1, %v25_v17, 0 }
   0x7   :  { %583 = vmatprep.subr.bf16.mxu0 %v622_v2  ;;  %589 = vmatprep.subr.bf16.mxu1 %v622_v2  ;;  %v438_v20 = vsel %vm160_vm1, %v26_v18, 0  ;;  %v27_v21 = vld [vmem:[%s760_s1 + $0x1c] sm:$0xf]  ;;  %v18_v23 = vld [vmem:[%s759_s0 + $0x18] sm:$0xf]  ;;  %vm534_vm3 = vcmask 60416  }
   0x8   :  { %v484_v22 = vsel %vm160_vm1, %v27_v21, 0  ;;  %v19_v24 = vld [vmem:[%s759_s0 + $0x1c] sm:$0xf] }
   0xa   :  { %92 = vxpose.xlu0.c.b16.start.end [1/1] (short) (narrow) %v16_v7, 16  ;;  %108 = vxpose.xlu1.c.b16.start.end [1/1] (short) (narrow) %v17_v8, 16 }
   0xe   :  { %124 = vxpose.xlu0.c.b16.start.end [1/1] (short) (narrow) %v18_v23, 16  ;;  %140 = vxpose.xlu1.c.b16.start.end [1/1] (short) (narrow) %v19_v24, 16 }
  0x68   :  { %v36_v25 = vpop.trf.xlu0  ;;  %v68_v27 = vpop.trf.xlu1 }
  0x69   :  { %574 = vmatmul.mubr.msk.bf16.vlgmr.msra.gmra.mrb[0].mxu0 %vm156_vm2, %v36_v25 }
  0x6a   :  { %584 = vmatpush3.bf16.msra.mxu0 %v254_v13  ;;  %585 = vmatprep.mubr.msk.bf16.mxu0 %vm623_vm0, %v622_v2 }
  0x6b   :  { %595 = vmatprep.subr.bf16.mxu0 %v622_v2 }
  0x6c   :  { %v52_v26 = vpop.trf.xlu0  ;;  %v84_v28 = vpop.trf.xlu1 }
  0x6d   :  { %580 = vmatmul.mubr.msk.bf16.vlgmr.msra.gmra.mrb[0].mxu1 %vm156_vm2, %v52_v26 }
  0x6e   :  { %590 = vmatpush3.bf16.msra.mxu1 %v300_v14  ;;  %591 = vmatprep.mubr.msk.bf16.mxu1 %vm623_vm0, %v622_v2 }
  0x6f   :  { %601 = vmatprep.subr.bf16.mxu1 %v622_v2 }
  0x70   :  { %v100_v29 = vpop.trf.xlu0  ;;  %v116_v30 = vpop.trf.xlu1 }
  0x71   :  { %586 = vmatmul.mubr.msk.bf16.vlgmr.msra.gmra.mrb[4].mxu0 %vm156_vm2, %v68_v27 }
  0x72   :  { %596 = vmatpush3.bf16.msra.mxu0 %v346_v16  ;;  %597 = vmatprep.mubr.msk.bf16.mxu0 %vm623_vm0, %v622_v2 }
  0x73   :  { %607 = vmatprep.subr.bf16.mxu0 %v622_v2 }
  0x74   :  { %v132_v31 = vpop.trf.xlu0  ;;  %v148_v32 = vpop.trf.xlu1 }
  0x75   :  { %592 = vmatmul.mubr.msk.bf16.vlgmr.msra.gmra.mrb[4].mxu1 %vm156_vm2, %v84_v28 }
  0x76   :  { %602 = vmatpush3.bf16.msra.mxu1 %v392_v19  ;;  %603 = vmatprep.mubr.msk.bf16.mxu1 %vm623_vm0, %v622_v2 }
  0x77   :  { %613 = vmatprep.subr.bf16.mxu1 %v622_v2 }
  0x79   :  { %598 = vmatmul.mubr.msk.bf16.vlgmr.msra.gmra.mrb[8].mxu0 %vm156_vm2, %v100_v29 }
  0x7a   :  { %608 = vmatpush3.bf16.msra.mxu0 %v438_v20  ;;  %609 = vmatprep.mubr.msk.bf16.mxu0 %vm623_vm0, %v622_v2 }
  0x7d   :  { %604 = vmatmul.mubr.msk.bf16.vlgmr.msra.gmra.mrb[8].mxu1 %vm156_vm2, %v116_v30 }
  0x7e   :  { %614 = vmatpush3.bf16.msra.mxu1 %v484_v22  ;;  %615 = vmatprep.mubr.msk.bf16.mxu1 %vm623_vm0, %v622_v2 }
  0x81   :  { %610 = vmatmul.mubr.msk.bf16.vlgmr.msra.gmra.mrb[12].mxu0 %vm156_vm2, %v132_v31 }
  0x85   :  { %616 = vmatmul.mubr.msk.bf16.vlgmr.msra.gmra.mrb[12].mxu1 %vm156_vm2, %v148_v32 }
 0x13c   :  { %v198_v33 = vpop.f32.mrb[0].mxu0 }
 0x13d   :  { %v526_v34 = vpack.c.bf16 %v198_v33, %v198_v33  ;;  %v575_v35 = vpop.f32.mrb[1].mxu0 }
 0x13e   :  { %v201_v36 = vpop.f32.mrb[2].mxu0 }
 0x13f   :  { %535 = vst.msk [vmem:[%s761_s2] sm:$0xf] %vm534_vm3, %v526_v34  ;;  %v576_v37 = vpop.f32.mrb[3].mxu0 }
 0x140   :  { %v244_v38 = vpop.f32.mrb[0].mxu1 }
 0x141   :  { %v527_v39 = vpack.c.bf16 %v244_v38, %v244_v38  ;;  %v581_v40 = vpop.f32.mrb[1].mxu1 }
 0x142   :  { %v247_v41 = vpop.f32.mrb[2].mxu1 }
 0x143   :  { %536 = vst.msk [vmem:[%s761_s2 + $0x4] sm:$0xf] %vm534_vm3, %v527_v39  ;;  %v582_v42 = vpop.f32.mrb[3].mxu1 }
 0x144   :  { %v290_v43 = vpop.f32.mrb[4].mxu0 }
 0x145   :  { %v528_v44 = vpack.c.bf16 %v290_v43, %v290_v43  ;;  %v587_v45 = vpop.f32.mrb[5].mxu0 }
 0x146   :  { %v293_v46 = vpop.f32.mrb[6].mxu0 }
 0x147   :  { %537 = vst.msk [vmem:[%s761_s2 + $0x8] sm:$0xf] %vm534_vm3, %v528_v44  ;;  %v588_v47 = vpop.f32.mrb[7].mxu0 }
 0x148   :  { %v336_v48 = vpop.f32.mrb[4].mxu1 }
 0x149   :  { %v529_v49 = vpack.c.bf16 %v336_v48, %v336_v48  ;;  %v593_v50 = vpop.f32.mrb[5].mxu1 }
 0x14a   :  { %v339_v51 = vpop.f32.mrb[6].mxu1 }
 0x14b   :  { %538 = vst.msk [vmem:[%s761_s2 + $0xc] sm:$0xf] %vm534_vm3, %v529_v49  ;;  %v594_v52 = vpop.f32.mrb[7].mxu1 }
 0x14c   :  { %v382_v53 = vpop.f32.mrb[8].mxu0 }
 0x14d   :  { %v530_v54 = vpack.c.bf16 %v382_v53, %v382_v53  ;;  %v599_v55 = vpop.f32.mrb[9].mxu0 }
 0x14e   :  { %v385_v56 = vpop.f32.mrb[10].mxu0 }
 0x14f   :  { %539 = vst.msk [vmem:[%s761_s2 + $0x10] sm:$0xf] %vm534_vm3, %v530_v54  ;;  %v600_v57 = vpop.f32.mrb[11].mxu0 }
 0x150   :  { %v428_v58 = vpop.f32.mrb[8].mxu1 }
 0x151   :  { %v531_v59 = vpack.c.bf16 %v428_v58, %v428_v58  ;;  %v605_v60 = vpop.f32.mrb[9].mxu1 }
 0x152   :  { %v431_v61 = vpop.f32.mrb[10].mxu1 }
 0x153   :  { %540 = vst.msk [vmem:[%s761_s2 + $0x14] sm:$0xf] %vm534_vm3, %v531_v59  ;;  %v606_v62 = vpop.f32.mrb[11].mxu1 }
 0x154   :  { %v474_v63 = vpop.f32.mrb[12].mxu0 }
 0x155   :  { %v532_v0 = vpack.c.bf16 %v474_v63, %v474_v63  ;;  %v611_v1 = vpop.f32.mrb[13].mxu0 }
 0x156   :  { %v477_v2 = vpop.f32.mrb[14].mxu0 }
 0x157   :  { %541 = vst.msk [vmem:[%s761_s2 + $0x18] sm:$0xf] %vm534_vm3, %v532_v0  ;;  %v612_v3 = vpop.f32.mrb[15].mxu0 }
 0x158   :  { %v520_v4 = vpop.f32.mrb[12].mxu1 }
 0x159   :  { %v533_v5 = vpack.c.bf16 %v520_v4, %v520_v4  ;;  %v617_v6 = vpop.f32.mrb[13].mxu1 }
 0x15a   :  { %v523_v7 = vpop.f32.mrb[14].mxu1 }
 0x15b   :  { %542 = vst.msk [vmem:[%s761_s2 + $0x1c] sm:$0xf] %vm534_vm3, %v533_v5  ;;  %v618_v8 = vpop.f32.mrb[15].mxu1 }

// kernel: evoformer_stack.57
= control target key start
LH: loop header
LB: loop body
LE: loop exit
PB: predicated region body
PF: predicated region fallthrough
CT: control target
= control target key end

     0   :  { %s844_s18 = smov 0   ;;  %s846_s19 = smov 0   ;;  %s915_s0 = inlined_call_operand.vmem [shape: bf16[8,8,16], index: 0, kind: input, shape index: {}]   ;;  %s916_s1 = inlined_call_operand.vmem [shape: bf16[8,8,16], index: 1, kind: input, shape index: {}]   ;;  %s917_s2 = inlined_call_operand.vmem [shape: bf16[8,8,16], index: 2, kind: input, shape index: {}]   ;;  %s918_s3 = inlined_call_operand.vmem [shape: bf16[2,8,8], index: 3, kind: input, shape index: {}]   ;;  %s919_s4 = inlined_call_operand.vmem [shape: f32[8,1,8], index: 4, kind: input, shape index: {}]   ;;  %s920_s5 = inlined_call_operand.vmem [shape: bf16[8,8,16], index: 5, kind: output, shape index: {}]  }
   0x1   :  { %s848_s20 = smov 0  }
   0x2 LB: > { %s27_s21 = sadd.s32 1, %s804_s19  ;;  %p699_p0 = scmp.ge.s32.totalorder %s808_s20, 1  ;;  %s808_s20 = sphi %s848_s20, %s15_s20   ;;  %s804_s19 = sphi %s846_s19, %s922_s19   ;;  %s800_s18 = sphi %s844_s18, %s921_s18  }
   0x3   : > { %p29_p1 = scmp.ge.s32.totalorder %s27_s21, 8  ;;  %p240_p2 = scmp.lt.s32.totalorder %s808_s20, 9 }
   0x5   : > { %s924_s21 = smov (%p29_p1, %s27_s21), 0  ;;  %p241_p3 = pnand %p699_p0, %p240_p2 }
   0x6   : > { %p287_p4 = scmp.lt.s32.totalorder (!%p241_p3), %s800_s18, 7  ;;  %v810_v0 = vmov (!%p241_p3), 0.0   ;;  %vm811_vm0 = vmmov (!%p241_p3), 0   ;;  %vm321_vm1 = vcmask (!%p241_p3), 64512   ;;  %v369_v4 = vld [vmem:[%s918_s3] sm:$0xff] (!%p241_p3)   ;;  %s812_s9 = smov (!%p241_p3), 120  }
   0x7   : > { %244 = sbr.rel (%p241_p3) target bundleno = 1433 (0x599), region = 40  ;;  %723 = vmatprep.subr.bf16.mxu0 (!%p241_p3), %v810_v0  ;;  %725 = vmatprep.mubr.msk.bf16.mxu0 (!%p241_p3), %vm811_vm0, %v810_v0  ;;  %v370_v5 = vunpack.c.l.bf16 (!%p241_p3), %v369_v4  ;;  %vm394_vm2 = vcmask (!%p241_p3), 1043456   ;;  %v497_v35 = vunpack.c.h.bf16 (!%p241_p3), %v369_v4  ;;  %s813_s13 = smov (!%p241_p3), 8   ;;  %vm569_vm3 = vcmask (!%p241_p3), 125952  }
   0x8   : > { %729 = vmatprep.subr.bf16.mxu1 (!%p241_p3), %v810_v0  ;;  %731 = vmatprep.mubr.msk.bf16.mxu1 (!%p241_p3), %vm811_vm0, %v810_v0 }
   0xe   : > { %s926_s18 = smov (!%p287_p4, %s800_s18), 7 }
   0xf   : > { %s864_s22 = sshll.u32 %s926_s18, 2  ;;  %s308_s8 = scalar_lea.vmem %s919_s4, %s926_s18 }
  0x10   : > { %s297_s25 = scalar_lea.vmem %s916_s1, %s864_s22  ;;  %s293_s28 = scalar_lea.vmem %s915_s0, %s864_s22  ;;  %v705_v10 = vld [vmem:[%s308_s8] ss:$0 sm:$0xff] }
  0x11   : > { %v318_v1 = vld [vmem:[%s297_s25] sm:$0xf]  ;;  %s301_s12 = scalar_lea.vmem %s917_s2, %s864_s22  ;;  %s315_s16 = scalar_lea.vmem %s920_s5, %s864_s22 }
  0x12   : > { %v326_v2 = vsel %vm321_vm1, %v318_v1, 0  ;;  %v317_v3 = vld [vmem:[%s293_s28] sm:$0xf]  ;;  %v708_v15 = vcombine.low %v318_v1, %v318_v1 }
  0x13   : > { %724 = vmatpush3.bf16.xpose.msra.mxu0 %v326_v2  ;;  %v707_v16 = vcombine.low %v317_v3, %v317_v3  ;;  %v319_v22 = vld [vmem:[%s301_s12] sm:$0xf] }
  0x14   : > { %741 = vmatprep.subr.bf16.mxu0 %v810_v0  ;;  %446 = vrot.lane.b32.xlu1 %v708_v15, %s812_s9  ;;  %v396_v23 = vsel %vm394_vm2, %v319_v22, 0  ;;  %v711_v44 = vcombine.low %v319_v22, %v319_v22 }
  0x15   : > { %730 = vmatpush3.bf16.msra.mxu1 %v396_v23 }
  0x16   : > { %735 = vmatprep.subr.bf16.mxu1 %v810_v0 }
  0x18   : > { %441 = vrot.lane.b32.xlu1 %v707_v16, %s812_s9 }
  0x1a   : > { %726 = vmatmul.mubr.msk.bf16.vlgmr.msra.gmra.mrb[0].mxu0 %vm321_vm1, %v317_v3 }
  0x1b   : > { %743 = vmatprep.mubr.msk.bf16.mxu0 %vm811_vm0, %v810_v0 }
  0x86   : > { %v447_v26 = vpop.permute.xlu1 %446 }
  0x87   : > { %v452_v28 = vsel %vm321_vm1, %v447_v26, 0 }
  0x8a   : > { %v442_v30 = vpop.permute.xlu1 %441 }
  0xed   : > { %v362_v6 = vpop.f32.mrb[0].mxu0 }
  0xee   : > { %v368_v7 = vmul.f32 0.35355338, %v362_v6  ;;  %v727_v8 = vpop.f32.mrb[1].mxu0 }
  0xef   : > { %v365_v9 = vpop.f32.mrb[2].mxu0 }
  0xf0   : > { %v371_v11 = vadd.f32 %v370_v5, %v368_v7  ;;  %v728_v12 = vpop.f32.mrb[3].mxu0 }
  0xf2   : > { %v378_v13 = vadd.f32 %v705_v10, %v371_v11 }
  0xf4   : > { %v379_v14 = vsel %vm321_vm1, %v378_v13, -inf }
  0xf5   : > { %380 = vmax.xlane.f32.xlu0 %v379_v14 }
 0x182   : > { %v381_v17 = vpop.xlane.xlu0 %380 }
 0x183   : > { %v382_v18 = vsub.f32 %v378_v13, %v381_v17 }
 0x185   : > { %v383_v19 = vmul.f32 1.442695, %v382_v18 }
 0x187   : > { %778 = vpow2.f32 %v383_v19 }
 0x191   : > { %v779_v20 = vpop.eup %778 }
 0x192   : > { %v385_v21 = vsel %vm321_vm1, %v779_v20, 0.0 }
 0x193   : > { %386 = vadd.xlane.f32.xlu0 %v385_v21 }
 0x220   : > { %v387_v24 = vpop.xlane.xlu0 %386 }
 0x221   : > { %780 = vrcp.f32 %v387_v24 }
 0x22b   : > { %v781_v25 = vpop.eup %780 }
 0x22c   : > { %v389_v27 = vmul.f32 %v781_v25, %v779_v20 }
 0x22e   : > { %v390_v29 = vpack.c.bf16 %v389_v27, %v389_v27 }
 0x230   : > { %732 = vmatmul.mubr.msk.bf16.vlgmr.msra.gmra.mrb[0].mxu1 %vm321_vm1, %v390_v29 }
 0x231   : > { %736 = vmatpush3.bf16.xpose.msra.mxu1 %v452_v28  ;;  %737 = vmatprep.mubr.msk.bf16.mxu1 %vm811_vm0, %v810_v0 }
 0x238   : > { %738 = vmatmul.mubr.msk.bf16.vlgmr.msra.gmra.mrb[4].mxu1 %vm321_vm1, %v442_v30 }
 0x303   : > { %v432_v31 = vpop.f32.mrb[0].mxu1 }
 0x304   : > { %v733_v32 = vpop.f32.mrb[1].mxu1 }
 0x305   : > { %v435_v33 = vpop.f32.mrb[2].mxu1 }
 0x306   : > { %v734_v34 = vpop.f32.mrb[3].mxu1 }
 0x30b   : > { %v488_v36 = vpop.f32.mrb[4].mxu1 }
 0x30c   : > { %v494_v37 = vmul.f32 0.35355338, %v488_v36  ;;  %v739_v38 = vpop.f32.mrb[5].mxu1 }
 0x30d   : > { %v491_v39 = vpop.f32.mrb[6].mxu1 }
 0x30e   : > { %v498_v40 = vadd.f32 %v497_v35, %v494_v37  ;;  %v740_v41 = vpop.f32.mrb[7].mxu1 }
 0x310   : > { %v499_v42 = vadd.f32 %v705_v10, %v498_v40 }
 0x312   : > { %v500_v43 = vsel %vm321_vm1, %v499_v42, -inf }
 0x313   : > { %501 = vmax.xlane.f32.xlu0 %v500_v43 }
 0x329   : > { %515 = vrot.lane.b32.xlu0 %v711_v44, %s812_s9 }
 0x3a0   : > { %v502_v45 = vpop.xlane.xlu0 %501 }
 0x3a1   : > { %v503_v46 = vsub.f32 %v499_v42, %v502_v45 }
 0x3a3   : > { %v504_v47 = vmul.f32 1.442695, %v503_v46 }
 0x3a4   : > { %v516_v50 = vpop.permute.xlu0 %515 }
 0x3a5   : > { %782 = vpow2.f32 %v504_v47  ;;  %v521_v51 = vsel %vm394_vm2, %v516_v50, 0 }
 0x3a6   : > { %742 = vmatpush3.bf16.msra.mxu0 %v521_v51 }
 0x3af   : > { %v783_v48 = vpop.eup %782 }
 0x3b0   : > { %v506_v49 = vsel %vm321_vm1, %v783_v48, 0.0 }
 0x3b1   : > { %507 = vadd.xlane.f32.xlu1 %v506_v49 }
 0x43e   : > { %v508_v52 = vpop.xlane.xlu1 %507 }
 0x43f   : > { %784 = vrcp.f32 %v508_v52 }
 0x449   : > { %v785_v53 = vpop.eup %784 }
 0x44a   : > { %v510_v54 = vmul.f32 %v785_v53, %v783_v48 }
 0x44c   : > { %v511_v55 = vpack.c.bf16 %v510_v54, %v510_v54 }
 0x44e   : > { %744 = vmatmul.mubr.msk.bf16.vlgmr.msra.gmra.mrb[4].mxu0 %vm321_vm1, %v511_v55 }
 0x521   : > { %v557_v56 = vpop.f32.mrb[4].mxu0 }
 0x522   : > { %564 = vrot.lane.b32.xlu0 %v557_v56, %s813_s13  ;;  %v745_v57 = vpop.f32.mrb[5].mxu0 }
 0x523   : > { %v560_v58 = vpop.f32.mrb[6].mxu0 }
 0x524   : > { %v746_v59 = vpop.f32.mrb[7].mxu0 }
 0x594   : > { %v565_v60 = vpop.permute.xlu0 %564 }
 0x595   : > { %v567_v61 = vsel %vm321_vm1, %v432_v31, %v565_v60 }
 0x596   : > { %v568_v62 = vpack.c.bf16 %v567_v61, %v567_v61 }
 0x598   : > { %570 = vst.msk [vmem:[%s315_s16] sm:$0xf] %vm569_vm3, %v568_v62 }
 0x599 PF: > { %s15_s20 = sadd.s32 1, %s808_s20   ;;  %s921_s18 = smov %s804_s19 }
 0x59a   : > { %p12_p5 = scmp.ge.s32.totalorder %s15_s20, 10   ;;  %s922_s19 = smov %s924_s21 }
 0x59c   :  { %14 = sbr.rel (!%p12_p5) target bundleno = 2 (0x2), region = 83 }

// kernel: evoformer_stack.56
= control target key start
LH: loop header
LB: loop body
LE: loop exit
PB: predicated region body
PF: predicated region fallthrough
CT: control target
= control target key end

     0   :  { %vm34_vm0 = vcmask 64512   ;;  %vm194_vm1 = vcmask 1043456   ;;  %vm295_vm2 = vcmask 125952   ;;  %s570_s10 = smov 112   ;;  %s571_s14 = smov 64   ;;  %vm465_vm3 = vcmask 516096   ;;  %s863_s0 = inlined_call_operand.vmem [shape: f32[64,8], index: 0, kind: input, shape index: {}]   ;;  %s864_s3 = inlined_call_operand.vmem [shape: bf16[8,66], index: 3, kind: input, shape index: {}]   ;;  %s865_s1 = inlined_call_operand.vmem [shape: f32[1,8], index: 1, kind: input, shape index: {}]   ;;  %s866_s2 = inlined_call_operand.vmem [shape: f32[1,8], index: 2, kind: input, shape index: {}]   ;;  %s867_s4 = inlined_call_operand.vmem [shape: f32[1,66], index: 4, kind: input, shape index: {}]   ;;  %s868_s5 = inlined_call_operand.vmem [shape: bf16[64,16], index: 5, kind: output, shape index: {0}]   ;;  %s869_s6 = inlined_call_operand.vmem [shape: bf16[64,16], index: 6, kind: output, shape index: {1}]   ;;  %s870_s7 = inlined_call_operand.vmem [shape: bf16[64,16], index: 7, kind: output, shape index: {2}]   ;;  %s871_s8 = inlined_call_operand.vmem [shape: bf16[64,16], index: 8, kind: output, shape index: {3}]   ;;  %s872_s9 = inlined_call_operand.vmem [shape: bf16[2,64], index: 9, kind: output, shape index: {4}]  }
   0x1   :  { %v26_v0 = vld [vmem:[%s863_s0] sm:$0xff]  ;;  %v28_v1 = vld [vmem:[%s863_s0 + $0x10] sm:$0xff]  ;;  %v27_v2 = vld [vmem:[%s863_s0 + $0x8] sm:$0xff]  ;;  %s573_s25 = smov 80  }
   0x2   :  { %v35_v3 = vsel %vm34_vm0, %v26_v0, 0.0  ;;  %v41_v4 = vsel %vm34_vm0, %v28_v1, 0.0  ;;  %v29_v5 = vld [vmem:[%s863_s0 + $0x18] sm:$0xff]  ;;  %v38_v6 = vsel %vm34_vm0, %v27_v2, 0.0  ;;  %v30_v8 = vld [vmem:[%s863_s0 + $0x20] sm:$0xff]  ;;  %v31_v9 = vld [vmem:[%s863_s0 + $0x28] sm:$0xff] }
   0x3   :  { %36 = vadd.xlane.f32.xlu0 %v35_v3  ;;  %42 = vadd.xlane.f32.xlu1 %v41_v4  ;;  %v44_v7 = vsel %vm34_vm0, %v29_v5, 0.0  ;;  %v47_v10 = vsel %vm34_vm0, %v30_v8, 0.0  ;;  %v50_v11 = vsel %vm34_vm0, %v31_v9, 0.0  ;;  %v32_v12 = vld [vmem:[%s863_s0 + $0x30] sm:$0xff]  ;;  %v33_v13 = vld [vmem:[%s863_s0 + $0x38] sm:$0xff]  ;;  %s572_s0 = smov 96  }
   0x4   :  { %v53_v14 = vsel %vm34_vm0, %v32_v12, 0.0  ;;  %v56_v15 = vsel %vm34_vm0, %v33_v13, 0.0  ;;  %v174_v56 = vld [vmem:[%s864_s3] sm:$0xf] }
   0x5   :  { %527 = vmatprep.subr.msk.bf16.mxu0 %vm194_vm1, %v174_v56  ;;  %v196_v57 = vsel %vm194_vm1, %v174_v56, 0  ;;  %528 = vmatprep.subr.msk.bf16.mxu1 %vm194_vm1, %v174_v56 }
   0x6   :  { %516 = vmatpush3.bf16.msra.mxu0 %v196_v57  ;;  %526 = vmatpush3.bf16.msra.mxu1 %v196_v57 }
   0x7   :  { %39 = vadd.xlane.f32.xlu0 %v38_v6  ;;  %45 = vadd.xlane.f32.xlu1 %v44_v7 }
   0xb   :  { %48 = vadd.xlane.f32.xlu0 %v47_v10  ;;  %51 = vadd.xlane.f32.xlu1 %v50_v11 }
   0xf   :  { %54 = vadd.xlane.f32.xlu0 %v53_v14  ;;  %57 = vadd.xlane.f32.xlu1 %v56_v15 }
  0x90   :  { %v37_v16 = vpop.xlane.xlu0 %36  ;;  %v43_v17 = vpop.xlane.xlu1 %42 }
  0x91   :  { %v60_v18 = vmul.f32 0.125, %v37_v16  ;;  %v62_v19 = vmul.f32 0.125, %v43_v17 }
  0x93   :  { %v656_v20 = vsub.f32 %v26_v0, %v60_v18  ;;  %v658_v21 = vsub.f32 %v28_v1, %v62_v19  ;;  %v487_v19 = vld [vmem:[%s865_s1] ss:$0 sm:$0xff] }
  0x94   :  { %v40_v22 = vpop.xlane.xlu0 %39  ;;  %v46_v23 = vpop.xlane.xlu1 %45 }
  0x95   :  { %v61_v24 = vmul.f32 0.125, %v40_v22  ;;  %v63_v25 = vmul.f32 0.125, %v46_v23  ;;  %v76_v26 = vmul.f32 %v656_v20, %v656_v20  ;;  %v78_v27 = vmul.f32 %v658_v21, %v658_v21 }
  0x97   :  { %v664_v28 = vsub.f32 %v27_v2, %v61_v24  ;;  %v666_v29 = vsub.f32 %v29_v5, %v63_v25  ;;  %v84_v30 = vsel %vm34_vm0, %v76_v26, 0.0  ;;  %v90_v33 = vsel %vm34_vm0, %v78_v27, 0.0 }
  0x98   :  { %85 = vadd.xlane.f32.xlu0 %v84_v30  ;;  %v49_v31 = vpop.xlane.xlu0 %48  ;;  %v52_v32 = vpop.xlane.xlu1 %51 }
  0x99   :  { %v64_v34 = vmul.f32 0.125, %v49_v31  ;;  %v65_v35 = vmul.f32 0.125, %v52_v32  ;;  %v77_v36 = vmul.f32 %v664_v28, %v664_v28  ;;  %v79_v37 = vmul.f32 %v666_v29, %v666_v29 }
  0x9b   :  { %v674_v38 = vsub.f32 %v30_v8, %v64_v34  ;;  %v676_v39 = vsub.f32 %v31_v9, %v65_v35  ;;  %v87_v40 = vsel %vm34_vm0, %v77_v36, 0.0  ;;  %v93_v43 = vsel %vm34_vm0, %v79_v37, 0.0 }
  0x9c   :  { %91 = vadd.xlane.f32.xlu0 %v90_v33  ;;  %88 = vadd.xlane.f32.xlu1 %v87_v40  ;;  %v55_v41 = vpop.xlane.xlu0 %54  ;;  %v58_v42 = vpop.xlane.xlu1 %57 }
  0x9d   :  { %v66_v44 = vmul.f32 0.125, %v55_v41  ;;  %v67_v45 = vmul.f32 0.125, %v58_v42  ;;  %v80_v46 = vmul.f32 %v674_v38, %v674_v38  ;;  %v81_v47 = vmul.f32 %v676_v39, %v676_v39 }
  0x9f   :  { %v684_v48 = vsub.f32 %v32_v12, %v66_v44  ;;  %v686_v49 = vsub.f32 %v33_v13, %v67_v45  ;;  %v96_v50 = vsel %vm34_vm0, %v80_v46, 0.0  ;;  %v99_v51 = vsel %vm34_vm0, %v81_v47, 0.0 }
  0xa0   :  { %94 = vadd.xlane.f32.xlu1 %v93_v43  ;;  %97 = vadd.xlane.f32.xlu0 %v96_v50 }
  0xa1   :  { %v82_v52 = vmul.f32 %v684_v48, %v684_v48  ;;  %v83_v53 = vmul.f32 %v686_v49, %v686_v49 }
  0xa3   :  { %v102_v54 = vsel %vm34_vm0, %v82_v52, 0.0  ;;  %v105_v55 = vsel %vm34_vm0, %v83_v53, 0.0 }
  0xa4   :  { %100 = vadd.xlane.f32.xlu1 %v99_v51  ;;  %103 = vadd.xlane.f32.xlu0 %v102_v54 }
  0xa8   :  { %106 = vadd.xlane.f32.xlu1 %v105_v55 }
 0x125   :  { %v86_v58 = vpop.xlane.xlu0 %85 }
 0x126   :  { %v108_v59 = vmul.f32 0.125, %v86_v58 }
 0x128   :  { %v116_v60 = vadd.f32 1e-05, %v108_v59 }
 0x129   :  { %v89_v61 = vpop.xlane.xlu1 %88  ;;  %v92_v62 = vpop.xlane.xlu0 %91 }
 0x12a   :  { %554 = vrsqrt.f32 %v116_v60  ;;  %v109_v63 = vmul.f32 0.125, %v89_v61  ;;  %v110_v0 = vmul.f32 0.125, %v92_v62 }
 0x12c   :  { %v117_v1 = vadd.f32 1e-05, %v109_v63  ;;  %v118_v2 = vadd.f32 1e-05, %v110_v0 }
 0x12d   :  { %v95_v3 = vpop.xlane.xlu1 %94  ;;  %v98_v4 = vpop.xlane.xlu0 %97 }
 0x12e   :  { %556 = vrsqrt.f32 %v117_v1  ;;  %v111_v5 = vmul.f32 0.125, %v95_v3  ;;  %v112_v6 = vmul.f32 0.125, %v98_v4 }
 0x12f   :  { %558 = vrsqrt.f32 %v118_v2 }
 0x130   :  { %v119_v7 = vadd.f32 1e-05, %v111_v5  ;;  %v120_v8 = vadd.f32 1e-05, %v112_v6 }
 0x131   :  { %v101_v9 = vpop.xlane.xlu1 %100  ;;  %v104_v10 = vpop.xlane.xlu0 %103 }
 0x132   :  { %560 = vrsqrt.f32 %v119_v7  ;;  %v113_v11 = vmul.f32 0.125, %v101_v9  ;;  %v114_v12 = vmul.f32 0.125, %v104_v10 }
 0x133   :  { %562 = vrsqrt.f32 %v120_v8 }
 0x134   :  { %v555_v13 = vpop.eup %554  ;;  %v121_v14 = vadd.f32 1e-05, %v113_v11  ;;  %v122_v15 = vadd.f32 1e-05, %v114_v12 }
 0x135   :  { %v107_v16 = vpop.xlane.xlu1 %106  ;;  %v132_v17 = vmul.f32 %v555_v13, %v656_v20  ;;  %v488_v20 = vld [vmem:[%s866_s2] ss:$0 sm:$0xff] }
 0x136   :  { %564 = vrsqrt.f32 %v121_v14  ;;  %v115_v18 = vmul.f32 0.125, %v107_v16 }
 0x137   :  { %566 = vrsqrt.f32 %v122_v15  ;;  %v147_v26 = vmul.f32 %v487_v19, %v132_v17 }
 0x138   :  { %v557_v22 = vpop.eup %556  ;;  %v123_v23 = vadd.f32 1e-05, %v115_v18 }
 0x139   :  { %v559_v24 = vpop.eup %558  ;;  %v133_v25 = vmul.f32 %v557_v22, %v664_v28  ;;  %v162_v34 = vadd.f32 %v488_v20, %v147_v26 }
 0x13a   :  { %v134_v27 = vmul.f32 %v559_v24, %v658_v21  ;;  %568 = vrsqrt.f32 %v123_v23 }
 0x13b   :  { %v148_v30 = vmul.f32 %v487_v19, %v133_v25 }
 0x13c   :  { %v561_v31 = vpop.eup %560  ;;  %v149_v36 = vmul.f32 %v487_v19, %v134_v27 }
 0x13d   :  { %v563_v32 = vpop.eup %562  ;;  %v135_v33 = vmul.f32 %v561_v31, %v666_v29  ;;  %v163_v35 = vadd.f32 %v488_v20, %v148_v30 }
 0x13e   :  { %v136_v37 = vmul.f32 %v563_v32, %v674_v38  ;;  %v164_v21 = vadd.f32 %v488_v20, %v149_v36 }
 0x13f   :  { %v170_v40 = vpack.c.bf16 %v163_v35, %v162_v34  ;;  %v150_v28 = vmul.f32 %v487_v19, %v135_v33 }
 0x140   :  { %v565_v41 = vpop.eup %564  ;;  %v151_v45 = vmul.f32 %v487_v19, %v136_v37 }
 0x141   :  { %v567_v42 = vpop.eup %566  ;;  %517 = vmatprep.mubr.msk.bf16.mxu0 %vm34_vm0, %v170_v40  ;;  %v165_v43 = vadd.f32 %v488_v20, %v150_v28  ;;  %v137_v44 = vmul.f32 %v565_v41, %v676_v39 }
 0x142   :  { %v138_v46 = vmul.f32 %v567_v42, %v684_v48  ;;  %v166_v38 = vadd.f32 %v488_v20, %v151_v45  ;;  %v489_v48 = vld [vmem:[%s867_s4] ss:$0 sm:$0xff] }
 0x143   :  { %v171_v47 = vpack.c.bf16 %v165_v43, %v164_v21  ;;  %v152_v29 = vmul.f32 %v487_v19, %v137_v44 }
 0x144   :  { %v569_v50 = vpop.eup %568  ;;  %v153_v53 = vmul.f32 %v487_v19, %v138_v46 }
 0x145   :  { %v139_v51 = vmul.f32 %v569_v50, %v686_v49  ;;  %518 = vmatmul.mubr.msk.bf16.vlgmr.msra.gmra.mrb[0].mxu0 %vm34_vm0, %v171_v47  ;;  %v167_v52 = vadd.f32 %v488_v20, %v152_v29 }
 0x146   :  { %v168_v56 = vadd.f32 %v488_v20, %v153_v53 }
 0x147   :  { %v172_v54 = vpack.c.bf16 %v167_v52, %v166_v38  ;;  %v154_v55 = vmul.f32 %v487_v19, %v139_v51 }
 0x149   :  { %521 = vmatprep.mubr.msk.bf16.mxu1 %vm34_vm0, %v172_v54  ;;  %v169_v57 = vadd.f32 %v488_v20, %v154_v55 }
 0x14b   :  { %v173_v39 = vpack.c.bf16 %v169_v57, %v168_v56 }
 0x14d   :  { %522 = vmatmul.mubr.msk.bf16.vlgmr.msra.gmra.mrb[0].mxu1 %vm34_vm0, %v173_v39 }
 0x218   :  { %v519_v58 = vpop.f32.mrb[0].mxu0 }
 0x219   :  { %v241_v49 = vadd.f32 %v519_v58, %v489_v48  ;;  %v232_v59 = vpop.f32.mrb[1].mxu0 }
 0x21a   :  { %v233_v60 = vadd.f32 %v489_v48, %v232_v59  ;;  %v520_v61 = vpop.f32.mrb[2].mxu0 }
 0x21b   :  { %v504_v62 = vpack.c.bf16 %v241_v49, %v241_v49  ;;  %v244_v63 = vadd.f32 %v520_v61, %v489_v48  ;;  %v235_v0 = vpop.f32.mrb[3].mxu0 }
 0x21c   :  { %v502_v1 = vpack.c.bf16 %v233_v60, %v233_v60  ;;  %v236_v2 = vadd.f32 %v489_v48, %v235_v0 }
 0x21d   :  { %298 = vst.msk [vmem:[%s868_s5 + $0x8] sm:$0xf] %vm295_vm2, %v504_v62  ;;  %v534_v3 = vpack.i.bf16 %v244_v63, %v241_v49  ;;  %v505_v4 = vpack.c.bf16 %v244_v63, %v244_v63  ;;  %308 = vrot.lane.b32.xlu0 %v504_v62, %s570_s10 }
 0x21e   :  { %296 = vst.msk [vmem:[%s868_s5] sm:$0xf] %vm295_vm2, %v502_v1  ;;  %v503_v5 = vpack.c.bf16 %v236_v2, %v236_v2  ;;  %v544_v6 = vpack.i.bf16 %v236_v2, %v233_v60 }
 0x21f   :  { %299 = vst.msk [vmem:[%s868_s5 + $0xc] sm:$0xf] %vm295_vm2, %v505_v4  ;;  %535 = vrot.lane.b32.xlu1 %v534_v3, %s571_s14 }
 0x220   :  { %297 = vst.msk [vmem:[%s868_s5 + $0x4] sm:$0xf] %vm295_vm2, %v503_v5  ;;  %v523_v7 = vpop.f32.mrb[0].mxu1 }
 0x221   :  { %v257_v8 = vadd.f32 %v523_v7, %v489_v48  ;;  %v248_v9 = vpop.f32.mrb[1].mxu1 }
 0x222   :  { %v249_v10 = vadd.f32 %v489_v48, %v248_v9  ;;  %v524_v11 = vpop.f32.mrb[2].mxu1 }
 0x223   :  { %v508_v12 = vpack.c.bf16 %v257_v8, %v257_v8  ;;  %v260_v13 = vadd.f32 %v524_v11, %v489_v48  ;;  %v251_v14 = vpop.f32.mrb[3].mxu1 }
 0x224   :  { %v506_v15 = vpack.c.bf16 %v249_v10, %v249_v10  ;;  %v252_v16 = vadd.f32 %v489_v48, %v251_v14 }
 0x225   :  { %302 = vst.msk [vmem:[%s868_s5 + $0x18] sm:$0xf] %vm295_vm2, %v508_v12  ;;  %v539_v17 = vpack.i.bf16 %v260_v13, %v257_v8  ;;  %v509_v18 = vpack.c.bf16 %v260_v13, %v260_v13  ;;  %316 = vrot.lane.b32.xlu0 %v508_v12, %s570_s10 }
 0x226   :  { %300 = vst.msk [vmem:[%s868_s5 + $0x10] sm:$0xf] %vm295_vm2, %v506_v15  ;;  %v507_v19 = vpack.c.bf16 %v252_v16, %v252_v16  ;;  %v549_v22 = vpack.i.bf16 %v252_v16, %v249_v10 }
 0x227   :  { %303 = vst.msk [vmem:[%s868_s5 + $0x1c] sm:$0xf] %vm295_vm2, %v509_v18  ;;  %540 = vrot.lane.b32.xlu1 %v539_v17, %s571_s14 }
 0x228   :  { %301 = vst.msk [vmem:[%s868_s5 + $0x14] sm:$0xf] %vm295_vm2, %v507_v19 }
 0x229   :  { %340 = vrot.lane.b32.xlu0 %v504_v62, %s572_s0 }
 0x22b   :  { %550 = vrot.lane.b32.xlu1 %v549_v22, %s571_s14 }
 0x22d   :  { %348 = vrot.lane.b32.xlu0 %v508_v12, %s572_s0 }
 0x22f   :  { %310 = vrot.lane.b32.xlu1 %v505_v4, %s570_s10 }
 0x231   :  { %372 = vrot.lane.b32.xlu0 %v504_v62, %s573_s25 }
 0x233   :  { %318 = vrot.lane.b32.xlu1 %v509_v18, %s570_s10 }
 0x235   :  { %380 = vrot.lane.b32.xlu0 %v508_v12, %s573_s25 }
 0x237   :  { %342 = vrot.lane.b32.xlu1 %v505_v4, %s572_s0 }
 0x239   :  { %545 = vrot.lane.b32.xlu0 %v544_v6, %s571_s14 }
 0x23b   :  { %350 = vrot.lane.b32.xlu1 %v509_v18, %s572_s0 }
 0x23d   :  { %304 = vrot.lane.b32.xlu0 %v502_v1, %s570_s10 }
 0x23f   :  { %374 = vrot.lane.b32.xlu1 %v505_v4, %s573_s25 }
 0x241   :  { %312 = vrot.lane.b32.xlu0 %v506_v15, %s570_s10 }
 0x243   :  { %306 = vrot.lane.b32.xlu1 %v503_v5, %s570_s10 }
 0x245   :  { %336 = vrot.lane.b32.xlu0 %v502_v1, %s572_s0 }
 0x247   :  { %314 = vrot.lane.b32.xlu1 %v507_v19, %s570_s10 }
 0x249   :  { %344 = vrot.lane.b32.xlu0 %v506_v15, %s572_s0 }
 0x24b   :  { %338 = vrot.lane.b32.xlu1 %v503_v5, %s572_s0 }
 0x24d   :  { %368 = vrot.lane.b32.xlu0 %v502_v1, %s573_s25 }
 0x24f   :  { %346 = vrot.lane.b32.xlu1 %v507_v19, %s572_s0 }
 0x251   :  { %376 = vrot.lane.b32.xlu0 %v506_v15, %s573_s25 }
 0x253   :  { %370 = vrot.lane.b32.xlu1 %v503_v5, %s573_s25 }
 0x257   :  { %378 = vrot.lane.b32.xlu1 %v507_v19, %s573_s25 }
 0x25b   :  { %382 = vrot.lane.b32.xlu1 %v509_v18, %s573_s25 }
 0x28f   :  { %v309_v23 = vpop.permute.xlu0 %308 }
 0x290   :  { %330 = vst.msk [vmem:[%s869_s6 + $0x8] sm:$0xf] %vm295_vm2, %v309_v23 }
 0x291   :  { %v536_v24 = vpop.permute.xlu1 %535 }
 0x292   :  { %v537_v43 = vunpack.i.l.bf16 %v536_v24  ;;  %v538_v46 = vunpack.i.h.bf16 %v536_v24 }
 0x297   :  { %v317_v25 = vpop.permute.xlu0 %316 }
 0x298   :  { %334 = vst.msk [vmem:[%s869_s6 + $0x18] sm:$0xf] %vm295_vm2, %v317_v25 }
 0x299   :  { %v541_v26 = vpop.permute.xlu1 %540 }
 0x29a   :  { %v542_v55 = vunpack.i.l.bf16 %v541_v26  ;;  %v543_v57 = vunpack.i.h.bf16 %v541_v26 }
 0x29b   :  { %v341_v27 = vpop.permute.xlu0 %340 }
 0x29c   :  { %362 = vst.msk [vmem:[%s870_s7 + $0x8] sm:$0xf] %vm295_vm2, %v341_v27 }
 0x29d   :  { %v551_v20 = vpop.permute.xlu1 %550 }
 0x29e   :  { %v552_v50 = vunpack.i.l.bf16 %v551_v20  ;;  %v553_v52 = vunpack.i.h.bf16 %v551_v20 }
 0x29f   :  { %v349_v30 = vpop.permute.xlu0 %348 }
 0x2a0   :  { %366 = vst.msk [vmem:[%s870_s7 + $0x18] sm:$0xf] %vm295_vm2, %v349_v30 }
 0x2a1   :  { %v311_v31 = vpop.permute.xlu1 %310 }
 0x2a2   :  { %331 = vst.msk [vmem:[%s869_s6 + $0xc] sm:$0xf] %vm295_vm2, %v311_v31 }
 0x2a3   :  { %v373_v32 = vpop.permute.xlu0 %372 }
 0x2a4   :  { %394 = vst.msk [vmem:[%s871_s8 + $0x8] sm:$0xf] %vm295_vm2, %v373_v32 }
 0x2a5   :  { %v319_v33 = vpop.permute.xlu1 %318 }
 0x2a6   :  { %335 = vst.msk [vmem:[%s869_s6 + $0x1c] sm:$0xf] %vm295_vm2, %v319_v33 }
 0x2a7   :  { %v381_v34 = vpop.permute.xlu0 %380 }
 0x2a8   :  { %398 = vst.msk [vmem:[%s871_s8 + $0x18] sm:$0xf] %vm295_vm2, %v381_v34 }
 0x2a9   :  { %v343_v35 = vpop.permute.xlu1 %342 }
 0x2aa   :  { %363 = vst.msk [vmem:[%s870_s7 + $0xc] sm:$0xf] %vm295_vm2, %v343_v35 }
 0x2ab   :  { %v546_v36 = vpop.permute.xlu0 %545 }
 0x2ac   :  { %v547_v37 = vunpack.i.l.bf16 %v546_v36  ;;  %v548_v41 = vunpack.i.h.bf16 %v546_v36 }
 0x2ad   :  { %v351_v40 = vpop.permute.xlu1 %350 }
 0x2ae   :  { %367 = vst.msk [vmem:[%s870_s7 + $0x1c] sm:$0xf] %vm295_vm2, %v351_v40  ;;  %432 = vxpose.xlu0.b32.start [1/8] (short) (narrow) %v547_v37, 8 }
 0x2af   :  { %v305_v28 = vpop.permute.xlu0 %304 }
 0x2b0   :  { %328 = vst.msk [vmem:[%s869_s6] sm:$0xf] %vm295_vm2, %v305_v28 }
 0x2b1   :  { %v375_v42 = vpop.permute.xlu1 %374 }
 0x2b2   :  { %395 = vst.msk [vmem:[%s871_s8 + $0xc] sm:$0xf] %vm295_vm2, %v375_v42  ;;  %433 = vxpose.xlu0.b32.cont [2/8] (short) (narrow) %v548_v41, 8 }
 0x2b3   :  { %v313_v21 = vpop.permute.xlu0 %312 }
 0x2b4   :  { %332 = vst.msk [vmem:[%s869_s6 + $0x10] sm:$0xf] %vm295_vm2, %v313_v21 }
 0x2b5   :  { %v307_v44 = vpop.permute.xlu1 %306 }
 0x2b6   :  { %329 = vst.msk [vmem:[%s869_s6 + $0x4] sm:$0xf] %vm295_vm2, %v307_v44  ;;  %434 = vxpose.xlu0.b32.cont [3/8] (short) (narrow) %v537_v43, 8 }
 0x2b7   :  { %v337_v45 = vpop.permute.xlu0 %336 }
 0x2b8   :  { %360 = vst.msk [vmem:[%s870_s7] sm:$0xf] %vm295_vm2, %v337_v45 }
 0x2b9   :  { %v315_v47 = vpop.permute.xlu1 %314 }
 0x2ba   :  { %333 = vst.msk [vmem:[%s869_s6 + $0x14] sm:$0xf] %vm295_vm2, %v315_v47  ;;  %435 = vxpose.xlu0.b32.cont [4/8] (short) (narrow) %v538_v46, 8 }
 0x2bb   :  { %v345_v29 = vpop.permute.xlu0 %344 }
 0x2bc   :  { %364 = vst.msk [vmem:[%s870_s7 + $0x10] sm:$0xf] %vm295_vm2, %v345_v29 }
 0x2bd   :  { %v339_v51 = vpop.permute.xlu1 %338 }
 0x2be   :  { %361 = vst.msk [vmem:[%s870_s7 + $0x4] sm:$0xf] %vm295_vm2, %v339_v51  ;;  %436 = vxpose.xlu0.b32.cont [5/8] (short) (narrow) %v552_v50, 8 }
 0x2bf   :  { %v369_v38 = vpop.permute.xlu0 %368 }
 0x2c0   :  { %392 = vst.msk [vmem:[%s871_s8] sm:$0xf] %vm295_vm2, %v369_v38 }
 0x2c1   :  { %v347_v53 = vpop.permute.xlu1 %346 }
 0x2c2   :  { %365 = vst.msk [vmem:[%s870_s7 + $0x14] sm:$0xf] %vm295_vm2, %v347_v53  ;;  %437 = vxpose.xlu0.b32.cont [6/8] (short) (narrow) %v553_v52, 8 }
 0x2c3   :  { %v377_v54 = vpop.permute.xlu0 %376 }
 0x2c4   :  { %396 = vst.msk [vmem:[%s871_s8 + $0x10] sm:$0xf] %vm295_vm2, %v377_v54 }
 0x2c5   :  { %v371_v56 = vpop.permute.xlu1 %370 }
 0x2c6   :  { %393 = vst.msk [vmem:[%s871_s8 + $0x4] sm:$0xf] %vm295_vm2, %v371_v56  ;;  %438 = vxpose.xlu0.b32.cont [7/8] (short) (narrow) %v542_v55, 8 }
 0x2c9   :  { %v379_v39 = vpop.permute.xlu1 %378 }
 0x2ca   :  { %397 = vst.msk [vmem:[%s871_s8 + $0x14] sm:$0xf] %vm295_vm2, %v379_v39  ;;  %439 = vxpose.xlu0.b32.end [8/8] (short) (narrow) %v543_v57, 8 }
 0x2cd   :  { %v383_v48 = vpop.permute.xlu1 %382 }
 0x2ce   :  { %399 = vst.msk [vmem:[%s871_s8 + $0x1c] sm:$0xf] %vm295_vm2, %v383_v48 }
 0x32e   :  { %v448_v58 = vpop.trf.xlu0 }
 0x32f   :  { %v464_v49 = vpack.c.bf16 %v448_v58, %v448_v58 }
 0x331   :  { %466 = vst.msk [vmem:[%s872_s9] sm:$0x1] %vm465_vm3, %v464_v49 }

// kernel: evoformer_stack.58
= control target key start
LH: loop header
LB: loop body
LE: loop exit
PB: predicated region body
PF: predicated region fallthrough
CT: control target
= control target key end

     0   :  { %vm128_vm0 = vcmask 130048   ;;  %vm222_vm1 = vcmask 64512   ;;  %s457_s1 = inlined_call_operand.vmem [shape: bf16[16,8], index: 1, kind: input, shape index: {}]   ;;  %s458_s3 = inlined_call_operand.vmem [shape: bf16[64,16], index: 3, kind: input, shape index: {}]   ;;  %s459_s0 = inlined_call_operand.vmem [shape: bf16[64,16], index: 0, kind: input, shape index: {}]   ;;  %s460_s2 = inlined_call_operand.vmem [shape: f32[1,8], index: 2, kind: input, shape index: {}]   ;;  %s461_s4 = inlined_call_operand.vmem [shape: f32[64,8], index: 4, kind: input, shape index: {}]   ;;  %s462_s5 = inlined_call_operand.vmem [shape: f32[64,8], index: 5, kind: output, shape index: {}]  }
   0x1   :  { %v304_v0 = vld [vmem:[%s457_s1] sm:$0xff]   ;;  %v285_v4 = vld [vmem:[%s458_s3 + $0x10] sm:$0xff]   ;;  %v284_v5 = vld [vmem:[%s458_s3 + $0x8] sm:$0xff]  }
   0x2   :  { %v266_v1 = vld [vmem:[%s458_s3] sm:$0xff]   ;;  %292 = vmatprep.subr.bf16.mxu0 %v304_v0  ;;  %302 = vmatprep.subr.bf16.mxu1 %v304_v0  ;;  %v275_v6 = vunpack.c.l.bf16 %v285_v4  ;;  %v276_v7 = vunpack.c.h.bf16 %v285_v4  ;;  %v286_v8 = vld [vmem:[%s458_s3 + $0x18] sm:$0xff]   ;;  %v271_v13 = vunpack.c.l.bf16 %v284_v5  ;;  %v272_v14 = vunpack.c.h.bf16 %v284_v5  ;;  %v282_v38 = vld [vmem:[%s459_s0 + $0x10] sm:$0xff]  }
   0x3   :  { %v267_v2 = vunpack.c.l.bf16 %v266_v1  ;;  %v268_v3 = vunpack.c.h.bf16 %v266_v1  ;;  %293 = vmatpush3.bf16.msra.mxu0 %v304_v0  ;;  %303 = vmatpush3.bf16.msra.mxu1 %v304_v0  ;;  %v279_v15 = vunpack.c.l.bf16 %v286_v8  ;;  %v280_v18 = vunpack.c.h.bf16 %v286_v8  ;;  %v250_v35 = vld [vmem:[%s459_s0] sm:$0xff]   ;;  %v281_v41 = vld [vmem:[%s459_s0 + $0x8] sm:$0xff]   ;;  %v283_v45 = vld [vmem:[%s459_s0 + $0x18] sm:$0xff]  }
   0x4   :  { %v239_v11 = vmul.f32 -1.442695, %v275_v6  ;;  %v240_v12 = vmul.f32 -1.442695, %v276_v7  ;;  %v237_v16 = vmul.f32 -1.442695, %v271_v13  ;;  %v251_v39 = vunpack.c.l.bf16 %v250_v35 }
   0x5   :  { %v235_v9 = vmul.f32 -1.442695, %v267_v2  ;;  %v236_v10 = vmul.f32 -1.442695, %v268_v3  ;;  %v238_v17 = vmul.f32 -1.442695, %v272_v14  ;;  %v252_v40 = vunpack.c.h.bf16 %v250_v35 }
   0x6   :  { %v241_v19 = vmul.f32 -1.442695, %v279_v15  ;;  %v242_v20 = vmul.f32 -1.442695, %v280_v18  ;;  %v259_v42 = vunpack.c.l.bf16 %v282_v38  ;;  %v260_v44 = vunpack.c.h.bf16 %v282_v38  ;;  %v243_v5 = vld [vmem:[%s460_s2] ss:$0 sm:$0xff] }
   0x7   :  { %305 = vpow2.f32 %v235_v9  ;;  %v255_v48 = vunpack.c.l.bf16 %v281_v41  ;;  %v256_v51 = vunpack.c.h.bf16 %v281_v41  ;;  %v263_v54 = vunpack.c.l.bf16 %v283_v45  ;;  %v208_v7 = vld [vmem:[%s461_s4 + $0x10] sm:$0xff]  ;;  %v209_v15 = vld [vmem:[%s461_s4 + $0x18] sm:$0xff] }
   0x8   :  { %307 = vpow2.f32 %v236_v10  ;;  %v264_v58 = vunpack.c.h.bf16 %v283_v45  ;;  %v206_v10 = vld [vmem:[%s461_s4] sm:$0xff] }
   0x9   :  { %309 = vpow2.f32 %v239_v11 }
   0xa   :  { %311 = vpow2.f32 %v240_v12  ;;  %v212_v12 = vld [vmem:[%s461_s4 + $0x30] sm:$0xff] }
   0xb   :  { %313 = vpow2.f32 %v237_v16 }
   0xc   :  { %315 = vpow2.f32 %v238_v17 }
   0xd   :  { %317 = vpow2.f32 %v241_v19  ;;  %v210_v19 = vld [vmem:[%s461_s4 + $0x20] sm:$0xff] }
   0xe   :  { %319 = vpow2.f32 %v242_v20 }
  0x11   :  { %v306_v21 = vpop.eup %305 }
  0x12   :  { %v308_v22 = vpop.eup %307  ;;  %v77_v23 = vadd.f32 1.0, %v306_v21 }
  0x13   :  { %v310_v24 = vpop.eup %309  ;;  %v78_v25 = vadd.f32 1.0, %v308_v22  ;;  %v207_v22 = vld [vmem:[%s461_s4 + $0x8] sm:$0xff] }
  0x14   :  { %v312_v26 = vpop.eup %311  ;;  %321 = vrcp.f32 %v77_v23  ;;  %v81_v27 = vadd.f32 1.0, %v310_v24 }
  0x15   :  { %v314_v28 = vpop.eup %313  ;;  %323 = vrcp.f32 %v78_v25  ;;  %v82_v29 = vadd.f32 1.0, %v312_v26  ;;  %v213_v26 = vld [vmem:[%s461_s4 + $0x38] sm:$0xff] }
  0x16   :  { %v316_v30 = vpop.eup %315  ;;  %325 = vrcp.f32 %v81_v27  ;;  %v79_v31 = vadd.f32 1.0, %v314_v28 }
  0x17   :  { %v318_v32 = vpop.eup %317  ;;  %327 = vrcp.f32 %v82_v29  ;;  %v80_v33 = vadd.f32 1.0, %v316_v30 }
  0x18   :  { %v320_v34 = vpop.eup %319  ;;  %329 = vrcp.f32 %v79_v31  ;;  %v83_v36 = vadd.f32 1.0, %v318_v32  ;;  %v211_v32 = vld [vmem:[%s461_s4 + $0x28] sm:$0xff] }
  0x19   :  { %331 = vrcp.f32 %v80_v33  ;;  %v84_v37 = vadd.f32 1.0, %v320_v34 }
  0x1a   :  { %333 = vrcp.f32 %v83_v36 }
  0x1b   :  { %335 = vrcp.f32 %v84_v37 }
  0x1e   :  { %v322_v43 = vpop.eup %321 }
  0x1f   :  { %v324_v46 = vpop.eup %323  ;;  %v101_v47 = vmul.f32 %v322_v43, %v251_v39 }
  0x20   :  { %v326_v49 = vpop.eup %325  ;;  %v102_v50 = vmul.f32 %v324_v46, %v252_v40 }
  0x21   :  { %v328_v52 = vpop.eup %327  ;;  %v105_v53 = vmul.f32 %v326_v49, %v259_v42 }
  0x22   :  { %v330_v55 = vpop.eup %329  ;;  %v109_v56 = vpack.c.bf16 %v102_v50, %v101_v47  ;;  %v106_v57 = vmul.f32 %v328_v52, %v260_v44 }
  0x23   :  { %v332_v59 = vpop.eup %331  ;;  %v103_v60 = vmul.f32 %v330_v55, %v255_v48 }
  0x24   :  { %v334_v61 = vpop.eup %333  ;;  %294 = vmatprep.mubr.msk.bf16.mxu0 %vm128_vm0, %v109_v56  ;;  %v111_v62 = vpack.c.bf16 %v106_v57, %v105_v53  ;;  %v104_v63 = vmul.f32 %v332_v59, %v256_v51 }
  0x25   :  { %v336_v0 = vpop.eup %335  ;;  %v107_v1 = vmul.f32 %v334_v61, %v263_v54 }
  0x26   :  { %298 = vmatprep.mubr.msk.bf16.mxu1 %vm128_vm0, %v111_v62  ;;  %v110_v2 = vpack.c.bf16 %v104_v63, %v103_v60  ;;  %v108_v3 = vmul.f32 %v336_v0, %v264_v58 }
  0x28   :  { %295 = vmatmul.mubr.msk.bf16.vlgmr.msra.gmra.mrb[0].mxu0 %vm128_vm0, %v110_v2  ;;  %v112_v4 = vpack.c.bf16 %v108_v3, %v107_v1 }
  0x2a   :  { %299 = vmatmul.mubr.msk.bf16.vlgmr.msra.gmra.mrb[0].mxu1 %vm128_vm0, %v112_v4 }
  0xfb   :  { %v296_v6 = vpop.f32.mrb[0].mxu0 }
  0xfc   :  { %v184_v8 = vadd.f32 %v296_v6, %v243_v5  ;;  %v175_v9 = vpop.f32.mrb[1].mxu0 }
  0xfd   :  { %v300_v11 = vpop.f32.mrb[0].mxu1  ;;  %v176_v13 = vadd.f32 %v243_v5, %v175_v9  ;;  %v297_v14 = vpop.f32.mrb[2].mxu0 }
  0xfe   :  { %v216_v16 = vadd.f32 %v208_v7, %v184_v8  ;;  %v200_v17 = vadd.f32 %v300_v11, %v243_v5  ;;  %v191_v18 = vpop.f32.mrb[1].mxu1  ;;  %v187_v20 = vadd.f32 %v297_v14, %v243_v5  ;;  %v178_v21 = vpop.f32.mrb[3].mxu0 }
  0xff   :  { %v214_v23 = vadd.f32 %v206_v10, %v176_v13  ;;  %v192_v24 = vadd.f32 %v243_v5, %v191_v18  ;;  %v301_v25 = vpop.f32.mrb[2].mxu1  ;;  %v179_v27 = vadd.f32 %v243_v5, %v178_v21 }
 0x100   :  { %225 = vst.msk [vmem:[%s462_s5 + $0x10] sm:$0xff] %vm222_vm1, %v216_v16  ;;  %v220_v28 = vadd.f32 %v212_v12, %v200_v17  ;;  %v217_v29 = vadd.f32 %v209_v15, %v187_v20  ;;  %v203_v30 = vadd.f32 %v301_v25, %v243_v5  ;;  %v194_v31 = vpop.f32.mrb[3].mxu1 }
 0x101   :  { %223 = vst.msk [vmem:[%s462_s5] sm:$0xff] %vm222_vm1, %v214_v23  ;;  %v218_v33 = vadd.f32 %v210_v19, %v192_v24  ;;  %v215_v34 = vadd.f32 %v207_v22, %v179_v27  ;;  %v195_v35 = vadd.f32 %v243_v5, %v194_v31 }
 0x102   :  { %229 = vst.msk [vmem:[%s462_s5 + $0x30] sm:$0xff] %vm222_vm1, %v220_v28  ;;  %226 = vst.msk [vmem:[%s462_s5 + $0x18] sm:$0xff] %vm222_vm1, %v217_v29  ;;  %v221_v36 = vadd.f32 %v213_v26, %v203_v30 }
 0x103   :  { %227 = vst.msk [vmem:[%s462_s5 + $0x20] sm:$0xff] %vm222_vm1, %v218_v33  ;;  %224 = vst.msk [vmem:[%s462_s5 + $0x8] sm:$0xff] %vm222_vm1, %v215_v34  ;;  %v219_v37 = vadd.f32 %v211_v32, %v195_v35 }
 0x104   :  { %230 = vst.msk [vmem:[%s462_s5 + $0x38] sm:$0xff] %vm222_vm1, %v221_v36 }
 0x105   :  { %228 = vst.msk [vmem:[%s462_s5 + $0x28] sm:$0xff] %vm222_vm1, %v219_v37 }

// kernel: evoformer_stack.62
= control target key start
LH: loop header
LB: loop body
LE: loop exit
PB: predicated region body
PF: predicated region fallthrough
CT: control target
= control target key end

     0   :  { %vm38_vm0 = vcmask 64512   ;;  %vm198_vm1 = vcmask 1043456   ;;  %vm294_vm2 = vcmask 130048   ;;  %s760_s0 = inlined_call_operand.vmem [shape: f32[64,8], index: 0, kind: input, shape index: {}]   ;;  %s761_s3 = inlined_call_operand.vmem [shape: bf16[8,16], index: 3, kind: input, shape index: {}]   ;;  %s762_s1 = inlined_call_operand.vmem [shape: f32[1,8], index: 1, kind: input, shape index: {}]   ;;  %s763_s2 = inlined_call_operand.vmem [shape: f32[1,8], index: 2, kind: input, shape index: {}]   ;;  %s764_s5 = inlined_call_operand.vmem [shape: bf16[16,8], index: 5, kind: input, shape index: {}]   ;;  %s765_s7 = inlined_call_operand.vmem [shape: f32[64,1], index: 7, kind: input, shape index: {}]   ;;  %s766_s4 = inlined_call_operand.vmem [shape: f32[1,16], index: 4, kind: input, shape index: {}]   ;;  %s767_s6 = inlined_call_operand.vmem [shape: f32[1,8], index: 6, kind: input, shape index: {}]   ;;  %s768_s8 = inlined_call_operand.vmem [shape: f32[64,8], index: 8, kind: output, shape index: {}]  }
   0x1   :  { %v561_v0 = vld [vmem:[%s760_s0] sm:$0xff]  ;;  %v566_v1 = vld [vmem:[%s760_s0 + $0x10] sm:$0xff]  ;;  %v571_v2 = vld [vmem:[%s760_s0 + $0x8] sm:$0xff] }
   0x2   :  { %v39_v3 = vsel %vm38_vm0, %v561_v0, 0.0  ;;  %v45_v4 = vsel %vm38_vm0, %v566_v1, 0.0  ;;  %v580_v5 = vld [vmem:[%s760_s0 + $0x18] sm:$0xff]  ;;  %v42_v6 = vsel %vm38_vm0, %v571_v2, 0.0  ;;  %v589_v8 = vld [vmem:[%s760_s0 + $0x20] sm:$0xff]  ;;  %v594_v9 = vld [vmem:[%s760_s0 + $0x28] sm:$0xff] }
   0x3   :  { %40 = vadd.xlane.f32.xlu0 %v39_v3  ;;  %46 = vadd.xlane.f32.xlu1 %v45_v4  ;;  %v48_v7 = vsel %vm38_vm0, %v580_v5, 0.0  ;;  %v51_v10 = vsel %vm38_vm0, %v589_v8, 0.0  ;;  %v54_v11 = vsel %vm38_vm0, %v594_v9, 0.0  ;;  %v603_v12 = vld [vmem:[%s760_s0 + $0x30] sm:$0xff]  ;;  %v608_v13 = vld [vmem:[%s760_s0 + $0x38] sm:$0xff] }
   0x4   :  { %v57_v14 = vsel %vm38_vm0, %v603_v12, 0.0  ;;  %v60_v15 = vsel %vm38_vm0, %v608_v13, 0.0  ;;  %v178_v56 = vld [vmem:[%s761_s3] sm:$0xf] }
   0x5   :  { %491 = vmatprep.subr.msk.bf16.mxu0 %vm198_vm1, %v178_v56  ;;  %v200_v57 = vsel %vm198_vm1, %v178_v56, 0 }
   0x6   :  { %472 = vmatpush3.bf16.msra.mxu0 %v200_v57 }
   0x7   :  { %43 = vadd.xlane.f32.xlu0 %v42_v6  ;;  %49 = vadd.xlane.f32.xlu1 %v48_v7 }
   0xb   :  { %52 = vadd.xlane.f32.xlu0 %v51_v10  ;;  %55 = vadd.xlane.f32.xlu1 %v54_v11 }
   0xf   :  { %58 = vadd.xlane.f32.xlu0 %v57_v14  ;;  %61 = vadd.xlane.f32.xlu1 %v60_v15 }
  0x90   :  { %v41_v16 = vpop.xlane.xlu0 %40  ;;  %v47_v17 = vpop.xlane.xlu1 %46 }
  0x91   :  { %v64_v18 = vmul.f32 0.125, %v41_v16  ;;  %v66_v19 = vmul.f32 0.125, %v47_v17 }
  0x93   :  { %v615_v20 = vsub.f32 %v561_v0, %v64_v18  ;;  %v618_v21 = vsub.f32 %v566_v1, %v66_v19 }
  0x94   :  { %v44_v22 = vpop.xlane.xlu0 %43  ;;  %v50_v23 = vpop.xlane.xlu1 %49 }
  0x95   :  { %v65_v24 = vmul.f32 0.125, %v44_v22  ;;  %v67_v25 = vmul.f32 0.125, %v50_v23  ;;  %v80_v26 = vmul.f32 %v615_v20, %v615_v20  ;;  %v82_v27 = vmul.f32 %v618_v21, %v618_v21 }
  0x97   :  { %v625_v28 = vsub.f32 %v571_v2, %v65_v24  ;;  %v628_v29 = vsub.f32 %v580_v5, %v67_v25  ;;  %v88_v30 = vsel %vm38_vm0, %v80_v26, 0.0  ;;  %v94_v33 = vsel %vm38_vm0, %v82_v27, 0.0 }
  0x98   :  { %89 = vadd.xlane.f32.xlu0 %v88_v30  ;;  %v53_v31 = vpop.xlane.xlu0 %52  ;;  %v56_v32 = vpop.xlane.xlu1 %55 }
  0x99   :  { %v68_v34 = vmul.f32 0.125, %v53_v31  ;;  %v69_v35 = vmul.f32 0.125, %v56_v32  ;;  %v81_v36 = vmul.f32 %v625_v28, %v625_v28  ;;  %v83_v37 = vmul.f32 %v628_v29, %v628_v29  ;;  %v448_v31 = vld [vmem:[%s762_s1] ss:$0 sm:$0xff] }
  0x9b   :  { %v637_v38 = vsub.f32 %v589_v8, %v68_v34  ;;  %v640_v39 = vsub.f32 %v594_v9, %v69_v35  ;;  %v91_v40 = vsel %vm38_vm0, %v81_v36, 0.0  ;;  %v97_v43 = vsel %vm38_vm0, %v83_v37, 0.0 }
  0x9c   :  { %95 = vadd.xlane.f32.xlu0 %v94_v33  ;;  %92 = vadd.xlane.f32.xlu1 %v91_v40  ;;  %v59_v41 = vpop.xlane.xlu0 %58  ;;  %v62_v42 = vpop.xlane.xlu1 %61 }
  0x9d   :  { %v70_v44 = vmul.f32 0.125, %v59_v41  ;;  %v71_v45 = vmul.f32 0.125, %v62_v42  ;;  %v84_v46 = vmul.f32 %v637_v38, %v637_v38  ;;  %v85_v47 = vmul.f32 %v640_v39, %v640_v39 }
  0x9f   :  { %v649_v48 = vsub.f32 %v603_v12, %v70_v44  ;;  %v652_v49 = vsub.f32 %v608_v13, %v71_v45  ;;  %v100_v50 = vsel %vm38_vm0, %v84_v46, 0.0  ;;  %v103_v51 = vsel %vm38_vm0, %v85_v47, 0.0 }
  0xa0   :  { %98 = vadd.xlane.f32.xlu1 %v97_v43  ;;  %101 = vadd.xlane.f32.xlu0 %v100_v50 }
  0xa1   :  { %v86_v52 = vmul.f32 %v649_v48, %v649_v48  ;;  %v87_v53 = vmul.f32 %v652_v49, %v652_v49 }
  0xa3   :  { %v106_v54 = vsel %vm38_vm0, %v86_v52, 0.0  ;;  %v109_v55 = vsel %vm38_vm0, %v87_v53, 0.0 }
  0xa4   :  { %104 = vadd.xlane.f32.xlu1 %v103_v51  ;;  %107 = vadd.xlane.f32.xlu0 %v106_v54 }
  0xa8   :  { %110 = vadd.xlane.f32.xlu1 %v109_v55 }
 0x125   :  { %v90_v58 = vpop.xlane.xlu0 %89 }
 0x126   :  { %v112_v59 = vmul.f32 0.125, %v90_v58 }
 0x128   :  { %v120_v60 = vadd.f32 1e-05, %v112_v59 }
 0x129   :  { %v93_v61 = vpop.xlane.xlu1 %92  ;;  %v96_v62 = vpop.xlane.xlu0 %95 }
 0x12a   :  { %496 = vrsqrt.f32 %v120_v60  ;;  %v113_v63 = vmul.f32 0.125, %v93_v61  ;;  %v114_v3 = vmul.f32 0.125, %v96_v62 }
 0x12c   :  { %v121_v4 = vadd.f32 1e-05, %v113_v63  ;;  %v122_v6 = vadd.f32 1e-05, %v114_v3 }
 0x12d   :  { %v99_v7 = vpop.xlane.xlu1 %98  ;;  %v102_v10 = vpop.xlane.xlu0 %101 }
 0x12e   :  { %498 = vrsqrt.f32 %v121_v4  ;;  %v115_v11 = vmul.f32 0.125, %v99_v7  ;;  %v116_v14 = vmul.f32 0.125, %v102_v10  ;;  %v374_v7 = vld [vmem:[%s765_s7 + $0x10] sm:$0xff]  ;;  %v372_v10 = vld [vmem:[%s765_s7] sm:$0xff] }
 0x12f   :  { %500 = vrsqrt.f32 %v122_v6  ;;  %v373_v6 = vld [vmem:[%s765_s7 + $0x8] sm:$0xff] }
 0x130   :  { %v123_v15 = vadd.f32 1e-05, %v115_v11  ;;  %v124_v16 = vadd.f32 1e-05, %v116_v14  ;;  %v375_v11 = vld [vmem:[%s765_s7 + $0x18] sm:$0xff]  ;;  %v376_v14 = vld [vmem:[%s765_s7 + $0x20] sm:$0xff] }
 0x131   :  { %v105_v17 = vpop.xlane.xlu1 %104  ;;  %v108_v18 = vpop.xlane.xlu0 %107 }
 0x132   :  { %502 = vrsqrt.f32 %v123_v15  ;;  %v117_v19 = vmul.f32 0.125, %v105_v17  ;;  %v118_v22 = vmul.f32 0.125, %v108_v18  ;;  %v377_v15 = vld [vmem:[%s765_s7 + $0x28] sm:$0xff]  ;;  %v379_v17 = vld [vmem:[%s765_s7 + $0x38] sm:$0xff]  ;;  %v450_v18 = vld [vmem:[%s766_s4] ss:$0 sm:$0xff] }
 0x133   :  { %504 = vrsqrt.f32 %v124_v16  ;;  %v378_v16 = vld [vmem:[%s765_s7 + $0x30] sm:$0xff] }
 0x134   :  { %v497_v23 = vpop.eup %496  ;;  %v125_v24 = vadd.f32 1e-05, %v117_v19  ;;  %v126_v25 = vadd.f32 1e-05, %v118_v22 }
 0x135   :  { %v111_v26 = vpop.xlane.xlu1 %110  ;;  %v136_v27 = vmul.f32 %v497_v23, %v615_v20  ;;  %v449_v20 = vld [vmem:[%s763_s2] ss:$0 sm:$0xff] }
 0x136   :  { %506 = vrsqrt.f32 %v125_v24  ;;  %v119_v30 = vmul.f32 0.125, %v111_v26 }
 0x137   :  { %508 = vrsqrt.f32 %v126_v25  ;;  %v151_v36 = vmul.f32 %v448_v31, %v136_v27 }
 0x138   :  { %v499_v32 = vpop.eup %498  ;;  %v127_v33 = vadd.f32 1e-05, %v119_v30 }
 0x139   :  { %v501_v34 = vpop.eup %500  ;;  %v137_v35 = vmul.f32 %v499_v32, %v625_v28  ;;  %v166_v44 = vadd.f32 %v449_v20, %v151_v36 }
 0x13a   :  { %v138_v37 = vmul.f32 %v501_v34, %v618_v21  ;;  %510 = vrsqrt.f32 %v127_v33 }
 0x13b   :  { %v152_v40 = vmul.f32 %v448_v31, %v137_v35 }
 0x13c   :  { %v503_v41 = vpop.eup %502  ;;  %v153_v46 = vmul.f32 %v448_v31, %v138_v37 }
 0x13d   :  { %v505_v42 = vpop.eup %504  ;;  %v139_v43 = vmul.f32 %v503_v41, %v628_v29  ;;  %v167_v45 = vadd.f32 %v449_v20, %v152_v40 }
 0x13e   :  { %v140_v47 = vmul.f32 %v505_v42, %v637_v38  ;;  %v168_v53 = vadd.f32 %v449_v20, %v153_v46 }
 0x13f   :  { %v174_v50 = vpack.c.bf16 %v167_v45, %v166_v44  ;;  %v154_v28 = vmul.f32 %v448_v31, %v139_v43 }
 0x140   :  { %v507_v51 = vpop.eup %506  ;;  %v155_v55 = vmul.f32 %v448_v31, %v140_v47 }
 0x141   :  { %v509_v52 = vpop.eup %508  ;;  %v141_v21 = vmul.f32 %v507_v51, %v640_v39  ;;  %473 = vmatprep.mubr.msk.bf16.mxu0 %vm38_vm0, %v174_v50  ;;  %v169_v54 = vadd.f32 %v449_v20, %v154_v28 }
 0x142   :  { %v142_v56 = vmul.f32 %v509_v52, %v649_v48  ;;  %v170_v38 = vadd.f32 %v449_v20, %v155_v55  ;;  %v495_v48 = vld [vmem:[%s764_s5] sm:$0xff]  }
 0x143   :  { %v175_v57 = vpack.c.bf16 %v169_v54, %v168_v53  ;;  %v156_v29 = vmul.f32 %v448_v31, %v141_v21  ;;  %481 = vmatprep.subr.bf16.mxu1 %v495_v48 }
 0x144   :  { %v511_v58 = vpop.eup %510  ;;  %v157_v61 = vmul.f32 %v448_v31, %v142_v56  ;;  %482 = vmatpush3.bf16.msra.mxu1 %v495_v48  ;;  %v455_v56 = vld [vmem:[%s767_s6] ss:$0 sm:$0xff] }
 0x145   :  { %v143_v59 = vmul.f32 %v511_v58, %v652_v49  ;;  %474 = vmatmul.mubr.msk.bf16.vlgmr.msra.gmra.mrb[0].mxu0 %vm38_vm0, %v175_v57  ;;  %v171_v60 = vadd.f32 %v449_v20, %v156_v29  ;;  %v512_v49 = vmov 0  }
 0x146   :  { %v172_v39 = vadd.f32 %v449_v20, %v157_v61  ;;  %494 = vset.pattern.permute.xlu1 %v512_v49  ;;  %493 = vset.pattern.permute.xlu0 %v512_v49 }
 0x147   :  { %v176_v62 = vpack.c.bf16 %v171_v60, %v170_v38  ;;  %v158_v63 = vmul.f32 %v448_v31, %v143_v59  ;;  %387 = vperm.xlu1 %494, %v373_v6   ;;  %382 = vperm.xlu0 %493, %v372_v10  }
 0x149   :  { %477 = vmatprep.mubr.msk.bf16.mxu0 %vm38_vm0, %v176_v62  ;;  %v173_v3 = vadd.f32 %v449_v20, %v158_v63 }
 0x14b   :  { %v177_v4 = vpack.c.bf16 %v173_v3, %v172_v39  ;;  %392 = vperm.xlu1 %494, %v374_v7  }
 0x14d   :  { %478 = vmatmul.mubr.msk.bf16.gmra.mrb[4].mxu0 %vm38_vm0, %v177_v4 }
 0x14f   :  { %397 = vperm.xlu1 %494, %v375_v11  }
 0x153   :  { %402 = vperm.xlu1 %494, %v376_v14  }
 0x157   :  { %407 = vperm.xlu1 %494, %v377_v15  }
 0x15b   :  { %412 = vperm.xlu1 %494, %v378_v16  }
 0x15f   :  { %417 = vperm.xlu1 %494, %v379_v17  }
 0x1c6   :  { %v388_v21 = vpop.permute.xlu1 %387  ;;  %v383_v38 = vpop.permute.xlu0 %382 }
 0x1ca   :  { %v393_v53 = vpop.permute.xlu1 %392 }
 0x1ce   :  { %v398_v54 = vpop.permute.xlu1 %397 }
 0x1d2   :  { %v403_v55 = vpop.permute.xlu1 %402 }
 0x1d6   :  { %v408_v57 = vpop.permute.xlu1 %407 }
 0x1da   :  { %v413_v6 = vpop.permute.xlu1 %412 }
 0x218   :  { %v475_v19 = vpop.f32.mrb[0].mxu0 }
 0x219   :  { %v245_v22 = vadd.f32 %v475_v19, %v450_v18  ;;  %v236_v23 = vpop.f32.mrb[1].mxu0  ;;  %v418_v19 = vpop.permute.xlu1 %417 }
 0x21a   :  { %v237_v24 = vadd.f32 %v450_v18, %v236_v23  ;;  %v476_v25 = vpop.f32.mrb[2].mxu0 }
 0x21b   :  { %v248_v26 = vadd.f32 %v476_v25, %v450_v18  ;;  %v239_v27 = vpop.f32.mrb[3].mxu0  ;;  %v269_v31 = vmax.f32 %v245_v22, 0.0 }
 0x21c   :  { %v240_v30 = vadd.f32 %v450_v18, %v239_v27  ;;  %v267_v33 = vmax.f32 %v237_v24, 0.0 }
 0x21d   :  { %v270_v32 = vmax.f32 %v248_v26, 0.0 }
 0x21e   :  { %v268_v34 = vmax.f32 %v240_v30, 0.0 }
 0x21f   :  { %v276_v35 = vpack.c.bf16 %v270_v32, %v269_v31 }
 0x220   :  { %v479_v36 = vpop.f32.mrb[4].mxu0  ;;  %v275_v37 = vpack.c.bf16 %v268_v34, %v267_v33 }
 0x221   :  { %v261_v20 = vadd.f32 %v479_v36, %v450_v18  ;;  %v252_v40 = vpop.f32.mrb[5].mxu0 }
 0x222   :  { %v253_v41 = vadd.f32 %v450_v18, %v252_v40  ;;  %v480_v42 = vpop.f32.mrb[6].mxu0  ;;  %483 = vmatprep.mubr.msk.bf16.mxu1 %vm294_vm2, %v275_v37 }
 0x223   :  { %v264_v43 = vadd.f32 %v480_v42, %v450_v18  ;;  %v255_v44 = vpop.f32.mrb[7].mxu0  ;;  %484 = vmatmul.mubr.msk.bf16.vlgmr.msra.gmra.mrb[0].mxu1 %vm294_vm2, %v276_v35  ;;  %v273_v46 = vmax.f32 %v261_v20, 0.0 }
 0x224   :  { %v256_v45 = vadd.f32 %v450_v18, %v255_v44  ;;  %v271_v50 = vmax.f32 %v253_v41, 0.0 }
 0x225   :  { %v274_v47 = vmax.f32 %v264_v43, 0.0 }
 0x226   :  { %v272_v28 = vmax.f32 %v256_v45, 0.0 }
 0x227   :  { %v278_v51 = vpack.c.bf16 %v274_v47, %v273_v46 }
 0x228   :  { %v277_v52 = vpack.c.bf16 %v272_v28, %v271_v50 }
 0x22a   :  { %487 = vmatprep.mubr.msk.bf16.mxu1 %vm294_vm2, %v277_v52 }
 0x22b   :  { %488 = vmatmul.mubr.msk.bf16.gmra.mrb[4].mxu1 %vm294_vm2, %v278_v51 }
 0x2f6   :  { %v485_v29 = vpop.f32.mrb[0].mxu1 }
 0x2f7   :  { %v350_v58 = vadd.f32 %v485_v29, %v455_v56  ;;  %v341_v59 = vpop.f32.mrb[1].mxu1 }
 0x2f8   :  { %v342_v60 = vadd.f32 %v455_v56, %v341_v59  ;;  %v486_v61 = vpop.f32.mrb[2].mxu1 }
 0x2f9   :  { %v422_v62 = vmul.f32 %v393_v53, %v350_v58  ;;  %v353_v63 = vadd.f32 %v486_v61, %v455_v56  ;;  %v344_v39 = vpop.f32.mrb[3].mxu1 }
 0x2fa   :  { %v345_v3 = vadd.f32 %v455_v56, %v344_v39  ;;  %v420_v4 = vmul.f32 %v383_v38, %v342_v60 }
 0x2fb   :  { %v430_v48 = vadd.f32 %v422_v62, %v566_v1  ;;  %v423_v49 = vmul.f32 %v398_v54, %v353_v63 }
 0x2fc   :  { %v421_v7 = vmul.f32 %v388_v21, %v345_v3  ;;  %v428_v10 = vadd.f32 %v420_v4, %v561_v0 }
 0x2fd   :  { %438 = vst.msk [vmem:[%s768_s8 + $0x10] sm:$0xff] %vm38_vm0, %v430_v48  ;;  %v431_v11 = vadd.f32 %v423_v49, %v580_v5 }
 0x2fe   :  { %v429_v14 = vadd.f32 %v421_v7, %v571_v2  ;;  %436 = vst.msk [vmem:[%s768_s8] sm:$0xff] %vm38_vm0, %v428_v10  ;;  %v489_v1 = vpop.f32.mrb[4].mxu1 }
 0x2ff   :  { %439 = vst.msk [vmem:[%s768_s8 + $0x18] sm:$0xff] %vm38_vm0, %v431_v11  ;;  %v366_v0 = vadd.f32 %v489_v1, %v455_v56  ;;  %v357_v15 = vpop.f32.mrb[5].mxu1 }
 0x300   :  { %437 = vst.msk [vmem:[%s768_s8 + $0x8] sm:$0xff] %vm38_vm0, %v429_v14  ;;  %v358_v5 = vadd.f32 %v455_v56, %v357_v15  ;;  %v490_v2 = vpop.f32.mrb[6].mxu1 }
 0x301   :  { %v426_v16 = vmul.f32 %v413_v6, %v366_v0  ;;  %v369_v17 = vadd.f32 %v490_v2, %v455_v56  ;;  %v360_v18 = vpop.f32.mrb[7].mxu1 }
 0x302   :  { %v424_v22 = vmul.f32 %v403_v55, %v358_v5  ;;  %v361_v23 = vadd.f32 %v455_v56, %v360_v18 }
 0x303   :  { %v434_v24 = vadd.f32 %v426_v16, %v603_v12  ;;  %v427_v25 = vmul.f32 %v418_v19, %v369_v17 }
 0x304   :  { %v432_v26 = vadd.f32 %v424_v22, %v589_v8  ;;  %v425_v27 = vmul.f32 %v408_v57, %v361_v23 }
 0x305   :  { %442 = vst.msk [vmem:[%s768_s8 + $0x30] sm:$0xff] %vm38_vm0, %v434_v24  ;;  %v435_v30 = vadd.f32 %v427_v25, %v608_v13 }
 0x306   :  { %440 = vst.msk [vmem:[%s768_s8 + $0x20] sm:$0xff] %vm38_vm0, %v432_v26  ;;  %v433_v31 = vadd.f32 %v425_v27, %v594_v9 }
 0x307   :  { %443 = vst.msk [vmem:[%s768_s8 + $0x38] sm:$0xff] %vm38_vm0, %v435_v30 }
 0x308   :  { %441 = vst.msk [vmem:[%s768_s8 + $0x28] sm:$0xff] %vm38_vm0, %v433_v31 }

// kernel: evoformer_stack.83
= control target key start
LH: loop header
LB: loop body
LE: loop exit
PB: predicated region body
PF: predicated region fallthrough
CT: control target
= control target key end

     0   :  { %vm39_vm0 = vcmask 64512   ;;  %s791_s0 = inlined_call_operand.vmem [shape: f32[64,8], index: 0, kind: input, shape index: {}]   ;;  %s792_s1 = inlined_call_operand.vmem [shape: f32[1,8], index: 1, kind: input, shape index: {}]   ;;  %s793_s2 = inlined_call_operand.vmem [shape: f32[1,8], index: 2, kind: input, shape index: {}]   ;;  %s794_s3 = inlined_call_operand.vmem [shape: bf16[8,16], index: 3, kind: input, shape index: {}]   ;;  %s795_s4 = inlined_call_operand.vmem [shape: f32[1,16], index: 4, kind: input, shape index: {}]   ;;  %s796_s5 = inlined_call_operand.vmem [shape: bf16[16,8], index: 5, kind: input, shape index: {}]   ;;  %s797_s6 = inlined_call_operand.vmem [shape: f32[1,8], index: 6, kind: input, shape index: {}]   ;;  %s798_s7 = inlined_call_operand.vmem [shape: f32[64,1], index: 7, kind: input, shape index: {}]   ;;  %s799_s8 = inlined_call_operand.hbm [shape: f32[64,8], index: 8, kind: output, shape index: {}]  }
   0x1   :  { %v604_v0 = vld [vmem:[%s791_s0] sm:$0xff]  ;;  %v609_v1 = vld [vmem:[%s791_s0 + $0x10] sm:$0xff]  ;;  %v614_v2 = vld [vmem:[%s791_s0 + $0x8] sm:$0xff] }
   0x2   :  { %v40_v3 = vsel %vm39_vm0, %v604_v0, 0.0  ;;  %v46_v4 = vsel %vm39_vm0, %v609_v1, 0.0  ;;  %v623_v5 = vld [vmem:[%s791_s0 + $0x18] sm:$0xff]  ;;  %v43_v6 = vsel %vm39_vm0, %v614_v2, 0.0  ;;  %v632_v8 = vld [vmem:[%s791_s0 + $0x20] sm:$0xff]  ;;  %v637_v9 = vld [vmem:[%s791_s0 + $0x28] sm:$0xff] }
   0x3   :  { %41 = vadd.xlane.f32.xlu0 %v40_v3  ;;  %47 = vadd.xlane.f32.xlu1 %v46_v4  ;;  %v49_v7 = vsel %vm39_vm0, %v623_v5, 0.0 }
   0x4   :  { %13 = vsyncpa [#allocation3], 0  ;;  %v52_v10 = vsel %vm39_vm0, %v632_v8, 0.0  ;;  %v55_v11 = vsel %vm39_vm0, %v637_v9, 0.0  ;;  %v646_v12 = vld [vmem:[%s791_s0 + $0x30] sm:$0xff]  ;;  %v651_v13 = vld [vmem:[%s791_s0 + $0x38] sm:$0xff] }
   0x5   :  { %v58_v14 = vsel %vm39_vm0, %v646_v12, 0.0  ;;  %v61_v15 = vsel %vm39_vm0, %v651_v13, 0.0  ;;  %v179_v56 = vld [vmem:[%s794_s3] sm:$0xf]  ;;  %vm199_vm1 = vcmask 1043456   ;;  %vm295_vm2 = vcmask 130048  }
   0x6   :  { %504 = vmatprep.subr.msk.bf16.mxu0 %vm199_vm1, %v179_v56  ;;  %v201_v57 = vsel %vm199_vm1, %v179_v56, 0 }
   0x7   :  { %44 = vadd.xlane.f32.xlu0 %v43_v6  ;;  %50 = vadd.xlane.f32.xlu1 %v49_v7 }
   0x8   :  { %485 = vmatpush3.bf16.msra.mxu0 %v201_v57 }
   0xb   :  { %53 = vadd.xlane.f32.xlu0 %v52_v10  ;;  %56 = vadd.xlane.f32.xlu1 %v55_v11 }
   0xf   :  { %59 = vadd.xlane.f32.xlu0 %v58_v14  ;;  %62 = vadd.xlane.f32.xlu1 %v61_v15 }
  0x90   :  { %v42_v16 = vpop.xlane.xlu0 %41  ;;  %v48_v17 = vpop.xlane.xlu1 %47 }
  0x91   :  { %v65_v18 = vmul.f32 0.125, %v42_v16  ;;  %v67_v19 = vmul.f32 0.125, %v48_v17 }
  0x93   :  { %v658_v20 = vsub.f32 %v604_v0, %v65_v18  ;;  %v661_v21 = vsub.f32 %v609_v1, %v67_v19 }
  0x94   :  { %v45_v22 = vpop.xlane.xlu0 %44  ;;  %v51_v23 = vpop.xlane.xlu1 %50 }
  0x95   :  { %v66_v24 = vmul.f32 0.125, %v45_v22  ;;  %v68_v25 = vmul.f32 0.125, %v51_v23  ;;  %v81_v26 = vmul.f32 %v658_v20, %v658_v20  ;;  %v83_v27 = vmul.f32 %v661_v21, %v661_v21 }
  0x97   :  { %v668_v28 = vsub.f32 %v614_v2, %v66_v24  ;;  %v671_v29 = vsub.f32 %v623_v5, %v68_v25  ;;  %v89_v30 = vsel %vm39_vm0, %v81_v26, 0.0  ;;  %v95_v33 = vsel %vm39_vm0, %v83_v27, 0.0 }
  0x98   :  { %90 = vadd.xlane.f32.xlu0 %v89_v30  ;;  %v54_v31 = vpop.xlane.xlu0 %53  ;;  %v57_v32 = vpop.xlane.xlu1 %56 }
  0x99   :  { %v69_v34 = vmul.f32 0.125, %v54_v31  ;;  %v70_v35 = vmul.f32 0.125, %v57_v32  ;;  %v82_v36 = vmul.f32 %v668_v28, %v668_v28  ;;  %v84_v37 = vmul.f32 %v671_v29, %v671_v29  ;;  %v461_v31 = vld [vmem:[%s792_s1] ss:$0 sm:$0xff] }
  0x9b   :  { %v680_v38 = vsub.f32 %v632_v8, %v69_v34  ;;  %v683_v39 = vsub.f32 %v637_v9, %v70_v35  ;;  %v92_v40 = vsel %vm39_vm0, %v82_v36, 0.0  ;;  %v98_v43 = vsel %vm39_vm0, %v84_v37, 0.0 }
  0x9c   :  { %96 = vadd.xlane.f32.xlu0 %v95_v33  ;;  %93 = vadd.xlane.f32.xlu1 %v92_v40  ;;  %v60_v41 = vpop.xlane.xlu0 %59  ;;  %v63_v42 = vpop.xlane.xlu1 %62 }
  0x9d   :  { %v71_v44 = vmul.f32 0.125, %v60_v41  ;;  %v72_v45 = vmul.f32 0.125, %v63_v42  ;;  %v85_v46 = vmul.f32 %v680_v38, %v680_v38  ;;  %v86_v47 = vmul.f32 %v683_v39, %v683_v39 }
  0x9f   :  { %v692_v48 = vsub.f32 %v646_v12, %v71_v44  ;;  %v695_v49 = vsub.f32 %v651_v13, %v72_v45  ;;  %v101_v50 = vsel %vm39_vm0, %v85_v46, 0.0  ;;  %v104_v51 = vsel %vm39_vm0, %v86_v47, 0.0 }
  0xa0   :  { %99 = vadd.xlane.f32.xlu1 %v98_v43  ;;  %102 = vadd.xlane.f32.xlu0 %v101_v50 }
  0xa1   :  { %v87_v52 = vmul.f32 %v692_v48, %v692_v48  ;;  %v88_v53 = vmul.f32 %v695_v49, %v695_v49 }
  0xa3   :  { %v107_v54 = vsel %vm39_vm0, %v87_v52, 0.0  ;;  %v110_v55 = vsel %vm39_vm0, %v88_v53, 0.0 }
  0xa4   :  { %105 = vadd.xlane.f32.xlu1 %v104_v51  ;;  %108 = vadd.xlane.f32.xlu0 %v107_v54 }
  0xa8   :  { %111 = vadd.xlane.f32.xlu1 %v110_v55 }
 0x125   :  { %v91_v58 = vpop.xlane.xlu0 %90 }
 0x126   :  { %v113_v59 = vmul.f32 0.125, %v91_v58 }
 0x128   :  { %v121_v60 = vadd.f32 1e-05, %v113_v59 }
 0x129   :  { %v94_v61 = vpop.xlane.xlu1 %93  ;;  %v97_v62 = vpop.xlane.xlu0 %96 }
 0x12a   :  { %512 = vrsqrt.f32 %v121_v60  ;;  %v114_v63 = vmul.f32 0.125, %v94_v61  ;;  %v115_v3 = vmul.f32 0.125, %v97_v62 }
 0x12c   :  { %v122_v4 = vadd.f32 1e-05, %v114_v63  ;;  %v123_v6 = vadd.f32 1e-05, %v115_v3 }
 0x12d   :  { %v100_v7 = vpop.xlane.xlu1 %99  ;;  %v103_v10 = vpop.xlane.xlu0 %102 }
 0x12e   :  { %514 = vrsqrt.f32 %v122_v4  ;;  %v116_v11 = vmul.f32 0.125, %v100_v7  ;;  %v117_v14 = vmul.f32 0.125, %v103_v10  ;;  %v373_v7 = vld [vmem:[%s798_s7] sm:$0xff]  ;;  %v375_v10 = vld [vmem:[%s798_s7 + $0x10] sm:$0xff] }
 0x12f   :  { %516 = vrsqrt.f32 %v123_v6  ;;  %v552_v6 = vmov 0  }
 0x130   :  { %v124_v15 = vadd.f32 1e-05, %v116_v11  ;;  %v125_v16 = vadd.f32 1e-05, %v117_v14  ;;  %510 = vset.pattern.permute.xlu1 %v552_v6  ;;  %509 = vset.pattern.permute.xlu0 %v552_v6  ;;  %v376_v11 = vld [vmem:[%s798_s7 + $0x18] sm:$0xff]  ;;  %v377_v14 = vld [vmem:[%s798_s7 + $0x20] sm:$0xff] }
 0x131   :  { %v106_v17 = vpop.xlane.xlu1 %105  ;;  %v109_v18 = vpop.xlane.xlu0 %108  ;;  %383 = vperm.xlu0 %509, %v373_v7  }
 0x132   :  { %518 = vrsqrt.f32 %v124_v15  ;;  %v118_v19 = vmul.f32 0.125, %v106_v17  ;;  %v119_v22 = vmul.f32 0.125, %v109_v18  ;;  %v378_v15 = vld [vmem:[%s798_s7 + $0x28] sm:$0xff]  ;;  %v380_v17 = vld [vmem:[%s798_s7 + $0x38] sm:$0xff]  ;;  %v463_v18 = vld [vmem:[%s795_s4] ss:$0 sm:$0xff] }
 0x133   :  { %520 = vrsqrt.f32 %v125_v16  ;;  %v379_v16 = vld [vmem:[%s798_s7 + $0x30] sm:$0xff] }
 0x134   :  { %v513_v23 = vpop.eup %512  ;;  %v126_v24 = vadd.f32 1e-05, %v118_v19  ;;  %v127_v25 = vadd.f32 1e-05, %v119_v22 }
 0x135   :  { %v112_v26 = vpop.xlane.xlu1 %111  ;;  %v137_v27 = vmul.f32 %v513_v23, %v658_v20  ;;  %v462_v20 = vld [vmem:[%s793_s2] ss:$0 sm:$0xff] }
 0x136   :  { %522 = vrsqrt.f32 %v126_v24  ;;  %v120_v30 = vmul.f32 0.125, %v112_v26 }
 0x137   :  { %524 = vrsqrt.f32 %v127_v25  ;;  %v152_v36 = vmul.f32 %v461_v31, %v137_v27 }
 0x138   :  { %v515_v32 = vpop.eup %514  ;;  %v128_v33 = vadd.f32 1e-05, %v120_v30 }
 0x139   :  { %v517_v34 = vpop.eup %516  ;;  %v138_v35 = vmul.f32 %v515_v32, %v668_v28  ;;  %v167_v44 = vadd.f32 %v462_v20, %v152_v36 }
 0x13a   :  { %v139_v37 = vmul.f32 %v517_v34, %v661_v21  ;;  %526 = vrsqrt.f32 %v128_v33 }
 0x13b   :  { %v153_v40 = vmul.f32 %v461_v31, %v138_v35 }
 0x13c   :  { %v519_v41 = vpop.eup %518  ;;  %v154_v46 = vmul.f32 %v461_v31, %v139_v37 }
 0x13d   :  { %v521_v42 = vpop.eup %520  ;;  %v140_v43 = vmul.f32 %v519_v41, %v671_v29  ;;  %v168_v45 = vadd.f32 %v462_v20, %v153_v40 }
 0x13e   :  { %v141_v47 = vmul.f32 %v521_v42, %v680_v38  ;;  %v169_v53 = vadd.f32 %v462_v20, %v154_v46 }
 0x13f   :  { %v175_v50 = vpack.c.bf16 %v168_v45, %v167_v44  ;;  %v155_v28 = vmul.f32 %v461_v31, %v140_v43 }
 0x140   :  { %v523_v51 = vpop.eup %522  ;;  %v156_v55 = vmul.f32 %v461_v31, %v141_v47 }
 0x141   :  { %v525_v52 = vpop.eup %524  ;;  %v142_v21 = vmul.f32 %v523_v51, %v683_v39  ;;  %486 = vmatprep.mubr.msk.bf16.mxu0 %vm39_vm0, %v175_v50  ;;  %v170_v54 = vadd.f32 %v462_v20, %v155_v28 }
 0x142   :  { %v143_v56 = vmul.f32 %v525_v52, %v692_v48  ;;  %v171_v38 = vadd.f32 %v462_v20, %v156_v55  ;;  %v511_v48 = vld [vmem:[%s796_s5] sm:$0xff]  }
 0x143   :  { %v176_v57 = vpack.c.bf16 %v170_v54, %v169_v53  ;;  %v157_v29 = vmul.f32 %v461_v31, %v142_v21  ;;  %494 = vmatprep.subr.bf16.mxu1 %v511_v48 }
 0x144   :  { %v527_v58 = vpop.eup %526  ;;  %v158_v61 = vmul.f32 %v461_v31, %v143_v56  ;;  %495 = vmatpush3.bf16.msra.mxu1 %v511_v48  ;;  %v468_v56 = vld [vmem:[%s797_s6] ss:$0 sm:$0xff]  ;;  %s553_s6 = smov [#allocation2]  }
 0x145   :  { %v144_v59 = vmul.f32 %v527_v58, %v695_v49  ;;  %487 = vmatmul.mubr.msk.bf16.vlgmr.msra.gmra.mrb[0].mxu0 %vm39_vm0, %v176_v57  ;;  %v172_v60 = vadd.f32 %v462_v20, %v157_v29  ;;  %v374_v49 = vld [vmem:[%s798_s7 + $0x8] sm:$0xff]  ;;  %s450_s20 = sshll.u32 %s553_s6, 4  ;;  %s451_s20 = int_to_ptr.vmem [resolvable:$true] %s450_s20 }
 0x146   :  { %v173_v39 = vadd.f32 %v462_v20, %v158_v61  ;;  %388 = vperm.xlu1 %510, %v374_v49   ;;  %s528_s0 = scalar_lea.vmem %s451_s20, 1024  ;;  %p533_p1 = scmp.lt.s32.totalorder %s451_s20, %s451_s20 }
 0x147   :  { %v177_v62 = vpack.c.bf16 %v172_v60, %v171_v38  ;;  %v159_v63 = vmul.f32 %v461_v31, %v144_v59  ;;  %p529_p0 = scmp.ne.s32.totalorder %s451_s20, %s528_s0  ;;  %p534_p2 = scmp.lt.s32.totalorder %s528_s0, %s528_s0 }
 0x149   :  { %490 = vmatprep.mubr.msk.bf16.mxu0 %vm39_vm0, %v177_v62  ;;  %v174_v3 = vadd.f32 %v462_v20, %v159_v63  ;;  %p535_p3 = por %p534_p2, %p533_p1 }
 0x14a   :  { %393 = vperm.xlu1 %510, %v375_v10  }
 0x14b   :  { %v178_v4 = vpack.c.bf16 %v174_v3, %v173_v39  ;;  %p536_p4 = pnand %p535_p3, %p529_p0 }
 0x14d   :  { %491 = vmatmul.mubr.msk.bf16.gmra.mrb[4].mxu0 %vm39_vm0, %v178_v4 }
 0x14e   :  { %398 = vperm.xlu1 %510, %v376_v11  }
 0x152   :  { %403 = vperm.xlu1 %510, %v377_v14  }
 0x156   :  { %408 = vperm.xlu1 %510, %v378_v15  }
 0x15a   :  { %413 = vperm.xlu1 %510, %v379_v16  }
 0x15e   :  { %418 = vperm.xlu1 %510, %v380_v17  }
 0x1b0   :  { %v384_v38 = vpop.permute.xlu0 %383 }
 0x1c5   :  { %v389_v21 = vpop.permute.xlu1 %388 }
 0x1c9   :  { %v394_v53 = vpop.permute.xlu1 %393 }
 0x1cd   :  { %v399_v54 = vpop.permute.xlu1 %398 }
 0x1d1   :  { %v404_v55 = vpop.permute.xlu1 %403 }
 0x1d5   :  { %v409_v57 = vpop.permute.xlu1 %408 }
 0x1d9   :  { %v414_v6 = vpop.permute.xlu1 %413 }
 0x218   :  { %v488_v19 = vpop.f32.mrb[0].mxu0 }
 0x219   :  { %v246_v22 = vadd.f32 %v488_v19, %v463_v18  ;;  %v237_v23 = vpop.f32.mrb[1].mxu0 }
 0x21a   :  { %v238_v24 = vadd.f32 %v463_v18, %v237_v23  ;;  %v489_v25 = vpop.f32.mrb[2].mxu0  ;;  %v419_v23 = vpop.permute.xlu1 %418 }
 0x21b   :  { %v249_v26 = vadd.f32 %v489_v25, %v463_v18  ;;  %v240_v27 = vpop.f32.mrb[3].mxu0  ;;  %v270_v31 = vmax.f32 %v246_v22, 0.0 }
 0x21c   :  { %v241_v30 = vadd.f32 %v463_v18, %v240_v27  ;;  %v268_v33 = vmax.f32 %v238_v24, 0.0 }
 0x21d   :  { %v271_v32 = vmax.f32 %v249_v26, 0.0 }
 0x21e   :  { %v269_v34 = vmax.f32 %v241_v30, 0.0 }
 0x21f   :  { %v277_v35 = vpack.c.bf16 %v271_v32, %v270_v31 }
 0x220   :  { %v492_v36 = vpop.f32.mrb[4].mxu0  ;;  %v276_v37 = vpack.c.bf16 %v269_v34, %v268_v33 }
 0x221   :  { %v262_v20 = vadd.f32 %v492_v36, %v463_v18  ;;  %v253_v40 = vpop.f32.mrb[5].mxu0 }
 0x222   :  { %v254_v41 = vadd.f32 %v463_v18, %v253_v40  ;;  %v493_v42 = vpop.f32.mrb[6].mxu0  ;;  %496 = vmatprep.mubr.msk.bf16.mxu1 %vm295_vm2, %v276_v37 }
 0x223   :  { %v265_v43 = vadd.f32 %v493_v42, %v463_v18  ;;  %v256_v44 = vpop.f32.mrb[7].mxu0  ;;  %497 = vmatmul.mubr.msk.bf16.vlgmr.msra.gmra.mrb[0].mxu1 %vm295_vm2, %v277_v35  ;;  %v274_v46 = vmax.f32 %v262_v20, 0.0 }
 0x224   :  { %v257_v45 = vadd.f32 %v463_v18, %v256_v44  ;;  %v272_v50 = vmax.f32 %v254_v41, 0.0 }
 0x225   :  { %v275_v47 = vmax.f32 %v265_v43, 0.0 }
 0x226   :  { %v273_v28 = vmax.f32 %v257_v45, 0.0 }
 0x227   :  { %v279_v51 = vpack.c.bf16 %v275_v47, %v274_v46 }
 0x228   :  { %v278_v52 = vpack.c.bf16 %v273_v28, %v272_v50 }
 0x22a   :  { %500 = vmatprep.mubr.msk.bf16.mxu1 %vm295_vm2, %v278_v52 }
 0x22b   :  { %501 = vmatmul.mubr.msk.bf16.gmra.mrb[4].mxu1 %vm295_vm2, %v279_v51 }
 0x2f6   :  { %v498_v29 = vpop.f32.mrb[0].mxu1 }
 0x2f7   :  { %v351_v58 = vadd.f32 %v498_v29, %v468_v56  ;;  %v342_v59 = vpop.f32.mrb[1].mxu1 }
 0x2f8   :  { %v343_v60 = vadd.f32 %v468_v56, %v342_v59  ;;  %v499_v61 = vpop.f32.mrb[2].mxu1 }
 0x2f9   :  { %v423_v62 = vmul.f32 %v394_v53, %v351_v58  ;;  %v354_v63 = vadd.f32 %v499_v61, %v468_v56  ;;  %v345_v39 = vpop.f32.mrb[3].mxu1 }
 0x2fa   :  { %v346_v3 = vadd.f32 %v468_v56, %v345_v39  ;;  %v421_v4 = vmul.f32 %v384_v38, %v343_v60 }
 0x2fb   :  { %v431_v48 = vadd.f32 %v423_v62, %v609_v1  ;;  %v424_v49 = vmul.f32 %v399_v54, %v354_v63 }
 0x2fc   :  { %v422_v7 = vmul.f32 %v389_v21, %v346_v3  ;;  %v429_v10 = vadd.f32 %v421_v4, %v604_v0 }
 0x2fd   :  { %439 = vst.msk [vmem:[#allocation2 + $0x10] sm:$0xff] %vm39_vm0, %v431_v48  ;;  %v432_v11 = vadd.f32 %v424_v49, %v623_v5 }
 0x2fe   :  { %v430_v14 = vadd.f32 %v422_v7, %v614_v2  ;;  %437 = vst.msk [vmem:[#allocation2] sm:$0xff] %vm39_vm0, %v429_v10  ;;  %v502_v15 = vpop.f32.mrb[4].mxu1 }
 0x2ff   :  { %440 = vst.msk [vmem:[#allocation2 + $0x18] sm:$0xff] %vm39_vm0, %v432_v11  ;;  %v367_v16 = vadd.f32 %v502_v15, %v468_v56  ;;  %v358_v17 = vpop.f32.mrb[5].mxu1 }
 0x300   :  { %438 = vst.msk [vmem:[#allocation2 + $0x8] sm:$0xff] %vm39_vm0, %v430_v14  ;;  %v359_v1 = vadd.f32 %v468_v56, %v358_v17  ;;  %v503_v18 = vpop.f32.mrb[6].mxu1 }
 0x301   :  { %v427_v19 = vmul.f32 %v414_v6, %v367_v16  ;;  %v370_v22 = vadd.f32 %v503_v18, %v468_v56  ;;  %v361_v0 = vpop.f32.mrb[7].mxu1 }
 0x302   :  { %v425_v24 = vmul.f32 %v404_v55, %v359_v1  ;;  %v362_v25 = vadd.f32 %v468_v56, %v361_v0 }
 0x303   :  { %v435_v5 = vadd.f32 %v427_v19, %v646_v12  ;;  %v428_v2 = vmul.f32 %v419_v23, %v370_v22 }
 0x304   :  { %v433_v26 = vadd.f32 %v425_v24, %v632_v8  ;;  %v426_v27 = vmul.f32 %v409_v57, %v362_v25 }
 0x305   :  { %443 = vst.msk [vmem:[#allocation2 + $0x30] sm:$0xff] %vm39_vm0, %v435_v5  ;;  %v436_v30 = vadd.f32 %v428_v2, %v651_v13 }
 0x306   :  { %441 = vst.msk [vmem:[#allocation2 + $0x20] sm:$0xff] %vm39_vm0, %v433_v26  ;;  %v434_v31 = vadd.f32 %v426_v27, %v637_v9 }
 0x307   :  { %444 = vst.msk [vmem:[#allocation2 + $0x38] sm:$0xff] %vm39_vm0, %v436_v30 }
 0x308   :  { %442 = vst.msk [vmem:[#allocation2 + $0x28] sm:$0xff] %vm39_vm0, %v434_v31 }
 0x309   :  { %539 = shalt.err (!%p536_p4)
}
 0x30a   :  { %s540_s22 = scalar_lea.hbm %s799_s8, 1024 }
 0x30b   :  { %p541_p5 = scmp.ne.s32.totalorder %s799_s8, %s540_s22  ;;  %p544_p6 = scmp.lt.u32.totalorder %s540_s22, %s799_s8 }
 0x30d   :  { %p546_p7 = pnand %p544_p6, %p541_p5 }
 0x30f   :  { %549 = shalt.err (!%p546_p7)
}
 0x310   :  { %s554_s25 = smov 128   ;;  %s555_s26 = smov 8  }
 0x311   :  { %456 = dma.vmem_to_hbm [thread:$0]  %s451_s20, 1024, %s799_s8, [#allocation3], %s554_s25, %s554_s25, %s555_s26  }
 0x312   :  { %550 = dma.done.wait [#allocation3], 1024  }
 0x313   :  { %551 = vsyncadd [#allocation3], 4294966272 }
 0x314   :  { %460 = vsyncpa [#allocation3], 1 }

</bundles_post_ra>
